<compile_context>
chip_gen: v7x
topology: tpu7x:2x2x1
jax: 0.10.0
libtpu: 0.0.40
codegen_flags: <defaults>
</compile_context>

<pallas_src>
import numpy as np
import jax
import jax.numpy as jnp
from jax.experimental import pallas as pl
from jax.experimental.pallas import tpu as pltpu

LANE = 128  # contribs / scores are padded to a lane-dense 128-wide slab


def _localization_kernel(attr_ref, poolw_ref, hmask_ref, contrib_ref, score_ref):
    """A block of bb multi-images per grid step.

    attr_ref   : (bb, N, C, H, W) native dtype (upcast to f32 on load)
    poolw_ref  : (W, 128) f32  poolw[w, k] = 1/s^2 if w//s == k//g and k < g*g else 0
    hmask_ref  : (H, 128) f32  hmask[h, k] = 1     if h//s == k%g  and k < g*g else 0
    contrib_ref: (bb, N, 128) f32  normalized contribs; lanes >= g*g stay 0
    score_ref  : (bb, 1, 128) f32  score[b, i] = contribs[b, i, i] at lane i; rest 0
    """
    # --- channel sum + clamp(min=0):  attributions.sum(1).clamp(0) ---
    a = jnp.maximum(jnp.sum(attr_ref[...].astype(jnp.float32), axis=2), 0.0)  # (bb,N,H,W)
    bb, n, h, w = a.shape

    # --- avg pool over W, scattered into column-major lanes (k = wb*g + hb) ---
    # Single MXU matmul over all bb*N*H rows (lane contraction), f32 accumulate.
    a2d = a.reshape(bb * n * h, w)                                   # merge major dims
    t = jnp.dot(a2d, poolw_ref[...],
                preferred_element_type=jnp.float32,
                precision=jax.lax.Precision.HIGHEST)                 # (bb*N*H, 128)

    # --- avg pool over H: mask rows belonging to cell hb(k), one sublane reduce ---
    hmask = hmask_ref[...]                                           # (H, 128)
    t3 = t.reshape(bb * n, h, LANE)
    contribs = jnp.sum(t3 * hmask[None, :, :], axis=1)               # (bb*N, 128)

    # --- normalize: where(total * contribs > 0, contribs / total, 0) ---
    # Lanes >= g*g are exactly 0 (poolw/hmask zero them), so the full-lane sum
    # equals the g*g-cell total.
    total = jnp.sum(contribs, axis=-1, keepdims=True)                # (bb*N, 1)
    inv_total = 1.0 / total                                          # one divide per row
    normed = jnp.where(total * contribs > 0.0, contribs * inv_total,
                       jnp.zeros_like(contribs))
    normed3 = normed.reshape(bb, n, LANE)
    contrib_ref[...] = normed3

    # --- localization score = contribs[i, i], folded into the kernel ---
    n_iota = jax.lax.broadcasted_iota(jnp.int32, (n, LANE), 0)
    lane_iota = jax.lax.broadcasted_iota(jnp.int32, (n, LANE), 1)
    diag_mask = (n_iota == lane_iota).astype(jnp.float32)            # (N, 128)
    score_ref[...] = jnp.sum(normed3 * diag_mask[None, :, :],
                             axis=1, keepdims=True)                  # (bb, 1, 128)


def _choose_batch_block(b, per_image_bytes, n, hh):
    """Largest divisor of b whose block (input + matmul intermediate) stays small."""
    in_budget = 2 << 20      # per-block input bytes (double-buffered by Pallas)
    t_budget = 4 << 20       # (bb*N*H, 128) f32 intermediate
    bb = 1
    for d in range(1, b + 1):
        if b % d != 0:
            continue
        if d * per_image_bytes <= in_budget and d * n * hh * LANE * 4 <= t_budget:
            bb = d
    return bb


def localization_contribs_and_scores(attributions, single_shape):
    """attributions: (B, N, C, H, W), H == W == g * single_shape, N == g*g.

    Returns (contribs (B, N, g*g), scores (B, N)) exactly as the PyTorch metric
    computes them (avg-pooled, transposed-flattened, sum-normalized, diagonal).
    """
    b, n, c, hh, ww = attributions.shape
    assert hh == ww and hh % single_shape == 0
    g = hh // single_shape
    gg = g * g
    assert gg == n, "multi_image_size must match the spatial grid"
    assert gg <= LANE

    s = single_shape
    # Constant pooling / selection matrices built once on host (f32, lane-dense).
    k = np.arange(LANE)
    wb, hb, valid = k // g, k % g, k < gg
    poolw = (((np.arange(ww)[:, None] // s) == wb[None, :]) & valid[None, :])
    poolw = poolw.astype(np.float32) / float(s * s)                  # (W, 128)
    hmask = ((((np.arange(hh)[:, None] // s) == hb[None, :]) & valid[None, :])
             .astype(np.float32))                                    # (H, 128)

    per_image_bytes = n * c * hh * ww * attributions.dtype.itemsize
    bb = _choose_batch_block(b, per_image_bytes, n, hh)

    contribs_pad, scores_pad = pl.pallas_call(
        _localization_kernel,
        out_shape=(jax.ShapeDtypeStruct((b, n, LANE), jnp.float32),
                   jax.ShapeDtypeStruct((b, 1, LANE), jnp.float32)),
        grid_spec=pltpu.PrefetchScalarGridSpec(
            num_scalar_prefetch=0,
            grid=(b // bb,),
            in_specs=[
                # native dtype; bb multi-images per grid step
                pl.BlockSpec((bb, n, c, hh, ww), lambda i: (i, 0, 0, 0, 0)),
                # constant blocks: same block index every step -> stay resident
                pl.BlockSpec((ww, LANE), lambda i: (0, 0)),
                pl.BlockSpec((hh, LANE), lambda i: (0, 0)),
            ],
            out_specs=[
                pl.BlockSpec((bb, n, LANE), lambda i: (i, 0, 0)),
                pl.BlockSpec((bb, 1, LANE), lambda i: (i, 0, 0)),
            ],
        ),
        compiler_params=pltpu.CompilerParams(
            dimension_semantics=("parallel",),
            vmem_limit_bytes=32 * 1024 * 1024,
        ),
    )(attributions, jnp.asarray(poolw), jnp.asarray(hmask))

    return contribs_pad[:, :, :gg], scores_pad[:, 0, :n]


def localization_scores(attributions, single_shape):
    """Single multi-image convenience wrapper: attributions (N, C, H, W)."""
    contribs, scores = localization_contribs_and_scores(attributions[None],
                                                        single_shape)
    return contribs[0], scores[0]


def _reference(attributions, single_shape):
    """Pure-JAX reference mirroring the PyTorch code line by line (batched)."""
    b, n, c, hh, ww = attributions.shape
    s = single_shape
    g = hh // s
    a = jnp.maximum(jnp.sum(attributions.astype(jnp.float32), axis=2), 0.0)   # (B,N,H,W)
    pooled = a.reshape(b, n, g, s, g, s).mean(axis=(3, 5))                     # (B,N,g,g)
    contribs = jnp.transpose(pooled, (0, 1, 3, 2)).reshape(b, n, g * g)        # permute+flatten
    total = jnp.sum(contribs, axis=-1, keepdims=True)
    contribs = jnp.where(total * contribs > 0.0, contribs / total,
                         jnp.zeros_like(contribs))
    scores = jnp.diagonal(contribs, axis1=1, axis2=2)
    return contribs, scores


if __name__ == "__main__":
    # Synthetic setup consistent with the module:
    #   multi_image_size = 4 (2x2 grid), single image 16x16, channels = 3
    #   => attribution maps are 32x32; batch = 8 multi-images per kernel call.
    multi_image_size = 4
    channels = 3
    single_shape = 16
    batch = 8
    g = int(np.sqrt(multi_image_size))
    H = W = single_shape * g

    key = jax.random.PRNGKey(0)
    # Shift so negatives exist -> exercises clamp(0) and the where() branch.
    attributions = jax.random.normal(
        key, (batch, multi_image_size, channels, H, W), dtype=jnp.float32) - 0.25

    contribs, scores = localization_contribs_and_scores(attributions, single_shape)
    contribs = jax.block_until_ready(contribs)
    scores = jax.block_until_ready(scores)

    ref_contribs, ref_scores = _reference(attributions, single_shape)
    np.testing.assert_allclose(np.asarray(contribs), np.asarray(ref_contribs),
                               rtol=1e-4, atol=1e-5)
    np.testing.assert_allclose(np.asarray(scores), np.asarray(ref_scores),
                               rtol=1e-4, atol=1e-5)
    assert contribs.shape == (batch, multi_image_size, multi_image_size)
    assert scores.shape == (batch, multi_image_size)

    # TODO(synk): model forward / captum attribution generation, dataloader
    # confidence sorting, multi-image assembly, and image/Histogram logging are
    # host-side orchestration with no Pallas equivalent.
    print("KERNEL_OK")
</pallas_src>

<mosaic_0001>
module attributes {stable_mosaic.version = 11 : i64} {
  func.func @_localization_kernel(%arg0: i32, %arg1: memref<8x4x3x32x32xf32, #tpu.memory_space<vmem>>, %arg2: memref<32x128xf32, #tpu.memory_space<vmem>>, %arg3: memref<32x128xf32, #tpu.memory_space<vmem>>, %arg4: memref<8x4x128xf32, #tpu.memory_space<vmem>>, %arg5: memref<8x1x128xf32, #tpu.memory_space<vmem>>) attributes {dimension_semantics = [#tpu.dimension_semantics<parallel>], iteration_bounds = array<i64: 1>, scalar_prefetch = 0 : i64, scratch_operands = 0 : i64, tpu.core_type = #tpu.core_type<tc>, window_params = [{transform_indices = @transform_0, window_bounds = array<i64: 8, 4, 3, 32, 32>}, {pipeline_mode = #tpu.pipeline_mode<synchronous>, transform_indices = @transform_1, window_bounds = array<i64: 32, 128>}, {pipeline_mode = #tpu.pipeline_mode<synchronous>, transform_indices = @transform_2, window_bounds = array<i64: 32, 128>}, {transform_indices = @transform_3, window_bounds = array<i64: 8, 4, 128>}, {transform_indices = @transform_4, window_bounds = array<i64: 8, 1, 128>}]} {
    %c0 = arith.constant 0 : index
    %c0_0 = arith.constant 0 : index
    %c0_1 = arith.constant 0 : index
    %c0_2 = arith.constant 0 : index
    %c0_3 = arith.constant 0 : index
    %0 = vector.load %arg1[%c0, %c0_0, %c0_1, %c0_2, %c0_3] : memref<8x4x3x32x32xf32, #tpu.memory_space<vmem>>, vector<8x4x3x32x32xf32>
    %cst = arith.constant dense<0.000000e+00> : vector<8x4x32x32xf32>
    %1 = vector.multi_reduction <add>, %0, %cst [2] : vector<8x4x3x32x32xf32> to vector<8x4x32x32xf32>
    %cst_4 = arith.constant 0.000000e+00 : f32
    %2 = vector.broadcast %cst_4 : f32 to vector<8x4x32x32xf32>
    %3 = arith.maximumf %1, %2 : vector<8x4x32x32xf32>
    %4 = vector.shape_cast %3 : vector<8x4x32x32xf32> to vector<1024x32xf32>
    %c0_5 = arith.constant 0 : index
    %c0_6 = arith.constant 0 : index
    %5 = vector.load %arg2[%c0_5, %c0_6] : memref<32x128xf32, #tpu.memory_space<vmem>>, vector<32x128xf32>
    %cst_7 = arith.constant dense<0.000000e+00> : vector<1024x128xf32>
    %6 = tpu.matmul %4, %5, %cst_7 {dimension_numbers = #tpu.dot_dimension_numbers<[1], [0], [0], [1], [0, 0, 1, 1], [], []>, precision = #tpu.contract_precision<fp32>} : vector<1024x32xf32>, vector<32x128xf32>, vector<1024x128xf32> -> vector<1024x128xf32>
    %c0_8 = arith.constant 0 : index
    %c0_9 = arith.constant 0 : index
    %7 = vector.load %arg3[%c0_8, %c0_9] : memref<32x128xf32, #tpu.memory_space<vmem>>, vector<32x128xf32>
    %8 = vector.shape_cast %6 : vector<1024x128xf32> to vector<32x32x128xf32>
    %9 = vector.shape_cast %7 : vector<32x128xf32> to vector<1x32x128xf32>
    %10 = vector.broadcast %9 : vector<1x32x128xf32> to vector<32x32x128xf32>
    %11 = arith.mulf %8, %10 : vector<32x32x128xf32>
    %cst_10 = arith.constant dense<0.000000e+00> : vector<32x128xf32>
    %12 = vector.multi_reduction <add>, %11, %cst_10 [1] : vector<32x32x128xf32> to vector<32x128xf32>
    %cst_11 = arith.constant dense<0.000000e+00> : vector<32xf32>
    %13 = vector.multi_reduction <add>, %12, %cst_11 [1] : vector<32x128xf32> to vector<32xf32>
    %14 = vector.shape_cast %13 : vector<32xf32> to vector<32x1xf32>
    %cst_12 = arith.constant 1.000000e+00 : f32
    %15 = vector.broadcast %cst_12 : f32 to vector<32x1xf32>
    %16 = arith.divf %15, %14 : vector<32x1xf32>
    %17 = vector.broadcast %14 : vector<32x1xf32> to vector<32x128xf32>
    %18 = arith.mulf %17, %12 : vector<32x128xf32>
    %cst_13 = arith.constant 0.000000e+00 : f32
    %19 = vector.broadcast %cst_13 : f32 to vector<32x128xf32>
    %20 = arith.cmpf ogt, %18, %19 : vector<32x128xf32>
    %21 = vector.broadcast %16 : vector<32x1xf32> to vector<32x128xf32>
    %22 = arith.mulf %12, %21 : vector<32x128xf32>
    %cst_14 = arith.constant 0.000000e+00 : f32
    %23 = vector.broadcast %cst_14 : f32 to vector<32x128xf32>
    %24 = arith.select %20, %22, %23 : vector<32x128xi1>, vector<32x128xf32>
    %25 = vector.shape_cast %24 : vector<32x128xf32> to vector<8x4x128xf32>
    %c0_15 = arith.constant 0 : index
    %c0_16 = arith.constant 0 : index
    %c0_17 = arith.constant 0 : index
    %26 = vector.load %arg4[%c0_15, %c0_16, %c0_17] : memref<8x4x128xf32, #tpu.memory_space<vmem>>, vector<8x4x128xf32>
    tpu.vector_store %arg4[%c0_15, %c0_16, %c0_17], %25 {strides = array<i32>} : memref<8x4x128xf32, #tpu.memory_space<vmem>>, vector<8x4x128xf32>,
    %27 = tpu.iota {dimensions = array<i32: 0>} : vector<4x128xi32>
    %28 = tpu.iota {dimensions = array<i32: 1>} : vector<4x128xi32>
    %29 = arith.cmpi eq, %27, %28 : vector<4x128xi32>
    %30 = arith.extui %29 : vector<4x128xi1> to vector<4x128xi32>
    %31 = arith.sitofp %30 : vector<4x128xi32> to vector<4x128xf32>
    %32 = vector.shape_cast %31 : vector<4x128xf32> to vector<1x4x128xf32>
    %33 = vector.broadcast %32 : vector<1x4x128xf32> to vector<8x4x128xf32>
    %34 = arith.mulf %25, %33 : vector<8x4x128xf32>
    %cst_18 = arith.constant dense<0.000000e+00> : vector<8x128xf32>
    %35 = vector.multi_reduction <add>, %34, %cst_18 [1] : vector<8x4x128xf32> to vector<8x128xf32>
    %36 = vector.shape_cast %35 : vector<8x128xf32> to vector<8x1x128xf32>
    %c0_19 = arith.constant 0 : index
    %c0_20 = arith.constant 0 : index
    %c0_21 = arith.constant 0 : index
    %37 = vector.load %arg5[%c0_19, %c0_20, %c0_21] : memref<8x1x128xf32, #tpu.memory_space<vmem>>, vector<8x1x128xf32>
    tpu.vector_store %arg5[%c0_19, %c0_20, %c0_21], %36 {strides = array<i32>} : memref<8x1x128xf32, #tpu.memory_space<vmem>>, vector<8x1x128xf32>,
    return
  }
  func.func @transform_0(%arg0: i32) -> (i32, i32, i32, i32, i32) {
    %c0_i32 = arith.constant 0 : i32
    %c0_i32_0 = arith.constant 0 : i32
    %c0_i32_1 = arith.constant 0 : i32
    %c0_i32_2 = arith.constant 0 : i32
    %c0_i32_3 = arith.constant 0 : i32
    return %arg0, %c0_i32, %c0_i32_0, %c0_i32_1, %c0_i32_2 : i32, i32, i32, i32, i32
  }
  func.func @transform_1(%arg0: i32) -> (i32, i32) {
    %c0_i32 = arith.constant 0 : i32
    %c0_i32_0 = arith.constant 0 : i32
    %c0_i32_1 = arith.constant 0 : i32
    return %c0_i32, %c0_i32_0 : i32, i32
  }
  func.func @transform_2(%arg0: i32) -> (i32, i32) {
    %c0_i32 = arith.constant 0 : i32
    %c0_i32_0 = arith.constant 0 : i32
    %c0_i32_1 = arith.constant 0 : i32
    return %c0_i32, %c0_i32_0 : i32, i32
  }
  func.func @transform_3(%arg0: i32) -> (i32, i32, i32) {
    %c0_i32 = arith.constant 0 : i32
    %c0_i32_0 = arith.constant 0 : i32
    %c0_i32_1 = arith.constant 0 : i32
    return %arg0, %c0_i32, %c0_i32_0 : i32, i32, i32
  }
  func.func @transform_4(%arg0: i32) -> (i32, i32, i32) {
    %c0_i32 = arith.constant 0 : i32
    %c0_i32_0 = arith.constant 0 : i32
    %c0_i32_1 = arith.constant 0 : i32
    return %arg0, %c0_i32, %c0_i32_0 : i32, i32, i32
  }
}

</mosaic_0001>

<bundles_post_ra>
// kernel: tpu_custom_call.1
= control target key start
LH: loop header
LB: loop body
LE: loop exit
PB: predicated region body
PF: predicated region fallthrough
CT: control target
= control target key end

     0   :  { %10 = vsyncpa [#allocation3], 0  ;;  %s13721_s0 = inlined_call_operand.hbm [shape: f32[8,4,3,32,32], index: 0, kind: input, shape index: {}]   ;;  %s13722_s1 = inlined_call_operand.hbm [shape: f32[32,128], index: 1, kind: input, shape index: {}]   ;;  %s13723_s2 = inlined_call_operand.hbm [shape: f32[32,128], index: 2, kind: input, shape index: {}]   ;;  %s13724_s3 = inlined_call_operand.hbm [shape: f32[8,4,128], index: 3, kind: output, shape index: {0}]   ;;  %s13725_s4 = inlined_call_operand.hbm [shape: f32[8,1,128], index: 4, kind: output, shape index: {1}]  }
   0x1   :  { %11 = vsyncpa [#allocation6], 0 }
   0x2   :  { %12 = vsyncpa [#allocation4], 0 }
   0x3   :  { %13 = vsyncpa [#allocation10], 0  ;;  %s11212_s15 = smov [#allocation5]   ;;  %s11213_s17 = smov [#allocation2]  }
   0x4   :  { %s31_s16 = sshll.u32 %s11212_s15, 4  ;;  %s19_s18 = sshll.u32 %s11213_s17, 4  ;;  %s32_s16 = int_to_ptr.vmem [resolvable:$true] %s31_s16  ;;  %s11249_s18 = int_to_ptr.vmem [resolvable:$true] %s19_s18 }
   0x5   :  { %s11094_s21 = scalar_lea.hbm %s13722_s1, 512 }
   0x6   :  { %p11095_p0 = scmp.ne.s32.totalorder %s13722_s1, %s11094_s21  ;;  %p11098_p1 = scmp.lt.u32.totalorder %s11094_s21, %s13722_s1 }
   0x8   :  { %p11100_p2 = pnand %p11098_p1, %p11095_p0 }
   0xa   :  { %11103 = shalt.err (!%p11100_p2)
}
   0xb   :  { %s11104_s26 = scalar_lea.vmem %s32_s16, 512  ;;  %p11109_p4 = scmp.lt.s32.totalorder %s32_s16, %s32_s16 }
   0xc   :  { %p11105_p3 = scmp.ne.s32.totalorder %s32_s16, %s11104_s26  ;;  %p11110_p5 = scmp.lt.s32.totalorder %s11104_s26, %s11104_s26 }
   0xe   :  { %p11111_p6 = por %p11110_p5, %p11109_p4 }
  0x10   :  { %p11112_p7 = pnand %p11111_p6, %p11105_p3 }
  0x12   :  { %11115 = shalt.err (!%p11112_p7)
}
  0x13   :  { %s11214_s27 = smov 128   ;;  %s11215_s28 = smov 8  }
  0x14   :  { %37 = dma.hbm_to_vmem [thread:$0]  %s13722_s1, 512, %s32_s16, [#allocation6], %s11214_s27, %s11214_s27, %s11215_s28  }
  0x15   :  { %s11116_s7 = scalar_lea.hbm %s13721_s0, 49152 }
  0x16   :  { %p11117_p8 = scmp.ne.s32.totalorder %s13721_s0, %s11116_s7  ;;  %p11120_p9 = scmp.lt.u32.totalorder %s11116_s7, %s13721_s0 }
  0x18   :  { %p11122_p10 = pnand %p11120_p9, %p11117_p8 }
  0x1a   :  { %11125 = shalt.err (!%p11122_p10)
}
  0x1b   :  { %s11126_s12 = scalar_lea.vmem %s11249_s18, 49152  ;;  %p11131_p12 = scmp.lt.s32.totalorder %s11249_s18, %s11249_s18 }
  0x1c   :  { %p11127_p11 = scmp.ne.s32.totalorder %s11249_s18, %s11126_s12  ;;  %p11132_p13 = scmp.lt.s32.totalorder %s11126_s12, %s11126_s12 }
  0x1e   :  { %p11133_p0 = por %p11132_p13, %p11131_p12 }
  0x20   :  { %p11134_p1 = pnand %p11133_p0, %p11127_p11 }
  0x22   :  { %11137 = shalt.err (!%p11134_p1)
}
  0x23   :  { %25 = dma.hbm_to_vmem [thread:$0]  %s13721_s0, 49152, %s11249_s18, [#allocation3], %s11214_s27, %s11214_s27, %s11215_s28  }
  0x24   :  { %s11216_s14 = smov [#allocation7]   ;;  %s11138_s19 = scalar_lea.hbm %s13723_s2, 512 }
  0x25   :  { %s43_s15 = sshll.u32 %s11216_s14, 4  ;;  %p11139_p2 = scmp.ne.s32.totalorder %s13723_s2, %s11138_s19  ;;  %s44_s15 = int_to_ptr.vmem [resolvable:$true] %s43_s15 }
  0x26   :  { %p11142_p3 = scmp.lt.u32.totalorder %s11138_s19, %s13723_s2 }
  0x28   :  { %p11144_p4 = pnand %p11142_p3, %p11139_p2 }
  0x2a   :  { %11147 = shalt.err (!%p11144_p4)
}
  0x2b   :  { %s11148_s24 = scalar_lea.vmem %s44_s15, 512  ;;  %p11153_p6 = scmp.lt.s32.totalorder %s44_s15, %s44_s15 }
  0x2c   :  { %p11149_p5 = scmp.ne.s32.totalorder %s44_s15, %s11148_s24  ;;  %p11154_p7 = scmp.lt.s32.totalorder %s11148_s24, %s11148_s24 }
  0x2e   :  { %p11155_p8 = por %p11154_p7, %p11153_p6 }
  0x30   :  { %p11156_p9 = pnand %p11155_p8, %p11149_p5 }
  0x32   :  { %11159 = shalt.err (!%p11156_p9)
}
  0x33   :  { %49 = dma.hbm_to_vmem [thread:$0]  %s13723_s2, 512, %s44_s15, [#allocation6], %s11214_s27, %s11214_s27, %s11215_s28  }
  0x34   :  { %11204 = dma.done.wait [#allocation3], 49152  }
  0x35   :  { %11205 = vsyncadd [#allocation3], 4294918144 }
  0x36   :  { %11206 = dma.done.wait [#allocation6], 1024  }
  0x37   :  { %11207 = vsyncadd [#allocation6], 4294966272  ;;  %vm443_vm0 = vcmask 261120   ;;  %v1212_v0 = vld [vmem:[#allocation5] sm:$0xff]  ;;  %v1213_v1 = vld [vmem:[#allocation5 + $0x8] sm:$0xff]  ;;  %vm7998_vm1 = vcmask 1041409  }
  0x38   :  { %v11301_v2 = vld [vmem:[#allocation5 + $0x10] sm:$0xff]  ;;  %v1601_v3 = vand.u32 4294901760, %v1212_v0  ;;  %v1604_v4 = vand.u32 4294901760, %v1213_v1  ;;  %v11303_v5 = vld [vmem:[#allocation5 + $0x18] sm:$0xff]  ;;  %v59_v7 = vld [vmem:[#allocation2] sm:$0xff]  ;;  %vm8000_vm2 = vcmask 1042434  }
  0x39   :  { %v13727_v6 = vand.u32 4294901760, %v11301_v2  ;;  %v63_v8 = vld [vmem:[#allocation2 + $0x20] sm:$0xff]  ;;  %v13726_v9 = vand.u32 4294901760, %v11303_v5  ;;  %v444_v11 = vsel %vm443_vm0, %v59_v7, 0.0  ;;  %v60_v13 = vld [vmem:[#allocation2 + $0x8] sm:$0xff]  ;;  %v61_v20 = vld [vmem:[#allocation2 + $0x10] sm:$0xff] }
  0x3a   :  { %v67_v10 = vld [vmem:[#allocation2 + $0x40] sm:$0xff]  ;;  %v445_v12 = vsel %vm443_vm0, %v63_v8, 0.0  ;;  %v64_v14 = vld [vmem:[#allocation2 + $0x28] sm:$0xff]  ;;  %v11309_v15 = vpack.c.bf16 %v1604_v4, %v1601_v3  ;;  %v449_v19 = vsel %vm443_vm0, %v60_v13, 0.0  ;;  %v65_v21 = vld [vmem:[#allocation2 + $0x30] sm:$0xff]  ;;  %v11321_v25 = vsub.f32 %v1212_v0, %v1601_v3  ;;  %s11218_s2 = smov [#allocation8]  }
  0x3b   :  { %v446_v16 = vadd.f32 %v445_v12, %v444_v11  ;;  %v447_v17 = vsel %vm443_vm0, %v67_v10, 0.0  ;;  %v68_v18 = vld [vmem:[#allocation2 + $0x48] sm:$0xff]  ;;  %v11317_v22 = vpack.c.bf16 %v13726_v9, %v13727_v6  ;;  %v450_v23 = vsel %vm443_vm0, %v64_v14, 0.0  ;;  %v69_v26 = vld [vmem:[#allocation2 + $0x50] sm:$0xff]  ;;  %v62_v27 = vld [vmem:[#allocation2 + $0x18] sm:$0xff]  ;;  %s8358_s25 = sshll.u32 %s11218_s2, 4  ;;  %s8359_s25 = int_to_ptr.vmem [resolvable:$true] %s8358_s25 }
  0x3c   :  { %v452_v24 = vsel %vm443_vm0, %v68_v18, 0.0  ;;  %10405 = vmatprep.subr.bf16.mxu0 %v11309_v15  ;;  %10381 = vmatprep.subr.bf16.mxu1 %v11309_v15  ;;  %v451_v29 = vadd.f32 %v450_v23, %v449_v19  ;;  %v11325_v30 = vsub.f32 %v1213_v1, %v1604_v4  ;;  %v454_v31 = vsel %vm443_vm0, %v61_v20, 0.0  ;;  %v66_v32 = vld [vmem:[#allocation2 + $0x38] sm:$0xff]  ;;  %v71_v34 = vld [vmem:[#allocation2 + $0x60] sm:$0xff]  ;;  %v72_v57 = vld [vmem:[#allocation2 + $0x68] sm:$0xff]  ;;  %s11160_s26 = scalar_lea.vmem %s8359_s25, 512  ;;  %p11165_p11 = scmp.lt.s32.totalorder %s8359_s25, %s8359_s25 }
  0x3d   :  { %v448_v28 = vadd.f32 %v447_v17, %v446_v16  ;;  %v70_v33 = vld [vmem:[#allocation2 + $0x58] sm:$0xff]  ;;  %10407 = vmatpush3.bf16.msra.mxu0 %v11309_v15  ;;  %10383 = vmatpush3.bf16.msra.mxu1 %v11309_v15  ;;  %v2952_v35 = vand.u32 4294901760, %v11321_v25  ;;  %v455_v36 = vsel %vm443_vm0, %v65_v21, 0.0  ;;  %v457_v37 = vsel %vm443_vm0, %v69_v26, 0.0  ;;  %v75_v46 = vld [vmem:[#allocation2 + $0x80] sm:$0xff]  ;;  %v76_v3 = vld [vmem:[#allocation2 + $0x88] sm:$0xff]  ;;  %p11161_p10 = scmp.ne.s32.totalorder %s8359_s25, %s11160_s26  ;;  %p11166_p12 = scmp.lt.s32.totalorder %s11160_s26, %s11160_s26 }
  0x3e   :  { %v459_v38 = vsel %vm443_vm0, %v62_v27, 0.0  ;;  %10409 = vmatprep.subr.bf16.mxu0 %v11317_v22  ;;  %10385 = vmatprep.subr.bf16.mxu1 %v11317_v22  ;;  %v453_v40 = vadd.f32 %v452_v24, %v451_v29  ;;  %v2959_v41 = vand.u32 4294901760, %v11325_v30  ;;  %v456_v42 = vadd.f32 %v455_v36, %v454_v31  ;;  %v79_v56 = vld [vmem:[#allocation2 + $0xa0] sm:$0xff]  ;;  %v80_v4 = vld [vmem:[#allocation2 + $0xa8] sm:$0xff]  ;;  %v73_v7 = vld [vmem:[#allocation2 + $0x70] sm:$0xff] }
  0x3f   :  { %v1084_v39 = vmax.f32 %v448_v28, 0.0  ;;  %v2953_v43 = vsub.f32 %v11321_v25, %v2952_v35  ;;  %v460_v44 = vsel %vm443_vm0, %v66_v32, 0.0  ;;  %v462_v45 = vsel %vm443_vm0, %v70_v33, 0.0  ;;  %v77_v18 = vld [vmem:[#allocation2 + $0x90] sm:$0xff]  ;;  %p11167_p13 = por %p11166_p12, %p11165_p11 }
  0x40   :  { %v464_v47 = vsel %vm443_vm0, %v71_v34, 0.0  ;;  %v1085_v49 = vmax.f32 %v453_v40, 0.0  ;;  %v2960_v50 = vsub.f32 %v11325_v30, %v2959_v41  ;;  %v458_v51 = vadd.f32 %v457_v37, %v456_v42  ;;  %v81_v29 = vld [vmem:[#allocation2 + $0xb0] sm:$0xff]  ;;  %v78_v40 = vld [vmem:[#allocation2 + $0x98] sm:$0xff] }
  0x41   :  { %v1217_v48 = vsel %vm443_vm0, %v1084_v39, 0  ;;  %10411 = vmatpush3.bf16.msra.mxu0 %v11317_v22  ;;  %10387 = vmatpush3.bf16.msra.mxu1 %v11317_v22  ;;  %v2954_v53 = vand.u32 4294901760, %v2953_v43  ;;  %v10412_v54 = vpack.c.bf16 %v2959_v41, %v2952_v35  ;;  %v461_v55 = vadd.f32 %v460_v44, %v459_v38  ;;  %v74_v39 = vld [vmem:[#allocation2 + $0x78] sm:$0xff]  ;;  %v125_v6 = vld [vmem:[#allocation2 + $0x210] sm:$0xff]  ;;  %p11168_p0 = pnand %p11167_p13, %p11161_p10 }
  0x42   :  { %v11344_v52 = vand.u32 4294901760, %v1217_v48  ;;  %v1220_v58 = vsel %vm443_vm0, %v1085_v49, 0  ;;  %v2961_v59 = vand.u32 4294901760, %v2960_v50  ;;  %v1086_v60 = vmax.f32 %v458_v51, 0.0  ;;  %v82_v49 = vld [vmem:[#allocation2 + $0xb8] sm:$0xff]  ;;  %v83_v50 = vld [vmem:[#allocation2 + $0xc0] sm:$0xff] }
  0x43   :  { %v465_v61 = vsel %vm443_vm0, %v75_v46, 0.0  ;;  %v11352_v63 = vand.u32 4294901760, %v1220_v58  ;;  %10413 = vmatprep.subr.bf16.mxu0 %v10412_v54  ;;  %v463_v0 = vadd.f32 %v462_v45, %v461_v55  ;;  %v467_v11 = vsel %vm443_vm0, %v79_v56, 0.0 }
  0x44   :  { %v11350_v62 = vsub.f32 %v1217_v48, %v11344_v52  ;;  %v466_v1 = vadd.f32 %v465_v61, %v464_v47  ;;  %v10388_v8 = vpack.c.bf16 %v2961_v59, %v2954_v53  ;;  %v1223_v10 = vsel %vm443_vm0, %v1086_v60, 0  ;;  %v87_v60 = vld [vmem:[#allocation2 + $0xe0] sm:$0xff] }
  0x45   :  { %v469_v12 = vsel %vm443_vm0, %v72_v57, 0.0  ;;  %v11359_v14 = vsub.f32 %v1220_v58, %v11352_v63  ;;  %v11361_v16 = vand.u32 4294901760, %v1223_v10  ;;  %v1087_v17 = vmax.f32 %v463_v0, 0.0  ;;  %v91_v61 = vld [vmem:[#allocation2 + $0x100] sm:$0xff] }
  0x46   :  { %14107 = vst [vmem:[#allocation15_spill] sm:$0xff] %v11350_v62  ;;  %v1671_v13 = vand.u32 4294901760, %v11350_v62  ;;  %10389 = vmatprep.subr.bf16.mxu1 %v10388_v8  ;;  %v468_v19 = vadd.f32 %v467_v11, %v466_v1  ;;  %v470_v20 = vsel %vm443_vm0, %v76_v3, 0.0  ;;  %v472_v21 = vsel %vm443_vm0, %v80_v4, 0.0 }
  0x47   :  { %14108 = vst [vmem:[#allocation16_spill] sm:$0xff] %v11359_v14  ;;  %v474_v23 = vsel %vm443_vm0, %v73_v7, 0.0  ;;  %v1681_v24 = vand.u32 4294901760, %v11359_v14  ;;  %v11369_v27 = vsub.f32 %v1223_v10, %v11361_v16  ;;  %v1226_v28 = vsel %vm443_vm0, %v1087_v17, 0  ;;  %v88_v17 = vld [vmem:[#allocation2 + $0xe8] sm:$0xff] }
  0x48   :  { %9788 = vmatprep.mubr.f32.mxu0 %v1671_v13  ;;  %v1672_v26 = vsub.f32 %v11350_v62, %v1671_v13  ;;  %v11372_v31 = vand.u32 4294901760, %v1226_v28  ;;  %v1088_v32 = vmax.f32 %v468_v19, 0.0  ;;  %v471_v33 = vadd.f32 %v470_v20, %v469_v12  ;;  %v84_v13 = vld [vmem:[#allocation2 + $0xc8] sm:$0xff] }
  0x49   :  { %14109 = vst [vmem:[#allocation17_spill] sm:$0xff] %v11369_v27  ;;  %v475_v34 = vsel %vm443_vm0, %v77_v18, 0.0  ;;  %9789 = vmatmul.mubr.f32.vlgmr.msra.gmra.mrb[0].mxu0 %v1681_v24  ;;  %v1691_v36 = vand.u32 4294901760, %v11369_v27  ;;  %v1682_v37 = vsub.f32 %v11359_v14, %v1681_v24  ;;  %v477_v44 = vsel %vm443_vm0, %v81_v29, 0.0  ;;  %v85_v29 = vld [vmem:[#allocation2 + $0xd0] sm:$0xff] }
  0x4a   :  { %v1673_v35 = vand.u32 4294901760, %v1672_v26  ;;  %v476_v38 = vadd.f32 %v475_v34, %v474_v23  ;;  %v11378_v41 = vsub.f32 %v1226_v28, %v11372_v31  ;;  %10415 = vmatpush3.bf16.msra.mxu0 %v10412_v54  ;;  %v1229_v42 = vsel %vm443_vm0, %v1088_v32, 0 }
  0x4b   :  { %v473_v43 = vadd.f32 %v472_v21, %v471_v33  ;;  %9791 = vmatprep.mubr.f32.mxu0 %v1691_v36  ;;  %v1683_v45 = vand.u32 4294901760, %v1682_v37  ;;  %v1692_v46 = vsub.f32 %v11369_v27, %v1691_v36  ;;  %v11383_v47 = vand.u32 4294901760, %v1229_v42  ;;  %v89_v36 = vld [vmem:[#allocation2 + $0xf0] sm:$0xff]  ;;  %v168_v27 = vld [vmem:[#allocation2 + $0x368] sm:$0xff] }
  0x4c   :  { %14110 = vst [vmem:[#allocation18_spill] sm:$0xff] %v11378_v41  ;;  %9188 = vmatprep.mubr.f32.mxu1 %v1673_v35  ;;  %v478_v48 = vadd.f32 %v477_v44, %v476_v38  ;;  %v1701_v51 = vand.u32 4294901760, %v11378_v41  ;;  %v479_v54 = vsel %vm443_vm0, %v74_v39, 0.0  ;;  %v480_v55 = vsel %vm443_vm0, %v78_v40, 0.0  ;;  %v93_v37 = vld [vmem:[#allocation2 + $0x110] sm:$0xff] }
  0x4d   :  { %v1089_v53 = vmax.f32 %v473_v43, 0.0  ;;  %9189 = vmatmul.mubr.f32.vlgmr.msra.gmra.mrb[0].mxu1 %v1683_v45  ;;  %v1693_v56 = vand.u32 4294901760, %v1692_v46  ;;  %v11389_v57 = vsub.f32 %v1229_v42, %v11383_v47  ;;  %v481_v59 = vadd.f32 %v480_v55, %v479_v54 }
  0x4e   :  { %v1090_v58 = vmax.f32 %v478_v48, 0.0  ;;  %10391 = vmatpush3.bf16.msra.mxu1 %v10388_v8  ;;  %9792 = vmatmul.mubr.f32.gmra.mrb[2].mxu0 %v1701_v51  ;;  %v1702_v0 = vsub.f32 %v11378_v41, %v1701_v51  ;;  %v482_v3 = vsel %vm443_vm0, %v82_v49, 0.0  ;;  %v484_v4 = vsel %vm443_vm0, %v83_v50, 0.0  ;;  %v92_v8 = vld [vmem:[#allocation2 + $0x108] sm:$0xff]  ;;  %v86_v48 = vld [vmem:[#allocation2 + $0xd8] sm:$0xff] }
  0x4f   :  { %14111 = vst [vmem:[#allocation19_spill] sm:$0xff] %v11389_v57  ;;  %v1232_v1 = vsel %vm443_vm0, %v1089_v53, 0  ;;  %9191 = vmatprep.mubr.f32.mxu1 %v1693_v56  ;;  %v1711_v7 = vand.u32 4294901760, %v11389_v57  ;;  %v483_v12 = vadd.f32 %v482_v3, %v481_v59  ;;  %v485_v20 = vsel %vm443_vm0, %v87_v60, 0.0  ;;  %v90_v49 = vld [vmem:[#allocation2 + $0xf8] sm:$0xff] }
  0x50   :  { %v11396_v10 = vand.u32 4294901760, %v1232_v1  ;;  %v1235_v11 = vsel %vm443_vm0, %v1090_v58, 0  ;;  %v1703_v18 = vand.u32 4294901760, %v1702_v0  ;;  %v487_v21 = vsel %vm443_vm0, %v91_v61, 0.0  ;;  %v94_v60 = vld [vmem:[#allocation2 + $0x118] sm:$0xff]  ;;  %v95_v61 = vld [vmem:[#allocation2 + $0x120] sm:$0xff] }
  0x51   :  { %v11399_v19 = vand.u32 4294901760, %v1235_v11  ;;  %9794 = vmatprep.mubr.f32.mxu0 %v1711_v7  ;;  %v1712_v24 = vsub.f32 %v11389_v57, %v1711_v7  ;;  %v1091_v26 = vmax.f32 %v483_v12, 0.0  ;;  %v486_v28 = vadd.f32 %v485_v20, %v484_v4  ;;  %v99_v7 = vld [vmem:[#allocation2 + $0x140] sm:$0xff] }
  0x52   :  { %v11404_v23 = vsub.f32 %v1232_v1, %v11396_v10  ;;  %9192 = vmatmul.mubr.f32.gmra.mrb[2].mxu1 %v1703_v18  ;;  %v489_v33 = vsel %vm443_vm0, %v84_v13, 0.0  ;;  %v490_v34 = vsel %vm443_vm0, %v88_v17, 0.0  ;;  %v492_v35 = vsel %vm443_vm0, %v92_v8, 0.0 }
  0x53   :  { %v11408_v32 = vsub.f32 %v1235_v11, %v11399_v19  ;;  %v1713_v39 = vand.u32 4294901760, %v1712_v24  ;;  %v1238_v40 = vsel %vm443_vm0, %v1091_v26, 0  ;;  %v488_v42 = vadd.f32 %v487_v21, %v486_v28  ;;  %v103_v21 = vld [vmem:[#allocation2 + $0x160] sm:$0xff]  ;;  %v96_v26 = vld [vmem:[#allocation2 + $0x128] sm:$0xff] }
  0x54   :  { %14112 = vst [vmem:[#allocation20_spill] sm:$0xff] %v11404_v23  ;;  %v1721_v38 = vand.u32 4294901760, %v11404_v23  ;;  %v11416_v44 = vand.u32 4294901760, %v1238_v40  ;;  %v491_v45 = vadd.f32 %v490_v34, %v489_v33  ;;  %v494_v46 = vsel %vm443_vm0, %v85_v29, 0.0 }
  0x55   :  { %14113 = vst [vmem:[#allocation21_spill] sm:$0xff] %v11408_v32  ;;  %v1731_v43 = vand.u32 4294901760, %v11408_v32  ;;  %9194 = vmatprep.mubr.f32.mxu1 %v1713_v39  ;;  %v1092_v51 = vmax.f32 %v488_v42, 0.0  ;;  %v495_v53 = vsel %vm443_vm0, %v89_v36, 0.0  ;;  %v497_v54 = vsel %vm443_vm0, %v93_v37, 0.0  ;;  %v100_v39 = vld [vmem:[#allocation2 + $0x148] sm:$0xff] }
  0x56   :  { %9795 = vmatmul.mubr.f32.gmra.mrb[4].mxu0 %v1721_v38  ;;  %v1722_v50 = vsub.f32 %v11404_v23, %v1721_v38  ;;  %v11423_v55 = vsub.f32 %v1238_v40, %v11416_v44  ;;  %v493_v58 = vadd.f32 %v492_v35, %v491_v45  ;;  %v496_v59 = vadd.f32 %v495_v53, %v494_v46  ;;  %v104_v40 = vld [vmem:[#allocation2 + $0x168] sm:$0xff]  ;;  %v97_v53 = vld [vmem:[#allocation2 + $0x130] sm:$0xff] }
  0x57   :  { %9797 = vmatprep.mubr.f32.mxu0 %v1731_v43  ;;  %v1732_v56 = vsub.f32 %v11408_v32, %v1731_v43  ;;  %v1241_v1 = vsel %vm443_vm0, %v1092_v51, 0  ;;  %v499_v3 = vsel %vm443_vm0, %v86_v48, 0.0  ;;  %v500_v4 = vsel %vm443_vm0, %v90_v49, 0.0 }
  0x58   :  { %14114 = vst [vmem:[#allocation22_spill] sm:$0xff] %v11423_v55  ;;  %v1723_v0 = vand.u32 4294901760, %v1722_v50  ;;  %v1741_v11 = vand.u32 4294901760, %v11423_v55  ;;  %v11430_v13 = vand.u32 4294901760, %v1241_v1  ;;  %v1093_v17 = vmax.f32 %v493_v58, 0.0 }
  0x59   :  { %v1733_v12 = vand.u32 4294901760, %v1732_v56  ;;  %v498_v8 = vadd.f32 %v497_v54, %v496_v59  ;;  %v501_v18 = vadd.f32 %v500_v4, %v499_v3  ;;  %v502_v20 = vsel %vm443_vm0, %v94_v60, 0.0  ;;  %v101_v60 = vld [vmem:[#allocation2 + $0x150] sm:$0xff] }
  0x5a   :  { %9195 = vmatmul.mubr.f32.gmra.mrb[4].mxu1 %v1723_v0  ;;  %v504_v24 = vsel %vm443_vm0, %v95_v61, 0.0  ;;  %9798 = vmatmul.mubr.f32.gmra.mrb[6].mxu0 %v1741_v11  ;;  %v11435_v28 = vsub.f32 %v1241_v1, %v11430_v13  ;;  %v1742_v29 = vsub.f32 %v11423_v55, %v1741_v11  ;;  %v1244_v33 = vsel %vm443_vm0, %v1093_v17, 0  ;;  %v154_v55 = vld [vmem:[#allocation2 + $0x2f8] sm:$0xff] }
  0x5b   :  { %9197 = vmatprep.mubr.f32.mxu1 %v1733_v12  ;;  %v505_v34 = vsel %vm443_vm0, %v99_v7, 0.0  ;;  %v11440_v35 = vand.u32 4294901760, %v1244_v33  ;;  %v1094_v36 = vmax.f32 %v498_v8, 0.0  ;;  %v503_v37 = vadd.f32 %v502_v20, %v501_v18  ;;  %v105_v12 = vld [vmem:[#allocation2 + $0x170] sm:$0xff]  ;;  %v98_v8 = vld [vmem:[#allocation2 + $0x138] sm:$0xff] }
  0x5c   :  { %14115 = vst [vmem:[#allocation23_spill] sm:$0xff] %v11435_v28  ;;  %v506_v38 = vadd.f32 %v505_v34, %v504_v24  ;;  %v1751_v42 = vand.u32 4294901760, %v11435_v28  ;;  %v1743_v43 = vand.u32 4294901760, %v1742_v29  ;;  %v507_v45 = vsel %vm443_vm0, %v103_v21, 0.0 }
  0x5d   :  { %v509_v46 = vsel %vm443_vm0, %v96_v26, 0.0  ;;  %v11446_v48 = vsub.f32 %v1244_v33, %v11440_v35  ;;  %v1247_v49 = vsel %vm443_vm0, %v1094_v36, 0  ;;  %v1095_v50 = vmax.f32 %v503_v37, 0.0  ;;  %v102_v36 = vld [vmem:[#allocation2 + $0x158] sm:$0xff] }
  0x5e   :  { %v508_v51 = vadd.f32 %v507_v45, %v506_v38  ;;  %9800 = vmatprep.mubr.f32.mxu0 %v1751_v42  ;;  %9198 = vmatmul.mubr.f32.gmra.mrb[6].mxu1 %v1743_v43  ;;  %v1752_v54 = vsub.f32 %v11435_v28, %v1751_v42  ;;  %v11450_v56 = vand.u32 4294901760, %v1247_v49  ;;  %v510_v58 = vsel %vm443_vm0, %v100_v39, 0.0  ;;  %v106_v37 = vld [vmem:[#allocation2 + $0x178] sm:$0xff]  ;;  %v107_v38 = vld [vmem:[#allocation2 + $0x180] sm:$0xff] }
  0x5f   :  { %14116 = vst [vmem:[#allocation24_spill] sm:$0xff] %v11446_v48  ;;  %v512_v59 = vsel %vm443_vm0, %v104_v40, 0.0  ;;  %v1761_v61 = vand.u32 4294901760, %v11446_v48  ;;  %v1250_v0 = vsel %vm443_vm0, %v1095_v50, 0  ;;  %v511_v3 = vadd.f32 %v510_v58, %v509_v46 }
  0x60   :  { %v1096_v1 = vmax.f32 %v508_v51, 0.0  ;;  %v1753_v4 = vand.u32 4294901760, %v1752_v54  ;;  %v11457_v7 = vsub.f32 %v1247_v49, %v11450_v56  ;;  %v11459_v11 = vand.u32 4294901760, %v1250_v0  ;;  %v111_v51 = vld [vmem:[#allocation2 + $0x1a0] sm:$0xff] }
  0x61   :  { %v514_v17 = vsel %vm443_vm0, %v97_v53, 0.0  ;;  %9801 = vmatmul.mubr.f32.gmra.mrb[8].mxu0 %v1761_v61  ;;  %v1762_v18 = vsub.f32 %v11446_v48, %v1761_v61  ;;  %v513_v21 = vadd.f32 %v512_v59, %v511_v3  ;;  %v515_v24 = vsel %vm443_vm0, %v101_v60, 0.0  ;;  %v115_v53 = vld [vmem:[#allocation2 + $0x1c0] sm:$0xff] }
  0x62   :  { %14117 = vst [vmem:[#allocation25_spill] sm:$0xff] %v11457_v7  ;;  %v1253_v20 = vsel %vm443_vm0, %v1096_v1, 0  ;;  %9200 = vmatprep.mubr.f32.mxu1 %v1753_v4  ;;  %v1771_v26 = vand.u32 4294901760, %v11457_v7  ;;  %v11467_v29 = vsub.f32 %v1250_v0, %v11459_v11  ;;  %v516_v34 = vadd.f32 %v515_v24, %v514_v17  ;;  %v108_v4 = vld [vmem:[#allocation2 + $0x188] sm:$0xff] }
  0x63   :  { %v11469_v33 = vand.u32 4294901760, %v1253_v20  ;;  %v1763_v39 = vand.u32 4294901760, %v1762_v18  ;;  %v1097_v40 = vmax.f32 %v513_v21, 0.0  ;;  %v517_v42 = vsel %vm443_vm0, %v105_v12, 0.0  ;;  %v112_v12 = vld [vmem:[#allocation2 + $0x1a8] sm:$0xff] }
  0x64   :  { %14118 = vst [vmem:[#allocation26_spill] sm:$0xff] %v11467_v29  ;;  %v519_v43 = vsel %vm443_vm0, %v98_v8, 0.0  ;;  %9803 = vmatprep.mubr.f32.mxu0 %v1771_v26  ;;  %v1781_v45 = vand.u32 4294901760, %v11467_v29  ;;  %v1772_v46 = vsub.f32 %v11457_v7, %v1771_v26  ;;  %v518_v50 = vadd.f32 %v517_v42, %v516_v34 }
  0x65   :  { %v11476_v49 = vsub.f32 %v1253_v20, %v11469_v33  ;;  %9201 = vmatmul.mubr.f32.gmra.mrb[8].mxu1 %v1763_v39  ;;  %v1256_v54 = vsel %vm443_vm0, %v1097_v40, 0  ;;  %v520_v58 = vsel %vm443_vm0, %v102_v36, 0.0  ;;  %v522_v59 = vsel %vm443_vm0, %v106_v37, 0.0  ;;  %v116_v36 = vld [vmem:[#allocation2 + $0x1c8] sm:$0xff]  ;;  %v109_v37 = vld [vmem:[#allocation2 + $0x190] sm:$0xff] }
  0x66   :  { %v524_v60 = vsel %vm443_vm0, %v107_v38, 0.0  ;;  %9804 = vmatmul.mubr.f32.gmra.mrb[10].mxu0 %v1781_v45  ;;  %v1773_v61 = vand.u32 4294901760, %v1772_v46  ;;  %v1782_v1 = vsub.f32 %v11467_v29, %v1781_v45  ;;  %v11484_v3 = vand.u32 4294901760, %v1256_v54 }
  0x67   :  { %14119 = vst [vmem:[#allocation27_spill] sm:$0xff] %v11476_v49  ;;  %v1791_v0 = vand.u32 4294901760, %v11476_v49  ;;  %v1098_v17 = vmax.f32 %v518_v50, 0.0  ;;  %v521_v8 = vadd.f32 %v520_v58, %v519_v43  ;;  %v525_v18 = vsel %vm443_vm0, %v111_v51, 0.0  ;;  %v113_v43 = vld [vmem:[#allocation2 + $0x1b0] sm:$0xff] }
  0x68   :  { %v527_v20 = vsel %vm443_vm0, %v115_v53, 0.0  ;;  %9203 = vmatprep.mubr.f32.mxu1 %v1773_v61  ;;  %v1783_v21 = vand.u32 4294901760, %v1782_v1  ;;  %v11489_v24 = vsub.f32 %v1256_v54, %v11484_v3  ;;  %v526_v34 = vadd.f32 %v525_v18, %v524_v60  ;;  %v117_v53 = vld [vmem:[#allocation2 + $0x1d0] sm:$0xff] }
  0x69   :  { %9806 = vmatprep.mubr.f32.mxu0 %v1791_v0  ;;  %v1792_v26 = vsub.f32 %v11476_v49, %v1791_v0  ;;  %v1259_v38 = vsel %vm443_vm0, %v1098_v17, 0  ;;  %v523_v39 = vadd.f32 %v522_v59, %v521_v8  ;;  %v529_v40 = vsel %vm443_vm0, %v108_v4, 0.0 }
  0x6a   :  { %14120 = vst [vmem:[#allocation28_spill] sm:$0xff] %v11489_v24  ;;  %v530_v42 = vsel %vm443_vm0, %v112_v12, 0.0  ;;  %9204 = vmatmul.mubr.f32.gmra.mrb[10].mxu1 %v1783_v21  ;;  %v1801_v45 = vand.u32 4294901760, %v11489_v24  ;;  %v11496_v50 = vand.u32 4294901760, %v1259_v38  ;;  %v528_v51 = vadd.f32 %v527_v20, %v526_v34  ;;  %v110_v12 = vld [vmem:[#allocation2 + $0x198] sm:$0xff] }
  0x6b   :  { %v1793_v46 = vand.u32 4294901760, %v1792_v26  ;;  %v1099_v54 = vmax.f32 %v523_v39, 0.0  ;;  %v531_v58 = vadd.f32 %v530_v42, %v529_v40  ;;  %v532_v60 = vsel %vm443_vm0, %v116_v36, 0.0  ;;  %v114_v21 = vld [vmem:[#allocation2 + $0x1b8] sm:$0xff] }
  0x6c   :  { %v534_v61 = vsel %vm443_vm0, %v109_v37, 0.0  ;;  %9807 = vmatmul.mubr.f32.gmra.mrb[12].mxu0 %v1801_v45  ;;  %v11501_v59 = vsub.f32 %v1259_v38, %v11496_v50  ;;  %v1802_v0 = vsub.f32 %v11489_v24, %v1801_v45  ;;  %v1100_v1 = vmax.f32 %v528_v51, 0.0  ;;  %v118_v26 = vld [vmem:[#allocation2 + $0x1d8] sm:$0xff]  ;;  %v119_v45 = vld [vmem:[#allocation2 + $0x1e0] sm:$0xff] }
  0x6d   :  { %9206 = vmatprep.mubr.f32.mxu1 %v1793_v46  ;;  %v535_v4 = vsel %vm443_vm0, %v113_v43, 0.0  ;;  %v1262_v17 = vsel %vm443_vm0, %v1099_v54, 0  ;;  %v533_v8 = vadd.f32 %v532_v60, %v531_v58  ;;  %v537_v20 = vsel %vm443_vm0, %v117_v53, 0.0  ;;  %v123_v58 = vld [vmem:[#allocation2 + $0x200] sm:$0xff] }
  0x6e   :  { %14121 = vst [vmem:[#allocation29_spill] sm:$0xff] %v11501_v59  ;;  %v536_v18 = vadd.f32 %v535_v4, %v534_v61  ;;  %v1811_v34 = vand.u32 4294901760, %v11501_v59  ;;  %v1803_v36 = vand.u32 4294901760, %v1802_v0  ;;  %v11508_v37 = vand.u32 4294901760, %v1262_v17 }
  0x6f   :  { %v1265_v38 = vsel %vm443_vm0, %v1100_v1, 0  ;;  %v1101_v40 = vmax.f32 %v533_v8, 0.0  ;;  %v539_v43 = vsel %vm443_vm0, %v110_v12, 0.0  ;;  %v540_v53 = vsel %vm443_vm0, %v114_v21, 0.0 }
  0x70   :  { %v11511_v39 = vand.u32 4294901760, %v1265_v38  ;;  %v538_v42 = vadd.f32 %v537_v20, %v536_v18  ;;  %9809 = vmatprep.mubr.f32.mxu0 %v1811_v34  ;;  %9207 = vmatmul.mubr.f32.gmra.mrb[12].mxu1 %v1803_v36  ;;  %v11515_v46 = vsub.f32 %v1262_v17, %v11508_v37  ;;  %v1812_v51 = vsub.f32 %v11501_v59, %v1811_v34  ;;  %v127_v17 = vld [vmem:[#allocation2 + $0x220] sm:$0xff]  ;;  %v120_v20 = vld [vmem:[#allocation2 + $0x1e8] sm:$0xff] }
  0x71   :  { %v542_v54 = vsel %vm443_vm0, %v118_v26, 0.0  ;;  %v1268_v61 = vsel %vm443_vm0, %v1101_v40, 0  ;;  %v541_v1 = vadd.f32 %v540_v53, %v539_v43  ;;  %v544_v18 = vsel %vm443_vm0, %v119_v45, 0.0  ;;  %v128_v45 = vld [vmem:[#allocation2 + $0x228] sm:$0xff] }
  0x72   :  { %14122 = vst [vmem:[#allocation30_spill] sm:$0xff] %v11515_v46  ;;  %v11521_v60 = vsub.f32 %v1265_v38, %v11511_v39  ;;  %v1102_v0 = vmax.f32 %v538_v42, 0.0  ;;  %v1821_v4 = vand.u32 4294901760, %v11515_v46  ;;  %v1813_v12 = vand.u32 4294901760, %v1812_v51  ;;  %v124_v51 = vld [vmem:[#allocation2 + $0x208] sm:$0xff] }
  0x73   :  { %v11525_v8 = vand.u32 4294901760, %v1268_v61  ;;  %v543_v34 = vadd.f32 %v542_v54, %v541_v1  ;;  %v545_v36 = vsel %vm443_vm0, %v123_v58, 0.0  ;;  %v547_v54 = vsel %vm443_vm0, %v127_v17, 0.0 }
  0x74   :  { %14123 = vst [vmem:[#allocation31_spill] sm:$0xff] %v11521_v60  ;;  %v1831_v21 = vand.u32 4294901760, %v11521_v60  ;;  %v1271_v26 = vsel %vm443_vm0, %v1102_v0, 0  ;;  %9810 = vmatmul.mubr.f32.gmra.mrb[14].mxu0 %v1821_v4  ;;  %9209 = vmatprep.mubr.f32.mxu1 %v1813_v12  ;;  %v1822_v38 = vsub.f32 %v11515_v46, %v1821_v4  ;;  %v546_v43 = vadd.f32 %v545_v36, %v544_v18  ;;  %v121_v12 = vld [vmem:[#allocation2 + $0x1f0] sm:$0xff] }
  0x75   :  { %v11533_v40 = vsub.f32 %v1268_v61, %v11525_v8  ;;  %v11535_v42 = vand.u32 4294901760, %v1271_v26  ;;  %v1103_v9 = vmax.f32 %v543_v34, 0.0  ;;  %v549_v58 = vsel %vm443_vm0, %v120_v20, 0.0  ;;  %v129_v18 = vld [vmem:[#allocation2 + $0x230] sm:$0xff] }
  0x76   :  { %9812 = vmatprep.mubr.f32.mxu0 %v1831_v21  ;;  %v1832_v53 = vsub.f32 %v11521_v60, %v1831_v21  ;;  %v1823_v0 = vand.u32 4294901760, %v1822_v38  ;;  %v548_v61 = vadd.f32 %v547_v54, %v546_v43  ;;  %v550_v21 = vsel %vm443_vm0, %v124_v51, 0.0  ;;  %v122_v43 = vld [vmem:[#allocation2 + $0x1f8] sm:$0xff] }
  0x77   :  { %14124 = vst [vmem:[#allocation32_spill] sm:$0xff] %v11533_v40  ;;  %v1841_v1 = vand.u32 4294901760, %v11533_v40  ;;  %v11542_v4 = vsub.f32 %v1271_v26, %v11535_v42  ;;  %v1274_v46 = vsel %vm443_vm0, %v1103_v9, 0  ;;  %v552_v34 = vsel %vm443_vm0, %v128_v45, 0.0  ;;  %v126_v60 = vld [vmem:[#allocation2 + $0x218] sm:$0xff] }
  0x78   :  { %v1833_v36 = vand.u32 4294901760, %v1832_v53  ;;  %9210 = vmatmul.mubr.f32.gmra.mrb[14].mxu1 %v1823_v0  ;;  %v11549_v38 = vand.u32 4294901760, %v1274_v46  ;;  %v1104_v26 = vmax.f32 %v548_v61, 0.0  ;;  %v551_v54 = vadd.f32 %v550_v21, %v549_v58  ;;  %v130_v45 = vld [vmem:[#allocation2 + $0x238] sm:$0xff]  ;;  %v135_v21 = vld [vmem:[#allocation2 + $0x260] sm:$0xff] }
  0x79   :  { %14125 = vst [vmem:[#allocation33_spill] sm:$0xff] %v11542_v4  ;;  %9813 = vmatmul.mubr.f32.gmra.mrb[16].mxu0 %v1841_v1  ;;  %v1851_v17 = vand.u32 4294901760, %v11542_v4  ;;  %v1842_v20 = vsub.f32 %v11533_v40, %v1841_v1  ;;  %v554_v53 = vsel %vm443_vm0, %v121_v12, 0.0  ;;  %v555_v9 = vsel %vm443_vm0, %v125_v6, 0.0  ;;  %v131_v6 = vld [vmem:[#allocation2 + $0x240] sm:$0xff] }
  0x7a   :  { %9212 = vmatprep.mubr.f32.mxu1 %v1833_v36  ;;  %v557_v51 = vsel %vm443_vm0, %v129_v18, 0.0  ;;  %v11555_v59 = vsub.f32 %v1274_v46, %v11549_v38  ;;  %v1277_v61 = vsel %vm443_vm0, %v1104_v26, 0  ;;  %v553_v58 = vadd.f32 %v552_v34, %v551_v54  ;;  %v139_v18 = vld [vmem:[#allocation2 + $0x280] sm:$0xff]  ;;  %v132_v54 = vld [vmem:[#allocation2 + $0x248] sm:$0xff] }
  0x7b   :  { %9815 = vmatprep.mubr.f32.mxu0 %v1851_v17  ;;  %v1843_v0 = vand.u32 4294901760, %v1842_v20  ;;  %v1852_v1 = vsub.f32 %v11542_v4, %v1851_v17  ;;  %v11559_v40 = vand.u32 4294901760, %v1277_v61  ;;  %v556_v36 = vadd.f32 %v555_v9, %v554_v53 }
  0x7c   :  { %14126 = vst [vmem:[#allocation34_spill] sm:$0xff] %v11555_v59  ;;  %v559_v12 = vsel %vm443_vm0, %v122_v43, 0.0  ;;  %v1861_v24 = vand.u32 4294901760, %v11555_v59  ;;  %v560_v46 = vsel %vm443_vm0, %v126_v60, 0.0  ;;  %v562_v49 = vsel %vm443_vm0, %v130_v45, 0.0  ;;  %v136_v60 = vld [vmem:[#allocation2 + $0x268] sm:$0xff] }
  0x7d   :  { %9213 = vmatmul.mubr.f32.gmra.mrb[16].mxu1 %v1843_v0  ;;  %v1853_v20 = vand.u32 4294901760, %v1852_v1  ;;  %v11566_v17 = vsub.f32 %v1277_v61, %v11559_v40  ;;  %v1105_v26 = vmax.f32 %v553_v58, 0.0  ;;  %v558_v4 = vadd.f32 %v557_v51, %v556_v36 }
  0x7e   :  { %v561_v34 = vadd.f32 %v560_v46, %v559_v12  ;;  %9816 = vmatmul.mubr.f32.gmra.mrb[18].mxu0 %v1861_v24  ;;  %v1862_v43 = vsub.f32 %v11555_v59, %v1861_v24  ;;  %v564_v53 = vsel %vm443_vm0, %v131_v6, 0.0  ;;  %v565_v9 = vsel %vm443_vm0, %v135_v21, 0.0  ;;  %v133_v46 = vld [vmem:[#allocation2 + $0x250] sm:$0xff] }
  0x7f   :  { %14127 = vst [vmem:[#allocation35_spill] sm:$0xff] %v11566_v17  ;;  %9215 = vmatprep.mubr.f32.mxu1 %v1853_v20  ;;  %v567_v0 = vsel %vm443_vm0, %v139_v18, 0.0  ;;  %v1871_v45 = vand.u32 4294901760, %v11566_v17  ;;  %v1280_v1 = vsel %vm443_vm0, %v1105_v26, 0  ;;  %v1106_v61 = vmax.f32 %v558_v4, 0.0  ;;  %v140_v20 = vld [vmem:[#allocation2 + $0x288] sm:$0xff] }
  0x80   :  { %v563_v58 = vadd.f32 %v562_v49, %v561_v34  ;;  %v1863_v51 = vand.u32 4294901760, %v1862_v43  ;;  %v11574_v36 = vand.u32 4294901760, %v1280_v1  ;;  %v566_v12 = vadd.f32 %v565_v9, %v564_v53  ;;  %v137_v43 = vld [vmem:[#allocation2 + $0x270] sm:$0xff] }
  0x81   :  { %v569_v24 = vsel %vm443_vm0, %v132_v54, 0.0  ;;  %9818 = vmatprep.mubr.f32.mxu0 %v1871_v45  ;;  %v1872_v6 = vsub.f32 %v11566_v17, %v1871_v45  ;;  %v1283_v21 = vsel %vm443_vm0, %v1106_v61, 0  ;;  %v570_v59 = vsel %vm443_vm0, %v136_v60, 0.0  ;;  %v141_v53 = vld [vmem:[#allocation2 + $0x290] sm:$0xff]  ;;  %v134_v54 = vld [vmem:[#allocation2 + $0x258] sm:$0xff] }
  0x82   :  { %v1107_v18 = vmax.f32 %v563_v58, 0.0  ;;  %9216 = vmatmul.mubr.f32.gmra.mrb[18].mxu1 %v1863_v51  ;;  %v11581_v4 = vsub.f32 %v1280_v1, %v11574_v36  ;;  %v11583_v49 = vand.u32 4294901760, %v1283_v21  ;;  %v568_v26 = vadd.f32 %v567_v0, %v566_v12  ;;  %v138_v0 = vld [vmem:[#allocation2 + $0x278] sm:$0xff] }
  0x83   :  { %v571_v34 = vadd.f32 %v570_v59, %v569_v24  ;;  %v1873_v9 = vand.u32 4294901760, %v1872_v6  ;;  %v572_v45 = vsel %vm443_vm0, %v140_v20, 0.0  ;;  %v574_v61 = vsel %vm443_vm0, %v133_v46, 0.0 }
  0x84   :  { %14128 = vst [vmem:[#allocation36_spill] sm:$0xff] %v11581_v4  ;;  %v1286_v29 = vsel %vm443_vm0, %v1107_v18, 0  ;;  %v1881_v60 = vand.u32 4294901760, %v11581_v4  ;;  %v11590_v58 = vsub.f32 %v1283_v21, %v11583_v49  ;;  %v1108_v51 = vmax.f32 %v568_v26, 0.0  ;;  %v142_v26 = vld [vmem:[#allocation2 + $0x298] sm:$0xff] }
  0x85   :  { %v11592_v1 = vand.u32 4294901760, %v1286_v29  ;;  %9218 = vmatprep.mubr.f32.mxu1 %v1873_v9  ;;  %v573_v59 = vadd.f32 %v572_v45, %v571_v34  ;;  %v575_v12 = vsel %vm443_vm0, %v137_v43, 0.0  ;;  %v577_v24 = vsel %vm443_vm0, %v141_v53, 0.0 }
  0x86   :  { %14129 = vst [vmem:[#allocation37_spill] sm:$0xff] %v11590_v58  ;;  %v579_v6 = vsel %vm443_vm0, %v134_v54, 0.0  ;;  %9819 = vmatmul.mubr.f32.gmra.mrb[20].mxu0 %v1881_v60  ;;  %v1891_v20 = vand.u32 4294901760, %v11590_v58  ;;  %v1882_v46 = vsub.f32 %v11581_v4, %v1881_v60  ;;  %v1289_v18 = vsel %vm443_vm0, %v1108_v51, 0  ;;  %v143_v60 = vld [vmem:[#allocation2 + $0x2a0] sm:$0xff] }
  0x87   :  { %v11600_v21 = vsub.f32 %v1286_v29, %v11592_v1  ;;  %v11603_v17 = vand.u32 4294901760, %v1289_v18  ;;  %v1109_v34 = vmax.f32 %v573_v59, 0.0  ;;  %v576_v9 = vadd.f32 %v575_v12, %v574_v61  ;;  %v147_v4 = vld [vmem:[#allocation2 + $0x2c0] sm:$0xff] }
  0x88   :  { %v580_v43 = vsel %vm443_vm0, %v138_v0, 0.0  ;;  %9821 = vmatprep.mubr.f32.mxu0 %v1891_v20  ;;  %v1883_v53 = vand.u32 4294901760, %v1882_v46  ;;  %v1892_v45 = vsub.f32 %v11590_v58, %v1891_v20  ;;  %v582_v59 = vsel %vm443_vm0, %v142_v26, 0.0  ;;  %v151_v20 = vld [vmem:[#allocation2 + $0x2e0] sm:$0xff] }
  0x89   :  { %14130 = vst [vmem:[#allocation38_spill] sm:$0xff] %v11600_v21  ;;  %v1901_v54 = vand.u32 4294901760, %v11600_v21  ;;  %v581_v7 = vadd.f32 %v580_v43, %v579_v6  ;;  %v11609_v29 = vsub.f32 %v1289_v18, %v11603_v17  ;;  %v1292_v51 = vsel %vm443_vm0, %v1109_v34, 0  ;;  %v144_v6 = vld [vmem:[#allocation2 + $0x2a8] sm:$0xff] }
  0x8a   :  { %v578_v48 = vadd.f32 %v577_v24, %v576_v9  ;;  %9219 = vmatmul.mubr.f32.gmra.mrb[20].mxu1 %v1883_v53  ;;  %v1893_v61 = vand.u32 4294901760, %v1892_v45  ;;  %v11614_v12 = vand.u32 4294901760, %v1292_v51  ;;  %v584_v18 = vsel %vm443_vm0, %v143_v60, 0.0  ;;  %v152_v45 = vld [vmem:[#allocation2 + $0x2e8] sm:$0xff] }
  0x8b   :  { %14131 = vst [vmem:[#allocation39_spill] sm:$0xff] %v11609_v29  ;;  %9822 = vmatmul.mubr.f32.gmra.mrb[22].mxu0 %v1901_v54  ;;  %v1902_v0 = vsub.f32 %v11600_v21, %v1901_v54  ;;  %v583_v46 = vadd.f32 %v582_v59, %v581_v7  ;;  %v1911_v43 = vand.u32 4294901760, %v11609_v29  ;;  %v585_v34 = vsel %vm443_vm0, %v147_v4, 0.0  ;;  %v148_v54 = vld [vmem:[#allocation2 + $0x2c8] sm:$0xff] }
  0x8c   :  { %v1110_v58 = vmax.f32 %v578_v48, 0.0  ;;  %9221 = vmatprep.mubr.f32.mxu1 %v1893_v61  ;;  %v11620_v26 = vsub.f32 %v1292_v51, %v11614_v12  ;;  %v586_v53 = vadd.f32 %v585_v34, %v584_v18  ;;  %v587_v48 = vsel %vm443_vm0, %v151_v20, 0.0  ;;  %v149_v18 = vld [vmem:[#allocation2 + $0x2d0] sm:$0xff] }
  0x8d   :  { %v1903_v24 = vand.u32 4294901760, %v1902_v0  ;;  %v1111_v9 = vmax.f32 %v583_v46, 0.0  ;;  %9824 = vmatprep.mubr.f32.mxu0 %v1911_v43  ;;  %v1912_v7 = vsub.f32 %v11609_v29, %v1911_v43  ;;  %v589_v60 = vsel %vm443_vm0, %v144_v6, 0.0  ;;  %v145_v46 = vld [vmem:[#allocation2 + $0x2b0] sm:$0xff] }
  0x8e   :  { %14132 = vst [vmem:[#allocation40_spill] sm:$0xff] %v11620_v26  ;;  %v1295_v59 = vsel %vm443_vm0, %v1110_v58, 0  ;;  %v1921_v4 = vand.u32 4294901760, %v11620_v26  ;;  %v588_v0 = vadd.f32 %v587_v48, %v586_v53  ;;  %v153_v34 = vld [vmem:[#allocation2 + $0x2f0] sm:$0xff]  ;;  %v590_v58 = vsel %vm443_vm0, %v148_v54, 0.0 }
  0x8f   :  { %9222 = vmatmul.mubr.f32.gmra.mrb[22].mxu1 %v1903_v24  ;;  %v11627_v61 = vand.u32 4294901760, %v1295_v59  ;;  %v1298_v51 = vsel %vm443_vm0, %v1111_v9, 0  ;;  %v1913_v21 = vand.u32 4294901760, %v1912_v7  ;;  %v592_v20 = vsel %vm443_vm0, %v152_v45, 0.0  ;;  %v146_v9 = vld [vmem:[#allocation2 + $0x2b8] sm:$0xff] }
  0x90   :  { %v11630_v28 = vand.u32 4294901760, %v1298_v51  ;;  %9825 = vmatmul.mubr.f32.gmra.mrb[24].mxu0 %v1921_v4  ;;  %v1922_v43 = vsub.f32 %v11620_v26, %v1921_v4  ;;  %v1112_v24 = vmax.f32 %v588_v0, 0.0  ;;  %v591_v29 = vadd.f32 %v590_v58, %v589_v60  ;;  %v150_v45 = vld [vmem:[#allocation2 + $0x2d8] sm:$0xff]  ;;  %v159_v26 = vld [vmem:[#allocation2 + $0x320] sm:$0xff] }
  0x91   :  { %v11635_v6 = vsub.f32 %v1295_v59, %v11627_v61  ;;  %9224 = vmatprep.mubr.f32.mxu1 %v1913_v21  ;;  %v594_v7 = vsel %vm443_vm0, %v145_v46, 0.0  ;;  %v595_v48 = vsel %vm443_vm0, %v149_v18, 0.0  ;;  %v597_v54 = vsel %vm443_vm0, %v153_v34, 0.0  ;;  %v155_v46 = vld [vmem:[#allocation2 + $0x300] sm:$0xff] }
  0x92   :  { %v11639_v53 = vsub.f32 %v1298_v51, %v11630_v28  ;;  %v1923_v32 = vand.u32 4294901760, %v1922_v43  ;;  %v1301_v4 = vsel %vm443_vm0, %v1112_v24, 0  ;;  %v593_v0 = vadd.f32 %v592_v20, %v591_v29 }
  0x93   :  { %14133 = vst [vmem:[#allocation41_spill] sm:$0xff] %v11635_v6  ;;  %v1931_v59 = vand.u32 4294901760, %v11635_v6  ;;  %v11647_v21 = vand.u32 4294901760, %v1301_v4  ;;  %v596_v51 = vadd.f32 %v595_v48, %v594_v7  ;;  %v599_v58 = vsel %vm443_vm0, %v146_v9, 0.0  ;;  %v163_v9 = vld [vmem:[#allocation2 + $0x340] sm:$0xff]  ;;  %v156_v48 = vld [vmem:[#allocation2 + $0x308] sm:$0xff] }
  0x94   :  { %14134 = vst [vmem:[#allocation42_spill] sm:$0xff] %v11639_v53  ;;  %v1941_v60 = vand.u32 4294901760, %v11639_v53  ;;  %9225 = vmatmul.mubr.f32.gmra.mrb[24].mxu1 %v1923_v32  ;;  %v1113_v34 = vmax.f32 %v593_v0, 0.0  ;;  %v600_v23 = vsel %vm443_vm0, %v150_v45, 0.0  ;;  %v602_v43 = vsel %vm443_vm0, %v154_v55, 0.0  ;;  %v160_v45 = vld [vmem:[#allocation2 + $0x328] sm:$0xff] }
  0x95   :  { %9827 = vmatprep.mubr.f32.mxu0 %v1931_v59  ;;  %v1932_v18 = vsub.f32 %v11635_v6, %v1931_v59  ;;  %v11654_v29 = vsub.f32 %v1301_v4, %v11647_v21  ;;  %v598_v24 = vadd.f32 %v597_v54, %v596_v51  ;;  %v601_v7 = vadd.f32 %v600_v23, %v599_v58  ;;  %v164_v51 = vld [vmem:[#allocation2 + $0x348] sm:$0xff] }
  0x96   :  { %9828 = vmatmul.mubr.f32.gmra.mrb[26].mxu0 %v1941_v60  ;;  %v1942_v20 = vsub.f32 %v11639_v53, %v1941_v60  ;;  %v1304_v32 = vsel %vm443_vm0, %v1113_v34, 0  ;;  %v604_v59 = vsel %vm443_vm0, %v155_v46, 0.0  ;;  %v605_v0 = vsel %vm443_vm0, %v159_v26, 0.0  ;;  %v158_v53 = vld [vmem:[#allocation2 + $0x318] sm:$0xff] }
  0x97   :  { %14135 = vst [vmem:[#allocation43_spill] sm:$0xff] %v11654_v29  ;;  %v1933_v57 = vand.u32 4294901760, %v1932_v18  ;;  %v1951_v55 = vand.u32 4294901760, %v11654_v29  ;;  %v11661_v41 = vand.u32 4294901760, %v1304_v32  ;;  %v1114_v4 = vmax.f32 %v598_v24, 0.0  ;;  %v157_v18 = vld [vmem:[#allocation2 + $0x310] sm:$0xff] }
  0x98   :  { %v1943_v6 = vand.u32 4294901760, %v1942_v20  ;;  %v603_v60 = vadd.f32 %v602_v43, %v601_v7  ;;  %v606_v54 = vadd.f32 %v605_v0, %v604_v59  ;;  %v607_v23 = vsel %vm443_vm0, %v163_v9, 0.0  ;;  %v161_v9 = vld [vmem:[#allocation2 + $0x330] sm:$0xff] }
  0x99   :  { %9227 = vmatprep.mubr.f32.mxu1 %v1933_v57  ;;  %v609_v58 = vsel %vm443_vm0, %v156_v48, 0.0  ;;  %9830 = vmatprep.mubr.f32.mxu0 %v1951_v55  ;;  %v11666_v26 = vsub.f32 %v1304_v32, %v11661_v41  ;;  %v1952_v46 = vsub.f32 %v11654_v29, %v1951_v55  ;;  %v1307_v34 = vsel %vm443_vm0, %v1114_v4, 0  ;;  %v165_v59 = vld [vmem:[#allocation2 + $0x350] sm:$0xff] }
  0x9a   :  { %9228 = vmatmul.mubr.f32.gmra.mrb[26].mxu1 %v1943_v6  ;;  %v610_v20 = vsel %vm443_vm0, %v160_v45, 0.0  ;;  %v11671_v57 = vand.u32 4294901760, %v1307_v34  ;;  %v1115_v43 = vmax.f32 %v603_v60, 0.0  ;;  %v608_v24 = vadd.f32 %v607_v23, %v606_v54 }
  0x9b   :  { %14136 = vst [vmem:[#allocation44_spill] sm:$0xff] %v11666_v26  ;;  %v611_v7 = vadd.f32 %v610_v20, %v609_v58  ;;  %v1961_v48 = vand.u32 4294901760, %v11666_v26  ;;  %v1953_v0 = vand.u32 4294901760, %v1952_v46  ;;  %v612_v6 = vsel %vm443_vm0, %v164_v51, 0.0  ;;  %v162_v58 = vld [vmem:[#allocation2 + $0x338] sm:$0xff] }
  0x9c   :  { %v614_v32 = vsel %vm443_vm0, %v157_v18, 0.0  ;;  %v11677_v55 = vsub.f32 %v1307_v34, %v11671_v57  ;;  %v1310_v4 = vsel %vm443_vm0, %v1115_v43, 0  ;;  %v1116_v45 = vmax.f32 %v608_v24, 0.0 }
  0x9d   :  { %v613_v29 = vadd.f32 %v612_v6, %v611_v7  ;;  %9831 = vmatmul.mubr.f32.gmra.mrb[28].mxu0 %v1961_v48  ;;  %9230 = vmatprep.mubr.f32.mxu1 %v1953_v0  ;;  %v1962_v60 = vsub.f32 %v11666_v26, %v1961_v48  ;;  %v11681_v54 = vand.u32 4294901760, %v1310_v4  ;;  %v615_v23 = vsel %vm443_vm0, %v161_v9, 0.0  ;;  %v166_v48 = vld [vmem:[#allocation2 + $0x358] sm:$0xff]  ;;  %v167_v6 = vld [vmem:[#allocation2 + $0x360] sm:$0xff] }
  0x9e   :  { %14137 = vst [vmem:[#allocation45_spill] sm:$0xff] %v11677_v55  ;;  %v617_v51 = vsel %vm443_vm0, %v165_v59, 0.0  ;;  %v1971_v18 = vand.u32 4294901760, %v11677_v55  ;;  %v1313_v46 = vsel %vm443_vm0, %v1116_v45, 0  ;;  %v616_v20 = vadd.f32 %v615_v23, %v614_v32  ;;  %v171_v23 = vld [vmem:[#allocation2 + $0x380] sm:$0xff] }
  0x9f   :  { %14138 = vst [vmem:[#allocation46_spill] sm:$0xff] %v11681_v54  ;;  %v1117_v34 = vmax.f32 %v613_v29, 0.0  ;;  %v1963_v43 = vand.u32 4294901760, %v1962_v60  ;;  %v11688_v24 = vsub.f32 %v1310_v4, %v11681_v54  ;;  %v11690_v7 = vand.u32 4294901760, %v1313_v46 }
  0xa0   :  { %v619_v0 = vsel %vm443_vm0, %v158_v53, 0.0  ;;  %9833 = vmatprep.mubr.f32.mxu0 %v1971_v18  ;;  %v1972_v9 = vsub.f32 %v11677_v55, %v1971_v18  ;;  %v618_v26 = vadd.f32 %v617_v51, %v616_v20  ;;  %v620_v45 = vsel %vm443_vm0, %v162_v58, 0.0  ;;  %v175_v53 = vld [vmem:[#allocation2 + $0x3a0] sm:$0xff] }
  0xa1   :  { %14139 = vst [vmem:[#allocation47_spill] sm:$0xff] %v11688_v24  ;;  %14140 = vst [vmem:[#allocation48_spill] sm:$0xff] %v11690_v7  ;;  %v1316_v59 = vsel %vm443_vm0, %v1117_v34, 0  ;;  %9231 = vmatmul.mubr.f32.gmra.mrb[28].mxu1 %v1963_v43  ;;  %v1981_v29 = vand.u32 4294901760, %v11688_v24  ;;  %v11698_v32 = vsub.f32 %v1313_v46, %v11690_v7  ;;  %v621_v60 = vadd.f32 %v620_v45, %v619_v0  ;;  %v172_v43 = vld [vmem:[#allocation2 + $0x388] sm:$0xff] }
  0xa2   :  { %v11700_v4 = vand.u32 4294901760, %v1316_v59  ;;  %v1973_v14 = vand.u32 4294901760, %v1972_v9  ;;  %v1118_v62 = vmax.f32 %v618_v26, 0.0  ;;  %v622_v18 = vsel %vm443_vm0, %v166_v48, 0.0  ;;  %v176_v0 = vld [vmem:[#allocation2 + $0x3a8] sm:$0xff] }
  0xa3   :  { %14141 = vst [vmem:[#allocation49_spill] sm:$0xff] %v11698_v32  ;;  %v624_v51 = vsel %vm443_vm0, %v167_v6, 0.0  ;;  %9834 = vmatmul.mubr.f32.gmra.mrb[30].mxu0 %v1981_v29  ;;  %v1991_v58 = vand.u32 4294901760, %v11698_v32  ;;  %v1982_v34 = vsub.f32 %v11688_v24, %v1981_v29  ;;  %v623_v20 = vadd.f32 %v622_v18, %v621_v60  ;;  %v169_v60 = vld [vmem:[#allocation2 + $0x370] sm:$0xff] }
  0xa4   :  { %14142 = vst [vmem:[#allocation50_spill] sm:$0xff] %v11700_v4  ;;  %v11707_v46 = vsub.f32 %v1316_v59, %v11700_v4  ;;  %9233 = vmatprep.mubr.f32.mxu1 %v1973_v14  ;;  %v1319_v45 = vsel %vm443_vm0, %v1118_v62, 0  ;;  %v625_v26 = vsel %vm443_vm0, %v171_v23, 0.0  ;;  %v627_v48 = vsel %vm443_vm0, %v175_v53, 0.0  ;;  %v173_v18 = vld [vmem:[#allocation2 + $0x390] sm:$0xff] }
  0xa5   :  { %v629_v6 = vsel %vm443_vm0, %v168_v27, 0.0  ;;  %9836 = vmatprep.mubr.f32.mxu0 %v1991_v58  ;;  %v1983_v9 = vand.u32 4294901760, %v1982_v34  ;;  %v1992_v29 = vsub.f32 %v11698_v32, %v1991_v58  ;;  %v11715_v59 = vand.u32 4294901760, %v1319_v45  ;;  %v177_v58 = vld [vmem:[#allocation2 + $0x3b0] sm:$0xff]  ;;  %v170_v32 = vld [vmem:[#allocation2 + $0x378] sm:$0xff] }
  0xa6   :  { %14143 = vst [vmem:[#allocation51_spill] sm:$0xff] %v11707_v46  ;;  %v2001_v55 = vand.u32 4294901760, %v11707_v46  ;;  %v1119_v24 = vmax.f32 %v623_v20, 0.0  ;;  %v626_v14 = vadd.f32 %v625_v26, %v624_v51  ;;  %v630_v62 = vsel %vm443_vm0, %v172_v43, 0.0  ;;  %v174_v43 = vld [vmem:[#allocation2 + $0x398] sm:$0xff] }
  0xa7   :  { %14144 = vst [vmem:[#allocation52_spill] sm:$0xff] %v11715_v59  ;;  %v632_v23 = vsel %vm443_vm0, %v176_v0, 0.0  ;;  %9234 = vmatmul.mubr.f32.gmra.mrb[30].mxu1 %v1983_v9  ;;  %v1993_v53 = vand.u32 4294901760, %v1992_v29  ;;  %v11720_v27 = vsub.f32 %v1319_v45, %v11715_v59  ;;  %v631_v4 = vadd.f32 %v630_v62, %v629_v6  ;;  %v178_v29 = vld [vmem:[#allocation2 + $0x3b8] sm:$0xff] }
  0xa8   :  { %9837 = vmatmul.mubr.f32.gmra.mrb[32].mxu0 %v2001_v55  ;;  %v2002_v34 = vsub.f32 %v11707_v46, %v2001_v55  ;;  %v1322_v7 = vsel %vm443_vm0, %v1119_v24, 0  ;;  %v628_v54 = vadd.f32 %v627_v48, %v626_v14  ;;  %v634_v51 = vsel %vm443_vm0, %v169_v60, 0.0 }
  0xa9   :  { %14145 = vst [vmem:[#allocation53_spill] sm:$0xff] %v11720_v27  ;;  %v635_v20 = vsel %vm443_vm0, %v173_v18, 0.0  ;;  %9236 = vmatprep.mubr.f32.mxu1 %v1993_v53  ;;  %v2011_v0 = vand.u32 4294901760, %v11720_v27  ;;  %v11727_v9 = vand.u32 4294901760, %v1322_v7  ;;  %v633_v45 = vadd.f32 %v632_v23, %v631_v4  ;;  %v179_v53 = vld [vmem:[#allocation2 + $0x3c0] sm:$0xff] }
  0xaa   :  { %v2003_v26 = vand.u32 4294901760, %v2002_v34  ;;  %v1120_v55 = vmax.f32 %v628_v54, 0.0  ;;  %v636_v6 = vadd.f32 %v635_v20, %v634_v51  ;;  %v637_v62 = vsel %vm443_vm0, %v177_v58, 0.0  ;;  %v183_v58 = vld [vmem:[#allocation2 + $0x3e0] sm:$0xff] }
  0xab   :  { %14146 = vst [vmem:[#allocation54_spill] sm:$0xff] %v11727_v9  ;;  %v639_v24 = vsel %vm443_vm0, %v170_v32, 0.0  ;;  %9839 = vmatprep.mubr.f32.mxu0 %v2011_v0  ;;  %v11732_v48 = vsub.f32 %v1322_v7, %v11727_v9  ;;  %v2012_v60 = vsub.f32 %v11720_v27, %v2011_v0  ;;  %v1121_v18 = vmax.f32 %v633_v45, 0.0  ;;  %v187_v51 = vld [vmem:[#allocation2 + $0x400] sm:$0xff] }
  0xac   :  { %9237 = vmatmul.mubr.f32.gmra.mrb[32].mxu1 %v2003_v26  ;;  %v640_v14 = vsel %vm443_vm0, %v174_v43, 0.0  ;;  %v1325_v4 = vsel %vm443_vm0, %v1120_v55, 0  ;;  %v638_v23 = vadd.f32 %v637_v62, %v636_v6  ;;  %v642_v34 = vsel %vm443_vm0, %v178_v29, 0.0  ;;  %v180_v55 = vld [vmem:[#allocation2 + $0x3c8] sm:$0xff] }
  0xad   :  { %14147 = vst [vmem:[#allocation55_spill] sm:$0xff] %v11732_v48  ;;  %v641_v54 = vadd.f32 %v640_v14, %v639_v24  ;;  %v2021_v32 = vand.u32 4294901760, %v11732_v48  ;;  %v2013_v20 = vand.u32 4294901760, %v2012_v60  ;;  %v11739_v26 = vand.u32 4294901760, %v1325_v4  ;;  %v184_v60 = vld [vmem:[#allocation2 + $0x3e8] sm:$0xff] }
  0xae   :  { %v1328_v7 = vsel %vm443_vm0, %v1121_v18, 0  ;;  %v1122_v45 = vmax.f32 %v638_v23, 0.0  ;;  %v644_v27 = vsel %vm443_vm0, %v179_v53, 0.0  ;;  %v645_v62 = vsel %vm443_vm0, %v183_v58, 0.0 }
  0xaf   :  { %14148 = vst [vmem:[#allocation56_spill] sm:$0xff] %v11739_v26  ;;  %v11742_v0 = vand.u32 4294901760, %v1328_v7  ;;  %v643_v43 = vadd.f32 %v642_v34, %v641_v54  ;;  %9840 = vmatmul.mubr.f32.gmra.mrb[34].mxu0 %v2021_v32  ;;  %9239 = vmatprep.mubr.f32.mxu1 %v2013_v20  ;;  %v11746_v29 = vsub.f32 %v1325_v4, %v11739_v26  ;;  %v647_v24 = vsel %vm443_vm0, %v187_v51, 0.0  ;;  %v188_v4 = vld [vmem:[#allocation2 + $0x408] sm:$0xff] }
  0xb0   :  { %v2022_v6 = vsub.f32 %v11732_v48, %v2021_v32  ;;  %v1331_v14 = vsel %vm443_vm0, %v1122_v45, 0  ;;  %v646_v53 = vadd.f32 %v645_v62, %v644_v27  ;;  %v649_v32 = vsel %vm443_vm0, %v180_v55, 0.0  ;;  %v181_v48 = vld [vmem:[#allocation2 + $0x3d0] sm:$0xff] }
  0xb1   :  { %14149 = vst [vmem:[#allocation57_spill] sm:$0xff] %v11742_v0  ;;  %14150 = vst [vmem:[#allocation58_spill] sm:$0xff] %v11746_v29  ;;  %v11752_v18 = vsub.f32 %v1328_v7, %v11742_v0  ;;  %v1123_v23 = vmax.f32 %v643_v43, 0.0  ;;  %v2031_v54 = vand.u32 4294901760, %v11746_v29  ;;  %v11756_v20 = vand.u32 4294901760, %v1331_v14  ;;  %v185_v62 = vld [vmem:[#allocation2 + $0x3f0] sm:$0xff] }
  0xb2   :  { %v2023_v34 = vand.u32 4294901760, %v2022_v6  ;;  %v648_v46 = vadd.f32 %v647_v24, %v646_v53  ;;  %v650_v7 = vsel %vm443_vm0, %v184_v60, 0.0  ;;  %v189_v55 = vld [vmem:[#allocation2 + $0x410] sm:$0xff]  ;;  %v652_v24 = vsel %vm443_vm0, %v188_v4, 0.0 }
  0xb3   :  { %14151 = vst [vmem:[#allocation59_spill] sm:$0xff] %v11752_v18  ;;  %14152 = vst [vmem:[#allocation60_spill] sm:$0xff] %v11756_v20  ;;  %v2041_v58 = vand.u32 4294901760, %v11752_v18  ;;  %v1334_v51 = vsel %vm443_vm0, %v1123_v23, 0  ;;  %9842 = vmatprep.mubr.f32.mxu0 %v2031_v54  ;;  %v2032_v27 = vsub.f32 %v11746_v29, %v2031_v54  ;;  %v11764_v45 = vsub.f32 %v1331_v14, %v11756_v20  ;;  %v186_v29 = vld [vmem:[#allocation2 + $0x3f8] sm:$0xff] }
  0xb4   :  { %9240 = vmatmul.mubr.f32.gmra.mrb[34].mxu1 %v2023_v34  ;;  %v11766_v43 = vand.u32 4294901760, %v1334_v51  ;;  %v651_v6 = vadd.f32 %v650_v7, %v649_v32  ;;  %v1124_v26 = vmax.f32 %v648_v46, 0.0  ;;  %v654_v60 = vsel %vm443_vm0, %v181_v48, 0.0  ;;  %v182_v34 = vld [vmem:[#allocation2 + $0x3d8] sm:$0xff] }
  0xb5   :  { %14153 = vst [vmem:[#allocation61_spill] sm:$0xff] %v11764_v45  ;;  %9843 = vmatmul.mubr.f32.gmra.mrb[36].mxu0 %v2041_v58  ;;  %v2042_v0 = vsub.f32 %v11752_v18, %v2041_v58  ;;  %v2033_v23 = vand.u32 4294901760, %v2032_v27  ;;  %v2051_v53 = vand.u32 4294901760, %v11764_v45  ;;  %v190_v32 = vld [vmem:[#allocation2 + $0x418] sm:$0xff]  ;;  %v655_v58 = vsel %vm443_vm0, %v185_v62, 0.0  ;;  %v195_v18 = vld [vmem:[#allocation2 + $0x440] sm:$0xff] }
  0xb6   :  { %14154 = vst [vmem:[#allocation62_spill] sm:$0xff] %v11766_v43  ;;  %v11773_v54 = vsub.f32 %v1334_v51, %v11766_v43  ;;  %v653_v14 = vadd.f32 %v652_v24, %v651_v6  ;;  %v1337_v20 = vsel %vm443_vm0, %v1124_v26, 0  ;;  %v657_v46 = vsel %vm443_vm0, %v189_v55, 0.0  ;;  %v191_v6 = vld [vmem:[#allocation2 + $0x420] sm:$0xff] }
  0xb7   :  { %v2043_v7 = vand.u32 4294901760, %v2042_v0  ;;  %9242 = vmatprep.mubr.f32.mxu1 %v2033_v23  ;;  %9845 = vmatprep.mubr.f32.mxu0 %v2051_v53  ;;  %v2052_v4 = vsub.f32 %v11764_v45, %v2051_v53  ;;  %v11780_v27 = vand.u32 4294901760, %v1337_v20  ;;  %v656_v24 = vadd.f32 %v655_v58, %v654_v60  ;;  %v199_v55 = vld [vmem:[#allocation2 + $0x460] sm:$0xff]  ;;  %v196_v58 = vld [vmem:[#allocation2 + $0x448] sm:$0xff] }
  0xb8   :  { %14155 = vst [vmem:[#allocation63_spill] sm:$0xff] %v11773_v54  ;;  %v2061_v48 = vand.u32 4294901760, %v11773_v54  ;;  %v1125_v51 = vmax.f32 %v653_v14, 0.0  ;;  %v659_v0 = vsel %vm443_vm0, %v182_v34, 0.0  ;;  %v660_v26 = vsel %vm443_vm0, %v186_v29, 0.0  ;;  %v192_v29 = vld [vmem:[#allocation2 + $0x428] sm:$0xff] }
  0xb9   :  { %14156 = vst [vmem:[#allocation64_spill] sm:$0xff] %v11780_v27  ;;  %9243 = vmatmul.mubr.f32.gmra.mrb[36].mxu1 %v2043_v7  ;;  %v662_v62 = vsel %vm443_vm0, %v190_v32, 0.0  ;;  %v2053_v23 = vand.u32 4294901760, %v2052_v4  ;;  %v11786_v43 = vsub.f32 %v1337_v20, %v11780_v27  ;;  %v658_v60 = vadd.f32 %v657_v46, %v656_v24  ;;  %v200_v32 = vld [vmem:[#allocation2 + $0x468] sm:$0xff]  ;;  %v193_v24 = vld [vmem:[#allocation2 + $0x430] sm:$0xff] }
  0xba   :  { %9846 = vmatmul.mubr.f32.gmra.mrb[38].mxu0 %v2061_v48  ;;  %v2062_v53 = vsub.f32 %v11773_v54, %v2061_v48  ;;  %v1340_v14 = vsel %vm443_vm0, %v1125_v51, 0  ;;  %v661_v7 = vadd.f32 %v660_v26, %v659_v0  ;;  %v664_v34 = vsel %vm443_vm0, %v191_v6, 0.0 }
  0xbb   :  { %14157 = vst [vmem:[#allocation65_spill] sm:$0xff] %v11786_v43  ;;  %v11790_v45 = vand.u32 4294901760, %v1340_v14  ;;  %9245 = vmatprep.mubr.f32.mxu1 %v2053_v23  ;;  %v2071_v9 = vand.u32 4294901760, %v11786_v43  ;;  %v665_v20 = vsel %vm443_vm0, %v195_v18, 0.0  ;;  %v667_v27 = vsel %vm443_vm0, %v199_v55, 0.0  ;;  %v197_v18 = vld [vmem:[#allocation2 + $0x450] sm:$0xff] }
  0xbc   :  { %v2063_v4 = vand.u32 4294901760, %v2062_v53  ;;  %v1126_v51 = vmax.f32 %v658_v60, 0.0  ;;  %v663_v54 = vadd.f32 %v662_v62, %v661_v7  ;;  %v666_v46 = vadd.f32 %v665_v20, %v664_v34  ;;  %v194_v20 = vld [vmem:[#allocation2 + $0x438] sm:$0xff] }
  0xbd   :  { %14158 = vst [vmem:[#allocation66_spill] sm:$0xff] %v11790_v45  ;;  %v11797_v48 = vsub.f32 %v1340_v14, %v11790_v45  ;;  %9848 = vmatprep.mubr.f32.mxu0 %v2071_v9  ;;  %v2072_v6 = vsub.f32 %v11786_v43, %v2071_v9  ;;  %v669_v0 = vsel %vm443_vm0, %v192_v29, 0.0  ;;  %v670_v26 = vsel %vm443_vm0, %v196_v58, 0.0 }
  0xbe   :  { %9246 = vmatmul.mubr.f32.gmra.mrb[38].mxu1 %v2063_v4  ;;  %v672_v23 = vsel %vm443_vm0, %v200_v32, 0.0  ;;  %v1343_v53 = vsel %vm443_vm0, %v1126_v51, 0  ;;  %v1127_v14 = vmax.f32 %v663_v54, 0.0  ;;  %v668_v60 = vadd.f32 %v667_v27, %v666_v46  ;;  %v201_v4 = vld [vmem:[#allocation2 + $0x470] sm:$0xff] }
  0xbf   :  { %14159 = vst [vmem:[#allocation67_spill] sm:$0xff] %v11797_v48  ;;  %v2081_v55 = vand.u32 4294901760, %v11797_v48  ;;  %v2073_v62 = vand.u32 4294901760, %v2072_v6  ;;  %v11805_v7 = vand.u32 4294901760, %v1343_v53  ;;  %v671_v34 = vadd.f32 %v670_v26, %v669_v0  ;;  %v198_v6 = vld [vmem:[#allocation2 + $0x458] sm:$0xff] }
  0xc0   :  { %v674_v9 = vsel %vm443_vm0, %v193_v24, 0.0  ;;  %v1346_v58 = vsel %vm443_vm0, %v1127_v14, 0  ;;  %v1128_v32 = vmax.f32 %v668_v60, 0.0  ;;  %v675_v43 = vsel %vm443_vm0, %v197_v18, 0.0  ;;  %v202_v0 = vld [vmem:[#allocation2 + $0x478] sm:$0xff]  ;;  %v203_v24 = vld [vmem:[#allocation2 + $0x480] sm:$0xff] }
  0xc1   :  { %14160 = vst [vmem:[#allocation68_spill] sm:$0xff] %v11805_v7  ;;  %9849 = vmatmul.mubr.f32.gmra.mrb[40].mxu0 %v2081_v55  ;;  %v2082_v29 = vsub.f32 %v11797_v48, %v2081_v55  ;;  %9248 = vmatprep.mubr.f32.mxu1 %v2073_v62  ;;  %v11812_v54 = vsub.f32 %v1343_v53, %v11805_v7  ;;  %v11814_v27 = vand.u32 4294901760, %v1346_v58  ;;  %v677_v55 = vsel %vm443_vm0, %v201_v4, 0.0 }
  0xc2   :  { %v673_v51 = vadd.f32 %v672_v23, %v671_v34  ;;  %v676_v46 = vadd.f32 %v675_v43, %v674_v9  ;;  %v1349_v45 = vsel %vm443_vm0, %v1128_v32, 0  ;;  %v679_v14 = vsel %vm443_vm0, %v194_v20, 0.0  ;;  %v207_v23 = vld [vmem:[#allocation2 + $0x4a0] sm:$0xff] }
  0xc3   :  { %14161 = vst [vmem:[#allocation69_spill] sm:$0xff] %v11812_v54  ;;  %14162 = vst [vmem:[#allocation70_spill] sm:$0xff] %v11814_v27  ;;  %v2083_v26 = vand.u32 4294901760, %v2082_v29  ;;  %v2091_v18 = vand.u32 4294901760, %v11812_v54  ;;  %v11821_v60 = vsub.f32 %v1346_v58, %v11814_v27  ;;  %v11823_v53 = vand.u32 4294901760, %v1349_v45 }
  0xc4   :  { %v1129_v62 = vmax.f32 %v673_v51, 0.0  ;;  %v678_v43 = vadd.f32 %v677_v55, %v676_v46  ;;  %v680_v34 = vsel %vm443_vm0, %v198_v6, 0.0  ;;  %v682_v9 = vsel %vm443_vm0, %v202_v0, 0.0  ;;  %v211_v51 = vld [vmem:[#allocation2 + $0x4c0] sm:$0xff] }
  0xc5   :  { %14163 = vst [vmem:[#allocation71_spill] sm:$0xff] %v11821_v60  ;;  %14164 = vst [vmem:[#allocation72_spill] sm:$0xff] %v11823_v53  ;;  %9249 = vmatmul.mubr.f32.gmra.mrb[40].mxu1 %v2083_v26  ;;  %v684_v29 = vsel %vm443_vm0, %v203_v24, 0.0  ;;  %9851 = vmatprep.mubr.f32.mxu0 %v2091_v18  ;;  %v2101_v4 = vand.u32 4294901760, %v11821_v60  ;;  %v2092_v20 = vsub.f32 %v11812_v54, %v2091_v18  ;;  %v685_v6 = vsel %vm443_vm0, %v207_v23, 0.0  ;;  %v204_v18 = vld [vmem:[#allocation2 + $0x488] sm:$0xff] }
  0xc6   :  { %v11831_v58 = vsub.f32 %v1349_v45, %v11823_v53  ;;  %v1352_v32 = vsel %vm443_vm0, %v1129_v62, 0  ;;  %v1130_v46 = vmax.f32 %v678_v43, 0.0  ;;  %v681_v26 = vadd.f32 %v680_v34, %v679_v14  ;;  %v208_v54 = vld [vmem:[#allocation2 + $0x4a8] sm:$0xff] }
  0xc7   :  { %v11834_v48 = vand.u32 4294901760, %v1352_v32  ;;  %9852 = vmatmul.mubr.f32.gmra.mrb[42].mxu0 %v2101_v4  ;;  %v2093_v0 = vand.u32 4294901760, %v2092_v20  ;;  %v2102_v55 = vsub.f32 %v11821_v60, %v2101_v4  ;;  %v686_v27 = vadd.f32 %v685_v6, %v684_v29  ;;  %v212_v4 = vld [vmem:[#allocation2 + $0x4c8] sm:$0xff]  ;;  %v205_v29 = vld [vmem:[#allocation2 + $0x490] sm:$0xff] }
  0xc8   :  { %14165 = vst [vmem:[#allocation73_spill] sm:$0xff] %v11831_v58  ;;  %v2111_v24 = vand.u32 4294901760, %v11831_v58  ;;  %v1355_v62 = vsel %vm443_vm0, %v1130_v46, 0  ;;  %v683_v53 = vadd.f32 %v682_v9, %v681_v26  ;;  %v687_v43 = vsel %vm443_vm0, %v211_v51, 0.0 }
  0xc9   :  { %14166 = vst [vmem:[#allocation74_spill] sm:$0xff] %v11834_v48  ;;  %v11840_v45 = vsub.f32 %v1352_v32, %v11834_v48  ;;  %9251 = vmatprep.mubr.f32.mxu1 %v2093_v0  ;;  %v2103_v14 = vand.u32 4294901760, %v2102_v55  ;;  %v11845_v34 = vand.u32 4294901760, %v1355_v62  ;;  %v688_v20 = vadd.f32 %v687_v43, %v686_v27  ;;  %v213_v55 = vld [vmem:[#allocation2 + $0x4d0] sm:$0xff]  ;;  %v223_v48 = vld [vmem:[#allocation2 + $0x520] sm:$0xff] }
  0xca   :  { %9854 = vmatprep.mubr.f32.mxu0 %v2111_v24  ;;  %v2112_v23 = vsub.f32 %v11831_v58, %v2111_v24  ;;  %v1131_v60 = vmax.f32 %v683_v53, 0.0  ;;  %v689_v32 = vsel %vm443_vm0, %v204_v18, 0.0  ;;  %v690_v46 = vsel %vm443_vm0, %v208_v54, 0.0  ;;  %v209_v24 = vld [vmem:[#allocation2 + $0x4b0] sm:$0xff] }
  0xcb   :  { %14167 = vst [vmem:[#allocation75_spill] sm:$0xff] %v11840_v45  ;;  %14168 = vst [vmem:[#allocation76_spill] sm:$0xff] %v11845_v34  ;;  %v2121_v6 = vand.u32 4294901760, %v11840_v45  ;;  %9252 = vmatmul.mubr.f32.gmra.mrb[42].mxu1 %v2103_v14  ;;  %v11851_v51 = vsub.f32 %v1355_v62, %v11845_v34  ;;  %v1132_v26 = vmax.f32 %v688_v20, 0.0  ;;  %v691_v0 = vadd.f32 %v690_v46, %v689_v32  ;;  %v206_v20 = vld [vmem:[#allocation2 + $0x498] sm:$0xff] }
  0xcc   :  { %v2113_v9 = vand.u32 4294901760, %v2112_v23  ;;  %v1358_v43 = vsel %vm443_vm0, %v1131_v60, 0  ;;  %v692_v53 = vsel %vm443_vm0, %v212_v4, 0.0  ;;  %v694_v18 = vsel %vm443_vm0, %v205_v29, 0.0  ;;  %v210_v32 = vld [vmem:[#allocation2 + $0x4b8] sm:$0xff] }
  0xcd   :  { %14169 = vst [vmem:[#allocation77_spill] sm:$0xff] %v11851_v51  ;;  %9855 = vmatmul.mubr.f32.gmra.mrb[44].mxu0 %v2121_v6  ;;  %v2122_v27 = vsub.f32 %v11840_v45, %v2121_v6  ;;  %v2131_v54 = vand.u32 4294901760, %v11851_v51  ;;  %v11858_v14 = vand.u32 4294901760, %v1358_v43  ;;  %v1361_v62 = vsel %vm443_vm0, %v1132_v26, 0  ;;  %v214_v46 = vld [vmem:[#allocation2 + $0x4d8] sm:$0xff]  ;;  %v215_v26 = vld [vmem:[#allocation2 + $0x4e0] sm:$0xff] }
  0xce   :  { %9254 = vmatprep.mubr.f32.mxu1 %v2113_v9  ;;  %v693_v23 = vadd.f32 %v692_v53, %v691_v0  ;;  %v11861_v34 = vand.u32 4294901760, %v1361_v62  ;;  %v695_v60 = vsel %vm443_vm0, %v209_v24, 0.0  ;;  %v697_v4 = vsel %vm443_vm0, %v213_v55, 0.0  ;;  %v219_v55 = vld [vmem:[#allocation2 + $0x500] sm:$0xff] }
  0xcf   :  { %14170 = vst [vmem:[#allocation78_spill] sm:$0xff] %v11858_v14  ;;  %v2123_v58 = vand.u32 4294901760, %v2122_v27  ;;  %9857 = vmatprep.mubr.f32.mxu0 %v2131_v54  ;;  %v11866_v29 = vsub.f32 %v1358_v43, %v11858_v14  ;;  %v2132_v6 = vsub.f32 %v11851_v51, %v2131_v54  ;;  %v696_v45 = vadd.f32 %v695_v60, %v694_v18  ;;  %v220_v51 = vld [vmem:[#allocation2 + $0x508] sm:$0xff] }
  0xd0   :  { %14171 = vst [vmem:[#allocation79_spill] sm:$0xff] %v11861_v34  ;;  %v1133_v9 = vmax.f32 %v693_v23, 0.0  ;;  %v11870_v0 = vsub.f32 %v1361_v62, %v11861_v34  ;;  %v699_v27 = vsel %vm443_vm0, %v206_v20, 0.0  ;;  %v700_v53 = vsel %vm443_vm0, %v210_v32, 0.0  ;;  %v216_v20 = vld [vmem:[#allocation2 + $0x4e8] sm:$0xff] }
  0xd1   :  { %14172 = vst [vmem:[#allocation80_spill] sm:$0xff] %v11866_v29  ;;  %9255 = vmatmul.mubr.f32.gmra.mrb[44].mxu1 %v2123_v58  ;;  %v702_v24 = vsel %vm443_vm0, %v214_v46, 0.0  ;;  %v2141_v43 = vand.u32 4294901760, %v11866_v29  ;;  %v2133_v14 = vand.u32 4294901760, %v2132_v6  ;;  %v698_v23 = vadd.f32 %v697_v4, %v696_v45 }
  0xd2   :  { %14173 = vst [vmem:[#allocation81_spill] sm:$0xff] %v11870_v0  ;;  %v1364_v54 = vsel %vm443_vm0, %v1133_v9, 0  ;;  %v2151_v18 = vand.u32 4294901760, %v11870_v0  ;;  %v701_v62 = vadd.f32 %v700_v53, %v699_v27  ;;  %v704_v60 = vsel %vm443_vm0, %v215_v26, 0.0  ;;  %v224_v26 = vld [vmem:[#allocation2 + $0x528] sm:$0xff]  ;;  %v217_v53 = vld [vmem:[#allocation2 + $0x4f0] sm:$0xff] }
  0xd3   :  { %v11878_v58 = vand.u32 4294901760, %v1364_v54  ;;  %9858 = vmatmul.mubr.f32.gmra.mrb[46].mxu0 %v2141_v43  ;;  %9257 = vmatprep.mubr.f32.mxu1 %v2133_v14  ;;  %v2142_v32 = vsub.f32 %v11866_v29, %v2141_v43  ;;  %v1134_v46 = vmax.f32 %v698_v23, 0.0  ;;  %v705_v34 = vsel %vm443_vm0, %v219_v55, 0.0  ;;  %v221_v55 = vld [vmem:[#allocation2 + $0x510] sm:$0xff] }
  0xd4   :  { %v707_v6 = vsel %vm443_vm0, %v223_v48, 0.0  ;;  %9860 = vmatprep.mubr.f32.mxu0 %v2151_v18  ;;  %v2152_v4 = vsub.f32 %v11870_v0, %v2151_v18  ;;  %v703_v9 = vadd.f32 %v702_v24, %v701_v62  ;;  %v706_v27 = vadd.f32 %v705_v34, %v704_v60  ;;  %v225_v62 = vld [vmem:[#allocation2 + $0x530] sm:$0xff]  ;;  %v227_v0 = vld [vmem:[#allocation2 + $0x540] sm:$0xff] }
  0xd5   :  { %14174 = vst [vmem:[#allocation82_spill] sm:$0xff] %v11878_v58  ;;  %v11885_v45 = vsub.f32 %v1364_v54, %v11878_v58  ;;  %v2143_v7 = vand.u32 4294901760, %v2142_v32  ;;  %v1367_v14 = vsel %vm443_vm0, %v1134_v46, 0  ;;  %v709_v43 = vsel %vm443_vm0, %v216_v20, 0.0  ;;  %v218_v32 = vld [vmem:[#allocation2 + $0x4f8] sm:$0xff] }
  0xd6   :  { %v710_v23 = vsel %vm443_vm0, %v220_v51, 0.0  ;;  %v2153_v29 = vand.u32 4294901760, %v2152_v4  ;;  %v11892_v59 = vand.u32 4294901760, %v1367_v14  ;;  %v1135_v54 = vmax.f32 %v703_v9, 0.0 }
  0xd7   :  { %14175 = vst [vmem:[#allocation83_spill] sm:$0xff] %v11885_v45  ;;  %v2161_v48 = vand.u32 4294901760, %v11885_v45  ;;  %9258 = vmatmul.mubr.f32.gmra.mrb[46].mxu1 %v2143_v7  ;;  %v708_v18 = vadd.f32 %v707_v6, %v706_v27  ;;  %v711_v24 = vadd.f32 %v710_v23, %v709_v43  ;;  %v712_v34 = vsel %vm443_vm0, %v224_v26, 0.0  ;;  %v222_v26 = vld [vmem:[#allocation2 + $0x518] sm:$0xff] }
  0xd8   :  { %14176 = vst [vmem:[#allocation84_spill] sm:$0xff] %v11892_v59  ;;  %v714_v60 = vsel %vm443_vm0, %v217_v53, 0.0  ;;  %9260 = vmatprep.mubr.f32.mxu1 %v2153_v29  ;;  %v11897_v51 = vsub.f32 %v1367_v14, %v11892_v59  ;;  %v1370_v46 = vsel %vm443_vm0, %v1135_v54, 0  ;;  %v715_v4 = vsel %vm443_vm0, %v221_v55, 0.0  ;;  %v226_v43 = vld [vmem:[#allocation2 + $0x538] sm:$0xff] }
  0xd9   :  { %9861 = vmatmul.mubr.f32.gmra.mrb[48].mxu0 %v2161_v48  ;;  %v2162_v20 = vsub.f32 %v11885_v45, %v2161_v48  ;;  %v11902_v7 = vand.u32 4294901760, %v1370_v46  ;;  %v1136_v6 = vmax.f32 %v708_v18, 0.0  ;;  %v713_v9 = vadd.f32 %v712_v34, %v711_v24 }
  0xda   :  { %14177 = vst [vmem:[#allocation85_spill] sm:$0xff] %v11897_v51  ;;  %v716_v27 = vadd.f32 %v715_v4, %v714_v60  ;;  %v2171_v53 = vand.u32 4294901760, %v11897_v51  ;;  %v717_v29 = vsel %vm443_vm0, %v225_v62, 0.0  ;;  %v719_v14 = vsel %vm443_vm0, %v218_v32, 0.0  ;;  %v231_v60 = vld [vmem:[#allocation2 + $0x560] sm:$0xff] }
  0xdb   :  { %14178 = vst [vmem:[#allocation86_spill] sm:$0xff] %v11902_v7  ;;  %v2163_v23 = vand.u32 4294901760, %v2162_v20  ;;  %v11908_v48 = vsub.f32 %v1370_v46, %v11902_v7  ;;  %v1373_v54 = vsel %vm443_vm0, %v1136_v6, 0  ;;  %v1137_v55 = vmax.f32 %v713_v9, 0.0 }
  0xdc   :  { %v718_v45 = vadd.f32 %v717_v29, %v716_v27  ;;  %9863 = vmatprep.mubr.f32.mxu0 %v2171_v53  ;;  %v2172_v18 = vsub.f32 %v11897_v51, %v2171_v53  ;;  %v11912_v24 = vand.u32 4294901760, %v1373_v54  ;;  %v720_v34 = vsel %vm443_vm0, %v222_v26, 0.0  ;;  %v235_v53 = vld [vmem:[#allocation2 + $0x580] sm:$0xff]  ;;  %v228_v29 = vld [vmem:[#allocation2 + $0x548] sm:$0xff] }
  0xdd   :  { %14179 = vst [vmem:[#allocation87_spill] sm:$0xff] %v11908_v48  ;;  %9261 = vmatmul.mubr.f32.gmra.mrb[48].mxu1 %v2163_v23  ;;  %v722_v62 = vsel %vm443_vm0, %v226_v43, 0.0  ;;  %v2181_v32 = vand.u32 4294901760, %v11908_v48  ;;  %v1376_v20 = vsel %vm443_vm0, %v1137_v55, 0  ;;  %v721_v4 = vadd.f32 %v720_v34, %v719_v14  ;;  %v232_v34 = vld [vmem:[#allocation2 + $0x568] sm:$0xff] }
  0xde   :  { %14180 = vst [vmem:[#allocation88_spill] sm:$0xff] %v11912_v24  ;;  %v1138_v46 = vmax.f32 %v718_v45, 0.0  ;;  %v2173_v6 = vand.u32 4294901760, %v2172_v18  ;;  %v11919_v9 = vsub.f32 %v1373_v54, %v11912_v24  ;;  %v11921_v27 = vand.u32 4294901760, %v1376_v20  ;;  %v229_v24 = vld [vmem:[#allocation2 + $0x550] sm:$0xff] }
  0xdf   :  { %v724_v23 = vsel %vm443_vm0, %v227_v0, 0.0  ;;  %9864 = vmatmul.mubr.f32.gmra.mrb[50].mxu0 %v2181_v32  ;;  %v2182_v26 = vsub.f32 %v11908_v48, %v2181_v32  ;;  %v723_v51 = vadd.f32 %v722_v62, %v721_v4  ;;  %v725_v55 = vsel %vm443_vm0, %v231_v60, 0.0  ;;  %v236_v0 = vld [vmem:[#allocation2 + $0x588] sm:$0xff] }
  0xe0   :  { %14181 = vst [vmem:[#allocation89_spill] sm:$0xff] %v11919_v9  ;;  %14182 = vst [vmem:[#allocation90_spill] sm:$0xff] %v11921_v27  ;;  %v1379_v43 = vsel %vm443_vm0, %v1138_v46, 0  ;;  %9263 = vmatprep.mubr.f32.mxu1 %v2173_v6  ;;  %v2191_v45 = vand.u32 4294901760, %v11919_v9  ;;  %v11929_v14 = vsub.f32 %v1376_v20, %v11921_v27  ;;  %v726_v18 = vadd.f32 %v725_v55, %v724_v23  ;;  %v233_v6 = vld [vmem:[#allocation2 + $0x570] sm:$0xff] }
  0xe1   :  { %v11931_v54 = vand.u32 4294901760, %v1379_v43  ;;  %v2183_v7 = vand.u32 4294901760, %v2182_v26  ;;  %v1139_v59 = vmax.f32 %v723_v51, 0.0  ;;  %v727_v32 = vsel %vm443_vm0, %v235_v53, 0.0  ;;  %v237_v23 = vld [vmem:[#allocation2 + $0x590] sm:$0xff] }
  0xe2   :  { %14183 = vst [vmem:[#allocation91_spill] sm:$0xff] %v11929_v14  ;;  %v729_v62 = vsel %vm443_vm0, %v228_v29, 0.0  ;;  %9866 = vmatprep.mubr.f32.mxu0 %v2191_v45  ;;  %v2201_v60 = vand.u32 4294901760, %v11929_v14  ;;  %v2192_v46 = vsub.f32 %v11919_v9, %v2191_v45  ;;  %v728_v4 = vadd.f32 %v727_v32, %v726_v18  ;;  %v230_v18 = vld [vmem:[#allocation2 + $0x558] sm:$0xff] }
  0xe3   :  { %14184 = vst [vmem:[#allocation92_spill] sm:$0xff] %v11931_v54  ;;  %v11938_v20 = vsub.f32 %v1379_v43, %v11931_v54  ;;  %9264 = vmatmul.mubr.f32.gmra.mrb[50].mxu1 %v2183_v7  ;;  %v1382_v55 = vsel %vm443_vm0, %v1139_v59, 0  ;;  %v730_v51 = vsel %vm443_vm0, %v232_v34, 0.0  ;;  %v732_v53 = vsel %vm443_vm0, %v236_v0, 0.0  ;;  %v234_v32 = vld [vmem:[#allocation2 + $0x578] sm:$0xff] }
  0xe4   :  { %v734_v29 = vsel %vm443_vm0, %v229_v24, 0.0  ;;  %9867 = vmatmul.mubr.f32.gmra.mrb[52].mxu0 %v2201_v60  ;;  %v2193_v26 = vand.u32 4294901760, %v2192_v46  ;;  %v2202_v45 = vsub.f32 %v11929_v14, %v2201_v60  ;;  %v11946_v43 = vand.u32 4294901760, %v1382_v55  ;;  %v238_v60 = vld [vmem:[#allocation2 + $0x598] sm:$0xff]  ;;  %v239_v14 = vld [vmem:[#allocation2 + $0x5a0] sm:$0xff] }
  0xe5   :  { %14185 = vst [vmem:[#allocation93_spill] sm:$0xff] %v11938_v20  ;;  %v2211_v48 = vand.u32 4294901760, %v11938_v20  ;;  %v1140_v9 = vmax.f32 %v728_v4, 0.0  ;;  %v731_v7 = vadd.f32 %v730_v51, %v729_v62  ;;  %v735_v59 = vsel %vm443_vm0, %v233_v6, 0.0  ;;  %v243_v6 = vld [vmem:[#allocation2 + $0x5c0] sm:$0xff] }
  0xe6   :  { %14186 = vst [vmem:[#allocation94_spill] sm:$0xff] %v11946_v43  ;;  %v737_v34 = vsel %vm443_vm0, %v237_v23, 0.0  ;;  %9266 = vmatprep.mubr.f32.mxu1 %v2193_v26  ;;  %v2203_v0 = vand.u32 4294901760, %v2202_v45  ;;  %v11951_v24 = vsub.f32 %v1382_v55, %v11946_v43  ;;  %v736_v54 = vadd.f32 %v735_v59, %v734_v29  ;;  %v247_v45 = vld [vmem:[#allocation2 + $0x5e0] sm:$0xff] }
  0xe7   :  { %9869 = vmatprep.mubr.f32.mxu0 %v2211_v48  ;;  %v2212_v46 = vsub.f32 %v11938_v20, %v2211_v48  ;;  %v1385_v27 = vsel %vm443_vm0, %v1140_v9, 0  ;;  %v733_v58 = vadd.f32 %v732_v53, %v731_v7  ;;  %v739_v62 = vsel %vm443_vm0, %v230_v18, 0.0 }
  0xe8   :  { %14187 = vst [vmem:[#allocation95_spill] sm:$0xff] %v11951_v24  ;;  %v740_v4 = vsel %vm443_vm0, %v234_v32, 0.0  ;;  %9267 = vmatmul.mubr.f32.gmra.mrb[52].mxu1 %v2203_v0  ;;  %v2221_v23 = vand.u32 4294901760, %v11951_v24  ;;  %v11958_v26 = vand.u32 4294901760, %v1385_v27  ;;  %v738_v55 = vadd.f32 %v737_v34, %v736_v54  ;;  %v240_v0 = vld [vmem:[#allocation2 + $0x5a8] sm:$0xff] }
  0xe9   :  { %v2213_v51 = vand.u32 4294901760, %v2212_v46  ;;  %v1141_v48 = vmax.f32 %v733_v58, 0.0  ;;  %v741_v29 = vadd.f32 %v740_v4, %v739_v62  ;;  %v742_v59 = vsel %vm443_vm0, %v238_v60, 0.0  ;;  %v244_v60 = vld [vmem:[#allocation2 + $0x5c8] sm:$0xff] }
  0xea   :  { %14188 = vst [vmem:[#allocation96_spill] sm:$0xff] %v11958_v26  ;;  %v744_v9 = vsel %vm443_vm0, %v239_v14, 0.0  ;;  %9870 = vmatmul.mubr.f32.gmra.mrb[54].mxu0 %v2221_v23  ;;  %v11963_v53 = vsub.f32 %v1385_v27, %v11958_v26  ;;  %v2222_v18 = vsub.f32 %v11951_v24, %v2221_v23  ;;  %v1142_v32 = vmax.f32 %v738_v55, 0.0  ;;  %v248_v62 = vld [vmem:[#allocation2 + $0x5e8] sm:$0xff] }
  0xeb   :  { %9269 = vmatprep.mubr.f32.mxu1 %v2213_v51  ;;  %v745_v7 = vsel %vm443_vm0, %v243_v6, 0.0  ;;  %v1388_v54 = vsel %vm443_vm0, %v1141_v48, 0  ;;  %v743_v34 = vadd.f32 %v742_v59, %v741_v29  ;;  %v747_v46 = vsel %vm443_vm0, %v247_v45, 0.0  ;;  %v241_v48 = vld [vmem:[#allocation2 + $0x5b0] sm:$0xff] }
  0xec   :  { %14189 = vst [vmem:[#allocation97_spill] sm:$0xff] %v11963_v53  ;;  %v746_v58 = vadd.f32 %v745_v7, %v744_v9  ;;  %v2231_v14 = vand.u32 4294901760, %v11963_v53  ;;  %v2223_v4 = vand.u32 4294901760, %v2222_v18  ;;  %v11970_v51 = vand.u32 4294901760, %v1388_v54  ;;  %v245_v18 = vld [vmem:[#allocation2 + $0x5d0] sm:$0xff] }
  0xed   :  { %v1391_v27 = vsel %vm443_vm0, %v1142_v32, 0  ;;  %v1143_v55 = vmax.f32 %v743_v34, 0.0  ;;  %v749_v24 = vsel %vm443_vm0, %v240_v0, 0.0  ;;  %v750_v59 = vsel %vm443_vm0, %v244_v60, 0.0 }
  0xee   :  { %14190 = vst [vmem:[#allocation98_spill] sm:$0xff] %v11970_v51  ;;  %v11973_v23 = vand.u32 4294901760, %v1391_v27  ;;  %v748_v6 = vadd.f32 %v747_v46, %v746_v58  ;;  %9872 = vmatprep.mubr.f32.mxu0 %v2231_v14  ;;  %9270 = vmatmul.mubr.f32.gmra.mrb[54].mxu1 %v2223_v4  ;;  %v11977_v45 = vsub.f32 %v1388_v54, %v11970_v51  ;;  %v752_v9 = vsel %vm443_vm0, %v248_v62, 0.0  ;;  %v249_v54 = vld [vmem:[#allocation2 + $0x5f0] sm:$0xff] }
  0xef   :  { %v2232_v29 = vsub.f32 %v11963_v53, %v2231_v14  ;;  %v1394_v7 = vsel %vm443_vm0, %v1143_v55, 0  ;;  %v751_v0 = vadd.f32 %v750_v59, %v749_v24  ;;  %v754_v14 = vsel %vm443_vm0, %v241_v48, 0.0  ;;  %v242_v53 = vld [vmem:[#allocation2 + $0x5b8] sm:$0xff] }
  0xf0   :  { %14191 = vst [vmem:[#allocation99_spill] sm:$0xff] %v11973_v23  ;;  %14192 = vst [vmem:[#allocation100_spill] sm:$0xff] %v11977_v45  ;;  %v11983_v32 = vsub.f32 %v1391_v27, %v11973_v23  ;;  %v1144_v34 = vmax.f32 %v748_v6, 0.0  ;;  %v2241_v58 = vand.u32 4294901760, %v11977_v45  ;;  %v11987_v4 = vand.u32 4294901760, %v1394_v7  ;;  %v246_v59 = vld [vmem:[#allocation2 + $0x5d8] sm:$0xff] }
  0xf1   :  { %v2233_v46 = vand.u32 4294901760, %v2232_v29  ;;  %v753_v20 = vadd.f32 %v752_v9, %v751_v0  ;;  %v755_v27 = vsel %vm443_vm0, %v245_v18, 0.0  ;;  %v250_v48 = vld [vmem:[#allocation2 + $0x5f8] sm:$0xff]  ;;  %v757_v9 = vsel %vm443_vm0, %v249_v54, 0.0 }
  0xf2   :  { %14193 = vst [vmem:[#allocation101_spill] sm:$0xff] %v11983_v32  ;;  %14194 = vst [vmem:[#allocation102_spill] sm:$0xff] %v11987_v4  ;;  %v2251_v60 = vand.u32 4294901760, %v11983_v32  ;;  %v1397_v62 = vsel %vm443_vm0, %v1144_v34, 0  ;;  %9873 = vmatmul.mubr.f32.gmra.mrb[56].mxu0 %v2241_v58  ;;  %v2242_v24 = vsub.f32 %v11977_v45, %v2241_v58  ;;  %v11995_v55 = vsub.f32 %v1394_v7, %v11987_v4  ;;  %v255_v45 = vld [vmem:[#allocation2 + $0x620] sm:$0xff] }
  0xf3   :  { %9272 = vmatprep.mubr.f32.mxu1 %v2233_v46  ;;  %v11997_v6 = vand.u32 4294901760, %v1397_v62  ;;  %v756_v29 = vadd.f32 %v755_v27, %v754_v14  ;;  %v1145_v51 = vmax.f32 %v753_v20, 0.0  ;;  %v759_v18 = vsel %vm443_vm0, %v242_v53, 0.0  ;;  %v251_v46 = vld [vmem:[#allocation2 + $0x600] sm:$0xff] }
  0xf4   :  { %14195 = vst [vmem:[#allocation103_spill] sm:$0xff] %v11995_v55  ;;  %9875 = vmatprep.mubr.f32.mxu0 %v2251_v60  ;;  %v2252_v23 = vsub.f32 %v11983_v32, %v2251_v60  ;;  %v2243_v34 = vand.u32 4294901760, %v2242_v24  ;;  %v2261_v0 = vand.u32 4294901760, %v11995_v55  ;;  %v259_v14 = vld [vmem:[#allocation2 + $0x640] sm:$0xff]  ;;  %v760_v60 = vsel %vm443_vm0, %v246_v59, 0.0  ;;  %v256_v32 = vld [vmem:[#allocation2 + $0x628] sm:$0xff] }
  0xf5   :  { %14196 = vst [vmem:[#allocation104_spill] sm:$0xff] %v11997_v6  ;;  %v12004_v58 = vsub.f32 %v1397_v62, %v11997_v6  ;;  %v758_v7 = vadd.f32 %v757_v9, %v756_v29  ;;  %v1400_v4 = vsel %vm443_vm0, %v1145_v51, 0  ;;  %v762_v20 = vsel %vm443_vm0, %v250_v48, 0.0  ;;  %v252_v29 = vld [vmem:[#allocation2 + $0x608] sm:$0xff] }
  0xf6   :  { %v2253_v27 = vand.u32 4294901760, %v2252_v23  ;;  %9273 = vmatmul.mubr.f32.gmra.mrb[56].mxu1 %v2243_v34  ;;  %9876 = vmatmul.mubr.f32.gmra.mrb[58].mxu0 %v2261_v0  ;;  %v2262_v54 = vsub.f32 %v11995_v55, %v2261_v0  ;;  %v12011_v24 = vand.u32 4294901760, %v1400_v4  ;;  %v761_v9 = vadd.f32 %v760_v60, %v759_v18  ;;  %v260_v48 = vld [vmem:[#allocation2 + $0x648] sm:$0xff] }
  0xf7   :  { %14197 = vst [vmem:[#allocation105_spill] sm:$0xff] %v12004_v58  ;;  %v2271_v53 = vand.u32 4294901760, %v12004_v58  ;;  %v1146_v62 = vmax.f32 %v758_v7, 0.0  ;;  %v764_v23 = vsel %vm443_vm0, %v251_v46, 0.0  ;;  %v765_v51 = vsel %vm443_vm0, %v255_v45, 0.0  ;;  %v253_v45 = vld [vmem:[#allocation2 + $0x610] sm:$0xff] }
  0xf8   :  { %14198 = vst [vmem:[#allocation106_spill] sm:$0xff] %v12011_v24  ;;  %9275 = vmatprep.mubr.f32.mxu1 %v2253_v27  ;;  %v767_v59 = vsel %vm443_vm0, %v259_v14, 0.0  ;;  %v2263_v34 = vand.u32 4294901760, %v2262_v54  ;;  %v12017_v6 = vsub.f32 %v1400_v4, %v12011_v24  ;;  %v763_v18 = vadd.f32 %v762_v20, %v761_v9 }
  0xf9   :  { %9878 = vmatprep.mubr.f32.mxu0 %v2271_v53  ;;  %v2272_v0 = vsub.f32 %v12004_v58, %v2271_v53  ;;  %v1403_v7 = vsel %vm443_vm0, %v1146_v62, 0  ;;  %v766_v27 = vadd.f32 %v765_v51, %v764_v23  ;;  %v769_v46 = vsel %vm443_vm0, %v252_v29, 0.0  ;;  %v11088_v29 = vld [vmem:[#allocation5 + $0x10] sm:$0xff]  ;;  %v11089_v51 = vld [vmem:[#allocation5 + $0x18] sm:$0xff] }
  0xfa   :  { %14199 = vst [vmem:[#allocation107_spill] sm:$0xff] %v12017_v6  ;;  %v12021_v55 = vand.u32 4294901760, %v1403_v7  ;;  %9276 = vmatmul.mubr.f32.gmra.mrb[58].mxu1 %v2263_v34  ;;  %v2281_v14 = vand.u32 4294901760, %v12017_v6  ;;  %v770_v54 = vsel %vm443_vm0, %v256_v32, 0.0  ;;  %v772_v4 = vsel %vm443_vm0, %v260_v48, 0.0  ;;  %v257_v48 = vld [vmem:[#allocation2 + $0x630] sm:$0xff] }
  0xfb   :  { %v2273_v60 = vand.u32 4294901760, %v2272_v0  ;;  %v1147_v53 = vmax.f32 %v763_v18, 0.0  ;;  %v768_v62 = vadd.f32 %v767_v59, %v766_v27  ;;  %v771_v58 = vadd.f32 %v770_v54, %v769_v46  ;;  %v261_v54 = vld [vmem:[#allocation2 + $0x650] sm:$0xff] }
  0xfc   :  { %14200 = vst [vmem:[#allocation108_spill] sm:$0xff] %v12021_v55  ;;  %v12028_v24 = vsub.f32 %v1403_v7, %v12021_v55  ;;  %9879 = vmatmul.mubr.f32.gmra.mrb[60].mxu0 %v2281_v14  ;;  %v2282_v20 = vsub.f32 %v12017_v6, %v2281_v14  ;;  %v14202_v9 = vand.u32 4294901760, %v11301_v2  ;;  %v14203_v32 = vand.u32 4294901760, %v11303_v5  ;;  %v262_v6 = vld [vmem:[#allocation2 + $0x658] sm:$0xff] }
  0xfd   :  { %9278 = vmatprep.mubr.f32.mxu1 %v2273_v60  ;;  %v774_v0 = vsel %vm443_vm0, %v253_v45, 0.0  ;;  %v1406_v7 = vsel %vm443_vm0, %v1147_v53, 0  ;;  %v1148_v18 = vmax.f32 %v768_v62, 0.0  ;;  %v773_v27 = vadd.f32 %v772_v4, %v771_v58 }
  0xfe   :  { %14201 = vst [vmem:[#allocation109_spill] sm:$0xff] %v12028_v24  ;;  %v12033_v23 = vsub.f32 %v11088_v29, %v14202_v9  ;;  %v12037_v34 = vsub.f32 %v11089_v51, %v14203_v32  ;;  %v2291_v59 = vand.u32 4294901760, %v12028_v24  ;;  %v2283_v46 = vand.u32 4294901760, %v2282_v20  ;;  %v254_v20 = vld [vmem:[#allocation2 + $0x618] sm:$0xff] }
  0xff   :  { %v12042_v14 = vand.u32 4294901760, %v1406_v7  ;;  %v1409_v29 = vsel %vm443_vm0, %v1148_v18, 0  ;;  %v1149_v45 = vmax.f32 %v773_v27, 0.0  ;;  %v775_v9 = vsel %vm443_vm0, %v257_v48, 0.0  ;;  %v258_v27 = vld [vmem:[#allocation2 + $0x638] sm:$0xff] }
 0x100   :  { %v2966_v2 = vand.u32 4294901760, %v12033_v23  ;;  %v2973_v60 = vand.u32 4294901760, %v12037_v34  ;;  %9881 = vmatprep.mubr.f32.mxu0 %v2291_v59  ;;  %v2292_v5 = vsub.f32 %v12028_v24, %v2291_v59  ;;  %9279 = vmatmul.mubr.f32.gmra.mrb[60].mxu1 %v2283_v46  ;;  %v12052_v58 = vand.u32 4294901760, %v1409_v29 }
 0x101   :  { %14204 = vst [vmem:[#allocation110_spill] sm:$0xff] %v12042_v14  ;;  %v12050_v53 = vsub.f32 %v1406_v7, %v12042_v14  ;;  %v1412_v32 = vsel %vm443_vm0, %v1149_v45, 0  ;;  %v776_v59 = vadd.f32 %v775_v9, %v774_v0  ;;  %v777_v18 = vsel %vm443_vm0, %v261_v54, 0.0  ;;  %v263_v45 = vld [vmem:[#allocation2 + $0x660] sm:$0xff] }
 0x102   :  { %14206 = vst [vmem:[#allocation112_spill] sm:$0xff] %v12052_v58  ;;  %v2967_v4 = vsub.f32 %v12033_v23, %v2966_v2  ;;  %v2974_v62 = vsub.f32 %v12037_v34, %v2973_v60  ;;  %v2293_v51 = vand.u32 4294901760, %v2292_v5  ;;  %v12060_v46 = vsub.f32 %v1409_v29, %v12052_v58  ;;  %v267_v58 = vld [vmem:[#allocation2 + $0x680] sm:$0xff] }
 0x103   :  { %14205 = vst [vmem:[#allocation111_spill] sm:$0xff] %v12050_v53  ;;  %v2301_v48 = vand.u32 4294901760, %v12050_v53  ;;  %v12062_v7 = vand.u32 4294901760, %v1412_v32  ;;  %v778_v55 = vadd.f32 %v777_v18, %v776_v59  ;;  %v10416_v26 = vpack.c.bf16 %v2973_v60, %v2966_v2  ;;  %v264_v18 = vld [vmem:[#allocation2 + $0x668] sm:$0xff] }
 0x104   :  { %14207 = vst [vmem:[#allocation113_spill] sm:$0xff] %v12060_v46  ;;  %v2968_v24 = vand.u32 4294901760, %v2967_v4  ;;  %9281 = vmatprep.mubr.f32.mxu1 %v2293_v51  ;;  %v2975_v14 = vand.u32 4294901760, %v2974_v62  ;;  %v779_v5 = vsel %vm443_vm0, %v254_v20, 0.0  ;;  %v2311_v0 = vand.u32 4294901760, %v12060_v46  ;;  %v271_v4 = vld [vmem:[#allocation2 + $0x6a0] sm:$0xff] }
 0x105   :  { %14208 = vst [vmem:[#allocation114_spill] sm:$0xff] %v12062_v7  ;;  %9882 = vmatmul.mubr.f32.gmra.mrb[62].mxu0 %v2301_v48  ;;  %v2302_v54 = vsub.f32 %v12050_v53, %v2301_v48  ;;  %v12068_v9 = vsub.f32 %v1412_v32, %v12062_v7  ;;  %v780_v29 = vsel %vm443_vm0, %v258_v27, 0.0  ;;  %v1150_v51 = vmax.f32 %v778_v55, 0.0  ;;  %10417 = vmatprep.subr.bf16.mxu0 %v10416_v26  ;;  %v268_v48 = vld [vmem:[#allocation2 + $0x688] sm:$0xff] }
 0x106   :  { %v10392_v43 = vpack.c.bf16 %v2975_v14, %v2968_v24  ;;  %v781_v62 = vadd.f32 %v780_v29, %v779_v5  ;;  %v782_v2 = vsel %vm443_vm0, %v262_v6, 0.0  ;;  %9884 = vmatprep.mubr.f32.mxu0 %v2311_v0  ;;  %v2312_v59 = vsub.f32 %v12060_v46, %v2311_v0  ;;  %10419 = vmatpush3.bf16.msra.mxu0 %v10416_v26  ;;  %v272_v27 = vld [vmem:[#allocation2 + $0x6a8] sm:$0xff]  ;;  %v269_v29 = vld [vmem:[#allocation2 + $0x690] sm:$0xff] }
 0x107   :  { %14209 = vst [vmem:[#allocation115_spill] sm:$0xff] %v12068_v9  ;;  %v2303_v60 = vand.u32 4294901760, %v2302_v54  ;;  %v2321_v20 = vand.u32 4294901760, %v12068_v9  ;;  %v784_v32 = vsel %vm443_vm0, %v263_v45, 0.0  ;;  %v1415_v24 = vsel %vm443_vm0, %v1150_v51, 0  ;;  %10421 = vmatprep.subr.bf16.mxu0 %v11309_v15  ;;  %v265_v54 = vld [vmem:[#allocation2 + $0x670] sm:$0xff] }
 0x108   :  { %10393 = vmatprep.subr.bf16.mxu1 %v10392_v43  ;;  %v783_v55 = vadd.f32 %v782_v2, %v781_v62  ;;  %v785_v14 = vsel %vm443_vm0, %v267_v58, 0.0  ;;  %v787_v6 = vsel %vm443_vm0, %v271_v4, 0.0  ;;  %v2313_v5 = vand.u32 4294901760, %v2312_v59  ;;  %v273_v46 = vld [vmem:[#allocation2 + $0x6b0] sm:$0xff] }
 0x109   :  { %9282 = vmatmul.mubr.f32.gmra.mrb[62].mxu1 %v2303_v60  ;;  %9885 = vmatmul.mubr.f32.gmra.mrb[64].mxu0 %v2321_v20  ;;  %v12079_v0 = vand.u32 4294901760, %v1415_v24  ;;  %v2322_v26 = vsub.f32 %v12068_v9, %v2321_v20  ;;  %v786_v45 = vadd.f32 %v785_v14, %v784_v32  ;;  %v789_v62 = vsel %vm443_vm0, %v264_v18, 0.0  ;;  %v266_v20 = vld [vmem:[#allocation2 + $0x678] sm:$0xff] }
 0x10a   :  { %10395 = vmatpush3.bf16.msra.mxu1 %v10392_v43  ;;  %v1151_v51 = vmax.f32 %v783_v55, 0.0  ;;  %v790_v58 = vsel %vm443_vm0, %v268_v48, 0.0  ;;  %v792_v4 = vsel %vm443_vm0, %v272_v27, 0.0  ;;  %9284 = vmatprep.mubr.f32.mxu1 %v2313_v5  ;;  %v270_v32 = vld [vmem:[#allocation2 + $0x698] sm:$0xff]  ;;  %v794_v43 = vsel %vm443_vm0, %v265_v54, 0.0  ;;  %v279_v54 = vld [vmem:[#allocation2 + $0x6e0] sm:$0xff] }
 0x10b   :  { %14210 = vst [vmem:[#allocation116_spill] sm:$0xff] %v12079_v0  ;;  %v12086_v2 = vsub.f32 %v1415_v24, %v12079_v0  ;;  %v2323_v60 = vand.u32 4294901760, %v2322_v26  ;;  %v788_v59 = vadd.f32 %v787_v6, %v786_v45  ;;  %v791_v53 = vadd.f32 %v790_v58, %v789_v62  ;;  %v274_v14 = vld [vmem:[#allocation2 + $0x6b8] sm:$0xff]  ;;  %v275_v6 = vld [vmem:[#allocation2 + $0x6c0] sm:$0xff] }
 0x10c   :  { %v1418_v9 = vsel %vm443_vm0, %v1151_v51, 0  ;;  %v795_v18 = vsel %vm443_vm0, %v269_v29, 0.0  ;;  %v797_v48 = vsel %vm443_vm0, %v273_v46, 0.0  ;;  %v799_v45 = vsel %vm443_vm0, %v266_v20, 0.0 }
 0x10d   :  { %14211 = vst [vmem:[#allocation117_spill] sm:$0xff] %v12086_v2  ;;  %v2331_v27 = vand.u32 4294901760, %v12086_v2  ;;  %9285 = vmatmul.mubr.f32.gmra.mrb[64].mxu1 %v2323_v60  ;;  %v12093_v55 = vand.u32 4294901760, %v1418_v9  ;;  %v1152_v24 = vmax.f32 %v788_v59, 0.0  ;;  %v793_v5 = vadd.f32 %v792_v4, %v791_v53 }
 0x10e   :  { %v796_v26 = vadd.f32 %v795_v18, %v794_v43  ;;  %v800_v62 = vsel %vm443_vm0, %v270_v32, 0.0  ;;  %v802_v51 = vsel %vm443_vm0, %v274_v14, 0.0  ;;  %v283_v43 = vld [vmem:[#allocation2 + $0x700] sm:$0xff]  ;;  %v804_v20 = vsel %vm443_vm0, %v275_v6, 0.0  ;;  %v276_v32 = vld [vmem:[#allocation2 + $0x6c8] sm:$0xff] }
 0x10f   :  { %14212 = vst [vmem:[#allocation118_spill] sm:$0xff] %v12093_v55  ;;  %9887 = vmatprep.mubr.f32.mxu0 %v2331_v27  ;;  %v12099_v29 = vsub.f32 %v1418_v9, %v12093_v55  ;;  %v2332_v46 = vsub.f32 %v12086_v2, %v2331_v27  ;;  %v1421_v58 = vsel %vm443_vm0, %v1152_v24, 0  ;;  %v1153_v60 = vmax.f32 %v793_v5, 0.0 }
 0x110   :  { %v12103_v59 = vand.u32 4294901760, %v1421_v58  ;;  %v798_v53 = vadd.f32 %v797_v48, %v796_v26  ;;  %v801_v4 = vadd.f32 %v800_v62, %v799_v45  ;;  %v805_v9 = vsel %vm443_vm0, %v279_v54, 0.0  ;;  %v280_v48 = vld [vmem:[#allocation2 + $0x6e8] sm:$0xff] }
 0x111   :  { %14213 = vst [vmem:[#allocation119_spill] sm:$0xff] %v12099_v29  ;;  %v2341_v14 = vand.u32 4294901760, %v12099_v29  ;;  %v2333_v18 = vand.u32 4294901760, %v2332_v46  ;;  %v1424_v0 = vsel %vm443_vm0, %v1153_v60, 0  ;;  %v806_v26 = vadd.f32 %v805_v9, %v804_v20  ;;  %v277_v20 = vld [vmem:[#allocation2 + $0x6d0] sm:$0xff] }
 0x112   :  { %14214 = vst [vmem:[#allocation120_spill] sm:$0xff] %v12103_v59  ;;  %v12110_v27 = vsub.f32 %v1421_v58, %v12103_v59  ;;  %v12112_v24 = vand.u32 4294901760, %v1424_v0  ;;  %v1154_v5 = vmax.f32 %v798_v53, 0.0  ;;  %v803_v2 = vadd.f32 %v802_v51, %v801_v4  ;;  %v284_v53 = vld [vmem:[#allocation2 + $0x708] sm:$0xff]  ;;  %v285_v59 = vld [vmem:[#allocation2 + $0x710] sm:$0xff] }
 0x113   :  { %9888 = vmatmul.mubr.f32.gmra.mrb[66].mxu0 %v2341_v14  ;;  %9287 = vmatprep.mubr.f32.mxu1 %v2333_v18  ;;  %v2342_v6 = vsub.f32 %v12099_v29, %v2341_v14  ;;  %v807_v45 = vsel %vm443_vm0, %v283_v43, 0.0  ;;  %v809_v62 = vsel %vm443_vm0, %v276_v32, 0.0  ;;  %v810_v14 = vsel %vm443_vm0, %v280_v48, 0.0  ;;  %v281_v29 = vld [vmem:[#allocation2 + $0x6f0] sm:$0xff] }
 0x114   :  { %14215 = vst [vmem:[#allocation121_spill] sm:$0xff] %v12110_v27  ;;  %14216 = vst [vmem:[#allocation122_spill] sm:$0xff] %v12112_v24  ;;  %v2351_v46 = vand.u32 4294901760, %v12110_v27  ;;  %v12119_v54 = vsub.f32 %v1424_v0, %v12112_v24  ;;  %v1427_v58 = vsel %vm443_vm0, %v1154_v5, 0  ;;  %v1155_v60 = vmax.f32 %v803_v2, 0.0 }
 0x115   :  { %v2343_v51 = vand.u32 4294901760, %v2342_v6  ;;  %v12122_v4 = vand.u32 4294901760, %v1427_v58  ;;  %v808_v18 = vadd.f32 %v807_v45, %v806_v26  ;;  %v811_v0 = vadd.f32 %v810_v14, %v809_v62  ;;  %v282_v14 = vld [vmem:[#allocation2 + $0x6f8] sm:$0xff] }
 0x116   :  { %14217 = vst [vmem:[#allocation123_spill] sm:$0xff] %v12119_v54  ;;  %9890 = vmatprep.mubr.f32.mxu0 %v2351_v46  ;;  %v2361_v43 = vand.u32 4294901760, %v12119_v54  ;;  %v2352_v32 = vsub.f32 %v12110_v27, %v2351_v46  ;;  %v1430_v9 = vsel %vm443_vm0, %v1155_v60, 0  ;;  %v812_v26 = vsel %vm443_vm0, %v284_v53, 0.0  ;;  %v278_v60 = vld [vmem:[#allocation2 + $0x6d8] sm:$0xff] }
 0x117   :  { %14218 = vst [vmem:[#allocation124_spill] sm:$0xff] %v12122_v4  ;;  %9288 = vmatmul.mubr.f32.gmra.mrb[66].mxu1 %v2343_v51  ;;  %v12129_v2 = vsub.f32 %v1427_v58, %v12122_v4  ;;  %v12131_v5 = vand.u32 4294901760, %v1430_v9  ;;  %v1156_v6 = vmax.f32 %v808_v18, 0.0  ;;  %v813_v24 = vadd.f32 %v812_v26, %v811_v0 }
 0x118   :  { %9891 = vmatmul.mubr.f32.gmra.mrb[68].mxu0 %v2361_v43  ;;  %v2353_v48 = vand.u32 4294901760, %v2352_v32  ;;  %v2362_v45 = vsub.f32 %v12119_v54, %v2361_v43  ;;  %v814_v46 = vsel %vm443_vm0, %v277_v20, 0.0  ;;  %v815_v18 = vsel %vm443_vm0, %v281_v29, 0.0 }
 0x119   :  { %14219 = vst [vmem:[#allocation125_spill] sm:$0xff] %v12129_v2  ;;  %14220 = vst [vmem:[#allocation126_spill] sm:$0xff] %v12131_v5  ;;  %v2371_v62 = vand.u32 4294901760, %v12129_v2  ;;  %v12138_v51 = vsub.f32 %v1430_v9, %v12131_v5  ;;  %v1433_v58 = vsel %vm443_vm0, %v1156_v6, 0  ;;  %v1157_v43 = vmax.f32 %v813_v24, 0.0  ;;  %v286_v9 = vld [vmem:[#allocation2 + $0x718] sm:$0xff] }
 0x11a   :  { %9290 = vmatprep.mubr.f32.mxu1 %v2353_v48  ;;  %v2363_v53 = vand.u32 4294901760, %v2362_v45  ;;  %v12142_v32 = vand.u32 4294901760, %v1433_v58  ;;  %v816_v0 = vadd.f32 %v815_v18, %v814_v46  ;;  %v817_v54 = vsel %vm443_vm0, %v285_v59, 0.0  ;;  %v287_v6 = vld [vmem:[#allocation2 + $0x720] sm:$0xff] }
 0x11b   :  { %14221 = vst [vmem:[#allocation127_spill] sm:$0xff] %v12138_v51  ;;  %9893 = vmatprep.mubr.f32.mxu0 %v2371_v62  ;;  %v2381_v20 = vand.u32 4294901760, %v12138_v51  ;;  %v2372_v26 = vsub.f32 %v12129_v2, %v2371_v62  ;;  %v819_v27 = vsel %vm443_vm0, %v278_v60, 0.0  ;;  %v1436_v48 = vsel %vm443_vm0, %v1157_v43, 0  ;;  %v291_v46 = vld [vmem:[#allocation2 + $0x740] sm:$0xff]  ;;  %v288_v43 = vld [vmem:[#allocation2 + $0x728] sm:$0xff] }
 0x11c   :  { %14222 = vst [vmem:[#allocation128_spill] sm:$0xff] %v12142_v32  ;;  %9291 = vmatmul.mubr.f32.gmra.mrb[68].mxu1 %v2363_v53  ;;  %v12149_v29 = vsub.f32 %v1433_v58, %v12142_v32  ;;  %v818_v45 = vadd.f32 %v817_v54, %v816_v0  ;;  %v820_v24 = vsel %vm443_vm0, %v282_v14, 0.0  ;;  %v12154_v2 = vand.u32 4294901760, %v1436_v48  ;;  %v295_v5 = vld [vmem:[#allocation2 + $0x760] sm:$0xff] }
 0x11d   :  { %9894 = vmatmul.mubr.f32.gmra.mrb[70].mxu0 %v2381_v20  ;;  %v2373_v18 = vand.u32 4294901760, %v2372_v26  ;;  %v2382_v62 = vsub.f32 %v12138_v51, %v2381_v20  ;;  %v821_v59 = vadd.f32 %v820_v24, %v819_v27  ;;  %v822_v58 = vsel %vm443_vm0, %v286_v9, 0.0  ;;  %v292_v26 = vld [vmem:[#allocation2 + $0x748] sm:$0xff] }
 0x11e   :  { %14223 = vst [vmem:[#allocation129_spill] sm:$0xff] %v12149_v29  ;;  %14224 = vst [vmem:[#allocation130_spill] sm:$0xff] %v12154_v2  ;;  %v2391_v60 = vand.u32 4294901760, %v12149_v29  ;;  %v1158_v53 = vmax.f32 %v818_v45, 0.0  ;;  %v824_v32 = vsel %vm443_vm0, %v287_v6, 0.0  ;;  %v12160_v14 = vsub.f32 %v1436_v48, %v12154_v2  ;;  %v296_v51 = vld [vmem:[#allocation2 + $0x768] sm:$0xff] }
 0x11f   :  { %9293 = vmatprep.mubr.f32.mxu1 %v2373_v18  ;;  %v2383_v54 = vand.u32 4294901760, %v2382_v62  ;;  %v823_v0 = vadd.f32 %v822_v58, %v821_v59  ;;  %v825_v20 = vsel %vm443_vm0, %v291_v46, 0.0  ;;  %v827_v9 = vsel %vm443_vm0, %v295_v5, 0.0  ;;  %v289_v59 = vld [vmem:[#allocation2 + $0x730] sm:$0xff] }
 0x120   :  { %14225 = vst [vmem:[#allocation131_spill] sm:$0xff] %v12160_v14  ;;  %9896 = vmatprep.mubr.f32.mxu0 %v2391_v60  ;;  %v2392_v27 = vsub.f32 %v12149_v29, %v2391_v60  ;;  %v1439_v45 = vsel %vm443_vm0, %v1158_v53, 0  ;;  %v826_v24 = vadd.f32 %v825_v20, %v824_v32  ;;  %v2401_v6 = vand.u32 4294901760, %v12160_v14  ;;  %v293_v46 = vld [vmem:[#allocation2 + $0x750] sm:$0xff]  ;;  %v290_v20 = vld [vmem:[#allocation2 + $0x738] sm:$0xff] }
 0x121   :  { %9294 = vmatmul.mubr.f32.gmra.mrb[70].mxu1 %v2383_v54  ;;  %v12167_v18 = vand.u32 4294901760, %v1439_v45  ;;  %v1159_v48 = vmax.f32 %v823_v0, 0.0  ;;  %v829_v62 = vsel %vm443_vm0, %v288_v43, 0.0  ;;  %v830_v4 = vsel %vm443_vm0, %v292_v26, 0.0  ;;  %v297_v0 = vld [vmem:[#allocation2 + $0x770] sm:$0xff] }
 0x122   :  { %v2393_v58 = vand.u32 4294901760, %v2392_v27  ;;  %v828_v2 = vadd.f32 %v827_v9, %v826_v24  ;;  %v832_v60 = vsel %vm443_vm0, %v296_v51, 0.0  ;;  %9897 = vmatmul.mubr.f32.gmra.mrb[72].mxu0 %v2401_v6  ;;  %v2402_v5 = vsub.f32 %v12160_v14, %v2401_v6  ;;  %v298_v6 = vld [vmem:[#allocation2 + $0x778] sm:$0xff]  ;;  %v299_v14 = vld [vmem:[#allocation2 + $0x780] sm:$0xff] }
 0x123   :  { %14226 = vst [vmem:[#allocation132_spill] sm:$0xff] %v12167_v18  ;;  %v12173_v32 = vsub.f32 %v1439_v45, %v12167_v18  ;;  %v1442_v53 = vsel %vm443_vm0, %v1159_v48, 0  ;;  %v831_v54 = vadd.f32 %v830_v4, %v829_v62  ;;  %v834_v24 = vsel %vm443_vm0, %v289_v59, 0.0  ;;  %v294_v18 = vld [vmem:[#allocation2 + $0x758] sm:$0xff] }
 0x124   :  { %9296 = vmatprep.mubr.f32.mxu1 %v2393_v58  ;;  %v12177_v43 = vand.u32 4294901760, %v1442_v53  ;;  %v1160_v27 = vmax.f32 %v828_v2, 0.0  ;;  %v835_v26 = vsel %vm443_vm0, %v293_v46, 0.0  ;;  %v2403_v9 = vand.u32 4294901760, %v2402_v5  ;;  %v303_v5 = vld [vmem:[#allocation2 + $0x7a0] sm:$0xff] }
 0x125   :  { %14227 = vst [vmem:[#allocation133_spill] sm:$0xff] %v12173_v32  ;;  %v2411_v51 = vand.u32 4294901760, %v12173_v32  ;;  %v833_v45 = vadd.f32 %v832_v60, %v831_v54  ;;  %v836_v29 = vadd.f32 %v835_v26, %v834_v24  ;;  %v837_v62 = vsel %vm443_vm0, %v297_v0, 0.0 }
 0x126   :  { %14228 = vst [vmem:[#allocation134_spill] sm:$0xff] %v12177_v43  ;;  %v12183_v4 = vsub.f32 %v1442_v53, %v12177_v43  ;;  %v1445_v48 = vsel %vm443_vm0, %v1160_v27, 0  ;;  %v839_v2 = vsel %vm443_vm0, %v290_v20, 0.0  ;;  %9297 = vmatmul.mubr.f32.gmra.mrb[72].mxu1 %v2403_v9  ;;  %v840_v53 = vsel %vm443_vm0, %v294_v18, 0.0  ;;  %v307_v27 = vld [vmem:[#allocation2 + $0x7c0] sm:$0xff] }
 0x127   :  { %9899 = vmatprep.mubr.f32.mxu0 %v2411_v51  ;;  %v2412_v59 = vsub.f32 %v12173_v32, %v2411_v51  ;;  %v12189_v46 = vand.u32 4294901760, %v1445_v48  ;;  %v1161_v58 = vmax.f32 %v833_v45, 0.0  ;;  %v838_v60 = vadd.f32 %v837_v62, %v836_v29  ;;  %v300_v32 = vld [vmem:[#allocation2 + $0x788] sm:$0xff] }
 0x128   :  { %14229 = vst [vmem:[#allocation135_spill] sm:$0xff] %v12183_v4  ;;  %v2421_v54 = vand.u32 4294901760, %v12183_v4  ;;  %v842_v24 = vsel %vm443_vm0, %v298_v6, 0.0  ;;  %v844_v0 = vsel %vm443_vm0, %v299_v14, 0.0  ;;  %v841_v62 = vadd.f32 %v840_v53, %v839_v2  ;;  %v304_v6 = vld [vmem:[#allocation2 + $0x7a8] sm:$0xff]  ;;  %v301_v53 = vld [vmem:[#allocation2 + $0x790] sm:$0xff] }
 0x129   :  { %14230 = vst [vmem:[#allocation136_spill] sm:$0xff] %v12189_v46  ;;  %v2413_v26 = vand.u32 4294901760, %v2412_v59  ;;  %v12196_v20 = vsub.f32 %v1445_v48, %v12189_v46  ;;  %v1448_v51 = vsel %vm443_vm0, %v1161_v58, 0  ;;  %v1162_v9 = vmax.f32 %v838_v60, 0.0  ;;  %v308_v2 = vld [vmem:[#allocation2 + $0x7c8] sm:$0xff] }
 0x12a   :  { %9900 = vmatmul.mubr.f32.gmra.mrb[74].mxu0 %v2421_v54  ;;  %v2422_v29 = vsub.f32 %v12183_v4, %v2421_v54  ;;  %v12200_v45 = vand.u32 4294901760, %v1448_v51  ;;  %v845_v18 = vsel %vm443_vm0, %v303_v5, 0.0  ;;  %v847_v46 = vsel %vm443_vm0, %v307_v27, 0.0 }
 0x12b   :  { %14231 = vst [vmem:[#allocation137_spill] sm:$0xff] %v12196_v20  ;;  %9299 = vmatprep.mubr.f32.mxu1 %v2413_v26  ;;  %v2431_v14 = vand.u32 4294901760, %v12196_v20  ;;  %v1451_v59 = vsel %vm443_vm0, %v1162_v9, 0  ;;  %v846_v48 = vadd.f32 %v845_v18, %v844_v0  ;;  %v843_v4 = vadd.f32 %v842_v24, %v841_v62  ;;  %v305_v18 = vld [vmem:[#allocation2 + $0x7b0] sm:$0xff] }
 0x12c   :  { %14232 = vst [vmem:[#allocation138_spill] sm:$0xff] %v12200_v45  ;;  %v2423_v58 = vand.u32 4294901760, %v2422_v29  ;;  %v12207_v60 = vsub.f32 %v1448_v51, %v12200_v45  ;;  %v12209_v54 = vand.u32 4294901760, %v1451_v59  ;;  %v849_v43 = vsel %vm443_vm0, %v300_v32, 0.0  ;;  %v309_v24 = vld [vmem:[#allocation2 + $0x7d0] sm:$0xff] }
 0x12d   :  { %9902 = vmatprep.mubr.f32.mxu0 %v2431_v14  ;;  %v2432_v5 = vsub.f32 %v12196_v20, %v2431_v14  ;;  %v848_v26 = vadd.f32 %v847_v46, %v846_v48  ;;  %v850_v9 = vsel %vm443_vm0, %v304_v6, 0.0  ;;  %v1163_v51 = vmax.f32 %v843_v4, 0.0 }
 0x12e   :  { %14233 = vst [vmem:[#allocation139_spill] sm:$0xff] %v12207_v60  ;;  %14234 = vst [vmem:[#allocation140_spill] sm:$0xff] %v12209_v54  ;;  %9300 = vmatmul.mubr.f32.gmra.mrb[74].mxu1 %v2423_v58  ;;  %v2441_v27 = vand.u32 4294901760, %v12207_v60  ;;  %v12216_v0 = vsub.f32 %v1451_v59, %v12209_v54  ;;  %v851_v29 = vadd.f32 %v850_v9, %v849_v43  ;;  %v852_v55 = vsel %vm443_vm0, %v308_v2, 0.0  ;;  %v302_v59 = vld [vmem:[#allocation2 + $0x798] sm:$0xff] }
 0x12f   :  { %v2433_v62 = vand.u32 4294901760, %v2432_v5  ;;  %v1164_v45 = vmax.f32 %v848_v26, 0.0  ;;  %v854_v46 = vsel %vm443_vm0, %v301_v53, 0.0  ;;  %v1454_v14 = vsel %vm443_vm0, %v1163_v51, 0  ;;  %v306_v58 = vld [vmem:[#allocation2 + $0x7b8] sm:$0xff] }
 0x130   :  { %14235 = vst [vmem:[#allocation141_spill] sm:$0xff] %v12216_v0  ;;  %9903 = vmatmul.mubr.f32.gmra.mrb[76].mxu0 %v2441_v27  ;;  %v2451_v32 = vand.u32 4294901760, %v12216_v0  ;;  %v2442_v6 = vsub.f32 %v12207_v60, %v2441_v27  ;;  %v853_v48 = vadd.f32 %v852_v55, %v851_v29  ;;  %v12223_v43 = vand.u32 4294901760, %v1454_v14  ;;  %v310_v51 = vld [vmem:[#allocation2 + $0x7d8] sm:$0xff]  ;;  %v311_v60 = vld [vmem:[#allocation2 + $0x7e0] sm:$0xff] }
 0x131   :  { %9302 = vmatprep.mubr.f32.mxu1 %v2433_v62  ;;  %v1457_v4 = vsel %vm443_vm0, %v1164_v45, 0  ;;  %v855_v5 = vsel %vm443_vm0, %v305_v18, 0.0  ;;  %v857_v2 = vsel %vm443_vm0, %v309_v24, 0.0  ;;  %v859_v62 = vsel %vm443_vm0, %v302_v59, 0.0  ;;  %v315_v18 = vld [vmem:[#allocation2 + $0x800] sm:$0xff] }
 0x132   :  { %14236 = vst [vmem:[#allocation142_spill] sm:$0xff] %v12223_v43  ;;  %9905 = vmatprep.mubr.f32.mxu0 %v2451_v32  ;;  %v2443_v53 = vand.u32 4294901760, %v2442_v6  ;;  %v2452_v26 = vsub.f32 %v12216_v0, %v2451_v32  ;;  %v12229_v9 = vand.u32 4294901760, %v1457_v4  ;;  %v1165_v27 = vmax.f32 %v853_v48, 0.0  ;;  %v319_v59 = vld [vmem:[#allocation2 + $0x820] sm:$0xff] }
 0x133   :  { %v12232_v55 = vsub.f32 %v1454_v14, %v12223_v43  ;;  %v856_v29 = vadd.f32 %v855_v5, %v854_v46  ;;  %v860_v45 = vsel %vm443_vm0, %v306_v58, 0.0  ;;  %v862_v46 = vsel %vm443_vm0, %v310_v51, 0.0  ;;  %v312_v5 = vld [vmem:[#allocation2 + $0x7e8] sm:$0xff] }
 0x134   :  { %14237 = vst [vmem:[#allocation143_spill] sm:$0xff] %v12229_v9  ;;  %9303 = vmatmul.mubr.f32.gmra.mrb[76].mxu1 %v2443_v53  ;;  %v2453_v24 = vand.u32 4294901760, %v2452_v26  ;;  %v12237_v6 = vsub.f32 %v1457_v4, %v12229_v9  ;;  %v1460_v32 = vsel %vm443_vm0, %v1165_v27, 0  ;;  %v861_v0 = vadd.f32 %v860_v45, %v859_v62 }
 0x135   :  { %14238 = vst [vmem:[#allocation144_spill] sm:$0xff] %v12232_v55  ;;  %v2461_v48 = vand.u32 4294901760, %v12232_v55  ;;  %v12241_v20 = vand.u32 4294901760, %v1460_v32  ;;  %v858_v14 = vadd.f32 %v857_v2, %v856_v29  ;;  %v864_v26 = vsel %vm443_vm0, %v311_v60, 0.0  ;;  %v316_v29 = vld [vmem:[#allocation2 + $0x808] sm:$0xff] }
 0x136   :  { %14239 = vst [vmem:[#allocation145_spill] sm:$0xff] %v12237_v6  ;;  %9305 = vmatprep.mubr.f32.mxu1 %v2453_v24  ;;  %v2471_v58 = vand.u32 4294901760, %v12237_v6  ;;  %v863_v53 = vadd.f32 %v862_v46, %v861_v0  ;;  %v865_v4 = vsel %vm443_vm0, %v315_v18, 0.0  ;;  %v867_v9 = vsel %vm443_vm0, %v319_v59, 0.0 }
 0x137   :  { %14240 = vst [vmem:[#allocation146_spill] sm:$0xff] %v12241_v20  ;;  %9906 = vmatmul.mubr.f32.gmra.mrb[78].mxu0 %v2461_v48  ;;  %v2462_v27 = vsub.f32 %v12232_v55, %v2461_v48  ;;  %v12249_v62 = vsub.f32 %v1460_v32, %v12241_v20  ;;  %v1166_v45 = vmax.f32 %v858_v14, 0.0  ;;  %v866_v2 = vadd.f32 %v865_v4, %v864_v26  ;;  %v320_v55 = vld [vmem:[#allocation2 + $0x828] sm:$0xff]  ;;  %v313_v32 = vld [vmem:[#allocation2 + $0x7f0] sm:$0xff] }
 0x138   :  { %9908 = vmatprep.mubr.f32.mxu0 %v2471_v58  ;;  %v2472_v51 = vsub.f32 %v12237_v6, %v2471_v58  ;;  %v1167_v24 = vmax.f32 %v863_v53, 0.0  ;;  %v869_v0 = vsel %vm443_vm0, %v312_v5, 0.0  ;;  %v317_v20 = vld [vmem:[#allocation2 + $0x810] sm:$0xff]  ;;  %v870_v58 = vsel %vm443_vm0, %v316_v29, 0.0  ;;  %v314_v29 = vld [vmem:[#allocation2 + $0x7f8] sm:$0xff] }
 0x139   :  { %14241 = vst [vmem:[#allocation147_spill] sm:$0xff] %v12249_v62  ;;  %v2463_v60 = vand.u32 4294901760, %v2462_v27  ;;  %v2481_v18 = vand.u32 4294901760, %v12249_v62  ;;  %v1463_v46 = vsel %vm443_vm0, %v1166_v45, 0  ;;  %v868_v48 = vadd.f32 %v867_v9, %v866_v2  ;;  %v321_v45 = vld [vmem:[#allocation2 + $0x830] sm:$0xff] }
 0x13a   :  { %v2473_v14 = vand.u32 4294901760, %v2472_v51  ;;  %v12256_v26 = vand.u32 4294901760, %v1463_v46  ;;  %v1466_v4 = vsel %vm443_vm0, %v1167_v24, 0  ;;  %v871_v27 = vadd.f32 %v870_v58, %v869_v0 }
 0x13b   :  { %9306 = vmatmul.mubr.f32.gmra.mrb[78].mxu1 %v2463_v60  ;;  %9909 = vmatmul.mubr.f32.gmra.mrb[80].mxu0 %v2481_v18  ;;  %v2482_v59 = vsub.f32 %v12249_v62, %v2481_v18  ;;  %v12261_v5 = vand.u32 4294901760, %v1466_v4  ;;  %v1168_v53 = vmax.f32 %v868_v48, 0.0  ;;  %v872_v2 = vsel %vm443_vm0, %v320_v55, 0.0  ;;  %v318_v60 = vld [vmem:[#allocation2 + $0x818] sm:$0xff] }
 0x13c   :  { %14242 = vst [vmem:[#allocation148_spill] sm:$0xff] %v12256_v26  ;;  %9308 = vmatprep.mubr.f32.mxu1 %v2473_v14  ;;  %v12264_v9 = vsub.f32 %v1463_v46, %v12256_v26  ;;  %v874_v51 = vsel %vm443_vm0, %v313_v32, 0.0  ;;  %v875_v24 = vsel %vm443_vm0, %v317_v20, 0.0  ;;  %v873_v0 = vadd.f32 %v872_v2, %v871_v27  ;;  %v322_v62 = vld [vmem:[#allocation2 + $0x838] sm:$0xff]  ;;  %v323_v32 = vld [vmem:[#allocation2 + $0x840] sm:$0xff] }
 0x13d   :  { %14243 = vst [vmem:[#allocation149_spill] sm:$0xff] %v12261_v5  ;;  %v2483_v6 = vand.u32 4294901760, %v2482_v59  ;;  %v12270_v18 = vsub.f32 %v1466_v4, %v12261_v5  ;;  %v1469_v48 = vsel %vm443_vm0, %v1168_v53, 0  ;;  %v876_v46 = vadd.f32 %v875_v24, %v874_v51  ;;  %v327_v24 = vld [vmem:[#allocation2 + $0x860] sm:$0xff] }
 0x13e   :  { %14244 = vst [vmem:[#allocation150_spill] sm:$0xff] %v12264_v9  ;;  %v2491_v14 = vand.u32 4294901760, %v12264_v9  ;;  %v12274_v58 = vand.u32 4294901760, %v1469_v48  ;;  %v877_v55 = vsel %vm443_vm0, %v321_v45, 0.0  ;;  %v1169_v26 = vmax.f32 %v873_v0, 0.0  ;;  %v331_v45 = vld [vmem:[#allocation2 + $0x880] sm:$0xff] }
 0x13f   :  { %14245 = vst [vmem:[#allocation151_spill] sm:$0xff] %v12270_v18  ;;  %9309 = vmatmul.mubr.f32.gmra.mrb[80].mxu1 %v2483_v6  ;;  %v2501_v20 = vand.u32 4294901760, %v12270_v18  ;;  %v879_v59 = vsel %vm443_vm0, %v314_v29, 0.0  ;;  %v880_v4 = vsel %vm443_vm0, %v318_v60, 0.0  ;;  %v878_v2 = vadd.f32 %v877_v55, %v876_v46  ;;  %v328_v46 = vld [vmem:[#allocation2 + $0x868] sm:$0xff] }
 0x140   :  { %14246 = vst [vmem:[#allocation152_spill] sm:$0xff] %v12274_v58  ;;  %9911 = vmatprep.mubr.f32.mxu0 %v2491_v14  ;;  %v2492_v53 = vsub.f32 %v12264_v9, %v2491_v14  ;;  %v12282_v27 = vsub.f32 %v1469_v48, %v12274_v58  ;;  %v881_v51 = vadd.f32 %v880_v4, %v879_v59  ;;  %v1472_v5 = vsel %vm443_vm0, %v1169_v26, 0  ;;  %v324_v9 = vld [vmem:[#allocation2 + $0x848] sm:$0xff] }
 0x141   :  { %9912 = vmatmul.mubr.f32.gmra.mrb[82].mxu0 %v2501_v20  ;;  %v2502_v6 = vsub.f32 %v12270_v18, %v2501_v20  ;;  %v882_v0 = vsel %vm443_vm0, %v322_v62, 0.0  ;;  %v884_v29 = vsel %vm443_vm0, %v323_v32, 0.0  ;;  %v12289_v14 = vand.u32 4294901760, %v1472_v5  ;;  %v332_v18 = vld [vmem:[#allocation2 + $0x888] sm:$0xff] }
 0x142   :  { %14247 = vst [vmem:[#allocation153_spill] sm:$0xff] %v12282_v27  ;;  %v2493_v60 = vand.u32 4294901760, %v2492_v53  ;;  %v2511_v43 = vand.u32 4294901760, %v12282_v27  ;;  %v1170_v48 = vmax.f32 %v878_v2, 0.0  ;;  %v883_v59 = vadd.f32 %v882_v0, %v881_v51  ;;  %v325_v2 = vld [vmem:[#allocation2 + $0x850] sm:$0xff] }
 0x143   :  { %14248 = vst [vmem:[#allocation154_spill] sm:$0xff] %v12289_v14  ;;  %v2503_v55 = vand.u32 4294901760, %v2502_v6  ;;  %v885_v4 = vsel %vm443_vm0, %v327_v24, 0.0  ;;  %v887_v20 = vsel %vm443_vm0, %v331_v45, 0.0  ;;  %v12294_v62 = vsub.f32 %v1472_v5, %v12289_v14  ;;  %v329_v14 = vld [vmem:[#allocation2 + $0x870] sm:$0xff] }
 0x144   :  { %9311 = vmatprep.mubr.f32.mxu1 %v2493_v60  ;;  %9914 = vmatprep.mubr.f32.mxu0 %v2511_v43  ;;  %v2512_v26 = vsub.f32 %v12282_v27, %v2511_v43  ;;  %v1475_v32 = vsel %vm443_vm0, %v1170_v48, 0  ;;  %v886_v53 = vadd.f32 %v885_v4, %v884_v29  ;;  %v1171_v51 = vmax.f32 %v883_v59, 0.0  ;;  %v333_v43 = vld [vmem:[#allocation2 + $0x890] sm:$0xff]  ;;  %v326_v27 = vld [vmem:[#allocation2 + $0x858] sm:$0xff] }
 0x145   :  { %14249 = vst [vmem:[#allocation155_spill] sm:$0xff] %v12294_v62  ;;  %9312 = vmatmul.mubr.f32.gmra.mrb[82].mxu1 %v2503_v55  ;;  %v12298_v58 = vand.u32 4294901760, %v1475_v32  ;;  %v889_v24 = vsel %vm443_vm0, %v324_v9, 0.0  ;;  %v890_v45 = vsel %vm443_vm0, %v328_v46, 0.0  ;;  %v2521_v6 = vand.u32 4294901760, %v12294_v62 }
 0x146   :  { %v2513_v0 = vand.u32 4294901760, %v2512_v26  ;;  %v888_v5 = vadd.f32 %v887_v20, %v886_v53  ;;  %v891_v60 = vadd.f32 %v890_v45, %v889_v24  ;;  %v1478_v48 = vsel %vm443_vm0, %v1171_v51, 0  ;;  %v330_v26 = vld [vmem:[#allocation2 + $0x878] sm:$0xff] }
 0x147   :  { %14250 = vst [vmem:[#allocation156_spill] sm:$0xff] %v12298_v58  ;;  %v12304_v29 = vsub.f32 %v1475_v32, %v12298_v58  ;;  %v892_v55 = vsel %vm443_vm0, %v332_v18, 0.0  ;;  %v894_v59 = vsel %vm443_vm0, %v325_v2, 0.0  ;;  %9915 = vmatmul.mubr.f32.gmra.mrb[84].mxu0 %v2521_v6  ;;  %v2522_v9 = vsub.f32 %v12294_v62, %v2521_v6  ;;  %v334_v51 = vld [vmem:[#allocation2 + $0x898] sm:$0xff]  ;;  %v335_v62 = vld [vmem:[#allocation2 + $0x8a0] sm:$0xff] }
 0x148   :  { %9314 = vmatprep.mubr.f32.mxu1 %v2513_v0  ;;  %v12310_v46 = vand.u32 4294901760, %v1478_v48  ;;  %v1172_v4 = vmax.f32 %v888_v5, 0.0  ;;  %v893_v20 = vadd.f32 %v892_v55, %v891_v60  ;;  %v895_v32 = vsel %vm443_vm0, %v329_v14, 0.0 }
 0x149   :  { %14251 = vst [vmem:[#allocation157_spill] sm:$0xff] %v12304_v29  ;;  %v2531_v53 = vand.u32 4294901760, %v12304_v29  ;;  %v897_v24 = vsel %vm443_vm0, %v333_v43, 0.0  ;;  %v899_v18 = vsel %vm443_vm0, %v326_v27, 0.0  ;;  %v2523_v45 = vand.u32 4294901760, %v2522_v9  ;;  %v339_v43 = vld [vmem:[#allocation2 + $0x8c0] sm:$0xff] }
 0x14a   :  { %14252 = vst [vmem:[#allocation158_spill] sm:$0xff] %v12310_v46  ;;  %v12317_v2 = vsub.f32 %v1478_v48, %v12310_v46  ;;  %v1481_v6 = vsel %vm443_vm0, %v1172_v4, 0  ;;  %v1173_v0 = vmax.f32 %v893_v20, 0.0  ;;  %v896_v55 = vadd.f32 %v895_v32, %v894_v59  ;;  %v343_v59 = vld [vmem:[#allocation2 + $0x8e0] sm:$0xff]  ;;  %v336_v32 = vld [vmem:[#allocation2 + $0x8a8] sm:$0xff] }
 0x14b   :  { %9917 = vmatprep.mubr.f32.mxu0 %v2531_v53  ;;  %v2532_v5 = vsub.f32 %v12304_v29, %v2531_v53  ;;  %v12321_v60 = vand.u32 4294901760, %v1481_v6  ;;  %v900_v14 = vsel %vm443_vm0, %v330_v26, 0.0  ;;  %9315 = vmatmul.mubr.f32.gmra.mrb[84].mxu1 %v2523_v45  ;;  %v902_v46 = vsel %vm443_vm0, %v334_v51, 0.0 }
 0x14c   :  { %14253 = vst [vmem:[#allocation159_spill] sm:$0xff] %v12317_v2  ;;  %v2541_v27 = vand.u32 4294901760, %v12317_v2  ;;  %v1484_v9 = vsel %vm443_vm0, %v1173_v0, 0  ;;  %v901_v48 = vadd.f32 %v900_v14, %v899_v18  ;;  %v898_v29 = vadd.f32 %v897_v24, %v896_v55  ;;  %v340_v14 = vld [vmem:[#allocation2 + $0x8c8] sm:$0xff] }
 0x14d   :  { %14254 = vst [vmem:[#allocation160_spill] sm:$0xff] %v12321_v60  ;;  %v2533_v4 = vand.u32 4294901760, %v2532_v5  ;;  %v12328_v20 = vsub.f32 %v1481_v6, %v12321_v60  ;;  %v12330_v53 = vand.u32 4294901760, %v1484_v9  ;;  %v904_v58 = vsel %vm443_vm0, %v335_v62, 0.0  ;;  %v344_v24 = vld [vmem:[#allocation2 + $0x8e8] sm:$0xff] }
 0x14e   :  { %9918 = vmatmul.mubr.f32.gmra.mrb[86].mxu0 %v2541_v27  ;;  %v2542_v26 = vsub.f32 %v12317_v2, %v2541_v27  ;;  %v903_v45 = vadd.f32 %v902_v46, %v901_v48  ;;  %v905_v0 = vsel %vm443_vm0, %v339_v43, 0.0  ;;  %v1174_v6 = vmax.f32 %v898_v29, 0.0 }
 0x14f   :  { %14255 = vst [vmem:[#allocation161_spill] sm:$0xff] %v12328_v20  ;;  %14256 = vst [vmem:[#allocation162_spill] sm:$0xff] %v12330_v53  ;;  %9317 = vmatprep.mubr.f32.mxu1 %v2533_v4  ;;  %v2551_v51 = vand.u32 4294901760, %v12328_v20  ;;  %v12337_v18 = vsub.f32 %v1484_v9, %v12330_v53  ;;  %v906_v5 = vadd.f32 %v905_v0, %v904_v58  ;;  %v907_v54 = vsel %vm443_vm0, %v343_v59, 0.0  ;;  %v337_v9 = vld [vmem:[#allocation2 + $0x8b0] sm:$0xff] }
 0x150   :  { %v2543_v55 = vand.u32 4294901760, %v2542_v26  ;;  %v1175_v60 = vmax.f32 %v903_v45, 0.0  ;;  %v909_v46 = vsel %vm443_vm0, %v336_v32, 0.0  ;;  %v1487_v27 = vsel %vm443_vm0, %v1174_v6, 0  ;;  %v341_v4 = vld [vmem:[#allocation2 + $0x8d0] sm:$0xff] }
 0x151   :  { %14257 = vst [vmem:[#allocation163_spill] sm:$0xff] %v12337_v18  ;;  %9920 = vmatprep.mubr.f32.mxu0 %v2551_v51  ;;  %v2561_v62 = vand.u32 4294901760, %v12337_v18  ;;  %v2552_v43 = vsub.f32 %v12328_v20, %v2551_v51  ;;  %v908_v48 = vadd.f32 %v907_v54, %v906_v5  ;;  %v12344_v58 = vand.u32 4294901760, %v1487_v27  ;;  %v345_v6 = vld [vmem:[#allocation2 + $0x8f0] sm:$0xff]  ;;  %v338_v20 = vld [vmem:[#allocation2 + $0x8b8] sm:$0xff] }
 0x152   :  { %9318 = vmatmul.mubr.f32.gmra.mrb[86].mxu1 %v2543_v55  ;;  %v1490_v29 = vsel %vm443_vm0, %v1175_v60, 0  ;;  %v910_v26 = vsel %vm443_vm0, %v340_v14, 0.0  ;;  %v912_v59 = vsel %vm443_vm0, %v344_v24, 0.0  ;;  %v914_v55 = vsel %vm443_vm0, %v337_v9, 0.0  ;;  %v342_v14 = vld [vmem:[#allocation2 + $0x8d8] sm:$0xff] }
 0x153   :  { %14258 = vst [vmem:[#allocation164_spill] sm:$0xff] %v12344_v58  ;;  %9921 = vmatmul.mubr.f32.gmra.mrb[88].mxu0 %v2561_v62  ;;  %v2553_v32 = vand.u32 4294901760, %v2552_v43  ;;  %v2562_v45 = vsub.f32 %v12337_v18, %v2561_v62  ;;  %v12350_v0 = vand.u32 4294901760, %v1490_v29  ;;  %v1176_v51 = vmax.f32 %v908_v48, 0.0  ;;  %v346_v9 = vld [vmem:[#allocation2 + $0x8f8] sm:$0xff] }
 0x154   :  { %v12353_v54 = vsub.f32 %v1487_v27, %v12344_v58  ;;  %v911_v5 = vadd.f32 %v910_v26, %v909_v46  ;;  %v915_v60 = vsel %vm443_vm0, %v341_v4, 0.0  ;;  %v917_v46 = vsel %vm443_vm0, %v345_v6, 0.0  ;;  %v347_v26 = vld [vmem:[#allocation2 + $0x900] sm:$0xff] }
 0x155   :  { %14259 = vst [vmem:[#allocation165_spill] sm:$0xff] %v12350_v0  ;;  %9320 = vmatprep.mubr.f32.mxu1 %v2553_v32  ;;  %v2563_v24 = vand.u32 4294901760, %v2562_v45  ;;  %v12358_v43 = vsub.f32 %v1490_v29, %v12350_v0  ;;  %v1493_v62 = vsel %vm443_vm0, %v1176_v51, 0  ;;  %v916_v18 = vadd.f32 %v915_v60, %v914_v55 }
 0x156   :  { %14260 = vst [vmem:[#allocation166_spill] sm:$0xff] %v12353_v54  ;;  %v2571_v48 = vand.u32 4294901760, %v12353_v54  ;;  %v12362_v2 = vand.u32 4294901760, %v1493_v62  ;;  %v913_v27 = vadd.f32 %v912_v59, %v911_v5  ;;  %v919_v45 = vsel %vm443_vm0, %v338_v20, 0.0  ;;  %v351_v5 = vld [vmem:[#allocation2 + $0x920] sm:$0xff] }
 0x157   :  { %14261 = vst [vmem:[#allocation167_spill] sm:$0xff] %v12358_v43  ;;  %9321 = vmatmul.mubr.f32.gmra.mrb[88].mxu1 %v2563_v24  ;;  %v2581_v4 = vand.u32 4294901760, %v12358_v43  ;;  %v918_v32 = vadd.f32 %v917_v46, %v916_v18  ;;  %v920_v29 = vsel %vm443_vm0, %v342_v14, 0.0  ;;  %v922_v0 = vsel %vm443_vm0, %v346_v9, 0.0 }
 0x158   :  { %14262 = vst [vmem:[#allocation168_spill] sm:$0xff] %v12362_v2  ;;  %9923 = vmatprep.mubr.f32.mxu0 %v2571_v48  ;;  %v2572_v51 = vsub.f32 %v12353_v54, %v2571_v48  ;;  %v12370_v55 = vsub.f32 %v1493_v62, %v12362_v2  ;;  %v1177_v60 = vmax.f32 %v913_v27, 0.0  ;;  %v921_v59 = vadd.f32 %v920_v29, %v919_v45  ;;  %v355_v54 = vld [vmem:[#allocation2 + $0x940] sm:$0xff]  ;;  %v348_v62 = vld [vmem:[#allocation2 + $0x908] sm:$0xff] }
 0x159   :  { %9924 = vmatmul.mubr.f32.gmra.mrb[90].mxu0 %v2581_v4  ;;  %v2582_v6 = vsub.f32 %v12358_v43, %v2581_v4  ;;  %v1178_v24 = vmax.f32 %v918_v32, 0.0  ;;  %v924_v18 = vsel %vm443_vm0, %v347_v26, 0.0  ;;  %v352_v2 = vld [vmem:[#allocation2 + $0x928] sm:$0xff]  ;;  %v925_v4 = vsel %vm443_vm0, %v351_v5, 0.0  ;;  %v349_v5 = vld [vmem:[#allocation2 + $0x910] sm:$0xff] }
 0x15a   :  { %14263 = vst [vmem:[#allocation169_spill] sm:$0xff] %v12370_v55  ;;  %v2573_v20 = vand.u32 4294901760, %v2572_v51  ;;  %v2591_v14 = vand.u32 4294901760, %v12370_v55  ;;  %v1496_v46 = vsel %vm443_vm0, %v1177_v60, 0  ;;  %v923_v48 = vadd.f32 %v922_v0, %v921_v59  ;;  %v356_v60 = vld [vmem:[#allocation2 + $0x948] sm:$0xff] }
 0x15b   :  { %v2583_v27 = vand.u32 4294901760, %v2582_v6  ;;  %v12377_v45 = vand.u32 4294901760, %v1496_v46  ;;  %v1499_v29 = vsel %vm443_vm0, %v1178_v24, 0  ;;  %v926_v51 = vadd.f32 %v925_v4, %v924_v18 }
 0x15c   :  { %9323 = vmatprep.mubr.f32.mxu1 %v2573_v20  ;;  %9926 = vmatprep.mubr.f32.mxu0 %v2591_v14  ;;  %v2592_v9 = vsub.f32 %v12370_v55, %v2591_v14  ;;  %v12382_v26 = vand.u32 4294901760, %v1499_v29  ;;  %v1179_v32 = vmax.f32 %v923_v48, 0.0  ;;  %v927_v59 = vsel %vm443_vm0, %v355_v54, 0.0  ;;  %v353_v20 = vld [vmem:[#allocation2 + $0x930] sm:$0xff] }
 0x15d   :  { %14264 = vst [vmem:[#allocation170_spill] sm:$0xff] %v12377_v45  ;;  %9324 = vmatmul.mubr.f32.gmra.mrb[90].mxu1 %v2583_v27  ;;  %v12385_v0 = vsub.f32 %v1496_v46, %v12377_v45  ;;  %v929_v6 = vsel %vm443_vm0, %v348_v62, 0.0  ;;  %v930_v24 = vsel %vm443_vm0, %v352_v2, 0.0  ;;  %v928_v18 = vadd.f32 %v927_v59, %v926_v51  ;;  %v357_v55 = vld [vmem:[#allocation2 + $0x950] sm:$0xff]  ;;  %v350_v62 = vld [vmem:[#allocation2 + $0x918] sm:$0xff] }
 0x15e   :  { %14265 = vst [vmem:[#allocation171_spill] sm:$0xff] %v12382_v26  ;;  %v2593_v43 = vand.u32 4294901760, %v2592_v9  ;;  %v12391_v14 = vsub.f32 %v1499_v29, %v12382_v26  ;;  %v1502_v48 = vsel %vm443_vm0, %v1179_v32, 0  ;;  %v931_v46 = vadd.f32 %v930_v24, %v929_v6  ;;  %v354_v24 = vld [vmem:[#allocation2 + $0x938] sm:$0xff] }
 0x15f   :  { %14266 = vst [vmem:[#allocation172_spill] sm:$0xff] %v12385_v0  ;;  %v2601_v27 = vand.u32 4294901760, %v12385_v0  ;;  %v12395_v4 = vand.u32 4294901760, %v1502_v48  ;;  %v932_v54 = vsel %vm443_vm0, %v356_v60, 0.0  ;;  %v1180_v45 = vmax.f32 %v928_v18, 0.0  ;;  %v358_v60 = vld [vmem:[#allocation2 + $0x958] sm:$0xff] }
 0x160   :  { %14267 = vst [vmem:[#allocation173_spill] sm:$0xff] %v12391_v14  ;;  %9326 = vmatprep.mubr.f32.mxu1 %v2593_v43  ;;  %v2611_v2 = vand.u32 4294901760, %v12391_v14  ;;  %v934_v9 = vsel %vm443_vm0, %v349_v5, 0.0  ;;  %v935_v29 = vsel %vm443_vm0, %v353_v20, 0.0  ;;  %v933_v59 = vadd.f32 %v932_v54, %v931_v46  ;;  %v363_v46 = vld [vmem:[#allocation2 + $0x980] sm:$0xff] }
 0x161   :  { %14268 = vst [vmem:[#allocation174_spill] sm:$0xff] %v12395_v4  ;;  %9927 = vmatmul.mubr.f32.gmra.mrb[92].mxu0 %v2601_v27  ;;  %v2602_v32 = vsub.f32 %v12385_v0, %v2601_v27  ;;  %v12403_v51 = vsub.f32 %v1502_v48, %v12395_v4  ;;  %v936_v6 = vadd.f32 %v935_v29, %v934_v9  ;;  %v1505_v26 = vsel %vm443_vm0, %v1180_v45, 0  ;;  %v359_v0 = vld [vmem:[#allocation2 + $0x960] sm:$0xff] }
 0x162   :  { %9929 = vmatprep.mubr.f32.mxu0 %v2611_v2  ;;  %v2612_v43 = vsub.f32 %v12391_v14, %v2611_v2  ;;  %v937_v18 = vsel %vm443_vm0, %v357_v55, 0.0  ;;  %v939_v5 = vsel %vm443_vm0, %v350_v62, 0.0  ;;  %v12410_v27 = vand.u32 4294901760, %v1505_v26  ;;  %v367_v14 = vld [vmem:[#allocation2 + $0x9a0] sm:$0xff] }
 0x163   :  { %14269 = vst [vmem:[#allocation175_spill] sm:$0xff] %v12403_v51  ;;  %v2603_v20 = vand.u32 4294901760, %v2602_v32  ;;  %v2621_v58 = vand.u32 4294901760, %v12403_v51  ;;  %v1181_v48 = vmax.f32 %v933_v59, 0.0  ;;  %v938_v9 = vadd.f32 %v937_v18, %v936_v6  ;;  %v360_v59 = vld [vmem:[#allocation2 + $0x968] sm:$0xff] }
 0x164   :  { %14270 = vst [vmem:[#allocation176_spill] sm:$0xff] %v12410_v27  ;;  %v2613_v54 = vand.u32 4294901760, %v2612_v43  ;;  %v940_v29 = vsel %vm443_vm0, %v354_v24, 0.0  ;;  %v942_v2 = vsel %vm443_vm0, %v358_v60, 0.0  ;;  %v12415_v55 = vsub.f32 %v1505_v26, %v12410_v27  ;;  %v364_v27 = vld [vmem:[#allocation2 + $0x988] sm:$0xff] }
 0x165   :  { %9327 = vmatmul.mubr.f32.gmra.mrb[92].mxu1 %v2603_v20  ;;  %9930 = vmatmul.mubr.f32.gmra.mrb[94].mxu0 %v2621_v58  ;;  %v2622_v45 = vsub.f32 %v12403_v51, %v2621_v58  ;;  %v1508_v62 = vsel %vm443_vm0, %v1181_v48, 0  ;;  %v941_v32 = vadd.f32 %v940_v29, %v939_v5  ;;  %v1182_v6 = vmax.f32 %v938_v9, 0.0  ;;  %v368_v58 = vld [vmem:[#allocation2 + $0x9a8] sm:$0xff]  ;;  %v361_v51 = vld [vmem:[#allocation2 + $0x970] sm:$0xff] }
 0x166   :  { %14271 = vst [vmem:[#allocation177_spill] sm:$0xff] %v12415_v55  ;;  %9329 = vmatprep.mubr.f32.mxu1 %v2613_v54  ;;  %v12419_v4 = vand.u32 4294901760, %v1508_v62  ;;  %v944_v24 = vsel %vm443_vm0, %v359_v0, 0.0  ;;  %v945_v60 = vsel %vm443_vm0, %v363_v46, 0.0  ;;  %v2631_v43 = vand.u32 4294901760, %v12415_v55 }
 0x167   :  { %v2623_v18 = vand.u32 4294901760, %v2622_v45  ;;  %v943_v26 = vadd.f32 %v942_v2, %v941_v32  ;;  %v946_v20 = vadd.f32 %v945_v60, %v944_v24  ;;  %v1511_v48 = vsel %vm443_vm0, %v1182_v6, 0  ;;  %v365_v45 = vld [vmem:[#allocation2 + $0x990] sm:$0xff] }
 0x168   :  { %14272 = vst [vmem:[#allocation178_spill] sm:$0xff] %v12419_v4  ;;  %v12425_v5 = vsub.f32 %v1508_v62, %v12419_v4  ;;  %v947_v54 = vsel %vm443_vm0, %v367_v14, 0.0  ;;  %v949_v9 = vsel %vm443_vm0, %v360_v59, 0.0  ;;  %9932 = vmatprep.mubr.f32.mxu0 %v2631_v43  ;;  %v2632_v0 = vsub.f32 %v12415_v55, %v2631_v43  ;;  %v369_v6 = vld [vmem:[#allocation2 + $0x9b0] sm:$0xff]  ;;  %v362_v55 = vld [vmem:[#allocation2 + $0x978] sm:$0xff] }
 0x169   :  { %9330 = vmatmul.mubr.f32.gmra.mrb[94].mxu1 %v2623_v18  ;;  %v12431_v46 = vand.u32 4294901760, %v1511_v48  ;;  %v1183_v29 = vmax.f32 %v943_v26, 0.0  ;;  %v948_v2 = vadd.f32 %v947_v54, %v946_v20  ;;  %v950_v62 = vsel %vm443_vm0, %v364_v27, 0.0 }
 0x16a   :  { %14273 = vst [vmem:[#allocation179_spill] sm:$0xff] %v12425_v5  ;;  %v2641_v32 = vand.u32 4294901760, %v12425_v5  ;;  %v952_v24 = vsel %vm443_vm0, %v368_v58, 0.0  ;;  %v954_v14 = vsel %vm443_vm0, %v361_v51, 0.0  ;;  %v2633_v60 = vand.u32 4294901760, %v2632_v0  ;;  %v366_v58 = vld [vmem:[#allocation2 + $0x998] sm:$0xff] }
 0x16b   :  { %14274 = vst [vmem:[#allocation180_spill] sm:$0xff] %v12431_v46  ;;  %v12438_v59 = vsub.f32 %v1511_v48, %v12431_v46  ;;  %v1514_v43 = vsel %vm443_vm0, %v1183_v29, 0  ;;  %v1184_v18 = vmax.f32 %v948_v2, 0.0  ;;  %v951_v54 = vadd.f32 %v950_v62, %v949_v9  ;;  %v370_v9 = vld [vmem:[#allocation2 + $0x9b8] sm:$0xff]  ;;  %v371_v62 = vld [vmem:[#allocation2 + $0x9c0] sm:$0xff] }
 0x16c   :  { %9933 = vmatmul.mubr.f32.gmra.mrb[96].mxu0 %v2641_v32  ;;  %v2642_v26 = vsub.f32 %v12425_v5, %v2641_v32  ;;  %v12442_v20 = vand.u32 4294901760, %v1514_v43  ;;  %v955_v27 = vsel %vm443_vm0, %v365_v45, 0.0  ;;  %9332 = vmatprep.mubr.f32.mxu1 %v2633_v60  ;;  %v957_v46 = vsel %vm443_vm0, %v369_v6, 0.0 }
 0x16d   :  { %14275 = vst [vmem:[#allocation181_spill] sm:$0xff] %v12438_v59  ;;  %v2651_v51 = vand.u32 4294901760, %v12438_v59  ;;  %v1517_v0 = vsel %vm443_vm0, %v1184_v18, 0  ;;  %v956_v48 = vadd.f32 %v955_v27, %v954_v14  ;;  %v953_v5 = vadd.f32 %v952_v24, %v951_v54  ;;  %v375_v27 = vld [vmem:[#allocation2 + $0x9e0] sm:$0xff] }
 0x16e   :  { %14276 = vst [vmem:[#allocation182_spill] sm:$0xff] %v12442_v20  ;;  %v2643_v29 = vand.u32 4294901760, %v2642_v26  ;;  %v12449_v2 = vsub.f32 %v1514_v43, %v12442_v20  ;;  %v12451_v32 = vand.u32 4294901760, %v1517_v0  ;;  %v959_v4 = vsel %vm443_vm0, %v362_v55, 0.0  ;;  %v379_v24 = vld [vmem:[#allocation2 + $0xa00] sm:$0xff] }
 0x16f   :  { %9935 = vmatprep.mubr.f32.mxu0 %v2651_v51  ;;  %v2652_v45 = vsub.f32 %v12438_v59, %v2651_v51  ;;  %v958_v60 = vadd.f32 %v957_v46, %v956_v48  ;;  %v960_v18 = vsel %vm443_vm0, %v366_v58, 0.0  ;;  %v1185_v43 = vmax.f32 %v953_v5, 0.0 }
 0x170   :  { %14277 = vst [vmem:[#allocation183_spill] sm:$0xff] %v12449_v2  ;;  %14278 = vst [vmem:[#allocation184_spill] sm:$0xff] %v12451_v32  ;;  %9333 = vmatmul.mubr.f32.gmra.mrb[96].mxu1 %v2643_v29  ;;  %v2661_v6 = vand.u32 4294901760, %v12449_v2  ;;  %v12458_v14 = vsub.f32 %v1517_v0, %v12451_v32  ;;  %v961_v26 = vadd.f32 %v960_v18, %v959_v4  ;;  %v962_v53 = vsel %vm443_vm0, %v370_v9, 0.0  ;;  %v372_v0 = vld [vmem:[#allocation2 + $0x9c8] sm:$0xff] }
 0x171   :  { %v2653_v54 = vand.u32 4294901760, %v2652_v45  ;;  %v1186_v20 = vmax.f32 %v958_v60, 0.0  ;;  %v964_v46 = vsel %vm443_vm0, %v371_v62, 0.0  ;;  %v1520_v51 = vsel %vm443_vm0, %v1185_v43, 0  ;;  %v376_v29 = vld [vmem:[#allocation2 + $0x9e8] sm:$0xff] }
 0x172   :  { %14279 = vst [vmem:[#allocation185_spill] sm:$0xff] %v12458_v14  ;;  %9936 = vmatmul.mubr.f32.gmra.mrb[98].mxu0 %v2661_v6  ;;  %v2671_v55 = vand.u32 4294901760, %v12458_v14  ;;  %v2662_v58 = vsub.f32 %v12449_v2, %v2661_v6  ;;  %v963_v48 = vadd.f32 %v962_v53, %v961_v26  ;;  %v12465_v4 = vand.u32 4294901760, %v1520_v51  ;;  %v380_v43 = vld [vmem:[#allocation2 + $0xa08] sm:$0xff]  ;;  %v373_v2 = vld [vmem:[#allocation2 + $0x9d0] sm:$0xff] }
 0x173   :  { %9335 = vmatprep.mubr.f32.mxu1 %v2653_v54  ;;  %v1523_v5 = vsel %vm443_vm0, %v1186_v20, 0  ;;  %v965_v45 = vsel %vm443_vm0, %v375_v27, 0.0  ;;  %v967_v9 = vsel %vm443_vm0, %v379_v24, 0.0  ;;  %v969_v54 = vsel %vm443_vm0, %v372_v0, 0.0  ;;  %v377_v27 = vld [vmem:[#allocation2 + $0x9f0] sm:$0xff] }
 0x174   :  { %14280 = vst [vmem:[#allocation186_spill] sm:$0xff] %v12465_v4  ;;  %9938 = vmatprep.mubr.f32.mxu0 %v2671_v55  ;;  %v2663_v62 = vand.u32 4294901760, %v2662_v58  ;;  %v2672_v60 = vsub.f32 %v12458_v14, %v2671_v55  ;;  %v12471_v18 = vand.u32 4294901760, %v1523_v5  ;;  %v1187_v6 = vmax.f32 %v963_v48, 0.0  ;;  %v381_v0 = vld [vmem:[#allocation2 + $0xa10] sm:$0xff] }
 0x175   :  { %v12474_v53 = vsub.f32 %v1520_v51, %v12465_v4  ;;  %v966_v26 = vadd.f32 %v965_v45, %v964_v46  ;;  %v970_v20 = vsel %vm443_vm0, %v376_v29, 0.0  ;;  %v972_v46 = vsel %vm443_vm0, %v380_v43, 0.0  ;;  %v374_v45 = vld [vmem:[#allocation2 + $0x9d8] sm:$0xff] }
 0x176   :  { %14281 = vst [vmem:[#allocation187_spill] sm:$0xff] %v12471_v18  ;;  %9336 = vmatmul.mubr.f32.gmra.mrb[98].mxu1 %v2663_v62  ;;  %v2673_v24 = vand.u32 4294901760, %v2672_v60  ;;  %v12479_v58 = vsub.f32 %v1523_v5, %v12471_v18  ;;  %v1526_v55 = vsel %vm443_vm0, %v1187_v6, 0  ;;  %v971_v14 = vadd.f32 %v970_v20, %v969_v54 }
 0x177   :  { %14282 = vst [vmem:[#allocation188_spill] sm:$0xff] %v12474_v53  ;;  %v2681_v48 = vand.u32 4294901760, %v12474_v53  ;;  %v12483_v59 = vand.u32 4294901760, %v1526_v55  ;;  %v968_v51 = vadd.f32 %v967_v9, %v966_v26  ;;  %v974_v60 = vsel %vm443_vm0, %v373_v2, 0.0  ;;  %v378_v26 = vld [vmem:[#allocation2 + $0x9f8] sm:$0xff] }
 0x178   :  { %14283 = vst [vmem:[#allocation189_spill] sm:$0xff] %v12479_v58  ;;  %9338 = vmatprep.mubr.f32.mxu1 %v2673_v24  ;;  %v2691_v29 = vand.u32 4294901760, %v12479_v58  ;;  %v973_v62 = vadd.f32 %v972_v46, %v971_v14  ;;  %v975_v5 = vsel %vm443_vm0, %v377_v27, 0.0  ;;  %v977_v18 = vsel %vm443_vm0, %v381_v0, 0.0 }
 0x179   :  { %14284 = vst [vmem:[#allocation190_spill] sm:$0xff] %v12483_v59  ;;  %9939 = vmatmul.mubr.f32.gmra.mrb[100].mxu0 %v2681_v48  ;;  %v2682_v6 = vsub.f32 %v12474_v53, %v2681_v48  ;;  %v12491_v54 = vsub.f32 %v1526_v55, %v12483_v59  ;;  %v1188_v20 = vmax.f32 %v968_v51, 0.0  ;;  %v976_v9 = vadd.f32 %v975_v5, %v974_v60  ;;  %v382_v53 = vld [vmem:[#allocation2 + $0xa18] sm:$0xff]  ;;  %v383_v55 = vld [vmem:[#allocation2 + $0xa20] sm:$0xff] }
 0x17a   :  { %9941 = vmatprep.mubr.f32.mxu0 %v2691_v29  ;;  %v2692_v43 = vsub.f32 %v12479_v58, %v2691_v29  ;;  %v1189_v24 = vmax.f32 %v973_v62, 0.0  ;;  %v979_v14 = vsel %vm443_vm0, %v374_v45, 0.0  ;;  %v387_v59 = vld [vmem:[#allocation2 + $0xa40] sm:$0xff]  ;;  %v980_v29 = vsel %vm443_vm0, %v378_v26, 0.0  ;;  %v384_v26 = vld [vmem:[#allocation2 + $0xa28] sm:$0xff] }
 0x17b   :  { %14285 = vst [vmem:[#allocation191_spill] sm:$0xff] %v12491_v54  ;;  %v2683_v2 = vand.u32 4294901760, %v2682_v6  ;;  %v2701_v27 = vand.u32 4294901760, %v12491_v54  ;;  %v1529_v46 = vsel %vm443_vm0, %v1188_v20, 0  ;;  %v978_v48 = vadd.f32 %v977_v18, %v976_v9  ;;  %v391_v20 = vld [vmem:[#allocation2 + $0xa60] sm:$0xff] }
 0x17c   :  { %v2693_v51 = vand.u32 4294901760, %v2692_v43  ;;  %v12498_v60 = vand.u32 4294901760, %v1529_v46  ;;  %v1532_v5 = vsel %vm443_vm0, %v1189_v24, 0  ;;  %v981_v6 = vadd.f32 %v980_v29, %v979_v14 }
 0x17d   :  { %9339 = vmatmul.mubr.f32.gmra.mrb[100].mxu1 %v2683_v2  ;;  %9942 = vmatmul.mubr.f32.gmra.mrb[102].mxu0 %v2701_v27  ;;  %v2702_v0 = vsub.f32 %v12491_v54, %v2701_v27  ;;  %v12503_v45 = vand.u32 4294901760, %v1532_v5  ;;  %v1190_v62 = vmax.f32 %v978_v48, 0.0  ;;  %v982_v9 = vsel %vm443_vm0, %v382_v53, 0.0  ;;  %v388_v2 = vld [vmem:[#allocation2 + $0xa48] sm:$0xff] }
 0x17e   :  { %14286 = vst [vmem:[#allocation192_spill] sm:$0xff] %v12498_v60  ;;  %9341 = vmatprep.mubr.f32.mxu1 %v2693_v51  ;;  %v12506_v18 = vsub.f32 %v1529_v46, %v12498_v60  ;;  %v984_v43 = vsel %vm443_vm0, %v383_v55, 0.0  ;;  %v985_v24 = vsel %vm443_vm0, %v387_v59, 0.0  ;;  %v983_v14 = vadd.f32 %v982_v9, %v981_v6  ;;  %v392_v54 = vld [vmem:[#allocation2 + $0xa68] sm:$0xff]  ;;  %v385_v55 = vld [vmem:[#allocation2 + $0xa30] sm:$0xff] }
 0x17f   :  { %14287 = vst [vmem:[#allocation193_spill] sm:$0xff] %v12503_v45  ;;  %v2703_v58 = vand.u32 4294901760, %v2702_v0  ;;  %v12512_v27 = vsub.f32 %v1532_v5, %v12503_v45  ;;  %v1535_v48 = vsel %vm443_vm0, %v1190_v62, 0  ;;  %v986_v46 = vadd.f32 %v985_v24, %v984_v43  ;;  %v389_v24 = vld [vmem:[#allocation2 + $0xa50] sm:$0xff] }
 0x180   :  { %14288 = vst [vmem:[#allocation194_spill] sm:$0xff] %v12506_v18  ;;  %v2711_v51 = vand.u32 4294901760, %v12506_v18  ;;  %v12516_v29 = vand.u32 4294901760, %v1535_v48  ;;  %v987_v53 = vsel %vm443_vm0, %v391_v20, 0.0  ;;  %v1191_v60 = vmax.f32 %v983_v14, 0.0  ;;  %v393_v20 = vld [vmem:[#allocation2 + $0xa70] sm:$0xff] }
 0x181   :  { %14289 = vst [vmem:[#allocation195_spill] sm:$0xff] %v12512_v27  ;;  %9342 = vmatmul.mubr.f32.gmra.mrb[102].mxu1 %v2703_v58  ;;  %v2721_v59 = vand.u32 4294901760, %v12512_v27  ;;  %v989_v0 = vsel %vm443_vm0, %v384_v26, 0.0  ;;  %v990_v5 = vsel %vm443_vm0, %v388_v2, 0.0  ;;  %v988_v9 = vadd.f32 %v987_v53, %v986_v46  ;;  %v390_v46 = vld [vmem:[#allocation2 + $0xa58] sm:$0xff] }
 0x182   :  { %14290 = vst [vmem:[#allocation196_spill] sm:$0xff] %v12516_v29  ;;  %9944 = vmatprep.mubr.f32.mxu0 %v2711_v51  ;;  %v2712_v62 = vsub.f32 %v12506_v18, %v2711_v51  ;;  %v12524_v6 = vsub.f32 %v1535_v48, %v12516_v29  ;;  %v991_v43 = vadd.f32 %v990_v5, %v989_v0  ;;  %v1538_v45 = vsel %vm443_vm0, %v1191_v60, 0  ;;  %v386_v18 = vld [vmem:[#allocation2 + $0xa38] sm:$0xff] }
 0x183   :  { %9945 = vmatmul.mubr.f32.gmra.mrb[104].mxu0 %v2721_v59  ;;  %v2722_v58 = vsub.f32 %v12512_v27, %v2721_v59  ;;  %v992_v14 = vsel %vm443_vm0, %v392_v54, 0.0  ;;  %v994_v26 = vsel %vm443_vm0, %v385_v55, 0.0  ;;  %v12531_v51 = vand.u32 4294901760, %v1538_v45  ;;  %v394_v27 = vld [vmem:[#allocation2 + $0xa78] sm:$0xff] }
 0x184   :  { %14291 = vst [vmem:[#allocation197_spill] sm:$0xff] %v12524_v6  ;;  %v2713_v2 = vand.u32 4294901760, %v2712_v62  ;;  %v2731_v4 = vand.u32 4294901760, %v12524_v6  ;;  %v1192_v48 = vmax.f32 %v988_v9, 0.0  ;;  %v993_v0 = vadd.f32 %v992_v14, %v991_v43  ;;  %v395_v9 = vld [vmem:[#allocation2 + $0xa80] sm:$0xff] }
 0x185   :  { %14292 = vst [vmem:[#allocation198_spill] sm:$0xff] %v12531_v51  ;;  %v2723_v53 = vand.u32 4294901760, %v2722_v58  ;;  %v995_v5 = vsel %vm443_vm0, %v389_v24, 0.0  ;;  %v997_v59 = vsel %vm443_vm0, %v393_v20, 0.0  ;;  %v12536_v54 = vsub.f32 %v1538_v45, %v12531_v51  ;;  %v399_v51 = vld [vmem:[#allocation2 + $0xaa0] sm:$0xff] }
 0x186   :  { %9344 = vmatprep.mubr.f32.mxu1 %v2713_v2  ;;  %9947 = vmatprep.mubr.f32.mxu0 %v2731_v4  ;;  %v2732_v60 = vsub.f32 %v12524_v6, %v2731_v4  ;;  %v1541_v55 = vsel %vm443_vm0, %v1192_v48, 0  ;;  %v996_v62 = vadd.f32 %v995_v5, %v994_v26  ;;  %v1193_v43 = vmax.f32 %v993_v0, 0.0  ;;  %v403_v4 = vld [vmem:[#allocation2 + $0xac0] sm:$0xff]  ;;  %v396_v6 = vld [vmem:[#allocation2 + $0xa88] sm:$0xff] }
 0x187   :  { %14293 = vst [vmem:[#allocation199_spill] sm:$0xff] %v12536_v54  ;;  %9345 = vmatmul.mubr.f32.gmra.mrb[104].mxu1 %v2723_v53  ;;  %v12540_v29 = vand.u32 4294901760, %v1541_v55  ;;  %v999_v24 = vsel %vm443_vm0, %v386_v18, 0.0  ;;  %v1000_v20 = vsel %vm443_vm0, %v390_v46, 0.0  ;;  %v2741_v58 = vand.u32 4294901760, %v12536_v54 }
 0x188   :  { %v2733_v14 = vand.u32 4294901760, %v2732_v60  ;;  %v998_v45 = vadd.f32 %v997_v59, %v996_v62  ;;  %v1001_v2 = vadd.f32 %v1000_v20, %v999_v24  ;;  %v1544_v48 = vsel %vm443_vm0, %v1193_v43, 0  ;;  %v400_v60 = vld [vmem:[#allocation2 + $0xaa8] sm:$0xff] }
 0x189   :  { %14294 = vst [vmem:[#allocation200_spill] sm:$0xff] %v12540_v29  ;;  %v12546_v26 = vsub.f32 %v1541_v55, %v12540_v29  ;;  %v1002_v53 = vsel %vm443_vm0, %v394_v27, 0.0  ;;  %v1004_v0 = vsel %vm443_vm0, %v395_v9, 0.0  ;;  %9948 = vmatmul.mubr.f32.gmra.mrb[106].mxu0 %v2741_v58  ;;  %v2742_v18 = vsub.f32 %v12536_v54, %v2741_v58  ;;  %v404_v43 = vld [vmem:[#allocation2 + $0xac8] sm:$0xff]  ;;  %v397_v54 = vld [vmem:[#allocation2 + $0xa90] sm:$0xff] }
 0x18a   :  { %9347 = vmatprep.mubr.f32.mxu1 %v2733_v14  ;;  %v12552_v46 = vand.u32 4294901760, %v1544_v48  ;;  %v1194_v5 = vmax.f32 %v998_v45, 0.0  ;;  %v1003_v59 = vadd.f32 %v1002_v53, %v1001_v2  ;;  %v1005_v55 = vsel %vm443_vm0, %v399_v51, 0.0 }
 0x18b   :  { %14295 = vst [vmem:[#allocation201_spill] sm:$0xff] %v12546_v26  ;;  %v2751_v62 = vand.u32 4294901760, %v12546_v26  ;;  %v1007_v24 = vsel %vm443_vm0, %v403_v4, 0.0  ;;  %v1009_v27 = vsel %vm443_vm0, %v396_v6, 0.0  ;;  %v2743_v20 = vand.u32 4294901760, %v2742_v18  ;;  %v401_v4 = vld [vmem:[#allocation2 + $0xab0] sm:$0xff] }
 0x18c   :  { %14296 = vst [vmem:[#allocation202_spill] sm:$0xff] %v12552_v46  ;;  %v12559_v9 = vsub.f32 %v1544_v48, %v12552_v46  ;;  %v1547_v58 = vsel %vm443_vm0, %v1194_v5, 0  ;;  %v1195_v14 = vmax.f32 %v1003_v59, 0.0  ;;  %v1006_v53 = vadd.f32 %v1005_v55, %v1004_v0  ;;  %v405_v0 = vld [vmem:[#allocation2 + $0xad0] sm:$0xff]  ;;  %v398_v55 = vld [vmem:[#allocation2 + $0xa98] sm:$0xff] }
 0x18d   :  { %9950 = vmatprep.mubr.f32.mxu0 %v2751_v62  ;;  %v2752_v45 = vsub.f32 %v12546_v26, %v2751_v62  ;;  %v12563_v2 = vand.u32 4294901760, %v1547_v58  ;;  %v1010_v51 = vsel %vm443_vm0, %v400_v60, 0.0  ;;  %9348 = vmatmul.mubr.f32.gmra.mrb[106].mxu1 %v2743_v20  ;;  %v1012_v46 = vsel %vm443_vm0, %v404_v43, 0.0 }
 0x18e   :  { %14297 = vst [vmem:[#allocation203_spill] sm:$0xff] %v12559_v9  ;;  %v2761_v6 = vand.u32 4294901760, %v12559_v9  ;;  %v1550_v18 = vsel %vm443_vm0, %v1195_v14, 0  ;;  %v1011_v48 = vadd.f32 %v1010_v51, %v1009_v27  ;;  %v1008_v26 = vadd.f32 %v1007_v24, %v1006_v53  ;;  %v402_v51 = vld [vmem:[#allocation2 + $0xab8] sm:$0xff] }
 0x18f   :  { %14298 = vst [vmem:[#allocation204_spill] sm:$0xff] %v12563_v2  ;;  %v2753_v5 = vand.u32 4294901760, %v2752_v45  ;;  %v12570_v59 = vsub.f32 %v1547_v58, %v12563_v2  ;;  %v12572_v62 = vand.u32 4294901760, %v1550_v18  ;;  %v1014_v29 = vsel %vm443_vm0, %v397_v54, 0.0  ;;  %v406_v24 = vld [vmem:[#allocation2 + $0xad8] sm:$0xff] }
 0x190   :  { %9951 = vmatmul.mubr.f32.gmra.mrb[108].mxu0 %v2761_v6  ;;  %v2762_v60 = vsub.f32 %v12559_v9, %v2761_v6  ;;  %v1013_v20 = vadd.f32 %v1012_v46, %v1011_v48  ;;  %v1015_v14 = vsel %vm443_vm0, %v401_v4, 0.0  ;;  %v1196_v58 = vmax.f32 %v1008_v26, 0.0 }
 0x191   :  { %14299 = vst [vmem:[#allocation205_spill] sm:$0xff] %v12570_v59  ;;  %14300 = vst [vmem:[#allocation206_spill] sm:$0xff] %v12572_v62  ;;  %9350 = vmatprep.mubr.f32.mxu1 %v2753_v5  ;;  %v2771_v43 = vand.u32 4294901760, %v12570_v59  ;;  %v12579_v27 = vsub.f32 %v1550_v18, %v12572_v62  ;;  %v1016_v45 = vadd.f32 %v1015_v14, %v1014_v29  ;;  %v1017_v32 = vsel %vm443_vm0, %v405_v0, 0.0  ;;  %v407_v18 = vld [vmem:[#allocation2 + $0xae0] sm:$0xff] }
 0x192   :  { %v2763_v53 = vand.u32 4294901760, %v2762_v60  ;;  %v1197_v2 = vmax.f32 %v1013_v20, 0.0  ;;  %v1019_v46 = vsel %vm443_vm0, %v398_v55, 0.0  ;;  %v1553_v6 = vsel %vm443_vm0, %v1196_v58, 0  ;;  %v411_v5 = vld [vmem:[#allocation2 + $0xb00] sm:$0xff] }
 0x193   :  { %14301 = vst [vmem:[#allocation207_spill] sm:$0xff] %v12579_v27  ;;  %9953 = vmatprep.mubr.f32.mxu0 %v2771_v43  ;;  %v2781_v54 = vand.u32 4294901760, %v12579_v27  ;;  %v2772_v4 = vsub.f32 %v12570_v59, %v2771_v43  ;;  %v1018_v48 = vadd.f32 %v1017_v32, %v1016_v45  ;;  %v12586_v29 = vand.u32 4294901760, %v1553_v6  ;;  %v415_v58 = vld [vmem:[#allocation2 + $0xb20] sm:$0xff]  ;;  %v408_v59 = vld [vmem:[#allocation2 + $0xae8] sm:$0xff] }
 0x194   :  { %9351 = vmatmul.mubr.f32.gmra.mrb[108].mxu1 %v2763_v53  ;;  %v1556_v26 = vsel %vm443_vm0, %v1197_v2, 0  ;;  %v1020_v60 = vsel %vm443_vm0, %v402_v51, 0.0  ;;  %v1022_v0 = vsel %vm443_vm0, %v406_v24, 0.0  ;;  %v1024_v53 = vsel %vm443_vm0, %v407_v18, 0.0  ;;  %v412_v51 = vld [vmem:[#allocation2 + $0xb08] sm:$0xff] }
 0x195   :  { %14302 = vst [vmem:[#allocation208_spill] sm:$0xff] %v12586_v29  ;;  %9954 = vmatmul.mubr.f32.gmra.mrb[110].mxu0 %v2781_v54  ;;  %v2773_v55 = vand.u32 4294901760, %v2772_v4  ;;  %v2782_v20 = vsub.f32 %v12579_v27, %v2781_v54  ;;  %v12592_v14 = vand.u32 4294901760, %v1556_v26  ;;  %v1198_v43 = vmax.f32 %v1018_v48, 0.0  ;;  %v416_v18 = vld [vmem:[#allocation2 + $0xb28] sm:$0xff] }
 0x196   :  { %v12595_v32 = vsub.f32 %v1553_v6, %v12586_v29  ;;  %v1021_v45 = vadd.f32 %v1020_v60, %v1019_v46  ;;  %v1025_v2 = vsel %vm443_vm0, %v411_v5, 0.0  ;;  %v1027_v46 = vsel %vm443_vm0, %v415_v58, 0.0  ;;  %v409_v60 = vld [vmem:[#allocation2 + $0xaf0] sm:$0xff] }
 0x197   :  { %14303 = vst [vmem:[#allocation209_spill] sm:$0xff] %v12592_v14  ;;  %9353 = vmatprep.mubr.f32.mxu1 %v2773_v55  ;;  %v2783_v24 = vand.u32 4294901760, %v2782_v20  ;;  %v12600_v4 = vsub.f32 %v1556_v26, %v12592_v14  ;;  %v1559_v54 = vsel %vm443_vm0, %v1198_v43, 0  ;;  %v1026_v27 = vadd.f32 %v1025_v2, %v1024_v53 }
 0x198   :  { %14304 = vst [vmem:[#allocation210_spill] sm:$0xff] %v12595_v32  ;;  %v2791_v48 = vand.u32 4294901760, %v12595_v32  ;;  %v12604_v9 = vand.u32 4294901760, %v1559_v54  ;;  %v1023_v6 = vadd.f32 %v1022_v0, %v1021_v45  ;;  %v1029_v20 = vsel %vm443_vm0, %v408_v59, 0.0  ;;  %v413_v45 = vld [vmem:[#allocation2 + $0xb10] sm:$0xff] }
 0x199   :  { %14305 = vst [vmem:[#allocation211_spill] sm:$0xff] %v12600_v4  ;;  %9354 = vmatmul.mubr.f32.gmra.mrb[110].mxu1 %v2783_v24  ;;  %v2801_v5 = vand.u32 4294901760, %v12600_v4  ;;  %v1028_v55 = vadd.f32 %v1027_v46, %v1026_v27  ;;  %v1030_v26 = vsel %vm443_vm0, %v412_v51, 0.0  ;;  %v1032_v14 = vsel %vm443_vm0, %v416_v18, 0.0 }
 0x19a   :  { %14306 = vst [vmem:[#allocation212_spill] sm:$0xff] %v12604_v9  ;;  %9956 = vmatprep.mubr.f32.mxu0 %v2791_v48  ;;  %v2792_v43 = vsub.f32 %v12595_v32, %v2791_v48  ;;  %v12612_v53 = vsub.f32 %v1559_v54, %v12604_v9  ;;  %v1199_v2 = vmax.f32 %v1023_v6, 0.0  ;;  %v1031_v0 = vadd.f32 %v1030_v26, %v1029_v20  ;;  %v417_v32 = vld [vmem:[#allocation2 + $0xb30] sm:$0xff]  ;;  %v410_v54 = vld [vmem:[#allocation2 + $0xaf8] sm:$0xff] }
 0x19b   :  { %9957 = vmatmul.mubr.f32.gmra.mrb[112].mxu0 %v2801_v5  ;;  %v2802_v58 = vsub.f32 %v12600_v4, %v2801_v5  ;;  %v1200_v24 = vmax.f32 %v1028_v55, 0.0  ;;  %v1034_v27 = vsel %vm443_vm0, %v409_v60, 0.0  ;;  %v414_v9 = vld [vmem:[#allocation2 + $0xb18] sm:$0xff]  ;;  %v1035_v5 = vsel %vm443_vm0, %v413_v45, 0.0  ;;  %v419_v45 = vld [vmem:[#allocation2 + $0xb40] sm:$0xff] }
 0x19c   :  { %14307 = vst [vmem:[#allocation213_spill] sm:$0xff] %v12612_v53  ;;  %v2793_v59 = vand.u32 4294901760, %v2792_v43  ;;  %v2811_v51 = vand.u32 4294901760, %v12612_v53  ;;  %v1562_v46 = vsel %vm443_vm0, %v1199_v2, 0  ;;  %v1033_v48 = vadd.f32 %v1032_v14, %v1031_v0  ;;  %v418_v2 = vld [vmem:[#allocation2 + $0xb38] sm:$0xff] }
 0x19d   :  { %v2803_v6 = vand.u32 4294901760, %v2802_v58  ;;  %v12619_v20 = vand.u32 4294901760, %v1562_v46  ;;  %v1565_v26 = vsel %vm443_vm0, %v1200_v24, 0  ;;  %v1036_v43 = vadd.f32 %v1035_v5, %v1034_v27 }
 0x19e   :  { %9356 = vmatprep.mubr.f32.mxu1 %v2793_v59  ;;  %9959 = vmatprep.mubr.f32.mxu0 %v2811_v51  ;;  %v2812_v18 = vsub.f32 %v12612_v53, %v2811_v51  ;;  %v12624_v60 = vand.u32 4294901760, %v1565_v26  ;;  %v1201_v55 = vmax.f32 %v1033_v48, 0.0  ;;  %v1037_v0 = vsel %vm443_vm0, %v417_v32, 0.0  ;;  %v423_v59 = vld [vmem:[#allocation2 + $0xb60] sm:$0xff] }
 0x19f   :  { %14308 = vst [vmem:[#allocation214_spill] sm:$0xff] %v12619_v20  ;;  %9357 = vmatmul.mubr.f32.gmra.mrb[112].mxu1 %v2803_v6  ;;  %v12627_v14 = vsub.f32 %v1562_v46, %v12619_v20  ;;  %v1039_v58 = vsel %vm443_vm0, %v410_v54, 0.0  ;;  %v1040_v24 = vsel %vm443_vm0, %v414_v9, 0.0  ;;  %v1038_v27 = vadd.f32 %v1037_v0, %v1036_v43  ;;  %v427_v53 = vld [vmem:[#allocation2 + $0xb80] sm:$0xff]  ;;  %v420_v54 = vld [vmem:[#allocation2 + $0xb48] sm:$0xff] }
 0x1a0   :  { %14309 = vst [vmem:[#allocation215_spill] sm:$0xff] %v12624_v60  ;;  %v2813_v4 = vand.u32 4294901760, %v2812_v18  ;;  %v12633_v51 = vsub.f32 %v1565_v26, %v12624_v60  ;;  %v1568_v48 = vsel %vm443_vm0, %v1201_v55, 0  ;;  %v1041_v46 = vadd.f32 %v1040_v24, %v1039_v58  ;;  %v424_v24 = vld [vmem:[#allocation2 + $0xb68] sm:$0xff] }
 0x1a1   :  { %14310 = vst [vmem:[#allocation216_spill] sm:$0xff] %v12627_v14  ;;  %v2821_v6 = vand.u32 4294901760, %v12627_v14  ;;  %v12637_v5 = vand.u32 4294901760, %v1568_v48  ;;  %v1042_v32 = vsel %vm443_vm0, %v418_v2, 0.0  ;;  %v1202_v20 = vmax.f32 %v1038_v27, 0.0  ;;  %v428_v2 = vld [vmem:[#allocation2 + $0xb88] sm:$0xff] }
 0x1a2   :  { %14311 = vst [vmem:[#allocation217_spill] sm:$0xff] %v12633_v51  ;;  %9359 = vmatprep.mubr.f32.mxu1 %v2813_v4  ;;  %v2831_v9 = vand.u32 4294901760, %v12633_v51  ;;  %v1044_v18 = vsel %vm443_vm0, %v419_v45, 0.0  ;;  %v1045_v26 = vsel %vm443_vm0, %v423_v59, 0.0  ;;  %v1043_v0 = vadd.f32 %v1042_v32, %v1041_v46  ;;  %v425_v46 = vld [vmem:[#allocation2 + $0xb70] sm:$0xff] }
 0x1a3   :  { %14312 = vst [vmem:[#allocation218_spill] sm:$0xff] %v12637_v5  ;;  %9960 = vmatmul.mubr.f32.gmra.mrb[114].mxu0 %v2821_v6  ;;  %v2822_v55 = vsub.f32 %v12627_v14, %v2821_v6  ;;  %v12645_v43 = vsub.f32 %v1568_v48, %v12637_v5  ;;  %v1046_v58 = vadd.f32 %v1045_v26, %v1044_v18  ;;  %v1571_v60 = vsel %vm443_vm0, %v1202_v20, 0  ;;  %v421_v14 = vld [vmem:[#allocation2 + $0xb50] sm:$0xff] }
 0x1a4   :  { %9962 = vmatprep.mubr.f32.mxu0 %v2831_v9  ;;  %v2832_v4 = vsub.f32 %v12633_v51, %v2831_v9  ;;  %v1047_v27 = vsel %vm443_vm0, %v427_v53, 0.0  ;;  %v1049_v45 = vsel %vm443_vm0, %v420_v54, 0.0  ;;  %v12652_v6 = vand.u32 4294901760, %v1571_v60  ;;  %v429_v51 = vld [vmem:[#allocation2 + $0xb90] sm:$0xff] }
 0x1a5   :  { %14313 = vst [vmem:[#allocation219_spill] sm:$0xff] %v12645_v43  ;;  %v2823_v59 = vand.u32 4294901760, %v2822_v55  ;;  %v2841_v29 = vand.u32 4294901760, %v12645_v43  ;;  %v1203_v48 = vmax.f32 %v1043_v0, 0.0  ;;  %v1048_v18 = vadd.f32 %v1047_v27, %v1046_v58  ;;  %v422_v0 = vld [vmem:[#allocation2 + $0xb58] sm:$0xff] }
 0x1a6   :  { %14314 = vst [vmem:[#allocation220_spill] sm:$0xff] %v12652_v6  ;;  %v2833_v32 = vand.u32 4294901760, %v2832_v4  ;;  %v1050_v26 = vsel %vm443_vm0, %v424_v24, 0.0  ;;  %v1052_v9 = vsel %vm443_vm0, %v428_v2, 0.0  ;;  %v12657_v53 = vsub.f32 %v1571_v60, %v12652_v6  ;;  %v426_v6 = vld [vmem:[#allocation2 + $0xb78] sm:$0xff] }
 0x1a7   :  { %9360 = vmatmul.mubr.f32.gmra.mrb[114].mxu1 %v2823_v59  ;;  %9963 = vmatmul.mubr.f32.gmra.mrb[116].mxu0 %v2841_v29  ;;  %v2842_v20 = vsub.f32 %v12645_v43, %v2841_v29  ;;  %v1574_v54 = vsel %vm443_vm0, %v1203_v48, 0  ;;  %v1051_v55 = vadd.f32 %v1050_v26, %v1049_v45  ;;  %v1204_v58 = vmax.f32 %v1048_v18, 0.0  ;;  %v430_v29 = vld [vmem:[#allocation2 + $0xb98] sm:$0xff]  ;;  %v431_v43 = vld [vmem:[#allocation2 + $0xba0] sm:$0xff] }
 0x1a8   :  { %14315 = vst [vmem:[#allocation221_spill] sm:$0xff] %v12657_v53  ;;  %9362 = vmatprep.mubr.f32.mxu1 %v2833_v32  ;;  %v12661_v5 = vand.u32 4294901760, %v1574_v54  ;;  %v1054_v24 = vsel %vm443_vm0, %v421_v14, 0.0  ;;  %v1055_v2 = vsel %vm443_vm0, %v425_v46, 0.0  ;;  %v2851_v4 = vand.u32 4294901760, %v12657_v53 }
 0x1a9   :  { %v2843_v27 = vand.u32 4294901760, %v2842_v20  ;;  %v1053_v60 = vadd.f32 %v1052_v9, %v1051_v55  ;;  %v1056_v59 = vadd.f32 %v1055_v2, %v1054_v24  ;;  %v1577_v48 = vsel %vm443_vm0, %v1204_v58, 0  ;;  %v435_v20 = vld [vmem:[#allocation2 + $0xbc0] sm:$0xff] }
 0x1aa   :  { %14316 = vst [vmem:[#allocation222_spill] sm:$0xff] %v12661_v5  ;;  %v12667_v45 = vsub.f32 %v1574_v54, %v12661_v5  ;;  %v1057_v32 = vsel %vm443_vm0, %v429_v51, 0.0  ;;  %v1059_v18 = vsel %vm443_vm0, %v422_v0, 0.0  ;;  %9965 = vmatprep.mubr.f32.mxu0 %v2851_v4  ;;  %v2852_v14 = vsub.f32 %v12657_v53, %v2851_v4  ;;  %v439_v58 = vld [vmem:[#allocation2 + $0xbe0] sm:$0xff]  ;;  %v432_v53 = vld [vmem:[#allocation2 + $0xba8] sm:$0xff] }
 0x1ab   :  { %9363 = vmatmul.mubr.f32.gmra.mrb[116].mxu1 %v2843_v27  ;;  %v12673_v46 = vand.u32 4294901760, %v1577_v48  ;;  %v1205_v26 = vmax.f32 %v1053_v60, 0.0  ;;  %v1058_v9 = vadd.f32 %v1057_v32, %v1056_v59  ;;  %v1060_v54 = vsel %vm443_vm0, %v426_v6, 0.0 }
 0x1ac   :  { %14317 = vst [vmem:[#allocation223_spill] sm:$0xff] %v12667_v45  ;;  %v2861_v55 = vand.u32 4294901760, %v12667_v45  ;;  %v1062_v24 = vsel %vm443_vm0, %v430_v29, 0.0  ;;  %v1064_v51 = vsel %vm443_vm0, %v431_v43, 0.0  ;;  %v2853_v2 = vand.u32 4294901760, %v2852_v14  ;;  %v436_v29 = vld [vmem:[#allocation2 + $0xbc8] sm:$0xff] }
 0x1ad   :  { %14318 = vst [vmem:[#allocation224_spill] sm:$0xff] %v12673_v46  ;;  %v12680_v0 = vsub.f32 %v1577_v48, %v12673_v46  ;;  %v1580_v4 = vsel %vm443_vm0, %v1205_v26, 0  ;;  %v1206_v27 = vmax.f32 %v1058_v9, 0.0  ;;  %v1061_v32 = vadd.f32 %v1060_v54, %v1059_v18  ;;  %v440_v18 = vld [vmem:[#allocation2 + $0xbe8] sm:$0xff]  ;;  %v433_v54 = vld [vmem:[#allocation2 + $0xbb0] sm:$0xff] }
 0x1ae   :  { %9966 = vmatmul.mubr.f32.gmra.mrb[118].mxu0 %v2861_v55  ;;  %v2862_v60 = vsub.f32 %v12667_v45, %v2861_v55  ;;  %v12684_v59 = vand.u32 4294901760, %v1580_v4  ;;  %v1065_v6 = vsel %vm443_vm0, %v435_v20, 0.0  ;;  %9365 = vmatprep.mubr.f32.mxu1 %v2853_v2  ;;  %v1067_v46 = vsel %vm443_vm0, %v439_v58, 0.0 }
 0x1af   :  { %14319 = vst [vmem:[#allocation225_spill] sm:$0xff] %v12680_v0  ;;  %v2871_v43 = vand.u32 4294901760, %v12680_v0  ;;  %v1583_v14 = vsel %vm443_vm0, %v1206_v27, 0  ;;  %v1066_v48 = vadd.f32 %v1065_v6, %v1064_v51  ;;  %v1063_v45 = vadd.f32 %v1062_v24, %v1061_v32  ;;  %v437_v6 = vld [vmem:[#allocation2 + $0xbd0] sm:$0xff] }
 0x1b0   :  { %14320 = vst [vmem:[#allocation226_spill] sm:$0xff] %v12684_v59  ;;  %v2863_v26 = vand.u32 4294901760, %v2862_v60  ;;  %v12691_v9 = vsub.f32 %v1580_v4, %v12684_v59  ;;  %v12693_v55 = vand.u32 4294901760, %v1583_v14  ;;  %v1069_v5 = vsel %vm443_vm0, %v432_v53, 0.0  ;;  %v441_v24 = vld [vmem:[#allocation2 + $0xbf0] sm:$0xff] }
 0x1b1   :  { %9968 = vmatprep.mubr.f32.mxu0 %v2871_v43  ;;  %v2872_v20 = vsub.f32 %v12680_v0, %v2871_v43  ;;  %v1068_v2 = vadd.f32 %v1067_v46, %v1066_v48  ;;  %v1070_v27 = vsel %vm443_vm0, %v436_v29, 0.0  ;;  %v1207_v4 = vmax.f32 %v1063_v45, 0.0  ;;  %v14357_v0 = vld [vmem:[#allocation96_spill] sm:$0xff] }
 0x1b2   :  { %14321 = vst [vmem:[#allocation227_spill] sm:$0xff] %v12691_v9  ;;  %14322 = vst [vmem:[#allocation228_spill] sm:$0xff] %v12693_v55  ;;  %9366 = vmatmul.mubr.f32.gmra.mrb[118].mxu1 %v2863_v26  ;;  %v2881_v58 = vand.u32 4294901760, %v12691_v9  ;;  %v12700_v51 = vsub.f32 %v1583_v14, %v12693_v55  ;;  %v1071_v60 = vadd.f32 %v1070_v27, %v1069_v5  ;;  %v1072_v62 = vsel %vm443_vm0, %v440_v18, 0.0  ;;  %v434_v14 = vld [vmem:[#allocation2 + $0xbb8] sm:$0xff] }
 0x1b3   :  { %v2873_v32 = vand.u32 4294901760, %v2872_v20  ;;  %v1208_v59 = vmax.f32 %v1068_v2, 0.0  ;;  %v1074_v46 = vsel %vm443_vm0, %v433_v54, 0.0  ;;  %v1586_v43 = vsel %vm443_vm0, %v1207_v4, 0  ;;  %v438_v26 = vld [vmem:[#allocation2 + $0xbd8] sm:$0xff] }
 0x1b4   :  { %14323 = vst [vmem:[#allocation229_spill] sm:$0xff] %v12700_v51  ;;  %9969 = vmatmul.mubr.f32.gmra.mrb[120].mxu0 %v2881_v58  ;;  %v2891_v53 = vand.u32 4294901760, %v12700_v51  ;;  %v2882_v29 = vsub.f32 %v12691_v9, %v2881_v58  ;;  %v1073_v48 = vadd.f32 %v1072_v62, %v1071_v60  ;;  %v12707_v5 = vand.u32 4294901760, %v1586_v43  ;;  %v442_v4 = vld [vmem:[#allocation2 + $0xbf8] sm:$0xff] }
 0x1b5   :  { %9368 = vmatprep.mubr.f32.mxu1 %v2873_v32  ;;  %v1589_v45 = vsel %vm443_vm0, %v1208_v59, 0  ;;  %v1075_v20 = vsel %vm443_vm0, %v437_v6, 0.0  ;;  %v1077_v18 = vsel %vm443_vm0, %v441_v24, 0.0  ;;  %v1079_v32 = vsel %vm443_vm0, %v434_v14, 0.0 }
 0x1b6   :  { %14324 = vst [vmem:[#allocation230_spill] sm:$0xff] %v12707_v5  ;;  %9971 = vmatprep.mubr.f32.mxu0 %v2891_v53  ;;  %v2883_v54 = vand.u32 4294901760, %v2882_v29  ;;  %v2892_v2 = vsub.f32 %v12700_v51, %v2891_v53  ;;  %v12713_v27 = vand.u32 4294901760, %v1589_v45  ;;  %v1209_v58 = vmax.f32 %v1073_v48, 0.0 }
 0x1b7   :  { %v12716_v62 = vsub.f32 %v1586_v43, %v12707_v5  ;;  %v1076_v60 = vadd.f32 %v1075_v20, %v1074_v46  ;;  %v1080_v59 = vsel %vm443_vm0, %v438_v26, 0.0  ;;  %v1082_v43 = vsel %vm443_vm0, %v442_v4, 0.0 }
 0x1b8   :  { %14325 = vst [vmem:[#allocation231_spill] sm:$0xff] %v12713_v27  ;;  %9369 = vmatmul.mubr.f32.gmra.mrb[120].mxu1 %v2883_v54  ;;  %v2893_v6 = vand.u32 4294901760, %v2892_v2  ;;  %v12721_v24 = vsub.f32 %v1589_v45, %v12713_v27  ;;  %v1592_v29 = vsel %vm443_vm0, %v1209_v58, 0  ;;  %v1081_v53 = vadd.f32 %v1080_v59, %v1079_v32 }
 0x1b9   :  { %14326 = vst [vmem:[#allocation232_spill] sm:$0xff] %v12716_v62  ;;  %v2901_v51 = vand.u32 4294901760, %v12716_v62  ;;  %v12725_v48 = vand.u32 4294901760, %v1592_v29  ;;  %v1078_v9 = vadd.f32 %v1077_v18, %v1076_v60  ;;  %v10396_v26 = vpack.c.bf16 %v11325_v30, %v11321_v25 }
 0x1ba   :  { %14327 = vst [vmem:[#allocation233_spill] sm:$0xff] %v12721_v24  ;;  %9371 = vmatprep.mubr.f32.mxu1 %v2893_v6  ;;  %v2911_v46 = vand.u32 4294901760, %v12721_v24  ;;  %v1083_v14 = vadd.f32 %v1082_v43, %v1081_v53  ;;  %vm8002_vm3 = vcmask 1043459   ;;  %vm8004_vm4 = vcmask 1044484  }
 0x1bb   :  { %14328 = vst [vmem:[#allocation234_spill] sm:$0xff] %v12725_v48  ;;  %9972 = vmatmul.mubr.f32.gmra.mrb[122].mxu0 %v2901_v51  ;;  %v2902_v45 = vsub.f32 %v12716_v62, %v2901_v51  ;;  %v12733_v20 = vsub.f32 %v1592_v29, %v12725_v48  ;;  %v1210_v54 = vmax.f32 %v1078_v9, 0.0  ;;  %10397 = vmatprep.subr.bf16.mxu1 %v10396_v26  ;;  %v14356_v62 = vld [vmem:[#allocation94_spill] sm:$0xff]  ;;  %vm8006_vm5 = vcmask 1045509  }
 0x1bc   :  { %9974 = vmatprep.mubr.f32.mxu0 %v2911_v46  ;;  %v2912_v2 = vsub.f32 %v12721_v24, %v2911_v46  ;;  %v1211_v18 = vmax.f32 %v1083_v14, 0.0  ;;  %v14355_v24 = vld [vmem:[#allocation92_spill] sm:$0xff]  ;;  %vm8008_vm6 = vcmask 1046534   ;;  %vm8010_vm7 = vcmask 1047559  }
 0x1bd   :  { %14329 = vst [vmem:[#allocation235_spill] sm:$0xff] %v12733_v20  ;;  %v2903_v58 = vand.u32 4294901760, %v2902_v45  ;;  %v2921_v4 = vand.u32 4294901760, %v12733_v20  ;;  %v1595_v60 = vsel %vm443_vm0, %v1210_v54, 0  ;;  %vm8288_vm9 = vcmask 1043456  }
 0x1be   :  { %v2913_v32 = vand.u32 4294901760, %v2912_v2  ;;  %v12738_v59 = vand.u32 4294901760, %v1595_v60  ;;  %v1598_v25 = vsel %vm443_vm0, %v1211_v18, 0  ;;  %v10400_v2 = vpack.c.bf16 %v12037_v34, %v12033_v23  ;;  %v14334_v23 = vld [vmem:[#allocation50_spill] sm:$0xff]  ;;  %v14335_v34 = vld [vmem:[#allocation52_spill] sm:$0xff] }
 0x1bf   :  { %9372 = vmatmul.mubr.f32.gmra.mrb[122].mxu1 %v2903_v58  ;;  %9975 = vmatmul.mubr.f32.gmra.mrb[124].mxu0 %v2921_v4  ;;  %v2922_v30 = vsub.f32 %v12733_v20, %v2921_v4  ;;  %v12742_v9 = vand.u32 4294901760, %v1598_v25  ;;  %v14337_v18 = vld [vmem:[#allocation56_spill] sm:$0xff]  ;;  %v14338_v58 = vld [vmem:[#allocation57_spill] sm:$0xff]  ;;  %v14354_v20 = vld [vmem:[#allocation90_spill] sm:$0xff] }
 0x1c0   :  { %9374 = vmatprep.mubr.f32.mxu1 %v2913_v32  ;;  %v12745_v51 = vsub.f32 %v1595_v60, %v12738_v59  ;;  %v14339_v4 = vld [vmem:[#allocation60_spill] sm:$0xff]  ;;  %v14340_v60 = vld [vmem:[#allocation62_spill] sm:$0xff] }
 0x1c1   :  { %v2923_v6 = vand.u32 4294901760, %v2922_v30  ;;  %v12748_v29 = vsub.f32 %v1598_v25, %v12742_v9  ;;  %v14341_v32 = vld [vmem:[#allocation64_spill] sm:$0xff]  ;;  %v14342_v25 = vld [vmem:[#allocation66_spill] sm:$0xff] }
 0x1c2   :  { %14330 = vst [vmem:[#allocation236_spill] sm:$0xff] %v12745_v51  ;;  %v2931_v53 = vand.u32 4294901760, %v12745_v51  ;;  %v14343_v30 = vld [vmem:[#allocation68_spill] sm:$0xff] }
 0x1c3   :  { %14331 = vst [vmem:[#allocation237_spill] sm:$0xff] %v12748_v29  ;;  %9375 = vmatmul.mubr.f32.gmra.mrb[124].mxu1 %v2923_v6  ;;  %v2941_v43 = vand.u32 4294901760, %v12748_v29  ;;  %v14344_v6 = vld [vmem:[#allocation70_spill] sm:$0xff] }
 0x1c4   :  { %9977 = vmatprep.mubr.f32.mxu0 %v2931_v53  ;;  %v2932_v46 = vsub.f32 %v12745_v51, %v2931_v53  ;;  %v14345_v53 = vld [vmem:[#allocation72_spill] sm:$0xff] }
 0x1c5   :  { %9978 = vmatmul.mubr.f32.gmra.mrb[126].mxu0 %v2941_v43  ;;  %v2942_v14 = vsub.f32 %v12748_v29, %v2941_v43  ;;  %v14346_v43 = vld [vmem:[#allocation74_spill] sm:$0xff]  ;;  %v14353_v51 = vld [vmem:[#allocation88_spill] sm:$0xff] }
 0x1c6   :  { %v2933_v45 = vand.u32 4294901760, %v2932_v46  ;;  %9988 = vmatprep.mubr.f32.mxu0 %v11344_v52  ;;  %v14347_v46 = vld [vmem:[#allocation76_spill] sm:$0xff]  ;;  %v14352_v29 = vld [vmem:[#allocation86_spill] sm:$0xff] }
 0x1c7   :  { %v2943_v54 = vand.u32 4294901760, %v2942_v14  ;;  %v14348_v14 = vld [vmem:[#allocation78_spill] sm:$0xff] }
 0x1c8   :  { %9377 = vmatprep.mubr.f32.mxu1 %v2933_v45  ;;  %v14349_v45 = vld [vmem:[#allocation79_spill] sm:$0xff] }
 0x1c9   :  { %9378 = vmatmul.mubr.f32.gmra.mrb[126].mxu1 %v2943_v54  ;;  %9989 = vmatmul.mubr.f32.vlgmr.msra.gmra.mrb[0].mxu0 %v11352_v63  ;;  %v14350_v54 = vld [vmem:[#allocation82_spill] sm:$0xff] }
 0x1ca   :  { %9388 = vmatprep.mubr.f32.mxu1 %v11344_v52  ;;  %9991 = vmatprep.mubr.f32.mxu0 %v11361_v16 }
 0x1cb   :  { %10423 = vmatpush3.bf16.msra.mxu0 %v11309_v15  ;;  %v14332_v15 = vld [vmem:[#allocation46_spill] sm:$0xff] }
 0x1cc   :  { %10425 = vmatprep.subr.bf16.mxu0 %v11317_v22 }
 0x1cd   :  { %9389 = vmatmul.mubr.f32.vlgmr.msra.gmra.mrb[0].mxu1 %v11352_v63  ;;  %9992 = vmatmul.mubr.f32.gmra.mrb[2].mxu0 %v11372_v31 }
 0x1ce   :  { %10399 = vmatpush3.bf16.msra.mxu1 %v10396_v26  ;;  %9391 = vmatprep.mubr.f32.mxu1 %v11361_v16  ;;  %v14336_v26 = vld [vmem:[#allocation54_spill] sm:$0xff] }
 0x1cf   :  { %9994 = vmatprep.mubr.f32.mxu0 %v11383_v47  ;;  %10401 = vmatprep.subr.bf16.mxu1 %v10400_v2 }
 0x1d0   :  { %10427 = vmatpush3.bf16.msra.mxu0 %v11317_v22  ;;  %v14333_v22 = vld [vmem:[#allocation48_spill] sm:$0xff] }
 0x1d1   :  { %9392 = vmatmul.mubr.f32.gmra.mrb[2].mxu1 %v11372_v31  ;;  %9995 = vmatmul.mubr.f32.gmra.mrb[4].mxu0 %v11396_v10 }
 0x1d2   :  { %9394 = vmatprep.mubr.f32.mxu1 %v11383_v47  ;;  %9997 = vmatprep.mubr.f32.mxu0 %v11399_v19 }
 0x1d3   :  { %10403 = vmatpush3.bf16.msra.mxu1 %v10400_v2  ;;  %v14351_v2 = vld [vmem:[#allocation84_spill] sm:$0xff] }
 0x1d5   :  { %9395 = vmatmul.mubr.f32.gmra.mrb[4].mxu1 %v11396_v10  ;;  %9998 = vmatmul.mubr.f32.gmra.mrb[6].mxu0 %v11416_v44 }
 0x1d6   :  { %9397 = vmatprep.mubr.f32.mxu1 %v11399_v19  ;;  %10000 = vmatprep.mubr.f32.mxu0 %v11430_v13 }
 0x1d9   :  { %9398 = vmatmul.mubr.f32.gmra.mrb[6].mxu1 %v11416_v44  ;;  %10001 = vmatmul.mubr.f32.gmra.mrb[8].mxu0 %v11440_v35 }
 0x1da   :  { %9400 = vmatprep.mubr.f32.mxu1 %v11430_v13  ;;  %10003 = vmatprep.mubr.f32.mxu0 %v11450_v56 }
 0x1dd   :  { %9401 = vmatmul.mubr.f32.gmra.mrb[8].mxu1 %v11440_v35  ;;  %10004 = vmatmul.mubr.f32.gmra.mrb[10].mxu0 %v11459_v11 }
 0x1de   :  { %9403 = vmatprep.mubr.f32.mxu1 %v11450_v56  ;;  %10006 = vmatprep.mubr.f32.mxu0 %v11469_v33 }
 0x1e1   :  { %9404 = vmatmul.mubr.f32.gmra.mrb[10].mxu1 %v11459_v11  ;;  %10007 = vmatmul.mubr.f32.gmra.mrb[12].mxu0 %v11484_v3 }
 0x1e2   :  { %9406 = vmatprep.mubr.f32.mxu1 %v11469_v33  ;;  %10009 = vmatprep.mubr.f32.mxu0 %v11496_v50 }
 0x1e5   :  { %9407 = vmatmul.mubr.f32.gmra.mrb[12].mxu1 %v11484_v3  ;;  %10010 = vmatmul.mubr.f32.gmra.mrb[14].mxu0 %v11508_v37 }
 0x1e6   :  { %9409 = vmatprep.mubr.f32.mxu1 %v11496_v50  ;;  %10012 = vmatprep.mubr.f32.mxu0 %v11511_v39 }
 0x1e9   :  { %9410 = vmatmul.mubr.f32.gmra.mrb[14].mxu1 %v11508_v37  ;;  %10013 = vmatmul.mubr.f32.gmra.mrb[16].mxu0 %v11525_v8 }
 0x1ea   :  { %9412 = vmatprep.mubr.f32.mxu1 %v11511_v39  ;;  %10015 = vmatprep.mubr.f32.mxu0 %v11535_v42 }
 0x1ed   :  { %9413 = vmatmul.mubr.f32.gmra.mrb[16].mxu1 %v11525_v8  ;;  %10016 = vmatmul.mubr.f32.gmra.mrb[18].mxu0 %v11549_v38 }
 0x1ee   :  { %9415 = vmatprep.mubr.f32.mxu1 %v11535_v42  ;;  %10018 = vmatprep.mubr.f32.mxu0 %v11559_v40 }
 0x1f1   :  { %9416 = vmatmul.mubr.f32.gmra.mrb[18].mxu1 %v11549_v38  ;;  %10019 = vmatmul.mubr.f32.gmra.mrb[20].mxu0 %v11574_v36 }
 0x1f2   :  { %9418 = vmatprep.mubr.f32.mxu1 %v11559_v40  ;;  %10021 = vmatprep.mubr.f32.mxu0 %v11583_v49 }
 0x1f5   :  { %9419 = vmatmul.mubr.f32.gmra.mrb[20].mxu1 %v11574_v36  ;;  %10022 = vmatmul.mubr.f32.gmra.mrb[22].mxu0 %v11592_v1 }
 0x1f6   :  { %9421 = vmatprep.mubr.f32.mxu1 %v11583_v49  ;;  %10024 = vmatprep.mubr.f32.mxu0 %v11603_v17 }
 0x1f9   :  { %9422 = vmatmul.mubr.f32.gmra.mrb[22].mxu1 %v11592_v1  ;;  %10025 = vmatmul.mubr.f32.gmra.mrb[24].mxu0 %v11614_v12 }
 0x1fa   :  { %9424 = vmatprep.mubr.f32.mxu1 %v11603_v17  ;;  %10027 = vmatprep.mubr.f32.mxu0 %v11627_v61 }
 0x1fd   :  { %9425 = vmatmul.mubr.f32.gmra.mrb[24].mxu1 %v11614_v12  ;;  %10028 = vmatmul.mubr.f32.gmra.mrb[26].mxu0 %v11630_v28 }
 0x1fe   :  { %9427 = vmatprep.mubr.f32.mxu1 %v11627_v61  ;;  %10030 = vmatprep.mubr.f32.mxu0 %v11647_v21 }
 0x201   :  { %9428 = vmatmul.mubr.f32.gmra.mrb[26].mxu1 %v11630_v28  ;;  %10031 = vmatmul.mubr.f32.gmra.mrb[28].mxu0 %v11661_v41 }
 0x202   :  { %9430 = vmatprep.mubr.f32.mxu1 %v11647_v21  ;;  %10033 = vmatprep.mubr.f32.mxu0 %v11671_v57 }
 0x205   :  { %9431 = vmatmul.mubr.f32.gmra.mrb[28].mxu1 %v11661_v41  ;;  %10034 = vmatmul.mubr.f32.gmra.mrb[30].mxu0 %v14332_v15 }
 0x206   :  { %9433 = vmatprep.mubr.f32.mxu1 %v11671_v57  ;;  %10036 = vmatprep.mubr.f32.mxu0 %v14333_v22 }
 0x209   :  { %9434 = vmatmul.mubr.f32.gmra.mrb[30].mxu1 %v14332_v15  ;;  %10037 = vmatmul.mubr.f32.gmra.mrb[32].mxu0 %v14334_v23 }
 0x20a   :  { %9436 = vmatprep.mubr.f32.mxu1 %v14333_v22  ;;  %10039 = vmatprep.mubr.f32.mxu0 %v14335_v34 }
 0x20d   :  { %9437 = vmatmul.mubr.f32.gmra.mrb[32].mxu1 %v14334_v23  ;;  %10040 = vmatmul.mubr.f32.gmra.mrb[34].mxu0 %v14336_v26 }
 0x20e   :  { %9439 = vmatprep.mubr.f32.mxu1 %v14335_v34  ;;  %10042 = vmatprep.mubr.f32.mxu0 %v14337_v18 }
 0x211   :  { %9440 = vmatmul.mubr.f32.gmra.mrb[34].mxu1 %v14336_v26  ;;  %10043 = vmatmul.mubr.f32.gmra.mrb[36].mxu0 %v14338_v58 }
 0x212   :  { %9442 = vmatprep.mubr.f32.mxu1 %v14337_v18  ;;  %10045 = vmatprep.mubr.f32.mxu0 %v14339_v4 }
 0x215   :  { %9443 = vmatmul.mubr.f32.gmra.mrb[36].mxu1 %v14338_v58  ;;  %10046 = vmatmul.mubr.f32.gmra.mrb[38].mxu0 %v14340_v60 }
 0x216   :  { %9445 = vmatprep.mubr.f32.mxu1 %v14339_v4  ;;  %10048 = vmatprep.mubr.f32.mxu0 %v14341_v32 }
 0x219   :  { %9446 = vmatmul.mubr.f32.gmra.mrb[38].mxu1 %v14340_v60  ;;  %10049 = vmatmul.mubr.f32.gmra.mrb[40].mxu0 %v14342_v25 }
 0x21a   :  { %9448 = vmatprep.mubr.f32.mxu1 %v14341_v32  ;;  %10051 = vmatprep.mubr.f32.mxu0 %v14343_v30 }
 0x21d   :  { %9449 = vmatmul.mubr.f32.gmra.mrb[40].mxu1 %v14342_v25  ;;  %10052 = vmatmul.mubr.f32.gmra.mrb[42].mxu0 %v14344_v6 }
 0x21e   :  { %9451 = vmatprep.mubr.f32.mxu1 %v14343_v30  ;;  %10054 = vmatprep.mubr.f32.mxu0 %v14345_v53 }
 0x221   :  { %9452 = vmatmul.mubr.f32.gmra.mrb[42].mxu1 %v14344_v6  ;;  %10055 = vmatmul.mubr.f32.gmra.mrb[44].mxu0 %v14346_v43 }
 0x222   :  { %9454 = vmatprep.mubr.f32.mxu1 %v14345_v53  ;;  %10057 = vmatprep.mubr.f32.mxu0 %v14347_v46 }
 0x225   :  { %9455 = vmatmul.mubr.f32.gmra.mrb[44].mxu1 %v14346_v43  ;;  %10058 = vmatmul.mubr.f32.gmra.mrb[46].mxu0 %v14348_v14 }
 0x226   :  { %9457 = vmatprep.mubr.f32.mxu1 %v14347_v46  ;;  %10060 = vmatprep.mubr.f32.mxu0 %v14349_v45 }
 0x229   :  { %9458 = vmatmul.mubr.f32.gmra.mrb[46].mxu1 %v14348_v14  ;;  %10061 = vmatmul.mubr.f32.gmra.mrb[48].mxu0 %v14350_v54 }
 0x22a   :  { %9460 = vmatprep.mubr.f32.mxu1 %v14349_v45  ;;  %10063 = vmatprep.mubr.f32.mxu0 %v14351_v2 }
 0x22d   :  { %9461 = vmatmul.mubr.f32.gmra.mrb[48].mxu1 %v14350_v54  ;;  %10064 = vmatmul.mubr.f32.gmra.mrb[50].mxu0 %v14352_v29 }
 0x22e   :  { %9463 = vmatprep.mubr.f32.mxu1 %v14351_v2  ;;  %10066 = vmatprep.mubr.f32.mxu0 %v14353_v51  ;;  %v14358_v2 = vld [vmem:[#allocation98_spill] sm:$0xff] }
 0x231   :  { %9464 = vmatmul.mubr.f32.gmra.mrb[50].mxu1 %v14352_v29  ;;  %10067 = vmatmul.mubr.f32.gmra.mrb[52].mxu0 %v14354_v20  ;;  %v14359_v29 = vld [vmem:[#allocation99_spill] sm:$0xff] }
 0x232   :  { %9466 = vmatprep.mubr.f32.mxu1 %v14353_v51  ;;  %10069 = vmatprep.mubr.f32.mxu0 %v14355_v24  ;;  %v14360_v51 = vld [vmem:[#allocation102_spill] sm:$0xff] }
 0x235   :  { %9467 = vmatmul.mubr.f32.gmra.mrb[52].mxu1 %v14354_v20  ;;  %10070 = vmatmul.mubr.f32.gmra.mrb[54].mxu0 %v14356_v62  ;;  %v14361_v20 = vld [vmem:[#allocation104_spill] sm:$0xff] }
 0x236   :  { %9469 = vmatprep.mubr.f32.mxu1 %v14355_v24  ;;  %10072 = vmatprep.mubr.f32.mxu0 %v14357_v0  ;;  %v14362_v24 = vld [vmem:[#allocation106_spill] sm:$0xff] }
 0x239   :  { %9470 = vmatmul.mubr.f32.gmra.mrb[54].mxu1 %v14356_v62  ;;  %10073 = vmatmul.mubr.f32.gmra.mrb[56].mxu0 %v14358_v2  ;;  %v14363_v62 = vld [vmem:[#allocation108_spill] sm:$0xff] }
 0x23a   :  { %9472 = vmatprep.mubr.f32.mxu1 %v14357_v0  ;;  %10075 = vmatprep.mubr.f32.mxu0 %v14359_v29  ;;  %v14364_v0 = vld [vmem:[#allocation110_spill] sm:$0xff] }
 0x23d   :  { %9473 = vmatmul.mubr.f32.gmra.mrb[56].mxu1 %v14358_v2  ;;  %10076 = vmatmul.mubr.f32.gmra.mrb[58].mxu0 %v14360_v51  ;;  %v14365_v2 = vld [vmem:[#allocation112_spill] sm:$0xff] }
 0x23e   :  { %9475 = vmatprep.mubr.f32.mxu1 %v14359_v29  ;;  %10078 = vmatprep.mubr.f32.mxu0 %v14361_v20 }
 0x241   :  { %9476 = vmatmul.mubr.f32.gmra.mrb[58].mxu1 %v14360_v51  ;;  %10079 = vmatmul.mubr.f32.gmra.mrb[60].mxu0 %v14362_v24  ;;  %v14366_v51 = vld [vmem:[#allocation116_spill] sm:$0xff] }
 0x242   :  { %9478 = vmatprep.mubr.f32.mxu1 %v14361_v20  ;;  %10081 = vmatprep.mubr.f32.mxu0 %v14363_v62  ;;  %v14367_v20 = vld [vmem:[#allocation118_spill] sm:$0xff] }
 0x245   :  { %9479 = vmatmul.mubr.f32.gmra.mrb[60].mxu1 %v14362_v24  ;;  %10082 = vmatmul.mubr.f32.gmra.mrb[62].mxu0 %v14364_v0  ;;  %v14368_v24 = vld [vmem:[#allocation120_spill] sm:$0xff] }
 0x246   :  { %9481 = vmatprep.mubr.f32.mxu1 %v14363_v62  ;;  %10084 = vmatprep.mubr.f32.mxu0 %v14365_v2  ;;  %v14369_v62 = vld [vmem:[#allocation122_spill] sm:$0xff] }
 0x249   :  { %9482 = vmatmul.mubr.f32.gmra.mrb[62].mxu1 %v14364_v0  ;;  %10085 = vmatmul.mubr.f32.gmra.mrb[64].mxu0 %v12062_v7  ;;  %v14370_v0 = vld [vmem:[#allocation124_spill] sm:$0xff] }
 0x24a   :  { %9484 = vmatprep.mubr.f32.mxu1 %v14365_v2  ;;  %10087 = vmatprep.mubr.f32.mxu0 %v14366_v51  ;;  %v14371_v2 = vld [vmem:[#allocation126_spill] sm:$0xff] }
 0x24d   :  { %9485 = vmatmul.mubr.f32.gmra.mrb[64].mxu1 %v12062_v7  ;;  %10088 = vmatmul.mubr.f32.gmra.mrb[66].mxu0 %v14367_v20  ;;  %v14372_v7 = vld [vmem:[#allocation128_spill] sm:$0xff] }
 0x24e   :  { %9487 = vmatprep.mubr.f32.mxu1 %v14366_v51  ;;  %10090 = vmatprep.mubr.f32.mxu0 %v14368_v24  ;;  %v14373_v51 = vld [vmem:[#allocation130_spill] sm:$0xff] }
 0x251   :  { %9488 = vmatmul.mubr.f32.gmra.mrb[66].mxu1 %v14367_v20  ;;  %10091 = vmatmul.mubr.f32.gmra.mrb[68].mxu0 %v14369_v62  ;;  %v14374_v20 = vld [vmem:[#allocation132_spill] sm:$0xff] }
 0x252   :  { %9490 = vmatprep.mubr.f32.mxu1 %v14368_v24  ;;  %10093 = vmatprep.mubr.f32.mxu0 %v14370_v0  ;;  %v14375_v24 = vld [vmem:[#allocation134_spill] sm:$0xff] }
 0x255   :  { %9491 = vmatmul.mubr.f32.gmra.mrb[68].mxu1 %v14369_v62  ;;  %10094 = vmatmul.mubr.f32.gmra.mrb[70].mxu0 %v14371_v2  ;;  %v14376_v62 = vld [vmem:[#allocation136_spill] sm:$0xff] }
 0x256   :  { %9493 = vmatprep.mubr.f32.mxu1 %v14370_v0  ;;  %10096 = vmatprep.mubr.f32.mxu0 %v14372_v7  ;;  %v14377_v0 = vld [vmem:[#allocation138_spill] sm:$0xff] }
 0x259   :  { %9494 = vmatmul.mubr.f32.gmra.mrb[70].mxu1 %v14371_v2  ;;  %10097 = vmatmul.mubr.f32.gmra.mrb[72].mxu0 %v14373_v51  ;;  %v14378_v2 = vld [vmem:[#allocation140_spill] sm:$0xff] }
 0x25a   :  { %9496 = vmatprep.mubr.f32.mxu1 %v14372_v7  ;;  %10099 = vmatprep.mubr.f32.mxu0 %v14374_v20  ;;  %v14379_v7 = vld [vmem:[#allocation142_spill] sm:$0xff] }
 0x25d   :  { %9497 = vmatmul.mubr.f32.gmra.mrb[72].mxu1 %v14373_v51  ;;  %10100 = vmatmul.mubr.f32.gmra.mrb[74].mxu0 %v14375_v24  ;;  %v14380_v51 = vld [vmem:[#allocation143_spill] sm:$0xff] }
 0x25e   :  { %9499 = vmatprep.mubr.f32.mxu1 %v14374_v20  ;;  %10102 = vmatprep.mubr.f32.mxu0 %v14376_v62  ;;  %v14381_v20 = vld [vmem:[#allocation146_spill] sm:$0xff] }
 0x261   :  { %9500 = vmatmul.mubr.f32.gmra.mrb[74].mxu1 %v14375_v24  ;;  %10103 = vmatmul.mubr.f32.gmra.mrb[76].mxu0 %v14377_v0  ;;  %v14382_v24 = vld [vmem:[#allocation148_spill] sm:$0xff] }
 0x262   :  { %9502 = vmatprep.mubr.f32.mxu1 %v14376_v62  ;;  %10105 = vmatprep.mubr.f32.mxu0 %v14378_v2  ;;  %v14383_v62 = vld [vmem:[#allocation149_spill] sm:$0xff] }
 0x265   :  { %9503 = vmatmul.mubr.f32.gmra.mrb[76].mxu1 %v14377_v0  ;;  %10106 = vmatmul.mubr.f32.gmra.mrb[78].mxu0 %v14379_v7  ;;  %v14384_v0 = vld [vmem:[#allocation152_spill] sm:$0xff] }
 0x266   :  { %9505 = vmatprep.mubr.f32.mxu1 %v14378_v2  ;;  %10108 = vmatprep.mubr.f32.mxu0 %v14380_v51  ;;  %v14385_v2 = vld [vmem:[#allocation154_spill] sm:$0xff] }
 0x269   :  { %9506 = vmatmul.mubr.f32.gmra.mrb[78].mxu1 %v14379_v7  ;;  %10109 = vmatmul.mubr.f32.gmra.mrb[80].mxu0 %v14381_v20  ;;  %v14386_v7 = vld [vmem:[#allocation156_spill] sm:$0xff] }
 0x26a   :  { %9508 = vmatprep.mubr.f32.mxu1 %v14380_v51  ;;  %10111 = vmatprep.mubr.f32.mxu0 %v14382_v24  ;;  %v14387_v51 = vld [vmem:[#allocation158_spill] sm:$0xff] }
 0x26d   :  { %9509 = vmatmul.mubr.f32.gmra.mrb[80].mxu1 %v14381_v20  ;;  %10112 = vmatmul.mubr.f32.gmra.mrb[82].mxu0 %v14383_v62  ;;  %v14388_v20 = vld [vmem:[#allocation160_spill] sm:$0xff] }
 0x26e   :  { %9511 = vmatprep.mubr.f32.mxu1 %v14382_v24  ;;  %10114 = vmatprep.mubr.f32.mxu0 %v14384_v0  ;;  %v14389_v24 = vld [vmem:[#allocation162_spill] sm:$0xff] }
 0x271   :  { %9512 = vmatmul.mubr.f32.gmra.mrb[82].mxu1 %v14383_v62  ;;  %10115 = vmatmul.mubr.f32.gmra.mrb[84].mxu0 %v14385_v2  ;;  %v14390_v62 = vld [vmem:[#allocation164_spill] sm:$0xff] }
 0x272   :  { %9514 = vmatprep.mubr.f32.mxu1 %v14384_v0  ;;  %10117 = vmatprep.mubr.f32.mxu0 %v14386_v7  ;;  %v14391_v0 = vld [vmem:[#allocation165_spill] sm:$0xff] }
 0x275   :  { %9515 = vmatmul.mubr.f32.gmra.mrb[84].mxu1 %v14385_v2  ;;  %10118 = vmatmul.mubr.f32.gmra.mrb[86].mxu0 %v14387_v51  ;;  %v14392_v2 = vld [vmem:[#allocation168_spill] sm:$0xff] }
 0x276   :  { %9517 = vmatprep.mubr.f32.mxu1 %v14386_v7  ;;  %10120 = vmatprep.mubr.f32.mxu0 %v14388_v20  ;;  %v14393_v7 = vld [vmem:[#allocation170_spill] sm:$0xff] }
 0x279   :  { %9518 = vmatmul.mubr.f32.gmra.mrb[86].mxu1 %v14387_v51  ;;  %10121 = vmatmul.mubr.f32.gmra.mrb[88].mxu0 %v14389_v24  ;;  %v14394_v51 = vld [vmem:[#allocation171_spill] sm:$0xff] }
 0x27a   :  { %9520 = vmatprep.mubr.f32.mxu1 %v14388_v20  ;;  %10123 = vmatprep.mubr.f32.mxu0 %v14390_v62  ;;  %v14395_v20 = vld [vmem:[#allocation174_spill] sm:$0xff] }
 0x27d   :  { %9521 = vmatmul.mubr.f32.gmra.mrb[88].mxu1 %v14389_v24  ;;  %10124 = vmatmul.mubr.f32.gmra.mrb[90].mxu0 %v14391_v0  ;;  %v14396_v24 = vld [vmem:[#allocation176_spill] sm:$0xff] }
 0x27e   :  { %9523 = vmatprep.mubr.f32.mxu1 %v14390_v62  ;;  %10126 = vmatprep.mubr.f32.mxu0 %v14392_v2  ;;  %v14397_v62 = vld [vmem:[#allocation178_spill] sm:$0xff] }
 0x281   :  { %9524 = vmatmul.mubr.f32.gmra.mrb[90].mxu1 %v14391_v0  ;;  %10127 = vmatmul.mubr.f32.gmra.mrb[92].mxu0 %v14393_v7  ;;  %v14398_v0 = vld [vmem:[#allocation180_spill] sm:$0xff] }
 0x282   :  { %9526 = vmatprep.mubr.f32.mxu1 %v14392_v2  ;;  %10129 = vmatprep.mubr.f32.mxu0 %v14394_v51  ;;  %v14399_v2 = vld [vmem:[#allocation182_spill] sm:$0xff] }
 0x285   :  { %9527 = vmatmul.mubr.f32.gmra.mrb[92].mxu1 %v14393_v7  ;;  %10130 = vmatmul.mubr.f32.gmra.mrb[94].mxu0 %v14395_v20  ;;  %v14400_v7 = vld [vmem:[#allocation184_spill] sm:$0xff] }
 0x286   :  { %9529 = vmatprep.mubr.f32.mxu1 %v14394_v51  ;;  %10132 = vmatprep.mubr.f32.mxu0 %v14396_v24  ;;  %v14401_v51 = vld [vmem:[#allocation186_spill] sm:$0xff] }
 0x289   :  { %9530 = vmatmul.mubr.f32.gmra.mrb[94].mxu1 %v14395_v20  ;;  %10133 = vmatmul.mubr.f32.gmra.mrb[96].mxu0 %v14397_v62  ;;  %v14402_v20 = vld [vmem:[#allocation187_spill] sm:$0xff] }
 0x28a   :  { %9532 = vmatprep.mubr.f32.mxu1 %v14396_v24  ;;  %10135 = vmatprep.mubr.f32.mxu0 %v14398_v0  ;;  %v14403_v24 = vld [vmem:[#allocation190_spill] sm:$0xff] }
 0x28d   :  { %9533 = vmatmul.mubr.f32.gmra.mrb[96].mxu1 %v14397_v62  ;;  %10136 = vmatmul.mubr.f32.gmra.mrb[98].mxu0 %v14399_v2  ;;  %v14404_v62 = vld [vmem:[#allocation192_spill] sm:$0xff] }
 0x28e   :  { %9535 = vmatprep.mubr.f32.mxu1 %v14398_v0  ;;  %10138 = vmatprep.mubr.f32.mxu0 %v14400_v7  ;;  %v14405_v0 = vld [vmem:[#allocation193_spill] sm:$0xff] }
 0x291   :  { %9536 = vmatmul.mubr.f32.gmra.mrb[98].mxu1 %v14399_v2  ;;  %10139 = vmatmul.mubr.f32.gmra.mrb[100].mxu0 %v14401_v51  ;;  %v14406_v2 = vld [vmem:[#allocation196_spill] sm:$0xff] }
 0x292   :  { %9538 = vmatprep.mubr.f32.mxu1 %v14400_v7  ;;  %10141 = vmatprep.mubr.f32.mxu0 %v14402_v20  ;;  %v14407_v7 = vld [vmem:[#allocation198_spill] sm:$0xff] }
 0x295   :  { %9539 = vmatmul.mubr.f32.gmra.mrb[100].mxu1 %v14401_v51  ;;  %10142 = vmatmul.mubr.f32.gmra.mrb[102].mxu0 %v14403_v24  ;;  %v14408_v51 = vld [vmem:[#allocation200_spill] sm:$0xff] }
 0x296   :  { %9541 = vmatprep.mubr.f32.mxu1 %v14402_v20  ;;  %10144 = vmatprep.mubr.f32.mxu0 %v14404_v62  ;;  %v14409_v20 = vld [vmem:[#allocation202_spill] sm:$0xff] }
 0x299   :  { %9542 = vmatmul.mubr.f32.gmra.mrb[102].mxu1 %v14403_v24  ;;  %10145 = vmatmul.mubr.f32.gmra.mrb[104].mxu0 %v14405_v0  ;;  %v14410_v24 = vld [vmem:[#allocation204_spill] sm:$0xff] }
 0x29a   :  { %9544 = vmatprep.mubr.f32.mxu1 %v14404_v62  ;;  %10147 = vmatprep.mubr.f32.mxu0 %v14406_v2  ;;  %v14411_v62 = vld [vmem:[#allocation206_spill] sm:$0xff] }
 0x29d   :  { %9545 = vmatmul.mubr.f32.gmra.mrb[104].mxu1 %v14405_v0  ;;  %10148 = vmatmul.mubr.f32.gmra.mrb[106].mxu0 %v14407_v7  ;;  %v14412_v0 = vld [vmem:[#allocation208_spill] sm:$0xff] }
 0x29e   :  { %9547 = vmatprep.mubr.f32.mxu1 %v14406_v2  ;;  %10150 = vmatprep.mubr.f32.mxu0 %v14408_v51  ;;  %v14413_v2 = vld [vmem:[#allocation209_spill] sm:$0xff] }
 0x2a1   :  { %9548 = vmatmul.mubr.f32.gmra.mrb[106].mxu1 %v14407_v7  ;;  %10151 = vmatmul.mubr.f32.gmra.mrb[108].mxu0 %v14409_v20  ;;  %v14414_v7 = vld [vmem:[#allocation212_spill] sm:$0xff] }
 0x2a2   :  { %9550 = vmatprep.mubr.f32.mxu1 %v14408_v51  ;;  %10153 = vmatprep.mubr.f32.mxu0 %v14410_v24  ;;  %v14415_v51 = vld [vmem:[#allocation214_spill] sm:$0xff] }
 0x2a5   :  { %9551 = vmatmul.mubr.f32.gmra.mrb[108].mxu1 %v14409_v20  ;;  %10154 = vmatmul.mubr.f32.gmra.mrb[110].mxu0 %v14411_v62  ;;  %v14416_v20 = vld [vmem:[#allocation215_spill] sm:$0xff] }
 0x2a6   :  { %9553 = vmatprep.mubr.f32.mxu1 %v14410_v24  ;;  %10156 = vmatprep.mubr.f32.mxu0 %v14412_v0  ;;  %v14417_v24 = vld [vmem:[#allocation218_spill] sm:$0xff] }
 0x2a9   :  { %9554 = vmatmul.mubr.f32.gmra.mrb[110].mxu1 %v14411_v62  ;;  %10157 = vmatmul.mubr.f32.gmra.mrb[112].mxu0 %v14413_v2  ;;  %v14418_v62 = vld [vmem:[#allocation220_spill] sm:$0xff] }
 0x2aa   :  { %9556 = vmatprep.mubr.f32.mxu1 %v14412_v0  ;;  %10159 = vmatprep.mubr.f32.mxu0 %v14414_v7  ;;  %v14419_v0 = vld [vmem:[#allocation222_spill] sm:$0xff] }
 0x2ad   :  { %9557 = vmatmul.mubr.f32.gmra.mrb[112].mxu1 %v14413_v2  ;;  %10160 = vmatmul.mubr.f32.gmra.mrb[114].mxu0 %v14415_v51  ;;  %v14420_v2 = vld [vmem:[#allocation224_spill] sm:$0xff] }
 0x2ae   :  { %9559 = vmatprep.mubr.f32.mxu1 %v14414_v7  ;;  %10162 = vmatprep.mubr.f32.mxu0 %v14416_v20  ;;  %v14421_v7 = vld [vmem:[#allocation226_spill] sm:$0xff] }
 0x2b1   :  { %9560 = vmatmul.mubr.f32.gmra.mrb[114].mxu1 %v14415_v51  ;;  %10163 = vmatmul.mubr.f32.gmra.mrb[116].mxu0 %v14417_v24 }
 0x2b2   :  { %9562 = vmatprep.mubr.f32.mxu1 %v14416_v20  ;;  %10165 = vmatprep.mubr.f32.mxu0 %v14418_v62 }
 0x2b5   :  { %9563 = vmatmul.mubr.f32.gmra.mrb[116].mxu1 %v14417_v24  ;;  %10166 = vmatmul.mubr.f32.gmra.mrb[118].mxu0 %v14419_v0 }
 0x2b6   :  { %9565 = vmatprep.mubr.f32.mxu1 %v14418_v62  ;;  %10168 = vmatprep.mubr.f32.mxu0 %v14420_v2 }
 0x2b9   :  { %9566 = vmatmul.mubr.f32.gmra.mrb[118].mxu1 %v14419_v0  ;;  %10169 = vmatmul.mubr.f32.gmra.mrb[120].mxu0 %v14421_v7 }
 0x2ba   :  { %9568 = vmatprep.mubr.f32.mxu1 %v14420_v2  ;;  %10171 = vmatprep.mubr.f32.mxu0 %v12693_v55 }
 0x2bd   :  { %9569 = vmatmul.mubr.f32.gmra.mrb[120].mxu1 %v14421_v7  ;;  %10172 = vmatmul.mubr.f32.gmra.mrb[122].mxu0 %v12707_v5 }
 0x2be   :  { %9571 = vmatprep.mubr.f32.mxu1 %v12693_v55  ;;  %10174 = vmatprep.mubr.f32.mxu0 %v12713_v27  ;;  %v14422_v55 = vld [vmem:[#allocation15_spill] sm:$0xff] }
 0x2c1   :  { %9572 = vmatmul.mubr.f32.gmra.mrb[122].mxu1 %v12707_v5  ;;  %10175 = vmatmul.mubr.f32.gmra.mrb[124].mxu0 %v12725_v48  ;;  %v14423_v5 = vld [vmem:[#allocation16_spill] sm:$0xff] }
 0x2c2   :  { %9574 = vmatprep.mubr.f32.mxu1 %v12713_v27  ;;  %10177 = vmatprep.mubr.f32.mxu0 %v12738_v59  ;;  %v14424_v27 = vld [vmem:[#allocation17_spill] sm:$0xff] }
 0x2c5   :  { %9575 = vmatmul.mubr.f32.gmra.mrb[124].mxu1 %v12725_v48  ;;  %10178 = vmatmul.mubr.f32.gmra.mrb[126].mxu0 %v12742_v9  ;;  %v14425_v48 = vld [vmem:[#allocation18_spill] sm:$0xff] }
 0x2c6   :  { %9577 = vmatprep.mubr.f32.mxu1 %v12738_v59  ;;  %10188 = vmatprep.mubr.f32.mxu0 %v11344_v52  ;;  %v14426_v52 = vld [vmem:[#allocation19_spill] sm:$0xff] }
 0x2c9   :  { %9578 = vmatmul.mubr.f32.gmra.mrb[126].mxu1 %v12742_v9  ;;  %10189 = vmatmul.mubr.f32.vlgmr.msra.gmra.mrb[0].mxu0 %v11352_v63  ;;  %v14427_v63 = vld [vmem:[#allocation20_spill] sm:$0xff] }
 0x2ca   :  { %9588 = vmatprep.mubr.f32.mxu1 %v14422_v55  ;;  %10191 = vmatprep.mubr.f32.mxu0 %v11361_v16  ;;  %v14428_v16 = vld [vmem:[#allocation21_spill] sm:$0xff]  ;;  %v14457_v55 = vld [vmem:[#allocation55_spill] sm:$0xff] }
 0x2cd   :  { %9589 = vmatmul.mubr.f32.vlgmr.msra.gmra.mrb[0].mxu1 %v14423_v5  ;;  %10192 = vmatmul.mubr.f32.gmra.mrb[2].mxu0 %v11372_v31  ;;  %v14429_v31 = vld [vmem:[#allocation22_spill] sm:$0xff] }
 0x2ce   :  { %9591 = vmatprep.mubr.f32.mxu1 %v14424_v27  ;;  %10194 = vmatprep.mubr.f32.mxu0 %v11383_v47  ;;  %v14430_v47 = vld [vmem:[#allocation23_spill] sm:$0xff]  ;;  %v14458_v5 = vld [vmem:[#allocation58_spill] sm:$0xff] }
 0x2cf   :  { %v14459_v27 = vld [vmem:[#allocation59_spill] sm:$0xff] }
 0x2d1   :  { %9592 = vmatmul.mubr.f32.gmra.mrb[2].mxu1 %v14425_v48  ;;  %10195 = vmatmul.mubr.f32.gmra.mrb[4].mxu0 %v11396_v10  ;;  %v14431_v10 = vld [vmem:[#allocation24_spill] sm:$0xff]  ;;  %v14460_v48 = vld [vmem:[#allocation61_spill] sm:$0xff] }
 0x2d2   :  { %9594 = vmatprep.mubr.f32.mxu1 %v14426_v52  ;;  %10197 = vmatprep.mubr.f32.mxu0 %v11399_v19  ;;  %v14432_v19 = vld [vmem:[#allocation25_spill] sm:$0xff]  ;;  %v14479_v52 = vld [vmem:[#allocation92_spill] sm:$0xff] }
 0x2d5   :  { %9595 = vmatmul.mubr.f32.gmra.mrb[4].mxu1 %v14427_v63  ;;  %10198 = vmatmul.mubr.f32.gmra.mrb[6].mxu0 %v11416_v44  ;;  %v14433_v44 = vld [vmem:[#allocation26_spill] sm:$0xff] }
 0x2d6   :  { %9597 = vmatprep.mubr.f32.mxu1 %v14428_v16  ;;  %10200 = vmatprep.mubr.f32.mxu0 %v11430_v13  ;;  %v14434_v13 = vld [vmem:[#allocation27_spill] sm:$0xff]  ;;  %v14481_v63 = vld [vmem:[#allocation94_spill] sm:$0xff]  ;;  %v14482_v16 = vld [vmem:[#allocation93_spill] sm:$0xff] }
 0x2d9   :  { %9598 = vmatmul.mubr.f32.gmra.mrb[6].mxu1 %v14429_v31  ;;  %10201 = vmatmul.mubr.f32.gmra.mrb[8].mxu0 %v11440_v35  ;;  %v14435_v35 = vld [vmem:[#allocation28_spill] sm:$0xff] }
 0x2da   :  { %9600 = vmatprep.mubr.f32.mxu1 %v14430_v47  ;;  %10203 = vmatprep.mubr.f32.mxu0 %v11450_v56  ;;  %v14436_v56 = vld [vmem:[#allocation29_spill] sm:$0xff]  ;;  %v14483_v31 = vld [vmem:[#allocation96_spill] sm:$0xff]  ;;  %v14484_v47 = vld [vmem:[#allocation95_spill] sm:$0xff] }
 0x2dd   :  { %9601 = vmatmul.mubr.f32.gmra.mrb[8].mxu1 %v14431_v10  ;;  %10204 = vmatmul.mubr.f32.gmra.mrb[10].mxu0 %v11459_v11  ;;  %v14437_v11 = vld [vmem:[#allocation30_spill] sm:$0xff] }
 0x2de   :  { %9603 = vmatprep.mubr.f32.mxu1 %v14432_v19  ;;  %10206 = vmatprep.mubr.f32.mxu0 %v11469_v33  ;;  %v14438_v33 = vld [vmem:[#allocation31_spill] sm:$0xff]  ;;  %v14485_v10 = vld [vmem:[#allocation98_spill] sm:$0xff]  ;;  %v14486_v19 = vld [vmem:[#allocation97_spill] sm:$0xff] }
 0x2e1   :  { %9604 = vmatmul.mubr.f32.gmra.mrb[10].mxu1 %v14433_v44  ;;  %10207 = vmatmul.mubr.f32.gmra.mrb[12].mxu0 %v11484_v3  ;;  %v14439_v3 = vld [vmem:[#allocation32_spill] sm:$0xff] }
 0x2e2   :  { %9606 = vmatprep.mubr.f32.mxu1 %v14434_v13  ;;  %10209 = vmatprep.mubr.f32.mxu0 %v11496_v50  ;;  %v14440_v50 = vld [vmem:[#allocation33_spill] sm:$0xff]  ;;  %v14487_v44 = vld [vmem:[#allocation100_spill] sm:$0xff]  ;;  %v14488_v13 = vld [vmem:[#allocation102_spill] sm:$0xff] }
 0x2e5   :  { %9607 = vmatmul.mubr.f32.gmra.mrb[12].mxu1 %v14435_v35  ;;  %10210 = vmatmul.mubr.f32.gmra.mrb[14].mxu0 %v11508_v37  ;;  %v14441_v37 = vld [vmem:[#allocation34_spill] sm:$0xff]  ;;  %v14489_v35 = vld [vmem:[#allocation101_spill] sm:$0xff] }
 0x2e6   :  { %9609 = vmatprep.mubr.f32.mxu1 %v14436_v56  ;;  %10212 = vmatprep.mubr.f32.mxu0 %v11511_v39  ;;  %v14442_v39 = vld [vmem:[#allocation35_spill] sm:$0xff]  ;;  %v14490_v56 = vld [vmem:[#allocation104_spill] sm:$0xff] }
 0x2e9   :  { %9610 = vmatmul.mubr.f32.gmra.mrb[14].mxu1 %v14437_v11  ;;  %10213 = vmatmul.mubr.f32.gmra.mrb[16].mxu0 %v11525_v8  ;;  %v14443_v8 = vld [vmem:[#allocation36_spill] sm:$0xff]  ;;  %v14491_v11 = vld [vmem:[#allocation103_spill] sm:$0xff] }
 0x2ea   :  { %9612 = vmatprep.mubr.f32.mxu1 %v14438_v33  ;;  %10215 = vmatprep.mubr.f32.mxu0 %v11535_v42  ;;  %v14444_v42 = vld [vmem:[#allocation37_spill] sm:$0xff]  ;;  %v14492_v33 = vld [vmem:[#allocation106_spill] sm:$0xff] }
 0x2ed   :  { %9613 = vmatmul.mubr.f32.gmra.mrb[16].mxu1 %v14439_v3  ;;  %10216 = vmatmul.mubr.f32.gmra.mrb[18].mxu0 %v11549_v38  ;;  %v14445_v38 = vld [vmem:[#allocation38_spill] sm:$0xff]  ;;  %v14493_v3 = vld [vmem:[#allocation105_spill] sm:$0xff] }
 0x2ee   :  { %9615 = vmatprep.mubr.f32.mxu1 %v14440_v50  ;;  %10218 = vmatprep.mubr.f32.mxu0 %v11559_v40  ;;  %v14446_v40 = vld [vmem:[#allocation39_spill] sm:$0xff]  ;;  %v14494_v50 = vld [vmem:[#allocation108_spill] sm:$0xff] }
 0x2f1   :  { %9616 = vmatmul.mubr.f32.gmra.mrb[18].mxu1 %v14441_v37  ;;  %10219 = vmatmul.mubr.f32.gmra.mrb[20].mxu0 %v11574_v36  ;;  %v14447_v36 = vld [vmem:[#allocation40_spill] sm:$0xff]  ;;  %v14495_v37 = vld [vmem:[#allocation107_spill] sm:$0xff] }
 0x2f2   :  { %9618 = vmatprep.mubr.f32.mxu1 %v14442_v39  ;;  %10221 = vmatprep.mubr.f32.mxu0 %v11583_v49  ;;  %v14448_v49 = vld [vmem:[#allocation41_spill] sm:$0xff]  ;;  %v14496_v39 = vld [vmem:[#allocation110_spill] sm:$0xff] }
 0x2f5   :  { %9619 = vmatmul.mubr.f32.gmra.mrb[20].mxu1 %v14443_v8  ;;  %10222 = vmatmul.mubr.f32.gmra.mrb[22].mxu0 %v11592_v1  ;;  %v14449_v1 = vld [vmem:[#allocation42_spill] sm:$0xff]  ;;  %v14498_v8 = vld [vmem:[#allocation112_spill] sm:$0xff] }
 0x2f6   :  { %9621 = vmatprep.mubr.f32.mxu1 %v14444_v42  ;;  %10224 = vmatprep.mubr.f32.mxu0 %v11603_v17  ;;  %v14450_v17 = vld [vmem:[#allocation43_spill] sm:$0xff] }
 0x2f7   :  { %v14499_v42 = vld [vmem:[#allocation111_spill] sm:$0xff] }
 0x2f9   :  { %9622 = vmatmul.mubr.f32.gmra.mrb[22].mxu1 %v14445_v38  ;;  %10225 = vmatmul.mubr.f32.gmra.mrb[24].mxu0 %v11614_v12  ;;  %v14451_v12 = vld [vmem:[#allocation44_spill] sm:$0xff]  ;;  %v14500_v38 = vld [vmem:[#allocation114_spill] sm:$0xff] }
 0x2fa   :  { %9624 = vmatprep.mubr.f32.mxu1 %v14446_v40  ;;  %10227 = vmatprep.mubr.f32.mxu0 %v11627_v61  ;;  %v14452_v61 = vld [vmem:[#allocation45_spill] sm:$0xff] }
 0x2fb   :  { %v14501_v40 = vld [vmem:[#allocation113_spill] sm:$0xff] }
 0x2fd   :  { %9625 = vmatmul.mubr.f32.gmra.mrb[24].mxu1 %v14447_v36  ;;  %10228 = vmatmul.mubr.f32.gmra.mrb[26].mxu0 %v11630_v28  ;;  %v14453_v28 = vld [vmem:[#allocation47_spill] sm:$0xff]  ;;  %v14502_v36 = vld [vmem:[#allocation116_spill] sm:$0xff] }
 0x2fe   :  { %9627 = vmatprep.mubr.f32.mxu1 %v14448_v49  ;;  %10230 = vmatprep.mubr.f32.mxu0 %v11647_v21  ;;  %v14454_v21 = vld [vmem:[#allocation49_spill] sm:$0xff]  ;;  %v14503_v49 = vld [vmem:[#allocation115_spill] sm:$0xff] }
 0x301   :  { %9628 = vmatmul.mubr.f32.gmra.mrb[26].mxu1 %v14449_v1  ;;  %10231 = vmatmul.mubr.f32.gmra.mrb[28].mxu0 %v11661_v41  ;;  %v14455_v41 = vld [vmem:[#allocation51_spill] sm:$0xff]  ;;  %v14504_v1 = vld [vmem:[#allocation118_spill] sm:$0xff] }
 0x302   :  { %9630 = vmatprep.mubr.f32.mxu1 %v14450_v17  ;;  %10233 = vmatprep.mubr.f32.mxu0 %v11671_v57  ;;  %v14456_v57 = vld [vmem:[#allocation53_spill] sm:$0xff] }
 0x303   :  { %v14505_v17 = vld [vmem:[#allocation117_spill] sm:$0xff] }
 0x305   :  { %9631 = vmatmul.mubr.f32.gmra.mrb[28].mxu1 %v14451_v12  ;;  %10234 = vmatmul.mubr.f32.gmra.mrb[30].mxu0 %v14332_v15  ;;  %v14461_v15 = vld [vmem:[#allocation63_spill] sm:$0xff]  ;;  %v14506_v12 = vld [vmem:[#allocation120_spill] sm:$0xff] }
 0x306   :  { %9633 = vmatprep.mubr.f32.mxu1 %v14452_v61  ;;  %10236 = vmatprep.mubr.f32.mxu0 %v14333_v22  ;;  %v14462_v22 = vld [vmem:[#allocation65_spill] sm:$0xff]  ;;  %v14507_v61 = vld [vmem:[#allocation119_spill] sm:$0xff] }
 0x309   :  { %9634 = vmatmul.mubr.f32.gmra.mrb[30].mxu1 %v14453_v28  ;;  %10237 = vmatmul.mubr.f32.gmra.mrb[32].mxu0 %v14334_v23  ;;  %v14463_v23 = vld [vmem:[#allocation67_spill] sm:$0xff]  ;;  %v14508_v28 = vld [vmem:[#allocation122_spill] sm:$0xff] }
 0x30a   :  { %9636 = vmatprep.mubr.f32.mxu1 %v14454_v21  ;;  %10239 = vmatprep.mubr.f32.mxu0 %v14335_v34  ;;  %v14464_v34 = vld [vmem:[#allocation69_spill] sm:$0xff] }
 0x30b   :  { %v14509_v21 = vld [vmem:[#allocation121_spill] sm:$0xff] }
 0x30d   :  { %9637 = vmatmul.mubr.f32.gmra.mrb[32].mxu1 %v14455_v41  ;;  %10240 = vmatmul.mubr.f32.gmra.mrb[34].mxu0 %v14336_v26  ;;  %v14465_v26 = vld [vmem:[#allocation71_spill] sm:$0xff]  ;;  %v14510_v41 = vld [vmem:[#allocation124_spill] sm:$0xff] }
 0x30e   :  { %9639 = vmatprep.mubr.f32.mxu1 %v14456_v57  ;;  %10242 = vmatprep.mubr.f32.mxu0 %v14337_v18  ;;  %v14466_v18 = vld [vmem:[#allocation73_spill] sm:$0xff]  ;;  %v14511_v57 = vld [vmem:[#allocation123_spill] sm:$0xff] }
 0x311   :  { %9640 = vmatmul.mubr.f32.gmra.mrb[34].mxu1 %v14457_v55  ;;  %10243 = vmatmul.mubr.f32.gmra.mrb[36].mxu0 %v14338_v58  ;;  %v14467_v58 = vld [vmem:[#allocation75_spill] sm:$0xff]  ;;  %v14512_v55 = vld [vmem:[#allocation126_spill] sm:$0xff] }
 0x312   :  { %9642 = vmatprep.mubr.f32.mxu1 %v14458_v5  ;;  %10245 = vmatprep.mubr.f32.mxu0 %v14339_v4  ;;  %v14468_v4 = vld [vmem:[#allocation77_spill] sm:$0xff] }
 0x313   :  { %v14513_v5 = vld [vmem:[#allocation125_spill] sm:$0xff] }
 0x315   :  { %9643 = vmatmul.mubr.f32.gmra.mrb[36].mxu1 %v14459_v27  ;;  %10246 = vmatmul.mubr.f32.gmra.mrb[38].mxu0 %v14340_v60  ;;  %v14469_v60 = vld [vmem:[#allocation80_spill] sm:$0xff] }
 0x316   :  { %9645 = vmatprep.mubr.f32.mxu1 %v14460_v48  ;;  %10248 = vmatprep.mubr.f32.mxu0 %v14341_v32  ;;  %v14470_v32 = vld [vmem:[#allocation81_spill] sm:$0xff]  ;;  %v14514_v27 = vld [vmem:[#allocation128_spill] sm:$0xff]  ;;  %v14515_v48 = vld [vmem:[#allocation127_spill] sm:$0xff] }
 0x319   :  { %9646 = vmatmul.mubr.f32.gmra.mrb[38].mxu1 %v14461_v15  ;;  %10249 = vmatmul.mubr.f32.gmra.mrb[40].mxu0 %v14342_v25  ;;  %v14471_v25 = vld [vmem:[#allocation84_spill] sm:$0xff]  ;;  %v14516_v15 = vld [vmem:[#allocation130_spill] sm:$0xff] }
 0x31a   :  { %9648 = vmatprep.mubr.f32.mxu1 %v14462_v22  ;;  %10251 = vmatprep.mubr.f32.mxu0 %v14343_v30  ;;  %v14472_v30 = vld [vmem:[#allocation83_spill] sm:$0xff]  ;;  %v14517_v22 = vld [vmem:[#allocation129_spill] sm:$0xff] }
 0x31d   :  { %9649 = vmatmul.mubr.f32.gmra.mrb[40].mxu1 %v14463_v23  ;;  %10252 = vmatmul.mubr.f32.gmra.mrb[42].mxu0 %v14344_v6  ;;  %v14473_v6 = vld [vmem:[#allocation86_spill] sm:$0xff]  ;;  %v14518_v23 = vld [vmem:[#allocation132_spill] sm:$0xff] }
 0x31e   :  { %9651 = vmatprep.mubr.f32.mxu1 %v14464_v34  ;;  %10254 = vmatprep.mubr.f32.mxu0 %v14345_v53  ;;  %v14474_v53 = vld [vmem:[#allocation85_spill] sm:$0xff]  ;;  %v14519_v34 = vld [vmem:[#allocation131_spill] sm:$0xff] }
 0x321   :  { %9652 = vmatmul.mubr.f32.gmra.mrb[42].mxu1 %v14465_v26  ;;  %10255 = vmatmul.mubr.f32.gmra.mrb[44].mxu0 %v14346_v43  ;;  %v14475_v43 = vld [vmem:[#allocation88_spill] sm:$0xff]  ;;  %v14520_v26 = vld [vmem:[#allocation134_spill] sm:$0xff] }
 0x322   :  { %9654 = vmatprep.mubr.f32.mxu1 %v14466_v18  ;;  %10257 = vmatprep.mubr.f32.mxu0 %v14347_v46  ;;  %v14476_v46 = vld [vmem:[#allocation87_spill] sm:$0xff]  ;;  %v14521_v18 = vld [vmem:[#allocation133_spill] sm:$0xff] }
 0x325   :  { %9655 = vmatmul.mubr.f32.gmra.mrb[44].mxu1 %v14467_v58  ;;  %10258 = vmatmul.mubr.f32.gmra.mrb[46].mxu0 %v14348_v14  ;;  %v14477_v14 = vld [vmem:[#allocation90_spill] sm:$0xff]  ;;  %v14522_v58 = vld [vmem:[#allocation136_spill] sm:$0xff] }
 0x326   :  { %9657 = vmatprep.mubr.f32.mxu1 %v14468_v4  ;;  %10260 = vmatprep.mubr.f32.mxu0 %v14349_v45  ;;  %v14478_v45 = vld [vmem:[#allocation89_spill] sm:$0xff]  ;;  %v14523_v4 = vld [vmem:[#allocation135_spill] sm:$0xff] }
 0x329   :  { %9658 = vmatmul.mubr.f32.gmra.mrb[46].mxu1 %v14469_v60  ;;  %10261 = vmatmul.mubr.f32.gmra.mrb[48].mxu0 %v14350_v54  ;;  %v14480_v54 = vld [vmem:[#allocation91_spill] sm:$0xff]  ;;  %v14524_v60 = vld [vmem:[#allocation138_spill] sm:$0xff] }
 0x32a   :  { %9660 = vmatprep.mubr.f32.mxu1 %v14470_v32  ;;  %10263 = vmatprep.mubr.f32.mxu0 %v14471_v25  ;;  %v14525_v32 = vld [vmem:[#allocation137_spill] sm:$0xff]  ;;  %v14526_v25 = vld [vmem:[#allocation140_spill] sm:$0xff] }
 0x32d   :  { %9661 = vmatmul.mubr.f32.gmra.mrb[48].mxu1 %v14472_v30  ;;  %10264 = vmatmul.mubr.f32.gmra.mrb[50].mxu0 %v14473_v6  ;;  %v14527_v30 = vld [vmem:[#allocation139_spill] sm:$0xff]  ;;  %v14528_v6 = vld [vmem:[#allocation142_spill] sm:$0xff] }
 0x32e   :  { %9663 = vmatprep.mubr.f32.mxu1 %v14474_v53  ;;  %10266 = vmatprep.mubr.f32.mxu0 %v14475_v43  ;;  %v14529_v53 = vld [vmem:[#allocation141_spill] sm:$0xff]  ;;  %v14530_v43 = vld [vmem:[#allocation143_spill] sm:$0xff] }
 0x331   :  { %9664 = vmatmul.mubr.f32.gmra.mrb[50].mxu1 %v14476_v46  ;;  %10267 = vmatmul.mubr.f32.gmra.mrb[52].mxu0 %v14477_v14  ;;  %v14531_v46 = vld [vmem:[#allocation144_spill] sm:$0xff]  ;;  %v14532_v14 = vld [vmem:[#allocation146_spill] sm:$0xff] }
 0x332   :  { %9666 = vmatprep.mubr.f32.mxu1 %v14478_v45  ;;  %10269 = vmatprep.mubr.f32.mxu0 %v14479_v52  ;;  %v14533_v45 = vld [vmem:[#allocation145_spill] sm:$0xff]  ;;  %v14534_v52 = vld [vmem:[#allocation148_spill] sm:$0xff] }
 0x335   :  { %9667 = vmatmul.mubr.f32.gmra.mrb[52].mxu1 %v14480_v54  ;;  %10270 = vmatmul.mubr.f32.gmra.mrb[54].mxu0 %v14481_v63  ;;  %v14535_v54 = vld [vmem:[#allocation147_spill] sm:$0xff]  ;;  %v14536_v63 = vld [vmem:[#allocation149_spill] sm:$0xff] }
 0x336   :  { %9669 = vmatprep.mubr.f32.mxu1 %v14482_v16  ;;  %10272 = vmatprep.mubr.f32.mxu0 %v14483_v31  ;;  %v14537_v16 = vld [vmem:[#allocation150_spill] sm:$0xff]  ;;  %v14538_v31 = vld [vmem:[#allocation152_spill] sm:$0xff] }
 0x339   :  { %9670 = vmatmul.mubr.f32.gmra.mrb[54].mxu1 %v14484_v47  ;;  %10273 = vmatmul.mubr.f32.gmra.mrb[56].mxu0 %v14485_v10  ;;  %v14539_v47 = vld [vmem:[#allocation151_spill] sm:$0xff]  ;;  %v14540_v10 = vld [vmem:[#allocation154_spill] sm:$0xff] }
 0x33a   :  { %9672 = vmatprep.mubr.f32.mxu1 %v14486_v19  ;;  %10275 = vmatprep.mubr.f32.mxu0 %v14359_v29  ;;  %v14497_v29 = vld [vmem:[#allocation109_spill] sm:$0xff] }
 0x33b   :  { %v14541_v19 = vld [vmem:[#allocation153_spill] sm:$0xff] }
 0x33d   :  { %9673 = vmatmul.mubr.f32.gmra.mrb[56].mxu1 %v14487_v44  ;;  %10276 = vmatmul.mubr.f32.gmra.mrb[58].mxu0 %v14488_v13  ;;  %v14542_v44 = vld [vmem:[#allocation156_spill] sm:$0xff]  ;;  %v14543_v13 = vld [vmem:[#allocation155_spill] sm:$0xff] }
 0x33e   :  { %9675 = vmatprep.mubr.f32.mxu1 %v14489_v35  ;;  %10278 = vmatprep.mubr.f32.mxu0 %v14490_v56  ;;  %v14544_v35 = vld [vmem:[#allocation158_spill] sm:$0xff]  ;;  %v14545_v56 = vld [vmem:[#allocation157_spill] sm:$0xff] }
 0x341   :  { %9676 = vmatmul.mubr.f32.gmra.mrb[58].mxu1 %v14491_v11  ;;  %10279 = vmatmul.mubr.f32.gmra.mrb[60].mxu0 %v14492_v33  ;;  %v14546_v11 = vld [vmem:[#allocation160_spill] sm:$0xff]  ;;  %v14547_v33 = vld [vmem:[#allocation159_spill] sm:$0xff] }
 0x342   :  { %9678 = vmatprep.mubr.f32.mxu1 %v14493_v3  ;;  %10281 = vmatprep.mubr.f32.mxu0 %v14494_v50  ;;  %v14548_v3 = vld [vmem:[#allocation162_spill] sm:$0xff]  ;;  %v14549_v50 = vld [vmem:[#allocation161_spill] sm:$0xff] }
 0x345   :  { %9679 = vmatmul.mubr.f32.gmra.mrb[60].mxu1 %v14495_v37  ;;  %10282 = vmatmul.mubr.f32.gmra.mrb[62].mxu0 %v14496_v39  ;;  %v14550_v37 = vld [vmem:[#allocation164_spill] sm:$0xff]  ;;  %v14551_v39 = vld [vmem:[#allocation163_spill] sm:$0xff] }
 0x346   :  { %9681 = vmatprep.mubr.f32.mxu1 %v14497_v29  ;;  %10284 = vmatprep.mubr.f32.mxu0 %v14498_v8  ;;  %v14552_v29 = vld [vmem:[#allocation165_spill] sm:$0xff]  ;;  %v14553_v8 = vld [vmem:[#allocation166_spill] sm:$0xff] }
 0x349   :  { %9682 = vmatmul.mubr.f32.gmra.mrb[62].mxu1 %v14499_v42  ;;  %10285 = vmatmul.mubr.f32.gmra.mrb[64].mxu0 %v14500_v38  ;;  %v14554_v42 = vld [vmem:[#allocation168_spill] sm:$0xff]  ;;  %v14555_v38 = vld [vmem:[#allocation167_spill] sm:$0xff] }
 0x34a   :  { %9684 = vmatprep.mubr.f32.mxu1 %v14501_v40  ;;  %10287 = vmatprep.mubr.f32.mxu0 %v14502_v36  ;;  %v14556_v40 = vld [vmem:[#allocation170_spill] sm:$0xff]  ;;  %v14557_v36 = vld [vmem:[#allocation169_spill] sm:$0xff] }
 0x34d   :  { %9685 = vmatmul.mubr.f32.gmra.mrb[64].mxu1 %v14503_v49  ;;  %10288 = vmatmul.mubr.f32.gmra.mrb[66].mxu0 %v14504_v1  ;;  %v14558_v49 = vld [vmem:[#allocation171_spill] sm:$0xff]  ;;  %v14559_v1 = vld [vmem:[#allocation172_spill] sm:$0xff] }
 0x34e   :  { %9687 = vmatprep.mubr.f32.mxu1 %v14505_v17  ;;  %10290 = vmatprep.mubr.f32.mxu0 %v14506_v12  ;;  %v14560_v17 = vld [vmem:[#allocation174_spill] sm:$0xff]  ;;  %v14561_v12 = vld [vmem:[#allocation173_spill] sm:$0xff] }
 0x351   :  { %9688 = vmatmul.mubr.f32.gmra.mrb[66].mxu1 %v14507_v61  ;;  %10291 = vmatmul.mubr.f32.gmra.mrb[68].mxu0 %v14508_v28  ;;  %v14562_v61 = vld [vmem:[#allocation176_spill] sm:$0xff]  ;;  %v14563_v28 = vld [vmem:[#allocation175_spill] sm:$0xff] }
 0x352   :  { %9690 = vmatprep.mubr.f32.mxu1 %v14509_v21  ;;  %10293 = vmatprep.mubr.f32.mxu0 %v14510_v41  ;;  %v14564_v21 = vld [vmem:[#allocation178_spill] sm:$0xff]  ;;  %v14565_v41 = vld [vmem:[#allocation177_spill] sm:$0xff] }
 0x355   :  { %9691 = vmatmul.mubr.f32.gmra.mrb[68].mxu1 %v14511_v57  ;;  %10294 = vmatmul.mubr.f32.gmra.mrb[70].mxu0 %v14512_v55  ;;  %v14566_v57 = vld [vmem:[#allocation180_spill] sm:$0xff]  ;;  %v14567_v55 = vld [vmem:[#allocation179_spill] sm:$0xff] }
 0x356   :  { %9693 = vmatprep.mubr.f32.mxu1 %v14513_v5  ;;  %10296 = vmatprep.mubr.f32.mxu0 %v14514_v27  ;;  %v14568_v5 = vld [vmem:[#allocation182_spill] sm:$0xff]  ;;  %v14569_v27 = vld [vmem:[#allocation181_spill] sm:$0xff] }
 0x359   :  { %9694 = vmatmul.mubr.f32.gmra.mrb[70].mxu1 %v14515_v48  ;;  %10297 = vmatmul.mubr.f32.gmra.mrb[72].mxu0 %v14516_v15  ;;  %v14570_v48 = vld [vmem:[#allocation184_spill] sm:$0xff]  ;;  %v14571_v15 = vld [vmem:[#allocation183_spill] sm:$0xff] }
 0x35a   :  { %9696 = vmatprep.mubr.f32.mxu1 %v14517_v22  ;;  %10299 = vmatprep.mubr.f32.mxu0 %v14518_v23  ;;  %v14572_v22 = vld [vmem:[#allocation186_spill] sm:$0xff]  ;;  %v14573_v23 = vld [vmem:[#allocation185_spill] sm:$0xff] }
 0x35d   :  { %9697 = vmatmul.mubr.f32.gmra.mrb[72].mxu1 %v14519_v34  ;;  %10300 = vmatmul.mubr.f32.gmra.mrb[74].mxu0 %v14520_v26  ;;  %v14574_v34 = vld [vmem:[#allocation187_spill] sm:$0xff]  ;;  %v14575_v26 = vld [vmem:[#allocation188_spill] sm:$0xff] }
 0x35e   :  { %9699 = vmatprep.mubr.f32.mxu1 %v14521_v18  ;;  %10302 = vmatprep.mubr.f32.mxu0 %v14522_v58  ;;  %v14576_v18 = vld [vmem:[#allocation190_spill] sm:$0xff]  ;;  %v14577_v58 = vld [vmem:[#allocation189_spill] sm:$0xff] }
 0x361   :  { %9700 = vmatmul.mubr.f32.gmra.mrb[74].mxu1 %v14523_v4  ;;  %10303 = vmatmul.mubr.f32.gmra.mrb[76].mxu0 %v14524_v60  ;;  %v14578_v4 = vld [vmem:[#allocation192_spill] sm:$0xff]  ;;  %v14579_v60 = vld [vmem:[#allocation191_spill] sm:$0xff] }
 0x362   :  { %9702 = vmatprep.mubr.f32.mxu1 %v14525_v32  ;;  %10305 = vmatprep.mubr.f32.mxu0 %v14526_v25  ;;  %v14580_v32 = vld [vmem:[#allocation193_spill] sm:$0xff]  ;;  %v14581_v25 = vld [vmem:[#allocation194_spill] sm:$0xff] }
 0x365   :  { %9703 = vmatmul.mubr.f32.gmra.mrb[76].mxu1 %v14527_v30  ;;  %10306 = vmatmul.mubr.f32.gmra.mrb[78].mxu0 %v14528_v6  ;;  %v14582_v30 = vld [vmem:[#allocation196_spill] sm:$0xff] }
 0x366   :  { %9705 = vmatprep.mubr.f32.mxu1 %v14529_v53  ;;  %10308 = vmatprep.mubr.f32.mxu0 %v14530_v43  ;;  %v14583_v53 = vld [vmem:[#allocation195_spill] sm:$0xff] }
 0x369   :  { %9706 = vmatmul.mubr.f32.gmra.mrb[78].mxu1 %v14531_v46  ;;  %10309 = vmatmul.mubr.f32.gmra.mrb[80].mxu0 %v14532_v14  ;;  %v14584_v46 = vld [vmem:[#allocation198_spill] sm:$0xff]  ;;  %v14585_v14 = vld [vmem:[#allocation197_spill] sm:$0xff] }
 0x36a   :  { %9708 = vmatprep.mubr.f32.mxu1 %v14533_v45  ;;  %10311 = vmatprep.mubr.f32.mxu0 %v14534_v52  ;;  %v14586_v45 = vld [vmem:[#allocation200_spill] sm:$0xff] }
 0x36d   :  { %9709 = vmatmul.mubr.f32.gmra.mrb[80].mxu1 %v14535_v54  ;;  %10312 = vmatmul.mubr.f32.gmra.mrb[82].mxu0 %v14536_v63  ;;  %v13231_v54 = vld [vmem:[#allocation7 + $0x8] sm:$0xff] }
 0x36e   :  { %9711 = vmatprep.mubr.f32.mxu1 %v14537_v16  ;;  %10314 = vmatprep.mubr.f32.mxu0 %v14538_v31 }
 0x371   :  { %9712 = vmatmul.mubr.f32.gmra.mrb[82].mxu1 %v14539_v47  ;;  %10315 = vmatmul.mubr.f32.gmra.mrb[84].mxu0 %v14540_v10  ;;  %v13233_v47 = vld [vmem:[#allocation7] sm:$0xff]  ;;  %v14587_v10 = vld [vmem:[#allocation199_spill] sm:$0xff] }
 0x372   :  { %9714 = vmatprep.mubr.f32.mxu1 %v14541_v19  ;;  %10317 = vmatprep.mubr.f32.mxu0 %v14542_v44  ;;  %v14588_v44 = vld [vmem:[#allocation202_spill] sm:$0xff] }
 0x375   :  { %9715 = vmatmul.mubr.f32.gmra.mrb[84].mxu1 %v14543_v13  ;;  %10318 = vmatmul.mubr.f32.gmra.mrb[86].mxu0 %v14544_v35  ;;  %v14589_v35 = vld [vmem:[#allocation201_spill] sm:$0xff] }
 0x376   :  { %9717 = vmatprep.mubr.f32.mxu1 %v14545_v56  ;;  %10320 = vmatprep.mubr.f32.mxu0 %v14546_v11  ;;  %v14590_v56 = vld [vmem:[#allocation204_spill] sm:$0xff] }
 0x379   :  { %9718 = vmatmul.mubr.f32.gmra.mrb[86].mxu1 %v14547_v33  ;;  %10321 = vmatmul.mubr.f32.gmra.mrb[88].mxu0 %v14548_v3 }
 0x37a   :  { %9720 = vmatprep.mubr.f32.mxu1 %v14549_v50  ;;  %10323 = vmatprep.mubr.f32.mxu0 %v14550_v37 }
 0x37d   :  { %9721 = vmatmul.mubr.f32.gmra.mrb[88].mxu1 %v14551_v39  ;;  %10324 = vmatmul.mubr.f32.gmra.mrb[90].mxu0 %v14552_v29  ;;  %v13241_v29 = vld [vmem:[#allocation7 + $0x10] sm:$0xff] }
 0x37e   :  { %9723 = vmatprep.mubr.f32.mxu1 %v14553_v8  ;;  %10326 = vmatprep.mubr.f32.mxu0 %v14554_v42  ;;  %v14591_v8 = vld [vmem:[#allocation203_spill] sm:$0xff] }
 0x381   :  { %9724 = vmatmul.mubr.f32.gmra.mrb[90].mxu1 %v14555_v38  ;;  %10327 = vmatmul.mubr.f32.gmra.mrb[92].mxu0 %v14556_v40  ;;  %v14592_v38 = vld [vmem:[#allocation206_spill] sm:$0xff] }
 0x382   :  { %9726 = vmatprep.mubr.f32.mxu1 %v14557_v36  ;;  %10329 = vmatprep.mubr.f32.mxu0 %v14558_v49  ;;  %v14593_v49 = vld [vmem:[#allocation205_spill] sm:$0xff] }
 0x385   :  { %9727 = vmatmul.mubr.f32.gmra.mrb[92].mxu1 %v14559_v1  ;;  %10330 = vmatmul.mubr.f32.gmra.mrb[94].mxu0 %v14560_v17  ;;  %v14594_v1 = vld [vmem:[#allocation208_spill] sm:$0xff]  ;;  %v13247_v17 = vld [vmem:[#allocation7 + $0x18] sm:$0xff] }
 0x386   :  { %9729 = vmatprep.mubr.f32.mxu1 %v14561_v12  ;;  %10332 = vmatprep.mubr.f32.mxu0 %v14562_v61 }
 0x389   :  { %9730 = vmatmul.mubr.f32.gmra.mrb[94].mxu1 %v14563_v28  ;;  %10333 = vmatmul.mubr.f32.gmra.mrb[96].mxu0 %v14564_v21 }
 0x38a   :  { %9732 = vmatprep.mubr.f32.mxu1 %v14565_v41  ;;  %10335 = vmatprep.mubr.f32.mxu0 %v14566_v57  ;;  %v14595_v57 = vld [vmem:[#allocation207_spill] sm:$0xff] }
 0x38d   :  { %9733 = vmatmul.mubr.f32.gmra.mrb[96].mxu1 %v14567_v55  ;;  %10336 = vmatmul.mubr.f32.gmra.mrb[98].mxu0 %v14568_v5  ;;  %v14596_v5 = vld [vmem:[#allocation209_spill] sm:$0xff] }
 0x38e   :  { %9735 = vmatprep.mubr.f32.mxu1 %v14569_v27  ;;  %10338 = vmatprep.mubr.f32.mxu0 %v14570_v48 }
 0x391   :  { %9736 = vmatmul.mubr.f32.gmra.mrb[98].mxu1 %v14571_v15  ;;  %10339 = vmatmul.mubr.f32.gmra.mrb[100].mxu0 %v14572_v22  ;;  %v14597_v22 = vld [vmem:[#allocation210_spill] sm:$0xff] }
 0x392   :  { %9738 = vmatprep.mubr.f32.mxu1 %v14573_v23  ;;  %10341 = vmatprep.mubr.f32.mxu0 %v14574_v34  ;;  %v14598_v23 = vld [vmem:[#allocation212_spill] sm:$0xff] }
 0x395   :  { %9739 = vmatmul.mubr.f32.gmra.mrb[100].mxu1 %v14575_v26  ;;  %10342 = vmatmul.mubr.f32.gmra.mrb[102].mxu0 %v14576_v18 }
 0x396   :  { %9741 = vmatprep.mubr.f32.mxu1 %v14577_v58  ;;  %10344 = vmatprep.mubr.f32.mxu0 %v14578_v4 }
 0x399   :  { %9742 = vmatmul.mubr.f32.gmra.mrb[102].mxu1 %v14579_v60  ;;  %10345 = vmatmul.mubr.f32.gmra.mrb[104].mxu0 %v14580_v32 }
 0x39a   :  { %9744 = vmatprep.mubr.f32.mxu1 %v14581_v25  ;;  %10347 = vmatprep.mubr.f32.mxu0 %v14582_v30  ;;  %v14599_v25 = vld [vmem:[#allocation211_spill] sm:$0xff] }
 0x39c   :  { %v10190_v6 = vpop.f32.mrb[0].mxu0 }
 0x39d   :  { %9745 = vmatmul.mubr.f32.gmra.mrb[104].mxu1 %v14583_v53  ;;  %v6780_v43 = vpop.f32.mrb[1].mxu0  ;;  %10348 = vmatmul.mubr.f32.gmra.mrb[106].mxu0 %v14584_v46 }
 0x39e   :  { %9747 = vmatprep.mubr.f32.mxu1 %v14585_v14  ;;  %10350 = vmatprep.mubr.f32.mxu0 %v14586_v45 }
 0x3a0   :  { %v9590_v52 = vpop.f32.mrb[0].mxu1  ;;  %v10193_v63 = vpop.f32.mrb[2].mxu0 }
 0x3a1   :  { %v10428_v16 = vadd.f32 %v10190_v6, %v9590_v52  ;;  %v3878_v31 = vpop.f32.mrb[1].mxu1  ;;  %9748 = vmatmul.mubr.f32.gmra.mrb[106].mxu1 %v14587_v10  ;;  %v6792_v19 = vpop.f32.mrb[3].mxu0  ;;  %10351 = vmatmul.mubr.f32.gmra.mrb[108].mxu0 %v14588_v44  ;;  %v14602_v44 = vld [vmem:[#allocation217_spill] sm:$0xff] }
 0x3a2   :  { %v10429_v13 = vadd.f32 %v6780_v43, %v3878_v31  ;;  %9750 = vmatprep.mubr.f32.mxu1 %v14589_v35  ;;  %10353 = vmatprep.mubr.f32.mxu0 %v14590_v56  ;;  %v14600_v43 = vld [vmem:[#allocation213_spill] sm:$0xff] }
 0x3a3   :  { %v7551_v11 = vmul.f32 %v10428_v16, %v13231_v54  ;;  %v14601_v16 = vld [vmem:[#allocation216_spill] sm:$0xff] }
 0x3a4   :  { %v7550_v33 = vmul.f32 %v10429_v13, %v13233_v47  ;;  %v9593_v3 = vpop.f32.mrb[2].mxu1  ;;  %v10196_v50 = vpop.f32.mrb[4].mxu0 }
 0x3a5   :  { %v10430_v37 = vadd.f32 %v10193_v63, %v9593_v3  ;;  %v3892_v39 = vpop.f32.mrb[3].mxu1  ;;  %9751 = vmatmul.mubr.f32.gmra.mrb[108].mxu1 %v14591_v8  ;;  %v6804_v42 = vpop.f32.mrb[5].mxu0  ;;  %10354 = vmatmul.mubr.f32.gmra.mrb[110].mxu0 %v14592_v38  ;;  %v14604_v8 = vld [vmem:[#allocation221_spill] sm:$0xff] }
 0x3a6   :  { %v7678_v40 = vadd.f32 %v7551_v11, %v7550_v33  ;;  %v10431_v36 = vadd.f32 %v6792_v19, %v3892_v39  ;;  %9753 = vmatprep.mubr.f32.mxu1 %v14593_v49  ;;  %10356 = vmatprep.mubr.f32.mxu0 %v14594_v1  ;;  %v14605_v49 = vld [vmem:[#allocation223_spill] sm:$0xff] }
 0x3a7   :  { %v7553_v27 = vmul.f32 %v10430_v37, %v13247_v17 }
 0x3a8   :  { %v7552_v12 = vmul.f32 %v10431_v36, %v13241_v29  ;;  %v9596_v61 = vpop.f32.mrb[4].mxu1  ;;  %v10199_v28 = vpop.f32.mrb[6].mxu0 }
 0x3a9   :  { %v10432_v21 = vadd.f32 %v10196_v50, %v9596_v61  ;;  %v3906_v41 = vpop.f32.mrb[5].mxu1  ;;  %9754 = vmatmul.mubr.f32.gmra.mrb[110].mxu1 %v14595_v57  ;;  %v6816_v55 = vpop.f32.mrb[7].mxu0  ;;  %10357 = vmatmul.mubr.f32.gmra.mrb[112].mxu0 %v14596_v5  ;;  %v14603_v50 = vld [vmem:[#allocation219_spill] sm:$0xff] }
 0x3aa   :  { %v7679_v48 = vadd.f32 %v7678_v40, %v7552_v12  ;;  %v10433_v15 = vadd.f32 %v6804_v42, %v3906_v41  ;;  %9756 = vmatprep.mubr.f32.mxu1 %v14597_v22  ;;  %10359 = vmatprep.mubr.f32.mxu0 %v14598_v23  ;;  %v14609_v22 = vld [vmem:[#allocation230_spill] sm:$0xff] }
 0x3ab   :  { %v7555_v34 = vmul.f32 %v10432_v21, %v13231_v54  ;;  %v14607_v21 = vld [vmem:[#allocation228_spill] sm:$0xff] }
 0x3ac   :  { %v13256_v26 = vadd.f32 %v7679_v48, %v7553_v27  ;;  %v7554_v18 = vmul.f32 %v10433_v15, %v13233_v47  ;;  %v9599_v58 = vpop.f32.mrb[6].mxu1  ;;  %v10202_v4 = vpop.f32.mrb[8].mxu0  ;;  %v14608_v15 = vld [vmem:[#allocation227_spill] sm:$0xff] }
 0x3ad   :  { %v10434_v60 = vadd.f32 %v10199_v28, %v9599_v58  ;;  %v3920_v32 = vpop.f32.mrb[7].mxu1  ;;  %9757 = vmatmul.mubr.f32.gmra.mrb[112].mxu1 %v14599_v25  ;;  %v6828_v30 = vpop.f32.mrb[9].mxu0  ;;  %10360 = vmatmul.mubr.f32.gmra.mrb[114].mxu0 %v14415_v51  ;;  %v14606_v28 = vld [vmem:[#allocation225_spill] sm:$0xff]  ;;  %v14611_v58 = vld [vmem:[#allocation231_spill] sm:$0xff] }
 0x3ae   :  { %v7687_v6 = vadd.f32 %v7555_v34, %v7554_v18  ;;  %v10435_v53 = vadd.f32 %v6816_v55, %v3920_v32  ;;  %9759 = vmatprep.mubr.f32.mxu1 %v14600_v43  ;;  %10362 = vmatprep.mubr.f32.mxu0 %v14416_v20  ;;  %v14610_v18 = vld [vmem:[#allocation229_spill] sm:$0xff]  ;;  %v14613_v43 = vld [vmem:[#allocation234_spill] sm:$0xff] }
 0x3af   :  { %v7557_v10 = vmul.f32 %v10434_v60, %v13247_v17 }
 0x3b0   :  { %v7556_v46 = vmul.f32 %v10435_v53, %v13241_v29  ;;  %v9602_v14 = vpop.f32.mrb[8].mxu1  ;;  %v10205_v45 = vpop.f32.mrb[10].mxu0 }
 0x3b1   :  { %v10436_v52 = vadd.f32 %v10202_v4, %v9602_v14  ;;  %v3934_v63 = vpop.f32.mrb[9].mxu1  ;;  %9760 = vmatmul.mubr.f32.gmra.mrb[114].mxu1 %v14601_v16  ;;  %v6840_v31 = vpop.f32.mrb[11].mxu0  ;;  %10363 = vmatmul.mubr.f32.gmra.mrb[116].mxu0 %v14417_v24 }
 0x3b2   :  { %v7688_v51 = vadd.f32 %v7687_v6, %v7556_v46  ;;  %v10437_v19 = vadd.f32 %v6828_v30, %v3934_v63  ;;  %9762 = vmatprep.mubr.f32.mxu1 %v14602_v44  ;;  %10365 = vmatprep.mubr.f32.mxu0 %v14418_v62  ;;  %v14612_v6 = vld [vmem:[#allocation232_spill] sm:$0xff] }
 0x3b3   :  { %v7559_v20 = vmul.f32 %v10436_v52, %v13231_v54  ;;  %v14614_v52 = vld [vmem:[#allocation233_spill] sm:$0xff] }
 0x3b4   :  { %v13270_v13 = vadd.f32 %v7688_v51, %v7557_v10  ;;  %v7558_v35 = vmul.f32 %v10437_v19, %v13233_v47  ;;  %v9605_v56 = vpop.f32.mrb[10].mxu1  ;;  %v10208_v11 = vpop.f32.mrb[12].mxu0 }
 0x3b5   :  { %v10438_v33 = vadd.f32 %v10205_v45, %v9605_v56  ;;  %v3948_v3 = vpop.f32.mrb[11].mxu1  ;;  %9763 = vmatmul.mubr.f32.gmra.mrb[116].mxu1 %v14603_v50  ;;  %v6852_v24 = vpop.f32.mrb[13].mxu0  ;;  %10366 = vmatmul.mubr.f32.gmra.mrb[118].mxu0 %v14419_v0 }
 0x3b6   :  { %v7696_v37 = vadd.f32 %v7559_v20, %v7558_v35  ;;  %v10439_v39 = vadd.f32 %v6840_v31, %v3948_v3  ;;  %9765 = vmatprep.mubr.f32.mxu1 %v14604_v8  ;;  %10368 = vmatprep.mubr.f32.mxu0 %v14420_v2  ;;  %v14615_v20 = vld [vmem:[#allocation235_spill] sm:$0xff] }
 0x3b7   :  { %v7561_v12 = vmul.f32 %v10438_v33, %v13247_v17  ;;  %v14616_v33 = vld [vmem:[#allocation236_spill] sm:$0xff] }
 0x3b8   :  { %v7560_v62 = vmul.f32 %v10439_v39, %v13241_v29  ;;  %v9608_v42 = vpop.f32.mrb[12].mxu1  ;;  %v10211_v38 = vpop.f32.mrb[14].mxu0  ;;  %v14617_v39 = vld [vmem:[#allocation237_spill] sm:$0xff] }
 0x3b9   :  { %v10440_v40 = vadd.f32 %v10208_v11, %v9608_v42  ;;  %v3962_v36 = vpop.f32.mrb[13].mxu1  ;;  %9766 = vmatmul.mubr.f32.gmra.mrb[118].mxu1 %v14605_v49  ;;  %v6864_v1 = vpop.f32.mrb[15].mxu0  ;;  %10369 = vmatmul.mubr.f32.gmra.mrb[120].mxu0 %v14421_v7 }
 0x3ba   :  { %v7697_v0 = vadd.f32 %v7696_v37, %v7560_v62  ;;  %v10441_v61 = vadd.f32 %v6852_v24, %v3962_v36  ;;  %9768 = vmatprep.mubr.f32.mxu1 %v14606_v28  ;;  %10371 = vmatprep.mubr.f32.mxu0 %v14607_v21 }
 0x3bb   :  { %v7563_v2 = vmul.f32 %v10440_v40, %v13231_v54 }
 0x3bc   :  { %v13284_v41 = vadd.f32 %v7697_v0, %v7561_v12  ;;  %v7562_v57 = vmul.f32 %v10441_v61, %v13233_v47  ;;  %v9611_v55 = vpop.f32.mrb[14].mxu1  ;;  %v10214_v5 = vpop.f32.mrb[16].mxu0 }
 0x3bd   :  { %v10442_v27 = vadd.f32 %v10211_v38, %v9611_v55  ;;  %v3976_v48 = vpop.f32.mrb[15].mxu1  ;;  %9769 = vmatmul.mubr.f32.gmra.mrb[120].mxu1 %v14608_v15  ;;  %v6876_v7 = vpop.f32.mrb[17].mxu0  ;;  %10372 = vmatmul.mubr.f32.gmra.mrb[122].mxu0 %v14609_v22 }
 0x3be   :  { %v7705_v23 = vadd.f32 %v7563_v2, %v7562_v57  ;;  %v10443_v34 = vadd.f32 %v6864_v1, %v3976_v48  ;;  %9771 = vmatprep.mubr.f32.mxu1 %v14610_v18  ;;  %10374 = vmatprep.mubr.f32.mxu0 %v14611_v58  ;;  %v7681_v18 = vrot.slane %v13256_v26, 4 }
 0x3bf   :  { %v7565_v46 = vmul.f32 %v10442_v27, %v13247_v17 }
 0x3c0   :  { %v7564_v4 = vmul.f32 %v10443_v34, %v13241_v29  ;;  %v9614_v60 = vpop.f32.mrb[16].mxu1  ;;  %v10217_v32 = vpop.f32.mrb[18].mxu0 }
 0x3c1   :  { %v10444_v25 = vadd.f32 %v10214_v5, %v9614_v60  ;;  %v3990_v30 = vpop.f32.mrb[17].mxu1  ;;  %9772 = vmatmul.mubr.f32.gmra.mrb[122].mxu1 %v14612_v6  ;;  %v6888_v53 = vpop.f32.mrb[19].mxu0  ;;  %10375 = vmatmul.mubr.f32.gmra.mrb[124].mxu0 %v14613_v43 }
 0x3c2   :  { %v7706_v14 = vadd.f32 %v7705_v23, %v7564_v4  ;;  %v10445_v45 = vadd.f32 %v6876_v7, %v3990_v30  ;;  %9774 = vmatprep.mubr.f32.mxu1 %v14614_v52  ;;  %10377 = vmatprep.mubr.f32.mxu0 %v12738_v59  ;;  %v7690_v23 = vrot.slane %v13270_v13, 4 }
 0x3c3   :  { %v7567_v63 = vmul.f32 %v10444_v25, %v13231_v54  ;;  %v7699_v25 = vrot.slane %v13284_v41, 4 }
 0x3c4   :  { %v13298_v16 = vadd.f32 %v7706_v14, %v7565_v46  ;;  %v7566_v31 = vmul.f32 %v10445_v45, %v13233_v47  ;;  %v9617_v10 = vpop.f32.mrb[18].mxu1  ;;  %v10220_v51 = vpop.f32.mrb[20].mxu0  ;;  %v7691_v45 = vadd.f32 %v7690_v23, %v13270_v13 }
 0x3c5   :  { %v10446_v19 = vadd.f32 %v10217_v32, %v9617_v10  ;;  %v4004_v44 = vpop.f32.mrb[19].mxu1  ;;  %9775 = vmatmul.mubr.f32.gmra.mrb[124].mxu1 %v14615_v20  ;;  %v6900_v35 = vpop.f32.mrb[21].mxu0  ;;  %10378 = vmatmul.mubr.f32.gmra.mrb[126].mxu0 %v12742_v9 }
 0x3c6   :  { %v7714_v56 = vadd.f32 %v7567_v63, %v7566_v31  ;;  %v10447_v11 = vadd.f32 %v6888_v53, %v4004_v44  ;;  %9777 = vmatprep.mubr.f32.mxu1 %v14616_v33  ;;  %v7708_v30 = vrot.slane %v13298_v16, 4  ;;  %v7682_v63 = vadd.f32 %v7681_v18, %v13256_v26 }
 0x3c7   :  { %v7569_v62 = vmul.f32 %v10446_v19, %v13247_v17  ;;  %v7700_v44 = vadd.f32 %v7699_v25, %v13284_v41  ;;  %v7692_v13 = vrot.slane %v7691_v45, 2 }
 0x3c8   :  { %v7568_v59 = vmul.f32 %v10447_v11, %v13241_v29  ;;  %v9620_v3 = vpop.f32.mrb[20].mxu1  ;;  %v10223_v50 = vpop.f32.mrb[22].mxu0  ;;  %v7709_v20 = vadd.f32 %v7708_v30, %v13298_v16 }
 0x3c9   :  { %v10448_v24 = vadd.f32 %v10220_v51, %v9620_v3  ;;  %v4018_v37 = vpop.f32.mrb[21].mxu1  ;;  %9778 = vmatmul.mubr.f32.gmra.mrb[126].mxu1 %v14617_v39  ;;  %v6912_v8 = vpop.f32.mrb[23].mxu0 }
 0x3ca   :  { %v7715_v42 = vadd.f32 %v7714_v56, %v7568_v59  ;;  %v10449_v38 = vadd.f32 %v6900_v35, %v4018_v37  ;;  %v7710_v16 = vrot.slane %v7709_v20, 2 }
 0x3cb   :  { %v7571_v40 = vmul.f32 %v10448_v24, %v13231_v54  ;;  %v7683_v24 = vrot.slane %v7682_v63, 2 }
 0x3cc   :  { %v7716_v9 = vadd.f32 %v7715_v42, %v7569_v62  ;;  %v7570_v36 = vmul.f32 %v10449_v38, %v13233_v47  ;;  %v9623_v49 = vpop.f32.mrb[22].mxu1  ;;  %v10226_v1 = vpop.f32.mrb[24].mxu0  ;;  %v7701_v42 = vrot.slane %v7700_v44, 2 }
 0x3cd   :  { %v10450_v12 = vadd.f32 %v10223_v50, %v9623_v49  ;;  %v4032_v0 = vpop.f32.mrb[23].mxu1  ;;  %v6924_v61 = vpop.f32.mrb[25].mxu0 }
 0x3ce   :  { %v7723_v28 = vadd.f32 %v7571_v40, %v7570_v36  ;;  %v10451_v21 = vadd.f32 %v6912_v8, %v4032_v0  ;;  %v7717_v52 = vrot.slane %v7716_v9, 4  ;;  %v7693_v0 = vadd.f32 %v7692_v13, %v7691_v45 }
 0x3cf   :  { %v7573_v15 = vmul.f32 %v10450_v12, %v13247_v17 }
 0x3d0   :  { %v7572_v2 = vmul.f32 %v10451_v21, %v13241_v29  ;;  %v9626_v57 = vpop.f32.mrb[24].mxu1  ;;  %v10229_v55 = vpop.f32.mrb[26].mxu0  ;;  %v7718_v50 = vadd.f32 %v7717_v52, %v7716_v9  ;;  %v7684_v9 = vadd.f32 %v7683_v24, %v7682_v63 }
 0x3d1   :  { %v10452_v5 = vadd.f32 %v10226_v1, %v9626_v57  ;;  %v4046_v27 = vpop.f32.mrb[25].mxu1  ;;  %v6936_v48 = vpop.f32.mrb[27].mxu0 }
 0x3d2   :  { %v7724_v7 = vadd.f32 %v7723_v28, %v7572_v2  ;;  %v10453_v22 = vadd.f32 %v6924_v61, %v4046_v27  ;;  %v7719_v61 = vrot.slane %v7718_v50, 2  ;;  %v7711_v27 = vadd.f32 %v7710_v16, %v7709_v20 }
 0x3d3   :  { %v7575_v34 = vmul.f32 %v10452_v5, %v13231_v54  ;;  %v7702_v5 = vadd.f32 %v7701_v42, %v7700_v44 }
 0x3d4   :  { %v7725_v58 = vadd.f32 %v7724_v7, %v7573_v15  ;;  %v7574_v4 = vmul.f32 %v10453_v22, %v13233_v47  ;;  %v9629_v60 = vpop.f32.mrb[26].mxu1  ;;  %v10232_v32 = vpop.f32.mrb[28].mxu0 }
 0x3d5   :  { %v10454_v6 = vadd.f32 %v10229_v55, %v9629_v60  ;;  %v4060_v53 = vpop.f32.mrb[27].mxu1  ;;  %v6948_v43 = vpop.f32.mrb[29].mxu0 }
 0x3d6   :  { %v7732_v46 = vadd.f32 %v7575_v34, %v7574_v4  ;;  %v10455_v14 = vadd.f32 %v6936_v48, %v4060_v53  ;;  %v7726_v31 = vrot.slane %v7725_v58, 4  ;;  %v7720_v4 = vadd.f32 %v7719_v61, %v7718_v50 }
 0x3d7   :  { %v7577_v33 = vmul.f32 %v10454_v6, %v13247_v17 }
 0x3d8   :  { %v7576_v10 = vmul.f32 %v10455_v14, %v13241_v29  ;;  %v9632_v51 = vpop.f32.mrb[28].mxu1  ;;  %v10235_v19 = vpop.f32.mrb[30].mxu0  ;;  %v7727_v37 = vadd.f32 %v7726_v31, %v7725_v58  ;;  %v7694_v58 = vrot.slane %v7693_v0, 1  ;;  %v7712_v14 = vrot.slane %v7711_v27, 1 }
 0x3d9   :  { %v10456_v35 = vadd.f32 %v10232_v32, %v9632_v51  ;;  %v4074_v56 = vpop.f32.mrb[29].mxu1  ;;  %v6960_v11 = vpop.f32.mrb[31].mxu0  ;;  %v7685_v32 = vrot.slane %v7684_v9, 1  ;;  %v7721_v20 = vrot.slane %v7720_v4, 1 }
 0x3da   :  { %v7733_v59 = vadd.f32 %v7732_v46, %v7576_v10  ;;  %v10457_v3 = vadd.f32 %v6948_v43, %v4074_v56  ;;  %v7728_v28 = vrot.slane %v7727_v37, 2  ;;  %v7703_v46 = vrot.slane %v7702_v5, 1 }
 0x3db   :  { %v7579_v26 = vmul.f32 %v10456_v35, %v13231_v54  ;;  %v13329_v44 = vadd.f32 %v7694_v58, %v7693_v0  ;;  %v13331_v35 = vadd.f32 %v7685_v32, %v7684_v9  ;;  %v13336_v50 = vadd.f32 %v7712_v14, %v7711_v27 }
 0x3dc   :  { %v7734_v39 = vadd.f32 %v7733_v59, %v7577_v33  ;;  %v7578_v8 = vmul.f32 %v10457_v3, %v13233_v47  ;;  %v9635_v62 = vpop.f32.mrb[30].mxu1  ;;  %v10238_v41 = vpop.f32.mrb[32].mxu0  ;;  %v7729_v25 = vadd.f32 %v7728_v28, %v7727_v37  ;;  %v13334_v13 = vadd.f32 %v7703_v46, %v7702_v5 }
 0x3dd   :  { %v10458_v38 = vadd.f32 %v10235_v19, %v9635_v62  ;;  %v4088_v40 = vpop.f32.mrb[31].mxu1  ;;  %v6972_v36 = vpop.f32.mrb[33].mxu0 }
 0x3de   :  { %v7735_v49 = vrot.slane %v7734_v39, 4  ;;  %v7741_v1 = vadd.f32 %v7579_v26, %v7578_v8  ;;  %v10459_v12 = vadd.f32 %v6960_v11, %v4088_v40  ;;  %v7730_v3 = vrot.slane %v7729_v25, 1 }
 0x3df   :  { %v7581_v23 = vmul.f32 %v10458_v38, %v13247_v17  ;;  %v13340_v38 = vadd.f32 %v7721_v20, %v7720_v4  ;;  %v7999_v40 = vsel %vm7998_vm1, %v13329_v44, %v13331_v35 }
 0x3e0   :  { %v7736_v21 = vadd.f32 %v7735_v49, %v7734_v39  ;;  %v7580_v2 = vmul.f32 %v10459_v12, %v13241_v29  ;;  %v9638_v57 = vpop.f32.mrb[32].mxu1  ;;  %v10241_v55 = vpop.f32.mrb[34].mxu0  ;;  %v13348_v0 = vadd.f32 %v7730_v3, %v7729_v25 }
 0x3e1   :  { %v10460_v48 = vadd.f32 %v10238_v41, %v9638_v57  ;;  %v4102_v15 = vpop.f32.mrb[33].mxu1  ;;  %v6984_v7 = vpop.f32.mrb[35].mxu0  ;;  %v8001_v57 = vsel %vm8000_vm2, %v13334_v13, %v7999_v40 }
 0x3e2   :  { %v7737_v22 = vrot.slane %v7736_v21, 2  ;;  %v7742_v34 = vadd.f32 %v7741_v1, %v7580_v2  ;;  %v10461_v18 = vadd.f32 %v6972_v36, %v4102_v15 }
 0x3e3   :  { %v7583_v60 = vmul.f32 %v10460_v48, %v13231_v54  ;;  %v8003_v48 = vsel %vm8002_vm3, %v13336_v50, %v8001_v57 }
 0x3e4   :  { %v7743_v30 = vadd.f32 %v7742_v34, %v7581_v23  ;;  %v7582_v6 = vmul.f32 %v10461_v18, %v13233_v47  ;;  %v9641_v53 = vpop.f32.mrb[34].mxu1  ;;  %v10244_v43 = vpop.f32.mrb[36].mxu0  ;;  %v7738_v31 = vadd.f32 %v7737_v22, %v7736_v21  ;;  %v8005_v15 = vsel %vm8004_vm4, %v13340_v38, %v8003_v48 }
 0x3e5   :  { %v10462_v45 = vadd.f32 %v10241_v55, %v9641_v53  ;;  %v4116_v52 = vpop.f32.mrb[35].mxu1  ;;  %v6996_v63 = vpop.f32.mrb[37].mxu0  ;;  %v8007_v18 = vsel %vm8006_vm5, %v13348_v0, %v8005_v15 }
 0x3e6   :  { %v7744_v10 = vrot.slane %v7743_v30, 4  ;;  %v7750_v51 = vadd.f32 %v7583_v60, %v7582_v6  ;;  %v10463_v19 = vadd.f32 %v6984_v7, %v4116_v52  ;;  %v7739_v39 = vrot.slane %v7738_v31, 1 }
 0x3e7   :  { %v7585_v8 = vmul.f32 %v10462_v45, %v13247_v17 }
 0x3e8   :  { %v7745_v56 = vadd.f32 %v7744_v10, %v7743_v30  ;;  %v7584_v11 = vmul.f32 %v10463_v19, %v13241_v29  ;;  %v9644_v33 = vpop.f32.mrb[36].mxu1  ;;  %v10247_v59 = vpop.f32.mrb[38].mxu0  ;;  %v13350_v2 = vadd.f32 %v7739_v39, %v7738_v31 }
 0x3e9   :  { %v10464_v26 = vadd.f32 %v10244_v43, %v9644_v33  ;;  %v4130_v24 = vpop.f32.mrb[37].mxu1  ;;  %v7008_v37 = vpop.f32.mrb[39].mxu0 }
 0x3ea   :  { %v7751_v62 = vadd.f32 %v7750_v51, %v7584_v11  ;;  %v10465_v41 = vadd.f32 %v6996_v63, %v4130_v24  ;;  %v7746_v42 = vrot.slane %v7745_v56, 2  ;;  %v8009_v32 = vsel %vm8008_vm6, %v13350_v2, %v8007_v18 }
 0x3eb   :  { %v7587_v16 = vmul.f32 %v10464_v26, %v13231_v54 }
 0x3ec   :  { %v13345_v36 = vadd.f32 %v7751_v62, %v7585_v8  ;;  %v7586_v49 = vmul.f32 %v10465_v41, %v13233_v47  ;;  %v9647_v1 = vpop.f32.mrb[38].mxu1  ;;  %v10250_v12 = vpop.f32.mrb[40].mxu0  ;;  %v7747_v61 = vadd.f32 %v7746_v42, %v7745_v56 }
 0x3ed   :  { %v10466_v9 = vadd.f32 %v10247_v59, %v9647_v1  ;;  %v4144_v28 = vpop.f32.mrb[39].mxu1  ;;  %v7020_v21 = vpop.f32.mrb[41].mxu0 }
 0x3ee   :  { %v7759_v55 = vadd.f32 %v7587_v16, %v7586_v49  ;;  %v10467_v5 = vadd.f32 %v7008_v37, %v4144_v28  ;;  %v7748_v27 = vrot.slane %v7747_v61, 1 }
 0x3ef   :  { %v7589_v25 = vmul.f32 %v10466_v9, %v13247_v17 }
 0x3f0   :  { %v7588_v7 = vmul.f32 %v10467_v5, %v13241_v29  ;;  %v9650_v22 = vpop.f32.mrb[40].mxu1  ;;  %v10253_v23 = vpop.f32.mrb[42].mxu0  ;;  %v13359_v34 = vadd.f32 %v7748_v27, %v7747_v61 }
 0x3f1   :  { %v10468_v58 = vadd.f32 %v10250_v12, %v9650_v22  ;;  %v4158_v4 = vpop.f32.mrb[41].mxu1  ;;  %v7032_v60 = vpop.f32.mrb[43].mxu0 }
 0x3f2   :  { %v7760_v30 = vadd.f32 %v7759_v55, %v7588_v7  ;;  %v10469_v6 = vadd.f32 %v7020_v21, %v4158_v4  ;;  %v13368_v53 = vsel %vm8010_vm7, %v13359_v34, %v8009_v32 }
 0x3f3   :  { %v7591_v43 = vmul.f32 %v10468_v58, %v13231_v54  ;;  %8037 = vadd.xlane.f32.xlu0 %v13368_v53 }
 0x3f4   :  { %v13372_v46 = vadd.f32 %v7760_v30, %v7589_v25  ;;  %v7590_v14 = vmul.f32 %v10469_v6, %v13233_v47  ;;  %v9653_v45 = vpop.f32.mrb[42].mxu1  ;;  %v10256_v52 = vpop.f32.mrb[44].mxu0 }
 0x3f5   :  { %v10470_v63 = vadd.f32 %v10253_v23, %v9653_v45  ;;  %v4172_v31 = vpop.f32.mrb[43].mxu1  ;;  %v7044_v10 = vpop.f32.mrb[45].mxu0 }
 0x3f6   :  { %v7768_v51 = vadd.f32 %v7591_v43, %v7590_v14  ;;  %v10471_v19 = vadd.f32 %v7032_v60, %v4172_v31 }
 0x3f7   :  { %v7593_v26 = vmul.f32 %v10470_v63, %v13247_v17 }
 0x3f8   :  { %v7592_v20 = vmul.f32 %v10471_v19, %v13241_v29  ;;  %v9656_v56 = vpop.f32.mrb[44].mxu1  ;;  %v10259_v11 = vpop.f32.mrb[46].mxu0 }
 0x3f9   :  { %v10472_v33 = vadd.f32 %v10256_v52, %v9656_v56  ;;  %v4186_v59 = vpop.f32.mrb[45].mxu1  ;;  %v7056_v3 = vpop.f32.mrb[47].mxu0 }
 0x3fa   :  { %v7769_v24 = vadd.f32 %v7768_v51, %v7592_v20  ;;  %v10473_v37 = vadd.f32 %v7044_v10, %v4186_v59 }
 0x3fb   :  { %v7595_v39 = vmul.f32 %v10472_v33, %v13231_v54 }
 0x3fc   :  { %v13378_v8 = vadd.f32 %v7769_v24, %v7593_v26  ;;  %v7594_v62 = vmul.f32 %v10473_v37, %v13233_v47  ;;  %v9659_v41 = vpop.f32.mrb[46].mxu1  ;;  %v10262_v42 = vpop.f32.mrb[48].mxu0 }
 0x3fd   :  { %v10474_v16 = vadd.f32 %v10259_v11, %v9659_v41  ;;  %v4200_v40 = vpop.f32.mrb[47].mxu1  ;;  %v7068_v49 = vpop.f32.mrb[49].mxu0 }
 0x3fe   :  { %v7777_v1 = vadd.f32 %v7595_v39, %v7594_v62  ;;  %v10475_v12 = vadd.f32 %v7056_v3, %v4200_v40 }
 0x3ff   :  { %v7597_v5 = vmul.f32 %v10474_v16, %v13247_v17 }
 0x400   :  { %v7596_v61 = vmul.f32 %v10475_v12, %v13241_v29  ;;  %v9662_v9 = vpop.f32.mrb[48].mxu1  ;;  %v10265_v28 = vpop.f32.mrb[50].mxu0  ;;  %v7762_v12 = vrot.slane %v13372_v46, 4 }
 0x401   :  { %v10476_v21 = vadd.f32 %v10262_v42, %v9662_v9  ;;  %v4214_v57 = vpop.f32.mrb[49].mxu1  ;;  %v7080_v55 = vpop.f32.mrb[51].mxu0  ;;  %v7753_v9 = vrot.slane %v13345_v36, 4 }
 0x402   :  { %v7778_v27 = vadd.f32 %v7777_v1, %v7596_v61  ;;  %v10477_v48 = vadd.f32 %v7068_v49, %v4214_v57 }
 0x403   :  { %v7599_v15 = vmul.f32 %v10476_v21, %v13231_v54 }
 0x404   :  { %v7779_v7 = vadd.f32 %v7778_v27, %v7597_v5  ;;  %v7598_v22 = vmul.f32 %v10477_v48, %v13233_v47  ;;  %v9665_v23 = vpop.f32.mrb[50].mxu1  ;;  %v10268_v18 = vpop.f32.mrb[52].mxu0  ;;  %v7771_v5 = vrot.slane %v13378_v8, 4 }
 0x405   :  { %v10478_v58 = vadd.f32 %v10265_v28, %v9665_v23  ;;  %v4228_v4 = vpop.f32.mrb[51].mxu1  ;;  %v7092_v60 = vpop.f32.mrb[53].mxu0 }
 0x406   :  { %v7786_v32 = vadd.f32 %v7599_v15, %v7598_v22  ;;  %v10479_v25 = vadd.f32 %v7080_v55, %v4228_v4  ;;  %v7780_v27 = vrot.slane %v7779_v7, 4 }
 0x407   :  { %v7601_v63 = vmul.f32 %v10478_v58, %v13247_v17  ;;  %v7763_v58 = vadd.f32 %v7762_v12, %v13372_v46 }
 0x408   :  { %v7600_v30 = vmul.f32 %v10479_v25, %v13241_v29  ;;  %v9668_v6 = vpop.f32.mrb[52].mxu1  ;;  %v10271_v43 = vpop.f32.mrb[54].mxu0 }
 0x409   :  { %v10480_v14 = vadd.f32 %v10268_v18, %v9668_v6  ;;  %v4242_v45 = vpop.f32.mrb[53].mxu1  ;;  %v7104_v52 = vpop.f32.mrb[55].mxu0 }
 0x40a   :  { %v7787_v31 = vadd.f32 %v7786_v32, %v7600_v30  ;;  %v10481_v10 = vadd.f32 %v7092_v60, %v4242_v45  ;;  %v7754_v60 = vadd.f32 %v7753_v9, %v13345_v36 }
 0x40b   :  { %v7603_v51 = vmul.f32 %v10480_v14, %v13231_v54  ;;  %v7781_v14 = vadd.f32 %v7780_v27, %v7779_v7 }
 0x40c   :  { %v7788_v19 = vadd.f32 %v7787_v31, %v7601_v63  ;;  %v7602_v20 = vmul.f32 %v10481_v10, %v13233_v47  ;;  %v9671_v56 = vpop.f32.mrb[54].mxu1  ;;  %v10274_v11 = vpop.f32.mrb[56].mxu0  ;;  %v7755_v36 = vrot.slane %v7754_v60, 2 }
 0x40d   :  { %v10482_v33 = vadd.f32 %v10271_v43, %v9671_v56  ;;  %v4256_v59 = vpop.f32.mrb[55].mxu1  ;;  %v7116_v3 = vpop.f32.mrb[57].mxu0  ;;  %v7772_v43 = vadd.f32 %v7771_v5, %v13378_v8  ;;  %v7782_v7 = vrot.slane %v7781_v14, 2 }
 0x40e   :  { %v7795_v26 = vadd.f32 %v7603_v51, %v7602_v20  ;;  %v10483_v24 = vadd.f32 %v7104_v52, %v4256_v59  ;;  %v7789_v4 = vrot.slane %v7788_v19, 4  ;;  %v7764_v20 = vrot.slane %v7763_v58, 2 }
 0x40f   :  { %v7605_v40 = vmul.f32 %v10482_v33, %v13247_v17  ;;  %v7773_v8 = vrot.slane %v7772_v43, 2 }
 0x410   :  { %v7604_v37 = vmul.f32 %v10483_v24, %v13241_v29  ;;  %v9674_v39 = vpop.f32.mrb[56].mxu1  ;;  %v10277_v62 = vpop.f32.mrb[58].mxu0  ;;  %v7790_v46 = vadd.f32 %v7789_v4, %v7788_v19  ;;  %v7756_v19 = vadd.f32 %v7755_v36, %v7754_v60 }
 0x411   :  { %v10484_v41 = vadd.f32 %v10274_v11, %v9674_v39  ;;  %v4270_v42 = vpop.f32.mrb[57].mxu1  ;;  %v7128_v16 = vpop.f32.mrb[59].mxu0 }
 0x412   :  { %v7796_v49 = vadd.f32 %v7795_v26, %v7604_v37  ;;  %v10485_v1 = vadd.f32 %v7116_v3, %v4270_v42  ;;  %v7757_v4 = vrot.slane %v7756_v19, 1 }
 0x413   :  { %v7607_v61 = vmul.f32 %v10484_v41, %v13231_v54 }
 0x414   :  { %v7797_v28 = vadd.f32 %v7796_v49, %v7605_v40  ;;  %v7606_v21 = vmul.f32 %v10485_v1, %v13233_v47  ;;  %v9677_v57 = vpop.f32.mrb[58].mxu1  ;;  %v10280_v55 = vpop.f32.mrb[60].mxu0  ;;  %v7791_v40 = vrot.slane %v7790_v46, 2  ;;  %v13409_v36 = vadd.f32 %v7757_v4, %v7756_v19 }
 0x415   :  { %v10486_v48 = vadd.f32 %v10277_v62, %v9677_v57  ;;  %v4284_v15 = vpop.f32.mrb[59].mxu1  ;;  %v7140_v22 = vpop.f32.mrb[61].mxu0 }
 0x416   :  { %v7804_v23 = vadd.f32 %v7607_v61, %v7606_v21  ;;  %v10487_v18 = vadd.f32 %v7128_v16, %v4284_v15  ;;  %v7798_v32 = vrot.slane %v7797_v28, 4  ;;  %v7765_v16 = vadd.f32 %v7764_v20, %v7763_v58 }
 0x417   :  { %v7609_v31 = vmul.f32 %v10486_v48, %v13247_v17  ;;  %v7783_v21 = vadd.f32 %v7782_v7, %v7781_v14 }
 0x418   :  { %v7608_v25 = vmul.f32 %v10487_v18, %v13241_v29  ;;  %v9680_v30 = vpop.f32.mrb[60].mxu1  ;;  %v10283_v6 = vpop.f32.mrb[62].mxu0  ;;  %v7799_v11 = vadd.f32 %v7798_v32, %v7797_v28  ;;  %v7774_v28 = vadd.f32 %v7773_v8, %v7772_v43  ;;  %v7792_v18 = vadd.f32 %v7791_v40, %v7790_v46 }
 0x419   :  { %v10488_v45 = vadd.f32 %v10280_v55, %v9680_v30  ;;  %v4298_v52 = vpop.f32.mrb[61].mxu1  ;;  %v7152_v63 = vpop.f32.mrb[63].mxu0  ;;  %v7784_v14 = vrot.slane %v7783_v21, 1 }
 0x41a   :  { %v7805_v10 = vadd.f32 %v7804_v23, %v7608_v25  ;;  %v10489_v51 = vadd.f32 %v7140_v22, %v4298_v52  ;;  %v7800_v49 = vrot.slane %v7799_v11, 2  ;;  %v7766_v23 = vrot.slane %v7765_v16, 1 }
 0x41b   :  { %v7611_v56 = vmul.f32 %v10488_v45, %v13231_v54  ;;  %v7775_v43 = vrot.slane %v7774_v28, 1  ;;  %v7793_v46 = vrot.slane %v7792_v18, 1  ;;  %v13414_v7 = vadd.f32 %v7784_v14, %v7783_v21 }
 0x41c   :  { %v7806_v33 = vadd.f32 %v7805_v10, %v7609_v31  ;;  %v7610_v59 = vmul.f32 %v10489_v51, %v13233_v47  ;;  %v9683_v3 = vpop.f32.mrb[62].mxu1  ;;  %v10286_v26 = vpop.f32.mrb[64].mxu0  ;;  %v7801_v60 = vadd.f32 %v7800_v49, %v7799_v11 }
 0x41d   :  { %v10490_v24 = vadd.f32 %v10283_v6, %v9683_v3  ;;  %v4312_v37 = vpop.f32.mrb[63].mxu1  ;;  %v7164_v39 = vpop.f32.mrb[65].mxu0  ;;  %v13412_v8 = vadd.f32 %v7775_v43, %v7774_v28  ;;  %v13418_v49 = vadd.f32 %v7793_v46, %v7792_v18 }
 0x41e   :  { %v7807_v62 = vrot.slane %v7806_v33, 4  ;;  %v7813_v41 = vadd.f32 %v7611_v56, %v7610_v59  ;;  %v10491_v42 = vadd.f32 %v7152_v63, %v4312_v37  ;;  %v13407_v56 = vadd.f32 %v7766_v23, %v7765_v16 }
 0x41f   :  { %v7613_v48 = vmul.f32 %v10490_v24, %v13247_v17 }
 0x420   :  { %v7808_v1 = vadd.f32 %v7807_v62, %v7806_v33  ;;  %v7612_v12 = vmul.f32 %v10491_v42, %v13241_v29  ;;  %v9686_v61 = vpop.f32.mrb[64].mxu1  ;;  %v10289_v9 = vpop.f32.mrb[66].mxu0 }
 0x421   :  { %v10492_v57 = vadd.f32 %v10286_v26, %v9686_v61  ;;  %v4326_v55 = vpop.f32.mrb[65].mxu1  ;;  %v7176_v5 = vpop.f32.mrb[67].mxu0  ;;  %v7802_v26 = vrot.slane %v7801_v60, 1 }
 0x422   :  { %v7809_v27 = vrot.slane %v7808_v1, 2  ;;  %v7814_v15 = vadd.f32 %v7813_v41, %v7612_v12  ;;  %v10493_v22 = vadd.f32 %v7164_v39, %v4326_v55 }
 0x423   :  { %v7615_v58 = vmul.f32 %v10492_v57, %v13231_v54  ;;  %v13426_v21 = vadd.f32 %v7802_v26, %v7801_v60 }
 0x424   :  { %v7815_v32 = vadd.f32 %v7814_v15, %v7613_v48  ;;  %v7614_v25 = vmul.f32 %v10493_v22, %v13233_v47  ;;  %v9689_v30 = vpop.f32.mrb[66].mxu1  ;;  %v10292_v6 = vpop.f32.mrb[68].mxu0  ;;  %v7810_v31 = vadd.f32 %v7809_v27, %v7808_v1  ;;  %v8012_v1 = vsel %vm7998_vm1, %v13407_v56, %v13409_v36 }
 0x425   :  { %v10494_v45 = vadd.f32 %v10289_v9, %v9689_v30  ;;  %v4340_v52 = vpop.f32.mrb[67].mxu1  ;;  %v7188_v63 = vpop.f32.mrb[69].mxu0  ;;  %v8013_v15 = vsel %vm8000_vm2, %v13412_v8, %v8012_v1 }
 0x426   :  { %v7816_v10 = vrot.slane %v7815_v32, 4  ;;  %v7822_v51 = vadd.f32 %v7615_v58, %v7614_v25  ;;  %v10495_v20 = vadd.f32 %v7176_v5, %v4340_v52  ;;  %v7811_v62 = vrot.slane %v7810_v31, 1 }
 0x427   :  { %v7617_v41 = vmul.f32 %v10494_v45, %v13247_v17  ;;  %v8014_v58 = vsel %vm8002_vm3, %v13414_v7, %v8013_v15 }
 0x428   :  { %v7817_v11 = vadd.f32 %v7816_v10, %v7815_v32  ;;  %v7616_v33 = vmul.f32 %v10495_v20, %v13241_v29  ;;  %v9692_v59 = vpop.f32.mrb[68].mxu1  ;;  %v10295_v3 = vpop.f32.mrb[70].mxu0  ;;  %v13428_v48 = vadd.f32 %v7811_v62, %v7810_v31  ;;  %v8015_v4 = vsel %vm8004_vm4, %v13418_v49, %v8014_v58 }
 0x429   :  { %v10496_v24 = vadd.f32 %v10292_v6, %v9692_v59  ;;  %v4354_v37 = vpop.f32.mrb[69].mxu1  ;;  %v7200_v39 = vpop.f32.mrb[71].mxu0  ;;  %v8016_v6 = vsel %vm8006_vm5, %v13426_v21, %v8015_v4 }
 0x42a   :  { %v7823_v42 = vadd.f32 %v7822_v51, %v7616_v33  ;;  %v10497_v16 = vadd.f32 %v7188_v63, %v4354_v37  ;;  %v7818_v40 = vrot.slane %v7817_v11, 2  ;;  %v8017_v52 = vsel %vm8008_vm6, %v13428_v48, %v8016_v6 }
 0x42b   :  { %v7619_v19 = vmul.f32 %v10496_v24, %v13231_v54 }
 0x42c   :  { %v13423_v12 = vadd.f32 %v7823_v42, %v7617_v41  ;;  %v7618_v61 = vmul.f32 %v10497_v16, %v13233_v47  ;;  %v9695_v9 = vpop.f32.mrb[70].mxu1  ;;  %v10298_v28 = vpop.f32.mrb[72].mxu0  ;;  %v7819_v57 = vadd.f32 %v7818_v40, %v7817_v11 }
 0x42d   :  { %v10498_v55 = vadd.f32 %v10295_v3, %v9695_v9  ;;  %v4368_v5 = vpop.f32.mrb[71].mxu1  ;;  %v7212_v27 = vpop.f32.mrb[73].mxu0  ;;  %v13455_v9 = vld [vmem:[#allocation7 + $0x8] sm:$0xff] }
 0x42e   :  { %v7831_v22 = vadd.f32 %v7619_v19, %v7618_v61  ;;  %v10499_v23 = vadd.f32 %v7200_v39, %v4368_v5  ;;  %v7820_v18 = vrot.slane %v7819_v57, 1 }
 0x42f   :  { %v7621_v63 = vmul.f32 %v10498_v55, %v13247_v17 }
 0x430   :  { %v7620_v60 = vmul.f32 %v10499_v23, %v13241_v29  ;;  %v9698_v32 = vpop.f32.mrb[72].mxu1  ;;  %v10301_v25 = vpop.f32.mrb[74].mxu0  ;;  %v13437_v30 = vadd.f32 %v7820_v18, %v7819_v57  ;;  %v13460_v57 = vld [vmem:[#allocation7] sm:$0xff] }
 0x431   :  { %v10500_v43 = vadd.f32 %v10298_v28, %v9698_v32  ;;  %v4382_v14 = vpop.f32.mrb[73].mxu1  ;;  %v7224_v45 = vpop.f32.mrb[75].mxu0 }
 0x432   :  { %v7832_v31 = vadd.f32 %v7831_v22, %v7620_v60  ;;  %v10501_v10 = vadd.f32 %v7212_v27, %v4382_v14  ;;  %v13446_v51 = vsel %vm8010_vm7, %v13437_v30, %v8017_v52 }
 0x433   :  { %v7623_v20 = vmul.f32 %v10500_v43, %v13231_v54  ;;  %8039 = vadd.xlane.f32.xlu0 %v13446_v51  ;;  %v13466_v43 = vld [vmem:[#allocation7 + $0x18] sm:$0xff] }
 0x434   :  { %v13450_v46 = vadd.f32 %v7832_v31, %v7621_v63  ;;  %v7622_v11 = vmul.f32 %v10501_v10, %v13233_v47  ;;  %v9701_v33 = vpop.f32.mrb[74].mxu1  ;;  %v10304_v59 = vpop.f32.mrb[76].mxu0 }
 0x435   :  { %v10502_v3 = vadd.f32 %v10301_v25, %v9701_v33  ;;  %v4396_v26 = vpop.f32.mrb[75].mxu1  ;;  %v7236_v24 = vpop.f32.mrb[77].mxu0 }
 0x436   :  { %v7840_v37 = vadd.f32 %v7623_v20, %v7622_v11  ;;  %v10503_v39 = vadd.f32 %v7224_v45, %v4396_v26 }
 0x437   :  { %v7625_v19 = vmul.f32 %v10502_v3, %v13247_v17  ;;  %v13463_v17 = vld [vmem:[#allocation7 + $0x10] sm:$0xff] }
 0x438   :  { %v7624_v62 = vmul.f32 %v10503_v39, %v13241_v29  ;;  %v9704_v41 = vpop.f32.mrb[76].mxu1  ;;  %v10307_v42 = vpop.f32.mrb[78].mxu0 }
 0x439   :  { %v10504_v16 = vadd.f32 %v10304_v59, %v9704_v41  ;;  %v4410_v40 = vpop.f32.mrb[77].mxu1  ;;  %v7248_v54 = vpop.f32.mrb[79].mxu0 }
 0x43a   :  { %v7841_v1 = vadd.f32 %v7840_v37, %v7624_v62  ;;  %v10505_v61 = vadd.f32 %v7236_v24, %v4410_v40 }
 0x43b   :  { %v7627_v47 = vmul.f32 %v13455_v9, %v10504_v16 }
 0x43c   :  { %v13458_v28 = vadd.f32 %v7841_v1, %v7625_v19  ;;  %v7626_v55 = vmul.f32 %v13460_v57, %v10505_v61  ;;  %v9707_v29 = vpop.f32.mrb[78].mxu1  ;;  %v10310_v5 = vpop.f32.mrb[80].mxu0 }
 0x43d   :  { %v10506_v27 = vadd.f32 %v10307_v42, %v9707_v29  ;;  %v4424_v15 = vpop.f32.mrb[79].mxu1  ;;  %v7260_v22 = vpop.f32.mrb[81].mxu0 }
 0x43e   :  { %v7849_v23 = vadd.f32 %v7627_v47, %v7626_v55  ;;  %v10507_v18 = vadd.f32 %v7248_v54, %v4424_v15 }
 0x43f   :  { %v7629_v14 = vmul.f32 %v13466_v43, %v10506_v27 }
 0x440   :  { %v7628_v58 = vmul.f32 %v13463_v17, %v10507_v18  ;;  %v9710_v4 = vpop.f32.mrb[80].mxu1  ;;  %v10313_v60 = vpop.f32.mrb[82].mxu0 }
 0x441   :  { %v10508_v32 = vadd.f32 %v10310_v5, %v9710_v4  ;;  %v4438_v25 = vpop.f32.mrb[81].mxu1  ;;  %v7272_v6 = vpop.f32.mrb[83].mxu0 }
 0x442   :  { %v7850_v45 = vadd.f32 %v7849_v23, %v7628_v58  ;;  %v10509_v52 = vadd.f32 %v7260_v22, %v4438_v25 }
 0x443   :  { %v7631_v63 = vmul.f32 %v13455_v9, %v10508_v32 }
 0x444   :  { %v7851_v31 = vadd.f32 %v7850_v45, %v7629_v14  ;;  %v7630_v10 = vmul.f32 %v13460_v57, %v10509_v52  ;;  %v9713_v20 = vpop.f32.mrb[82].mxu1  ;;  %v10316_v11 = vpop.f32.mrb[84].mxu0  ;;  %v7834_v52 = vrot.slane %v13450_v46, 4 }
 0x445   :  { %v10510_v33 = vadd.f32 %v10313_v60, %v9713_v20  ;;  %v4452_v59 = vpop.f32.mrb[83].mxu1  ;;  %v7284_v3 = vpop.f32.mrb[85].mxu0 }
 0x446   :  { %v7858_v26 = vadd.f32 %v7631_v63, %v7630_v10  ;;  %v10511_v24 = vadd.f32 %v7272_v6, %v4452_v59  ;;  %v7825_v10 = vrot.slane %v13423_v12, 4 }
 0x447   :  { %v7633_v40 = vmul.f32 %v13466_v43, %v10510_v33 }
 0x448   :  { %v7632_v37 = vmul.f32 %v13463_v17, %v10511_v24  ;;  %v9716_v39 = vpop.f32.mrb[84].mxu1  ;;  %v10319_v62 = vpop.f32.mrb[86].mxu0 }
 0x449   :  { %v10512_v41 = vadd.f32 %v10316_v11, %v9716_v39  ;;  %v4466_v42 = vpop.f32.mrb[85].mxu1  ;;  %v7296_v16 = vpop.f32.mrb[87].mxu0 }
 0x44a   :  { %v7859_v54 = vadd.f32 %v7858_v26, %v7632_v37  ;;  %v10513_v19 = vadd.f32 %v7284_v3, %v4466_v42  ;;  %v7843_v3 = vrot.slane %v13458_v28, 4  ;;  %v7852_v26 = vrot.slane %v7851_v31, 4 }
 0x44b   :  { %v7635_v1 = vmul.f32 %v13455_v9, %v10512_v41  ;;  %v7835_v42 = vadd.f32 %v7834_v52, %v13450_v46 }
 0x44c   :  { %v7860_v61 = vadd.f32 %v7859_v54, %v7633_v40  ;;  %v7634_v47 = vmul.f32 %v13460_v57, %v10513_v19  ;;  %v9719_v55 = vpop.f32.mrb[86].mxu1  ;;  %v10322_v29 = vpop.f32.mrb[88].mxu0  ;;  %v7826_v40 = vadd.f32 %v7825_v10, %v13423_v12 }
 0x44d   :  { %v10514_v5 = vadd.f32 %v10319_v62, %v9719_v55  ;;  %v4480_v27 = vpop.f32.mrb[87].mxu1  ;;  %v7308_v15 = vpop.f32.mrb[89].mxu0  ;;  %v7844_v55 = vadd.f32 %v7843_v3, %v13458_v28 }
 0x44e   :  { %v7867_v22 = vadd.f32 %v7635_v1, %v7634_v47  ;;  %v10515_v23 = vadd.f32 %v7296_v16, %v4480_v27  ;;  %v7861_v16 = vrot.slane %v7860_v61, 4  ;;  %v7827_v12 = vrot.slane %v7826_v40, 2 }
 0x44f   :  { %v7637_v6 = vmul.f32 %v13466_v43, %v10514_v5  ;;  %v7845_v28 = vrot.slane %v7844_v55, 2 }
 0x450   :  { %v7636_v18 = vmul.f32 %v13463_v17, %v10515_v23  ;;  %v9722_v58 = vpop.f32.mrb[88].mxu1  ;;  %v10325_v4 = vpop.f32.mrb[90].mxu0  ;;  %v7862_v46 = vadd.f32 %v7861_v16, %v7860_v61  ;;  %v7828_v61 = vadd.f32 %v7827_v12, %v7826_v40 }
 0x451   :  { %v10516_v60 = vadd.f32 %v10322_v29, %v9722_v58  ;;  %v4494_v32 = vpop.f32.mrb[89].mxu1  ;;  %v7320_v25 = vpop.f32.mrb[91].mxu0  ;;  %v7853_v29 = vadd.f32 %v7852_v26, %v7851_v31  ;;  %v7836_v58 = vrot.slane %v7835_v42, 2 }
 0x452   :  { %v7868_v14 = vadd.f32 %v7867_v22, %v7636_v18  ;;  %v10517_v45 = vadd.f32 %v7308_v15, %v4494_v32  ;;  %v7863_v3 = vrot.slane %v7862_v46, 2 }
 0x453   :  { %v7639_v63 = vmul.f32 %v13455_v9, %v10516_v60  ;;  %v7854_v31 = vrot.slane %v7853_v29, 2 }
 0x454   :  { %v7869_v20 = vadd.f32 %v7868_v14, %v7637_v6  ;;  %v7638_v11 = vmul.f32 %v13460_v57, %v10517_v45  ;;  %v9725_v33 = vpop.f32.mrb[90].mxu1  ;;  %v10328_v59 = vpop.f32.mrb[92].mxu0 }
 0x455   :  { %v10518_v24 = vadd.f32 %v10325_v4, %v9725_v33  ;;  %v4508_v37 = vpop.f32.mrb[91].mxu1  ;;  %v7332_v39 = vpop.f32.mrb[93].mxu0 }
 0x456   :  { %v7876_v62 = vadd.f32 %v7639_v63, %v7638_v11  ;;  %v10519_v41 = vadd.f32 %v7320_v25, %v4508_v37  ;;  %v7870_v54 = vrot.slane %v7869_v20, 4 }
 0x457   :  { %v7641_v22 = vmul.f32 %v13466_v43, %v10518_v24 }
 0x458   :  { %v7640_v19 = vmul.f32 %v13463_v17, %v10519_v41  ;;  %v9728_v1 = vpop.f32.mrb[92].mxu1  ;;  %v10331_v47 = vpop.f32.mrb[94].mxu0  ;;  %v7871_v60 = vadd.f32 %v7870_v54, %v7869_v20  ;;  %v7855_v41 = vadd.f32 %v7854_v31, %v7853_v29 }
 0x459   :  { %v10520_v5 = vadd.f32 %v10328_v59, %v9728_v1  ;;  %v4522_v27 = vpop.f32.mrb[93].mxu1  ;;  %v7344_v15 = vpop.f32.mrb[95].mxu0  ;;  %v7837_v59 = vadd.f32 %v7836_v58, %v7835_v42  ;;  %v7864_v42 = vadd.f32 %v7863_v3, %v7862_v46 }
 0x45a   :  { %v7877_v23 = vadd.f32 %v7876_v62, %v7640_v19  ;;  %v10521_v18 = vadd.f32 %v7332_v39, %v4522_v27  ;;  %v7872_v26 = vrot.slane %v7871_v60, 2  ;;  %v7846_v62 = vadd.f32 %v7845_v28, %v7844_v55 }
 0x45b   :  { %v7643_v4 = vmul.f32 %v13455_v9, %v10520_v5  ;;  %v7856_v12 = vrot.slane %v7855_v41, 1  ;;  %v7865_v46 = vrot.slane %v7864_v42, 1 }
 0x45c   :  { %v7878_v32 = vadd.f32 %v7877_v23, %v7641_v22  ;;  %v7642_v25 = vmul.f32 %v13460_v57, %v10521_v18  ;;  %v9731_v6 = vpop.f32.mrb[94].mxu1  ;;  %v10334_v14 = vpop.f32.mrb[96].mxu0  ;;  %v7829_v22 = vrot.slane %v7828_v61, 1  ;;  %v7873_v23 = vadd.f32 %v7872_v26, %v7871_v60 }
 0x45d   :  { %v10522_v45 = vadd.f32 %v10331_v47, %v9731_v6  ;;  %v4536_v52 = vpop.f32.mrb[95].mxu1  ;;  %v7356_v63 = vpop.f32.mrb[97].mxu0  ;;  %v7847_v29 = vrot.slane %v7846_v62, 1 }
 0x45e   :  { %v7879_v10 = vrot.slane %v7878_v32, 4  ;;  %v7885_v11 = vadd.f32 %v7643_v4, %v7642_v25  ;;  %v10523_v33 = vadd.f32 %v7344_v15, %v4536_v52  ;;  %v7838_v15 = vrot.slane %v7837_v59, 1 }
 0x45f   :  { %v7645_v47 = vmul.f32 %v13466_v43, %v10522_v45  ;;  %v7874_v3 = vrot.slane %v7873_v23, 1  ;;  %v13498_v26 = vadd.f32 %v7847_v29, %v7846_v62 }
 0x460   :  { %v7880_v24 = vadd.f32 %v7879_v10, %v7878_v32  ;;  %v7644_v20 = vmul.f32 %v13463_v17, %v10523_v33  ;;  %v9734_v37 = vpop.f32.mrb[96].mxu1  ;;  %v10337_v39 = vpop.f32.mrb[98].mxu0  ;;  %v13493_v52 = vadd.f32 %v7838_v15, %v7837_v59 }
 0x461   :  { %v10524_v16 = vadd.f32 %v10334_v14, %v9734_v37  ;;  %v4550_v54 = vpop.f32.mrb[97].mxu1  ;;  %v7368_v19 = vpop.f32.mrb[99].mxu0 }
 0x462   :  { %v7881_v1 = vrot.slane %v7880_v24, 2  ;;  %v7886_v5 = vadd.f32 %v7885_v11, %v7644_v20  ;;  %v10525_v27 = vadd.f32 %v7356_v63, %v4550_v54  ;;  %v13495_v63 = vadd.f32 %v7829_v22, %v7828_v61 }
 0x463   :  { %v7647_v40 = vmul.f32 %v13455_v9, %v10524_v16  ;;  %v13500_v20 = vadd.f32 %v7856_v12, %v7855_v41 }
 0x464   :  { %v7887_v18 = vadd.f32 %v7886_v5, %v7645_v47  ;;  %v7646_v58 = vmul.f32 %v13460_v57, %v10525_v27  ;;  %v9737_v4 = vpop.f32.mrb[98].mxu1  ;;  %v10340_v55 = vpop.f32.mrb[100].mxu0  ;;  %v7882_v14 = vadd.f32 %v7881_v1, %v7880_v24  ;;  %v13504_v47 = vadd.f32 %v7865_v46, %v7864_v42 }
 0x465   :  { %v10526_v32 = vadd.f32 %v10337_v39, %v9737_v4  ;;  %v4564_v25 = vpop.f32.mrb[99].mxu1  ;;  %v7380_v6 = vpop.f32.mrb[101].mxu0  ;;  %v8019_v62 = vsel %vm7998_vm1, %v13493_v52, %v13495_v63 }
 0x466   :  { %v7888_v28 = vrot.slane %v7887_v18, 4  ;;  %v7894_v31 = vadd.f32 %v7647_v40, %v7646_v58  ;;  %v10527_v45 = vadd.f32 %v7368_v19, %v4564_v25  ;;  %v7883_v16 = vrot.slane %v7882_v14, 1 }
 0x467   :  { %v7649_v59 = vmul.f32 %v13466_v43, %v10526_v32  ;;  %v13512_v40 = vadd.f32 %v7874_v3, %v7873_v23  ;;  %v8020_v42 = vsel %vm8000_vm2, %v13498_v26, %v8019_v62 }
 0x468   :  { %v7889_v60 = vadd.f32 %v7888_v28, %v7887_v18  ;;  %v7648_v10 = vmul.f32 %v13463_v17, %v10527_v45  ;;  %v9740_v11 = vpop.f32.mrb[100].mxu1  ;;  %v10343_v33 = vpop.f32.mrb[102].mxu0  ;;  %v8021_v25 = vsel %vm8002_vm3, %v13500_v20, %v8020_v42 }
 0x469   :  { %v10528_v37 = vadd.f32 %v10340_v55, %v9740_v11  ;;  %v4578_v24 = vpop.f32.mrb[101].mxu1  ;;  %v7392_v39 = vpop.f32.mrb[103].mxu0  ;;  %v13514_v55 = vadd.f32 %v7883_v16, %v7882_v14 }
 0x46a   :  { %v7895_v54 = vadd.f32 %v7894_v31, %v7648_v10  ;;  %v10529_v19 = vadd.f32 %v7380_v6, %v4578_v24  ;;  %v7890_v61 = vrot.slane %v7889_v60, 2  ;;  %v8022_v6 = vsel %vm8004_vm4, %v13504_v47, %v8021_v25 }
 0x46b   :  { %v7651_v1 = vmul.f32 %v13455_v9, %v10528_v37  ;;  %14618 = vst [vmem:[#allocation46_spill] sm:$0xff] %v13514_v55  ;;  %v8023_v14 = vsel %vm8006_vm5, %v13512_v40, %v8022_v6 }
 0x46c   :  { %v13509_v5 = vadd.f32 %v7895_v54, %v7649_v59  ;;  %v7650_v41 = vmul.f32 %v13460_v57, %v10529_v19  ;;  %v9743_v27 = vpop.f32.mrb[102].mxu1  ;;  %v10346_v15 = vpop.f32.mrb[104].mxu0  ;;  %v7891_v22 = vadd.f32 %v7890_v61, %v7889_v60  ;;  %v8024_v11 = vsel %vm8008_vm6, %v13514_v55, %v8023_v14 }
 0x46d   :  { %v10530_v18 = vadd.f32 %v10343_v33, %v9743_v27  ;;  %v4592_v58 = vpop.f32.mrb[103].mxu1  ;;  %v7404_v4 = vpop.f32.mrb[105].mxu0 }
 0x46e   :  { %v7903_v29 = vadd.f32 %v7651_v1, %v7650_v41  ;;  %v10531_v12 = vadd.f32 %v7392_v39, %v4592_v58  ;;  %v7892_v32 = vrot.slane %v7891_v22, 1 }
 0x46f   :  { %v7653_v33 = vmul.f32 %v13466_v43, %v10530_v18 }
 0x470   :  { %v7652_v23 = vmul.f32 %v13463_v17, %v10531_v12  ;;  %v9746_v28 = vpop.f32.mrb[104].mxu1  ;;  %v10349_v31 = vpop.f32.mrb[106].mxu0  ;;  %v13523_v45 = vadd.f32 %v7892_v32, %v7891_v22 }
 0x471   :  { %v10532_v46 = vadd.f32 %v10346_v15, %v9746_v28  ;;  %v4606_v60 = vpop.f32.mrb[105].mxu1  ;;  %v7416_v10 = vpop.f32.mrb[107].mxu0 }
 0x472   :  { %14619 = vst [vmem:[#allocation48_spill] sm:$0xff] %v13523_v45  ;;  %v7904_v3 = vadd.f32 %v7903_v29, %v7652_v23  ;;  %v10533_v37 = vadd.f32 %v7404_v4, %v4606_v60  ;;  %v13532_v24 = vsel %vm8010_vm7, %v13523_v45, %v8024_v11 }
 0x473   :  { %14620 = vst [vmem:[#allocation50_spill] sm:$0xff] %v13532_v24  ;;  %v7655_v39 = vmul.f32 %v13455_v9, %v10532_v46  ;;  %8041 = vadd.xlane.f32.xlu1 %v13532_v24 }
 0x474   :  { %v7905_v16 = vadd.f32 %v7904_v3, %v7653_v33  ;;  %v7654_v59 = vmul.f32 %v13460_v57, %v10533_v37  ;;  %v9749_v54 = vpop.f32.mrb[106].mxu1  ;;  %v10352_v19 = vpop.f32.mrb[108].mxu0  ;;  %v8273_v37 = vlaneseq }
 0x475   :  { %v10534_v61 = vadd.f32 %v10349_v31, %v9749_v54  ;;  %v4620_v1 = vpop.f32.mrb[107].mxu1  ;;  %v7428_v62 = vpop.f32.mrb[109].mxu0 }
 0x476   :  { %v7912_v41 = vadd.f32 %v7655_v39, %v7654_v59  ;;  %v10535_v27 = vadd.f32 %v7416_v10, %v4620_v1 }
 0x477   :  { %v7657_v29 = vmul.f32 %v13466_v43, %v10534_v61 }
 0x478   :  { %v7656_v15 = vmul.f32 %v13463_v17, %v10535_v27  ;;  %v9752_v22 = vpop.f32.mrb[108].mxu1  ;;  %v10355_v18 = vpop.f32.mrb[110].mxu0  ;;  %v7906_v27 = vrot.slane %v7905_v16, 4 }
 0x479   :  { %v10536_v58 = vadd.f32 %v10352_v19, %v9752_v22  ;;  %v4634_v4 = vpop.f32.mrb[109].mxu1  ;;  %v7440_v42 = vpop.f32.mrb[111].mxu0 }
 0x47a   :  { %v7913_v12 = vadd.f32 %v7912_v41, %v7656_v15  ;;  %v10537_v32 = vadd.f32 %v7428_v62, %v4634_v4  ;;  %v7897_v41 = vrot.slane %v13509_v5, 4 }
 0x47b   :  { %v7659_v25 = vmul.f32 %v13455_v9, %v10536_v58  ;;  %v8276_v58 = vand.u32 127, %v8273_v37 }
 0x47c   :  { %v7914_v6 = vadd.f32 %v7913_v12, %v7657_v29  ;;  %v7658_v23 = vmul.f32 %v13460_v57, %v10537_v32  ;;  %v9755_v28 = vpop.f32.mrb[110].mxu1  ;;  %v10358_v31 = vpop.f32.mrb[112].mxu0 }
 0x47d   :  { %v10538_v14 = vadd.f32 %v10355_v18, %v9755_v28  ;;  %v4648_v46 = vpop.f32.mrb[111].mxu1  ;;  %v7452_v60 = vpop.f32.mrb[113].mxu0  ;;  %v8274_v18 = vshrl.u32 %v8273_v37, 7 }
 0x47e   :  { %v7921_v10 = vadd.f32 %v7659_v25, %v7658_v23  ;;  %v10539_v11 = vadd.f32 %v7440_v42, %v4648_v46 }
 0x47f   :  { %v7661_v19 = vmul.f32 %v13466_v43, %v10538_v14  ;;  %v13551_v14 = vadd.f32 %v7906_v27, %v7905_v16  ;;  %vm8277_vm8 = vcmp.eq.s32.totalorder %v8274_v18, %v8276_v58 }
 0x480   :  { %v7660_v33 = vmul.f32 %v13463_v17, %v10539_v11  ;;  %v10361_v3 = vpop.f32.mrb[114].mxu0  ;;  %v8038_v39 = vpop.xlane.xlu0 %8037 }
 0x481   :  { %11080 = vrcp.f32 %v8038_v39  ;;  %v9758_v59 = vpop.f32.mrb[112].mxu1  ;;  %v7464_v54 = vpop.f32.mrb[115].mxu0 }
 0x482   :  { %v7922_v61 = vadd.f32 %v7921_v10, %v7660_v33  ;;  %v10540_v1 = vadd.f32 %v10358_v31, %v9758_v59  ;;  %v4662_v62 = vpop.f32.mrb[113].mxu1  ;;  %v13549_v31 = vadd.f32 %v7897_v41, %v13509_v5 }
 0x483   :  { %v10541_v15 = vadd.f32 %v7452_v60, %v4662_v62  ;;  %v7915_v60 = vrot.slane %v7914_v6, 4  ;;  %v11217_v62 = vmov 0.0  }
 0x484   :  { %v13544_v22 = vadd.f32 %v7922_v61, %v7661_v19  ;;  %v7663_v4 = vmul.f32 %v13455_v9, %v10540_v1  ;;  %v9761_v42 = vpop.f32.mrb[114].mxu1  ;;  %v10364_v29 = vpop.f32.mrb[116].mxu0  ;;  %v13556_v16 = vsel %vm8277_vm8, 1.0, %v11217_v62 }
 0x485   :  { %v7662_v12 = vmul.f32 %v13460_v57, %v10541_v15  ;;  %v10542_v32 = vadd.f32 %v10361_v3, %v9761_v42  ;;  %v4676_v25 = vpop.f32.mrb[115].mxu1  ;;  %v7476_v23 = vpop.f32.mrb[117].mxu0  ;;  %v13558_v41 = vadd.f32 %v7915_v60, %v7914_v6 }
 0x486   :  { %v10543_v28 = vadd.f32 %v7464_v54, %v4676_v25 }
 0x487   :  { %v7930_v46 = vadd.f32 %v7663_v4, %v7662_v12  ;;  %v7665_v6 = vmul.f32 %v13466_v43, %v10542_v32 }
 0x488   :  { %v7664_v10 = vmul.f32 %v13463_v17, %v10543_v28  ;;  %v9764_v11 = vpop.f32.mrb[116].mxu1  ;;  %v10367_v33 = vpop.f32.mrb[118].mxu0 }
 0x489   :  { %v10544_v37 = vadd.f32 %v10364_v29, %v9764_v11  ;;  %v4690_v59 = vpop.f32.mrb[117].mxu1  ;;  %v7488_v19 = vpop.f32.mrb[119].mxu0 }
 0x48a   :  { %v7931_v61 = vadd.f32 %v7930_v46, %v7664_v10  ;;  %v10545_v3 = vadd.f32 %v7476_v23, %v4690_v59  ;;  %v8053_v46 = vmul.f32 %v8038_v39, %v13368_v53 }
 0x48b   :  { %v11081_v1 = vpop.eup %11080  ;;  %v7667_v54 = vmul.f32 %v13455_v9, %v10544_v37 }
 0x48c   :  { %v8065_v27 = vrot.slane %v11081_v1, 1  ;;  %v8066_v15 = vrot.slane %v11081_v1, 2  ;;  %v8067_v18 = vrot.slane %v11081_v1, 3  ;;  %v9767_v58 = vpop.f32.mrb[118].mxu1  ;;  %v10370_v4 = vpop.f32.mrb[120].mxu0  ;;  %v8068_v42 = vrot.slane %v11081_v1, 4 }
 0x48d   :  { %v8069_v29 = vrot.slane %v11081_v1, 5  ;;  %v8070_v12 = vrot.slane %v11081_v1, 6  ;;  %v8071_v25 = vrot.slane %v11081_v1, 7  ;;  %v4704_v23 = vpop.f32.mrb[119].mxu1  ;;  %v7500_v28 = vpop.f32.mrb[121].mxu0  ;;  %v8125_v5 = vmul.f32 %v11081_v1, %v13331_v35 }
 0x48e   :  { %v8126_v10 = vmul.f32 %v8065_v27, %v13329_v44  ;;  %v8127_v11 = vmul.f32 %v8066_v15, %v13334_v13  ;;  %v8128_v60 = vmul.f32 %v8067_v18, %v13336_v50  ;;  %v8129_v59 = vmul.f32 %v8068_v42, %v13340_v38 }
 0x48f   :  { %v8130_v62 = vmul.f32 %v8069_v29, %v13348_v0  ;;  %v8131_v24 = vmul.f32 %v8070_v12, %v13350_v2  ;;  %v7924_v13 = vrot.slane %v13544_v22, 4  ;;  %v8132_v32 = vmul.f32 %v8071_v25, %v13359_v34 }
 0x490   :  { %v8189_v45 = vrot.slane %v8126_v10, 7  ;;  %v8191_v53 = vrot.slane %v8127_v11, 6  ;;  %v9770_v39 = vpop.f32.mrb[120].mxu1  ;;  %v10373_v44 = vpop.f32.mrb[122].mxu0  ;;  %v8193_v50 = vrot.slane %v8128_v60, 5  ;;  %v8195_v27 = vrot.slane %v8129_v59, 4 }
 0x491   :  { %v4718_v38 = vpop.f32.mrb[121].mxu1  ;;  %v7512_v15 = vpop.f32.mrb[123].mxu0  ;;  %v8197_v37 = vrot.slane %v8130_v62, 3  ;;  %v7932_v18 = vadd.f32 %v7931_v61, %v7665_v6  ;;  %v7666_v35 = vmul.f32 %v13460_v57, %v10545_v3  ;;  %v10546_v1 = vadd.f32 %v10367_v33, %v9767_v58 }
 0x492   :  { %v8190_v0 = vsel %vm7998_vm1, %v8189_v45, %v8125_v5  ;;  %v10547_v42 = vadd.f32 %v7488_v19, %v4704_v23  ;;  %v10548_v29 = vadd.f32 %v10370_v4, %v9770_v39  ;;  %v8199_v10 = vrot.slane %v8131_v24, 2 }
 0x493   :  { %v8192_v2 = vsel %vm8000_vm2, %v8191_v53, %v8190_v0  ;;  %v7939_v11 = vadd.f32 %v7667_v54, %v7666_v35  ;;  %v10549_v34 = vadd.f32 %v7500_v28, %v4718_v38  ;;  %v8201_v55 = vrot.slane %v8132_v32, 1 }
 0x494   :  { %v8194_v12 = vsel %vm8002_vm3, %v8193_v50, %v8192_v2  ;;  %v9773_v25 = vpop.f32.mrb[122].mxu1  ;;  %v10376_v60 = vpop.f32.mrb[124].mxu0  ;;  %v7668_v45 = vmul.f32 %v13463_v17, %v10547_v42  ;;  %v7671_v61 = vmul.f32 %v13455_v9, %v10548_v29  ;;  %v7933_v19 = vrot.slane %v7932_v18, 4 }
 0x495   :  { %v8196_v59 = vsel %vm8004_vm4, %v8195_v27, %v8194_v12  ;;  %v4732_v3 = vpop.f32.mrb[123].mxu1  ;;  %v7524_v5 = vpop.f32.mrb[125].mxu0  ;;  %v7670_v58 = vmul.f32 %v13460_v57, %v10549_v34  ;;  %v10550_v4 = vadd.f32 %v10373_v44, %v9773_v25  ;;  %v7669_v54 = vmul.f32 %v13466_v43, %v10546_v1 }
 0x496   :  { %v8198_v33 = vsel %vm8006_vm5, %v8197_v37, %v8196_v59  ;;  %v7940_v23 = vadd.f32 %v7939_v11, %v7668_v45  ;;  %v10551_v28 = vadd.f32 %v7512_v15, %v4732_v3  ;;  %v7925_v6 = vadd.f32 %v7924_v13, %v13544_v22 }
 0x497   :  { %v8200_v24 = vsel %vm8008_vm6, %v8199_v10, %v8198_v33  ;;  %vm8057_vm10 = vcmp.gt.f32.partialorder %v8053_v46, 0.0  ;;  %v7948_v53 = vadd.f32 %v7671_v61, %v7670_v58  ;;  %v7934_v15 = vadd.f32 %v7933_v19, %v7932_v18 }
 0x498   :  { %v8202_v62 = vsel %vm8010_vm7, %v8201_v55, %v8200_v24  ;;  %v9776_v39 = vpop.f32.mrb[124].mxu1  ;;  %v10379_v32 = vpop.f32.mrb[126].mxu0  ;;  %v7941_v27 = vadd.f32 %v7940_v23, %v7669_v54  ;;  %v7672_v38 = vmul.f32 %v13463_v17, %v10551_v28  ;;  %v7673_v46 = vmul.f32 %v13466_v43, %v10550_v4 }
 0x499   :  { %v8249_v50 = vsel %vm8057_vm10, %v8202_v62, 0.0  ;;  %v10552_v0 = vadd.f32 %v10376_v60, %v9776_v39  ;;  %v4746_v44 = vpop.f32.mrb[125].mxu1  ;;  %v7536_v37 = vpop.f32.mrb[127].mxu0  ;;  %v7917_v42 = vrot.slane %v13558_v41, 2  ;;  %v7926_v45 = vrot.slane %v7925_v6, 2 }
 0x49a   :  { %v8257_v35 = vcombine.high %v8249_v50, %v8249_v50  ;;  %8265 = vst [vmem:[#allocation8] sm:$0xf] %v8249_v50  ;;  %v8280_v2 = vmul.f32 %v13556_v16, %v8249_v50  ;;  %v10553_v1 = vadd.f32 %v7524_v5, %v4746_v44  ;;  %v7942_v22 = vrot.slane %v7941_v27, 4 }
 0x49b   :  { %v7949_v55 = vadd.f32 %v7948_v53, %v7672_v38  ;;  %v7675_v13 = vmul.f32 %v13455_v9, %v10552_v0  ;;  %v7935_v19 = vrot.slane %v7934_v15, 2  ;;  %v14621_v4 = vrot.slane %v13551_v14, 2 }
 0x49c   :  { %8266 = vst [vmem:[#allocation8 + $0x4] sm:$0xf] %v8257_v35  ;;  %v8281_v29 = vmul.f32 %v13556_v16, %v8257_v35  ;;  %v8289_v12 = vsel %vm8288_vm9, %v8280_v2, 0.0  ;;  %v7674_v10 = vmul.f32 %v13460_v57, %v10553_v1  ;;  %v9779_v11 = vpop.f32.mrb[126].mxu1  ;;  %v7943_v25 = vadd.f32 %v7942_v22, %v7941_v27 }
 0x49d   :  { %v8290_v34 = vrot.slane %v8289_v12, 4  ;;  %v7950_v18 = vadd.f32 %v7949_v55, %v7673_v46  ;;  %v10554_v60 = vadd.f32 %v10379_v32, %v9779_v11  ;;  %v4760_v59 = vpop.f32.mrb[127].mxu1  ;;  %v7909_v24 = vadd.f32 %v14621_v4, %v13551_v14 }
 0x49e   :  { %v8296_v61 = vsel %vm8288_vm9, %v8281_v29, 0.0  ;;  %v7957_v3 = vadd.f32 %v7675_v13, %v7674_v10  ;;  %v10555_v9 = vadd.f32 %v7536_v37, %v4760_v59  ;;  %v7944_v57 = vrot.slane %v7943_v25, 2 }
 0x49f   :  { %v8291_v5 = vadd.f32 %v8290_v34, %v8289_v12  ;;  %v8297_v33 = vrot.slane %v8296_v61, 4  ;;  %v7951_v58 = vrot.slane %v7950_v18, 4  ;;  %v7918_v23 = vadd.f32 %v7917_v42, %v13558_v41 }
 0x4a0   :  { %v7676_v54 = vmul.f32 %v13463_v17, %v10555_v9  ;;  %v14622_v39 = vrot.slane %v13549_v31, 2  ;;  %v7927_v50 = vadd.f32 %v7926_v45, %v7925_v6  ;;  %v7677_v27 = vmul.f32 %v13466_v43, %v10554_v60 }
 0x4a1   :  { %v8292_v28 = vrot.slane %v8291_v5, 2  ;;  %v8298_v62 = vadd.f32 %v8297_v33, %v8296_v61  ;;  %v7952_v53 = vadd.f32 %v7951_v58, %v7950_v18  ;;  %v7936_v37 = vadd.f32 %v7935_v19, %v7934_v15 }
 0x4a2   :  { %v7900_v32 = vadd.f32 %v14622_v39, %v13549_v31  ;;  %v7958_v38 = vadd.f32 %v7957_v3, %v7676_v54  ;;  %v7910_v35 = vrot.slane %v7909_v24, 1  ;;  %v7945_v2 = vadd.f32 %v7944_v57, %v7943_v25 }
 0x4a3   :  { %v8293_v0 = vadd.f32 %v8292_v28, %v8291_v5  ;;  %v8299_v44 = vrot.slane %v8298_v62, 2  ;;  %v7953_v14 = vrot.slane %v7952_v53, 2  ;;  %v7919_v1 = vrot.slane %v7918_v23, 1 }
 0x4a4   :  { %v7959_v17 = vadd.f32 %v7958_v38, %v7677_v27  ;;  %v7901_v55 = vrot.slane %v7900_v32, 1  ;;  %v7928_v13 = vrot.slane %v7927_v50, 1  ;;  %v7937_v6 = vrot.slane %v7936_v37, 1 }
 0x4a5   :  { %v8294_v41 = vrot.slane %v8293_v0, 1  ;;  %v8300_v22 = vadd.f32 %v8299_v44, %v8298_v62  ;;  %v7954_v46 = vadd.f32 %v7953_v14, %v7952_v53  ;;  %v13603_v12 = vadd.f32 %v7910_v35, %v7909_v24 }
 0x4a6   :  { %v7960_v42 = vrot.slane %v7959_v17, 4  ;;  %v7946_v10 = vrot.slane %v7945_v2, 1  ;;  %v13605_v11 = vadd.f32 %v7919_v1, %v7918_v23  ;;  %v13607_v25 = vadd.f32 %v7901_v55, %v7900_v32 }
 0x4a7   :  { %v8295_v29 = vadd.f32 %v8294_v41, %v8293_v0  ;;  %v8301_v31 = vrot.slane %v8300_v22, 1  ;;  %v7955_v34 = vrot.slane %v7954_v46, 1  ;;  %v13609_v18 = vadd.f32 %v7928_v13, %v7927_v50 }
 0x4a8   :  { %v7961_v43 = vadd.f32 %v7960_v42, %v7959_v17  ;;  %v13611_v59 = vadd.f32 %v7937_v6, %v7936_v37  ;;  %v13613_v45 = vadd.f32 %v7946_v10, %v7945_v2  ;;  %v8026_v3 = vsel %vm7998_vm1, %v13603_v12, %v13607_v25 }
 0x4a9   :  { %v8302_v15 = vadd.f32 %v8301_v31, %v8300_v22  ;;  %8345 = vst [vmem:[#allocation9] sm:$0x1] %v8295_v29  ;;  %v13618_v9 = vadd.f32 %v7955_v34, %v7954_v46  ;;  %v8027_v5 = vsel %vm8000_vm2, %v13605_v11, %v8026_v3 }
 0x4aa   :  { %v7962_v60 = vrot.slane %v7961_v43, 2  ;;  %v8028_v19 = vsel %vm8002_vm3, %v13609_v18, %v8027_v5 }
 0x4ab   :  { %8346 = vst [vmem:[#allocation9 + $0x1] sm:$0x1] %v8302_v15  ;;  %v8029_v58 = vsel %vm8004_vm4, %v13611_v59, %v8028_v19 }
 0x4ac   :  { %v7963_v61 = vadd.f32 %v7962_v60, %v7961_v43  ;;  %v8030_v24 = vsel %vm8006_vm5, %v13613_v45, %v8029_v58 }
 0x4ad   :  { %v8031_v57 = vsel %vm8008_vm6, %v13618_v9, %v8030_v24 }
 0x4ae   :  { %v7964_v33 = vrot.slane %v7963_v61, 1 }
 0x4b0   :  { %v13626_v4 = vadd.f32 %v7964_v33, %v7963_v61 }
 0x4b2   :  { %v13634_v54 = vsel %vm8010_vm7, %v13626_v4, %v8031_v57 }
 0x4b3   :  { %8043 = vadd.xlane.f32.xlu1 %v13634_v54 }
 0x4c0   :  { %v8040_v23 = vpop.xlane.xlu0 %8039 }
 0x4c1   :  { %11082 = vrcp.f32 %v8040_v23 }
 0x4cb   :  { %v11083_v28 = vpop.eup %11082 }
 0x4cc   :  { %v8072_v62 = vrot.slane %v11083_v28, 1  ;;  %v8073_v53 = vrot.slane %v11083_v28, 2  ;;  %v8074_v39 = vrot.slane %v11083_v28, 3  ;;  %v8075_v32 = vrot.slane %v11083_v28, 4 }
 0x4cd   :  { %v8076_v50 = vrot.slane %v11083_v28, 5  ;;  %v8077_v27 = vrot.slane %v11083_v28, 6  ;;  %v8078_v38 = vrot.slane %v11083_v28, 7  ;;  %v8133_v35 = vmul.f32 %v11083_v28, %v13409_v36 }
 0x4ce   :  { %v8134_v0 = vmul.f32 %v8072_v62, %v13407_v56  ;;  %v8135_v44 = vmul.f32 %v8073_v53, %v13412_v8  ;;  %v8136_v37 = vmul.f32 %v8074_v39, %v13414_v7  ;;  %v8137_v14 = vmul.f32 %v8075_v32, %v13418_v49 }
 0x4cf   :  { %v8138_v2 = vmul.f32 %v8076_v50, %v13426_v21  ;;  %v8139_v41 = vmul.f32 %v8077_v27, %v13428_v48  ;;  %v8140_v22 = vmul.f32 %v8078_v38, %v13437_v30  ;;  %v8054_v7 = vmul.f32 %v8040_v23, %v13446_v51 }
 0x4d0   :  { %v8203_v17 = vrot.slane %v8134_v0, 7  ;;  %v8205_v1 = vrot.slane %v8135_v44, 6  ;;  %v8207_v55 = vrot.slane %v8136_v37, 5  ;;  %v8209_v8 = vrot.slane %v8137_v14, 4 }
 0x4d1   :  { %v8211_v13 = vrot.slane %v8138_v2, 3  ;;  %v8213_v21 = vrot.slane %v8139_v41, 2  ;;  %v8215_v29 = vrot.slane %v8140_v22, 1  ;;  %vm8058_vm11 = vcmp.gt.f32.partialorder %v8054_v7, 0.0 }
 0x4d2   :  { %v8204_v46 = vsel %vm7998_vm1, %v8203_v17, %v8133_v35 }
 0x4d3   :  { %v8206_v56 = vsel %vm8000_vm2, %v8205_v1, %v8204_v46  ;;  %v14623_v46 = vld [vmem:[#allocation46_spill] sm:$0xff] }
 0x4d4   :  { %v8208_v49 = vsel %vm8002_vm3, %v8207_v55, %v8206_v56  ;;  %v14624_v56 = vld [vmem:[#allocation48_spill] sm:$0xff] }
 0x4d5   :  { %v8210_v36 = vsel %vm8004_vm4, %v8209_v8, %v8208_v49 }
 0x4d6   :  { %v8212_v42 = vsel %vm8006_vm5, %v8211_v13, %v8210_v36  ;;  %v14625_v13 = vld [vmem:[#allocation50_spill] sm:$0xff] }
 0x4d7   :  { %v8214_v48 = vsel %vm8008_vm6, %v8213_v21, %v8212_v42 }
 0x4d8   :  { %v8216_v30 = vsel %vm8010_vm7, %v8215_v29, %v8214_v48 }
 0x4d9   :  { %v8250_v31 = vsel %vm8058_vm11, %v8216_v30, 0.0 }
 0x4da   :  { %v8258_v6 = vcombine.high %v8250_v31, %v8250_v31  ;;  %8267 = vst [vmem:[#allocation8 + $0x8] sm:$0xf] %v8250_v31  ;;  %v8282_v43 = vmul.f32 %v13556_v16, %v8250_v31 }
 0x4dc   :  { %8268 = vst [vmem:[#allocation8 + $0xc] sm:$0xf] %v8258_v6  ;;  %v8283_v51 = vmul.f32 %v13556_v16, %v8258_v6  ;;  %v8303_v10 = vsel %vm8288_vm9, %v8282_v43, 0.0 }
 0x4dd   :  { %v8304_v15 = vrot.slane %v8303_v10, 4 }
 0x4de   :  { %v8310_v34 = vsel %vm8288_vm9, %v8283_v51, 0.0 }
 0x4df   :  { %v8305_v60 = vadd.f32 %v8304_v15, %v8303_v10  ;;  %v8311_v61 = vrot.slane %v8310_v34, 4 }
 0x4e1   :  { %v8306_v3 = vrot.slane %v8305_v60, 2  ;;  %v8312_v5 = vadd.f32 %v8311_v61, %v8310_v34 }
 0x4e3   :  { %v8307_v33 = vadd.f32 %v8306_v3, %v8305_v60  ;;  %v8313_v19 = vrot.slane %v8312_v5, 2 }
 0x4e5   :  { %v8308_v58 = vrot.slane %v8307_v33, 1  ;;  %v8314_v24 = vadd.f32 %v8313_v19, %v8312_v5 }
 0x4e7   :  { %v8309_v57 = vadd.f32 %v8308_v58, %v8307_v33  ;;  %v8315_v23 = vrot.slane %v8314_v24, 1 }
 0x4e9   :  { %v8316_v28 = vadd.f32 %v8315_v23, %v8314_v24  ;;  %8347 = vst [vmem:[#allocation9 + $0x2] sm:$0x1] %v8309_v57 }
 0x4eb   :  { %8348 = vst [vmem:[#allocation9 + $0x3] sm:$0x1] %v8316_v28 }
 0x500   :  { %v8042_v62 = vpop.xlane.xlu1 %8041 }
 0x501   :  { %11084 = vrcp.f32 %v8042_v62 }
 0x50b   :  { %v11085_v53 = vpop.eup %11084 }
 0x50c   :  { %v8079_v39 = vrot.slane %v11085_v53, 1  ;;  %v8080_v32 = vrot.slane %v11085_v53, 2  ;;  %v8081_v50 = vrot.slane %v11085_v53, 3  ;;  %v8082_v27 = vrot.slane %v11085_v53, 4 }
 0x50d   :  { %v8083_v38 = vrot.slane %v11085_v53, 5  ;;  %v8084_v0 = vrot.slane %v11085_v53, 6  ;;  %v8085_v44 = vrot.slane %v11085_v53, 7  ;;  %v8141_v17 = vmul.f32 %v11085_v53, %v13495_v63 }
 0x50e   :  { %v8142_v37 = vmul.f32 %v8079_v39, %v13493_v52  ;;  %v8143_v14 = vmul.f32 %v8080_v32, %v13498_v26  ;;  %v8144_v35 = vmul.f32 %v8081_v50, %v13500_v20  ;;  %v8145_v2 = vmul.f32 %v8082_v27, %v13504_v47 }
 0x50f   :  { %v8146_v1 = vmul.f32 %v8083_v38, %v13512_v40  ;;  %v8147_v55 = vmul.f32 %v8084_v0, %v14623_v46  ;;  %v8148_v8 = vmul.f32 %v8085_v44, %v14624_v56  ;;  %v8055_v20 = vmul.f32 %v8042_v62, %v14625_v13 }
 0x510   :  { %v8217_v41 = vrot.slane %v8142_v37, 7  ;;  %v8219_v22 = vrot.slane %v8143_v14, 6  ;;  %v8221_v49 = vrot.slane %v8144_v35, 5  ;;  %v8223_v26 = vrot.slane %v8145_v2, 4 }
 0x511   :  { %v8225_v36 = vrot.slane %v8146_v1, 3  ;;  %v8227_v40 = vrot.slane %v8147_v55, 2  ;;  %v8229_v42 = vrot.slane %v8148_v8, 1  ;;  %vm8059_vm12 = vcmp.gt.f32.partialorder %v8055_v20, 0.0 }
 0x512   :  { %v8218_v7 = vsel %vm7998_vm1, %v8217_v41, %v8141_v17 }
 0x513   :  { %v8220_v52 = vsel %vm8000_vm2, %v8219_v22, %v8218_v7 }
 0x514   :  { %v8222_v47 = vsel %vm8002_vm3, %v8221_v49, %v8220_v52 }
 0x515   :  { %v8224_v63 = vsel %vm8004_vm4, %v8223_v26, %v8222_v47 }
 0x516   :  { %v8226_v21 = vsel %vm8006_vm5, %v8225_v36, %v8224_v63 }
 0x517   :  { %v8228_v29 = vsel %vm8008_vm6, %v8227_v40, %v8226_v21 }
 0x518   :  { %v8230_v48 = vsel %vm8010_vm7, %v8229_v42, %v8228_v29 }
 0x519   :  { %v8251_v30 = vsel %vm8059_vm12, %v8230_v48, 0.0 }
 0x51a   :  { %v8259_v31 = vcombine.high %v8251_v30, %v8251_v30  ;;  %8269 = vst [vmem:[#allocation8 + $0x10] sm:$0xf] %v8251_v30  ;;  %v8284_v6 = vmul.f32 %v13556_v16, %v8251_v30 }
 0x51c   :  { %8270 = vst [vmem:[#allocation8 + $0x14] sm:$0xf] %v8259_v31  ;;  %v8285_v43 = vmul.f32 %v13556_v16, %v8259_v31  ;;  %v8317_v51 = vsel %vm8288_vm9, %v8284_v6, 0.0 }
 0x51d   :  { %v8318_v10 = vrot.slane %v8317_v51, 4 }
 0x51e   :  { %v8324_v15 = vsel %vm8288_vm9, %v8285_v43, 0.0 }
 0x51f   :  { %v8319_v34 = vadd.f32 %v8318_v10, %v8317_v51  ;;  %v8325_v60 = vrot.slane %v8324_v15, 4 }
 0x521   :  { %v8320_v61 = vrot.slane %v8319_v34, 2  ;;  %v8326_v3 = vadd.f32 %v8325_v60, %v8324_v15 }
 0x523   :  { %v8321_v5 = vadd.f32 %v8320_v61, %v8319_v34  ;;  %v8327_v33 = vrot.slane %v8326_v3, 2 }
 0x525   :  { %v8322_v19 = vrot.slane %v8321_v5, 1  ;;  %v8328_v58 = vadd.f32 %v8327_v33, %v8326_v3 }
 0x527   :  { %v8323_v24 = vadd.f32 %v8322_v19, %v8321_v5  ;;  %v8329_v57 = vrot.slane %v8328_v58, 1 }
 0x529   :  { %v8330_v23 = vadd.f32 %v8329_v57, %v8328_v58  ;;  %8349 = vst [vmem:[#allocation9 + $0x4] sm:$0x1] %v8323_v24 }
 0x52b   :  { %8350 = vst [vmem:[#allocation9 + $0x5] sm:$0x1] %v8330_v23 }
 0x540   :  { %v8044_v28 = vpop.xlane.xlu1 %8043 }
 0x541   :  { %11086 = vrcp.f32 %v8044_v28 }
 0x54b   :  { %v11087_v62 = vpop.eup %11086 }
 0x54c   :  { %v8086_v53 = vrot.slane %v11087_v62, 1  ;;  %v8087_v39 = vrot.slane %v11087_v62, 2  ;;  %v8088_v32 = vrot.slane %v11087_v62, 3  ;;  %v8089_v50 = vrot.slane %v11087_v62, 4 }
 0x54d   :  { %v8090_v27 = vrot.slane %v11087_v62, 5  ;;  %v8091_v38 = vrot.slane %v11087_v62, 6  ;;  %v8092_v0 = vrot.slane %v11087_v62, 7  ;;  %v8149_v2 = vmul.f32 %v11087_v62, %v13607_v25 }
 0x54e   :  { %v8150_v44 = vmul.f32 %v8086_v53, %v13603_v12  ;;  %v8151_v37 = vmul.f32 %v8087_v39, %v13605_v11  ;;  %v8152_v14 = vmul.f32 %v8088_v32, %v13609_v18  ;;  %v8153_v35 = vmul.f32 %v8089_v50, %v13611_v59 }
 0x54f   :  { %v8154_v17 = vmul.f32 %v8090_v27, %v13613_v45  ;;  %v8155_v22 = vmul.f32 %v8091_v38, %v13618_v9  ;;  %v8156_v46 = vmul.f32 %v8092_v0, %v13626_v4  ;;  %v8056_v18 = vmul.f32 %v8044_v28, %v13634_v54 }
 0x550   :  { %v8231_v1 = vrot.slane %v8150_v44, 7  ;;  %v8233_v41 = vrot.slane %v8151_v37, 6  ;;  %v8235_v56 = vrot.slane %v8152_v14, 5  ;;  %v8237_v11 = vrot.slane %v8153_v35, 4 }
 0x551   :  { %v8239_v8 = vrot.slane %v8154_v17, 3  ;;  %v8241_v45 = vrot.slane %v8155_v22, 2  ;;  %v8243_v49 = vrot.slane %v8156_v46, 1  ;;  %vm8060_vm13 = vcmp.gt.f32.partialorder %v8056_v18, 0.0 }
 0x552   :  { %v8232_v55 = vsel %vm7998_vm1, %v8231_v1, %v8149_v2 }
 0x553   :  { %v8234_v12 = vsel %vm8000_vm2, %v8233_v41, %v8232_v55 }
 0x554   :  { %v8236_v59 = vsel %vm8002_vm3, %v8235_v56, %v8234_v12 }
 0x555   :  { %v8238_v25 = vsel %vm8004_vm4, %v8237_v11, %v8236_v59 }
 0x556   :  { %v8240_v7 = vsel %vm8006_vm5, %v8239_v8, %v8238_v25 }
 0x557   :  { %v8242_v9 = vsel %vm8008_vm6, %v8241_v45, %v8240_v7 }
 0x558   :  { %v8244_v4 = vsel %vm8010_vm7, %v8243_v49, %v8242_v9 }
 0x559   :  { %v8252_v52 = vsel %vm8060_vm13, %v8244_v4, 0.0 }
 0x55a   :  { %v8260_v26 = vcombine.high %v8252_v52, %v8252_v52  ;;  %8271 = vst [vmem:[#allocation8 + $0x18] sm:$0xf] %v8252_v52  ;;  %v8286_v54 = vmul.f32 %v13556_v16, %v8252_v52 }
 0x55c   :  { %8272 = vst [vmem:[#allocation8 + $0x1c] sm:$0xf] %v8260_v26  ;;  %v8287_v13 = vmul.f32 %v13556_v16, %v8260_v26  ;;  %v8331_v20 = vsel %vm8288_vm9, %v8286_v54, 0.0 }
 0x55d   :  { %v8332_v47 = vrot.slane %v8331_v20, 4 }
 0x55e   :  { %11171 = shalt.err (!%p11168_p0)
}
 0x55f   :  { %s11172_s29 = scalar_lea.hbm %s13724_s3, 512 }
 0x560   :  { %p11173_p1 = scmp.ne.s32.totalorder %s13724_s3, %s11172_s29  ;;  %p11176_p2 = scmp.lt.u32.totalorder %s11172_s29, %s13724_s3 }
 0x562   :  { %p11178_p3 = pnand %p11176_p2, %p11173_p1 }
 0x564   :  { %11181 = shalt.err (!%p11178_p3)
}
 0x565   :  { %s11219_s8 = smov 64   ;;  %s11220_s9 = smov 4   ;;  %v8338_v16 = vsel %vm8288_vm9, %v8287_v13, 0.0  ;;  %v8333_v36 = vadd.f32 %v8332_v47, %v8331_v20 }
 0x566   :  { %8364 = dma.vmem_to_hbm [thread:$0]  %s8359_s25, 512, %s13724_s3, [#allocation4], %s11219_s8, %s11219_s8, %s11220_s9   ;;  %v8339_v63 = vrot.slane %v8338_v16, 4 }
 0x567   :  { %v8334_v40 = vrot.slane %v8333_v36, 2  ;;  %s11221_s12 = smov [#allocation9]  }
 0x568   :  { %v8340_v21 = vadd.f32 %v8339_v63, %v8338_v16  ;;  %s8370_s1 = sshll.u32 %s11221_s12, 4  ;;  %s8371_s1 = int_to_ptr.vmem [resolvable:$true] %s8370_s1 }
 0x569   :  { %v8335_v42 = vadd.f32 %v8334_v40, %v8333_v36  ;;  %s11182_s13 = scalar_lea.vmem %s8371_s1, 128  ;;  %p11187_p5 = scmp.lt.s32.totalorder %s8371_s1, %s8371_s1 }
 0x56a   :  { %v8341_v29 = vrot.slane %v8340_v21, 2  ;;  %p11183_p4 = scmp.ne.s32.totalorder %s8371_s1, %s11182_s13  ;;  %p11188_p6 = scmp.lt.s32.totalorder %s11182_s13, %s11182_s13 }
 0x56b   :  { %v8336_v48 = vrot.slane %v8335_v42, 1 }
 0x56c   :  { %v8342_v30 = vadd.f32 %v8341_v29, %v8340_v21  ;;  %p11189_p7 = por %p11188_p6, %p11187_p5 }
 0x56d   :  { %v8337_v31 = vadd.f32 %v8336_v48, %v8335_v42 }
 0x56e   :  { %v8343_v6 = vrot.slane %v8342_v30, 1  ;;  %p11190_p8 = pnand %p11189_p7, %p11183_p4 }
 0x56f   :  { %8351 = vst [vmem:[#allocation9 + $0x6] sm:$0x1] %v8337_v31 }
 0x570   :  { %v8344_v43 = vadd.f32 %v8343_v6, %v8342_v30 }
 0x572   :  { %8352 = vst [vmem:[#allocation9 + $0x7] sm:$0x1] %v8344_v43 }
 0x573   :  { %11193 = shalt.err (!%p11190_p8)
}
 0x574   :  { %s11194_s15 = scalar_lea.hbm %s13725_s4, 128 }
 0x575   :  { %p11195_p9 = scmp.ne.s32.totalorder %s13725_s4, %s11194_s15  ;;  %p11198_p10 = scmp.lt.u32.totalorder %s11194_s15, %s13725_s4 }
 0x577   :  { %p11200_p11 = pnand %p11198_p10, %p11195_p9 }
 0x579   :  { %11203 = shalt.err (!%p11200_p11)
}
 0x57a   :  { %s11222_s21 = smov 16   ;;  %s11223_s22 = smov 1  }
 0x57b   :  { %8376 = dma.vmem_to_hbm [thread:$0]  %s8371_s1, 128, %s13725_s4, [#allocation10], %s11222_s21, %s11222_s21, %s11223_s22  }
 0x57c   :  { %11208 = dma.done.wait [#allocation4], 512  }
 0x57d   :  { %11209 = vsyncadd [#allocation4], 4294966784 }
 0x57e   :  { %11210 = dma.done.wait [#allocation10], 128  }
 0x57f   :  { %11211 = vsyncadd [#allocation10], 4294967168 }
 0x580   :  { %8383 = vsyncpa [#allocation3], 1 }
 0x581   :  { %8384 = vsyncpa [#allocation6], 1 }
 0x582   :  { %8385 = vsyncpa [#allocation4], 1 }
 0x583   :  { %8386 = vsyncpa [#allocation10], 1 }

</bundles_post_ra>
